<compile_context>
chip_gen: v6e
topology: v6e:2x2x1
jax: 0.10.0
libtpu: 0.0.40
codegen_flags: <defaults>
</compile_context>

<pallas_src>
import functools
import math

import jax
import jax.numpy as jnp
from jax import lax
from jax.experimental import pallas as pl
from jax.experimental.pallas import tpu as pltpu


def _round_up(x, m):
    return ((x + m - 1) // m) * m


def _gaus_delta_term(delta):
    return math.sqrt(2.0 * (math.log(1.25) - math.log(delta)))


def _I32(v):
    """Python int -> int32 constant with two's-complement wrapping."""
    v &= 0xFFFFFFFF
    if v >= (1 << 31):
        v -= 1 << 32
    return jnp.int32(v)


def _detect_num_tensorcores():
    """1 on single-TC chips (v5e/v6e) / CPU, #cores on multi-TC parts (v7x)."""
    try:
        d = jax.devices()[0]
        if d.platform == "tpu":
            return max(1, int(getattr(d, "num_cores", 1) or 1))
    except Exception:
        pass
    return 1


def _pick_chunk(d):
    """K-chunk width for the inner noise+matmul loop."""
    if d <= 512:
        return d
    for ck in (512, 256, 128):
        if d % ck == 0:
            return ck
    return d  # fallback: single chunk


# ----------------------------------------------------------------------------
# In-kernel portable noise generation (counter-based hash PRNG)
# ----------------------------------------------------------------------------
def _hash32(x):
    """lowbias32-style integer finalizer; logical shifts emulated on int32."""
    x = x ^ ((x >> 16) & 0xFFFF)
    x = x * _I32(0x7FEB352D)
    x = x ^ ((x >> 15) & 0x1FFFF)
    x = x * _I32(0x846CA68B)
    x = x ^ ((x >> 16) & 0xFFFF)
    return x


def _erfinv_f32(t):
    """Giles (2010) single-precision erfinv approximation (mul/add/log/sqrt only)."""
    w = -jnp.log((1.0 - t) * (1.0 + t))
    ws = w - 2.5
    ps = jnp.float32(2.81022636e-08)
    for c in (3.43273939e-07, -3.5233877e-06, -4.39150654e-06, 0.00021858087,
              -0.00125372503, -0.00417768164, 0.246640727, 1.50140941):
        ps = jnp.float32(c) + ps * ws
    wb = jnp.sqrt(w) - 3.0
    pb = jnp.float32(-0.000200214257)
    for c in (0.000100950558, 0.00134934322, -0.00367342844, 0.00573950773,
              -0.0076224613, 0.00943887047, 1.00167406, 2.83297682):
        pb = jnp.float32(c) + pb * wb
    return jnp.where(w < 5.0, ps, pb) * t


def _noise_from_counters(ctr, sigma, mode):
    """int32 counters -> f32 noise with scale `sigma` (Laplace) / std `sigma` (Gaussian)."""
    h = _hash32(ctr)
    # 23 mantissa bits -> f in [1, 2)
    fbits = jnp.bitwise_or(jnp.bitwise_and(h, 0x007FFFFF), 0x3F800000)
    f = lax.bitcast_convert_type(fbits, jnp.float32)
    if mode == "laplace":
        u = 2.0 - f                                   # (0, 1], log never sees 0
        mag = jnp.log(u) * jnp.float32(-sigma)        # sigma * Exp(1) >= 0
        sbit = jnp.bitwise_and(h, _I32(0x80000000))   # random sign from bit 31
        bits = jnp.bitwise_or(lax.bitcast_convert_type(mag, jnp.int32), sbit)
        return lax.bitcast_convert_type(bits, jnp.float32)
    else:  # gaussian (inverse-CDF; tail truncated ~7 sigma by the clamp)
        t = jnp.clip(2.0 * f - 3.0, -0.9999997, 0.9999997)
        return jnp.float32(sigma * math.sqrt(2.0)) * _erfinv_f32(t)


# ----------------------------------------------------------------------------
# Pallas kernels
# ----------------------------------------------------------------------------
def _pixeldp_eval_kernel(seed_ref, c_ref, w_ref, preds_ref, counts_ref, *,
                         n_population, block_b, steps_per_split, chunk_k,
                         sigma, mode):
    """One grid step == block_b Monte-Carlo samples of forward_eval.

    seed_ref:   (1,)       int32 seed (SMEM, scalar prefetch)
    c_ref:      (1, C)     hoisted clean term x @ W + b (f32)
    w_ref:      (D, C)     classifier weight (bf16, resident across the grid)
    preds_ref:  (1, 1, C)  per-split accumulator: sum of logits
    counts_ref: (1, 1, C)  per-split accumulator: argmax vote counts
    """
    split = pl.program_id(0)
    step = pl.program_id(1)

    @pl.when(step == 0)
    def _():
        preds_ref[...] = jnp.zeros_like(preds_ref)
        counts_ref[...] = jnp.zeros_like(counts_ref)

    global_step = split * steps_per_split + step

    D, C = w_ref.shape
    n_chunks = D // chunk_k

    # Per-element counters, unique over (MC sample row, feature column).
    row = lax.broadcasted_iota(jnp.int32, (block_b, chunk_k), 0)
    col = lax.broadcasted_iota(jnp.int32, (block_b, chunk_k), 1)
    base = (global_step * block_b + row) * D + col        # chunk offset added per-chunk
    salt = seed_ref[0] * _I32(0x9E3779B9)

    def chunk_body(kc, acc):
        ctr = (base + kc * chunk_k) ^ salt
        noise = _noise_from_counters(ctr, sigma, mode)                  # (B, CK) f32
        w_blk = w_ref[pl.ds(kc * chunk_k, chunk_k), :]                  # (CK, C) bf16
        return acc + jnp.dot(noise.astype(jnp.bfloat16), w_blk,
                             preferred_element_type=jnp.float32)

    acc0 = jnp.zeros((block_b, C), jnp.float32)
    if n_chunks == 1:
        acc = chunk_body(0, acc0)
    else:
        acc = lax.fori_loop(0, n_chunks, chunk_body, acc0, unroll=n_chunks <= 4)

    # logits = (x + noise) @ W + b == c + noise @ W
    logits = acc + c_ref[...]

    # First-occurrence argmax -> one-hot votes (f32 so the lane reduce stays on f32).
    col_f = lax.broadcasted_iota(jnp.int32, (block_b, C), 1).astype(jnp.float32)
    row_max = jnp.max(logits, axis=1, keepdims=True)
    first_arg = jnp.min(jnp.where(logits >= row_max, col_f, jnp.float32(C)),
                        axis=1, keepdims=True)
    onehot = (col_f == first_arg).astype(jnp.float32)

    rows_remaining = n_population - global_step * block_b

    # Full blocks: no masking work; reductions go through the (idle) MXU.
    @pl.when(rows_remaining >= block_b)
    def _():
        ones = jnp.ones((1, block_b), jnp.float32)
        preds_ref[0] += jnp.dot(ones, logits, preferred_element_type=jnp.float32)
        counts_ref[0] += jnp.dot(ones, onehot, preferred_element_type=jnp.float32)

    # Partial (or empty) final blocks: mask rows beyond n_population.
    @pl.when(rows_remaining < block_b)
    def _():
        r = lax.broadcasted_iota(jnp.int32, (1, block_b), 1)
        valid = (r < rows_remaining).astype(jnp.float32)
        preds_ref[0] += jnp.dot(valid, logits, preferred_element_type=jnp.float32)
        counts_ref[0] += jnp.dot(valid, onehot, preferred_element_type=jnp.float32)


def _pixeldp_train_kernel(seed_ref, x_ref, w_ref, b_ref, out_ref, *,
                          chunk_k, sigma, mode):
    """forward_train: model(x + noise) for one tile of the batch (K-chunked)."""
    i = pl.program_id(0)
    block_n, D = x_ref.shape
    _, C = w_ref.shape
    n_chunks = D // chunk_k

    row = lax.broadcasted_iota(jnp.int32, (block_n, chunk_k), 0)
    col = lax.broadcasted_iota(jnp.int32, (block_n, chunk_k), 1)
    base = (i * block_n + row) * D + col
    salt = seed_ref[0] * _I32(0x9E3779B9) + _I32(0x7F4A7C15)   # distinct stream from eval

    def chunk_body(kc, acc):
        k0 = kc * chunk_k
        noise = _noise_from_counters((base + k0) ^ salt, sigma, mode)
        xn = (x_ref[:, pl.ds(k0, chunk_k)] + noise).astype(jnp.bfloat16)
        return acc + jnp.dot(xn, w_ref[pl.ds(k0, chunk_k), :],
                             preferred_element_type=jnp.float32)

    acc0 = jnp.zeros((block_n, C), jnp.float32)
    if n_chunks == 1:
        acc = chunk_body(0, acc0)
    else:
        acc = lax.fori_loop(0, n_chunks, chunk_body, acc0, unroll=n_chunks <= 4)

    out_ref[...] = acc + b_ref[...]


# ----------------------------------------------------------------------------
# PixelDP wrapper (plain-JAX glue around the kernels)
# ----------------------------------------------------------------------------
class PixelDPPallas:
    def __init__(self, w, b, num_classes, L, eps, delta,
                 n_population_mc=1000, batch_size_mc=32, eta=0.05,
                 mode="laplace", sensitivity=1.0,
                 eval_block_b=256, num_core_splits=None):
        self.w = jnp.asarray(w, jnp.float32)          # (D, num_classes)
        self.b = jnp.asarray(b, jnp.float32)          # (1, num_classes)
        self.w_bf16 = self.w.astype(jnp.bfloat16)     # bf16 weights for the MXU
        self.num_classes = num_classes
        self.L = L
        self.eps = eps
        self.delta = delta
        self.n_population_mc = n_population_mc
        self.batch_size_mc = batch_size_mc            # kept for API parity only
        self.eta = eta
        self.mode = mode
        self.eval_block_b = eval_block_b              # MC samples per grid step
        # 1 on single-TC chips (v5e/v6e), #cores on multi-TC parts (v7x).
        self.num_core_splits = (int(num_core_splits) if num_core_splits
                                else _detect_num_tensorcores())
        if mode == "laplace":
            self.sigma = sensitivity * L / eps
        elif mode == "gaussian":
            self.sigma = _gaus_delta_term(delta) * sensitivity * L / eps
        else:
            raise ValueError(f"{mode} is not supported")

    def forward_train(self, x, key):
        N = x.shape[0]
        D = math.prod(x.shape[1:])
        C = self.num_classes
        x_flat = x.reshape(N, D).astype(jnp.float32)
        seed = jax.random.randint(key, (1,), 0, 2**31 - 1, dtype=jnp.int32)

        block_n = N if N <= 128 else (128 if N % 128 == 0 else N)
        grid_n = N // block_n
        chunk_k = _pick_chunk(D)
        # TODO(synk): for very large D, also tile x along D via a grid axis so the
        # (block_n, D) input tile fits v7x's 64 MiB VMEM.

        kernel = functools.partial(_pixeldp_train_kernel, chunk_k=chunk_k,
                                   sigma=self.sigma, mode=self.mode)
        return pl.pallas_call(
            kernel,
            out_shape=jax.ShapeDtypeStruct((N, C), jnp.float32),
            grid_spec=pltpu.PrefetchScalarGridSpec(
                num_scalar_prefetch=1,
                grid=(grid_n,),
                in_specs=[
                    pl.BlockSpec((block_n, D), lambda i, *_: (i, 0)),   # x tile
                    pl.BlockSpec((D, C), lambda i, *_: (0, 0)),         # weight
                    pl.BlockSpec((1, C), lambda i, *_: (0, 0)),         # bias
                ],
                out_specs=pl.BlockSpec((block_n, C), lambda i, *_: (i, 0)),
            ),
            compiler_params=pltpu.CompilerParams(
                dimension_semantics=("parallel",)),
        )(seed, x_flat, self.w_bf16, self.b)

    def forward_eval(self, x, key):
        # Mirrors PixelDP.forward_eval: a single input, noised n_population_mc
        # times, classified; logits summed and argmax votes counted.
        assert x.shape[0] == 1, "forward_eval expects a single example [1,C,H,W]"
        D = math.prod(x.shape[1:])
        C = self.num_classes
        n_pop = self.n_population_mc
        splits = max(1, self.num_core_splits)

        # Keep block_b <= 256 and grow steps instead (elementwise-bound kernel).
        block_b = min(self.eval_block_b, _round_up(-(-n_pop // splits), 8))
        block_b = max(8, block_b)
        steps_per_split = -(-n_pop // (splits * block_b))
        chunk_k = _pick_chunk(D)

        x_flat = x.reshape(1, D).astype(jnp.float32)
        clean = x_flat @ self.w + self.b               # hoisted clean term (1, C)
        seed = jax.random.randint(key, (1,), 0, 2**31 - 1, dtype=jnp.int32)

        total_rows = splits * steps_per_split * block_b
        cost = pl.CostEstimate(
            flops=2 * total_rows * D * C + 4 * total_rows * (D + C),
            transcendentals=total_rows * D,
            bytes_accessed=D * C * 2 + C * 4 + 2 * splits * C * 4)

        kernel = functools.partial(
            _pixeldp_eval_kernel, n_population=n_pop, block_b=block_b,
            steps_per_split=steps_per_split, chunk_k=chunk_k,
            sigma=self.sigma, mode=self.mode)

        preds, counts = pl.pallas_call(
            kernel,
            out_shape=(jax.ShapeDtypeStruct((splits, 1, C), jnp.float32),
                       jax.ShapeDtypeStruct((splits, 1, C), jnp.float32)),
            grid_spec=pltpu.PrefetchScalarGridSpec(
                num_scalar_prefetch=1,
                grid=(splits, steps_per_split),
                in_specs=[
                    pl.BlockSpec((1, C), lambda s, i, *_: (0, 0)),       # clean logits
                    pl.BlockSpec((D, C), lambda s, i, *_: (0, 0)),       # weight (resident)
                ],
                out_specs=[
                    pl.BlockSpec((1, 1, C), lambda s, i, *_: (s, 0, 0)),  # preds partial
                    pl.BlockSpec((1, 1, C), lambda s, i, *_: (s, 0, 0)),  # counts partial
                ],
            ),
            compiler_params=pltpu.CompilerParams(
                dimension_semantics=("parallel", "arbitrary")),
            cost_estimate=cost,
        )(seed, clean, self.w_bf16)
        # Sum the per-core partial accumulators.
        return preds.sum(axis=0)[0], counts.sum(axis=0)[0]

    # TODO(synk): certify() / Clopper-Pearson interval is host-side scalar
    # statistics (scipy beta quantiles + bisection) with no Pallas equivalent.


# ----------------------------------------------------------------------------
if __name__ == "__main__":
    key = jax.random.PRNGKey(0)
    k_x, k_w, k_b, k_eval, k_train = jax.random.split(key, 5)

    # Small shapes consistent with the module's NCHW conv-style inputs.
    N, Cin, H, W = 2, 4, 16, 16
    num_classes = 10
    D = Cin * H * W

    x = jax.random.normal(k_x, (N, Cin, H, W), dtype=jnp.float32)
    w = jax.random.normal(k_w, (D, num_classes), dtype=jnp.float32) * 0.05
    b = jax.random.normal(k_b, (1, num_classes), dtype=jnp.float32) * 0.1

    model = PixelDPPallas(
        w, b, num_classes=num_classes, L=0.1, eps=1.0, delta=1e-5,
        n_population_mc=500, batch_size_mc=32, eta=0.05,
        mode="laplace", sensitivity=1.0)

    # --- Eval path (Monte-Carlo certification forward) on a single example ---
    x_eval = x[:1]
    preds, counts = jax.block_until_ready(model.forward_eval(x_eval, k_eval))

    assert preds.shape == (num_classes,) and counts.shape == (num_classes,)
    assert bool(jnp.all(jnp.isfinite(preds)))
    assert bool(jnp.all(counts >= 0.0))
    # Every one of the n_population MC samples casts exactly one vote.
    assert float(jnp.sum(counts)) == model.n_population_mc, counts

    # Statistical check (noise is zero-mean, so E[model(x+noise)] == model(x)):
    # per-class logit-noise std ~0.23, mean over 500 samples ~0.01 -> 0.2 is ~20 sigma.
    clean = (x_eval.reshape(1, D) @ w + b)[0]
    mean_pred = preds / model.n_population_mc
    assert bool(jnp.all(jnp.abs(mean_pred - clean) < 0.2)), (mean_pred, clean)

    # --- Train path (single noisy forward through the model) ---
    logits_train = jax.block_until_ready(model.forward_train(x, k_train))
    assert logits_train.shape == (N, num_classes)
    assert bool(jnp.all(jnp.isfinite(logits_train)))
    clean_train = x.reshape(N, D) @ w + b
    # Per-logit noise std ~0.23 -> 3.0 is a >10-sigma bound.
    assert bool(jnp.all(jnp.abs(logits_train - clean_train) < 3.0)), logits_train

    print("KERNEL_OK")
</pallas_src>

<mosaic_0001>
module attributes {stable_mosaic.version = 11 : i64} {
  func.func @_pixeldp_eval_kernel(%arg0: i32, %arg1: i32, %arg2: memref<1xi32, #tpu.memory_space<smem>>, %arg3: memref<1x10xf32, #tpu.memory_space<vmem>>, %arg4: memref<1024x10xbf16, #tpu.memory_space<vmem>>, %arg5: memref<1x1x10xf32, #tpu.memory_space<vmem>>, %arg6: memref<1x1x10xf32, #tpu.memory_space<vmem>>) attributes {dimension_semantics = [#tpu.dimension_semantics<parallel>, #tpu.dimension_semantics<arbitrary>], iteration_bounds = array<i64: 1, 2>, scalar_prefetch = 1 : i64, scratch_operands = 0 : i64, tpu.core_type = #tpu.core_type<tc>, window_params = [{pipeline_mode = #tpu.pipeline_mode<synchronous>, transform_indices = @transform_0, window_bounds = array<i64: 1, 10>}, {pipeline_mode = #tpu.pipeline_mode<synchronous>, transform_indices = @transform_1, window_bounds = array<i64: 1024, 10>}, {transform_indices = @transform_2, window_bounds = array<i64: 1, 1, 10>}, {transform_indices = @transform_3, window_bounds = array<i64: 1, 1, 10>}]} {
    %c0_i32 = arith.constant 0 : i32
    %0 = arith.cmpi eq, %arg1, %c0_i32 : i32
    %1 = arith.extui %0 : i1 to i32
    %c0_i32_0 = arith.constant 0 : i32
    %2 = arith.cmpi ne, %1, %c0_i32_0 : i32
    scf.if %2 {
      %cst_37 = arith.constant 0.000000e+00 : f32
      %131 = vector.broadcast %cst_37 : f32 to vector<1x1x10xf32>
      %c0_38 = arith.constant 0 : index
      %c0_39 = arith.constant 0 : index
      %c0_40 = arith.constant 0 : index
      %132 = vector.load %arg5[%c0_38, %c0_39, %c0_40] : memref<1x1x10xf32, #tpu.memory_space<vmem>>, vector<1x1x10xf32>
      tpu.vector_store %arg5[%c0_38, %c0_39, %c0_40], %131 {strides = array<i32>} : memref<1x1x10xf32, #tpu.memory_space<vmem>>, vector<1x1x10xf32>,
      %cst_41 = arith.constant 0.000000e+00 : f32
      %133 = vector.broadcast %cst_41 : f32 to vector<1x1x10xf32>
      %c0_42 = arith.constant 0 : index
      %c0_43 = arith.constant 0 : index
      %c0_44 = arith.constant 0 : index
      %134 = vector.load %arg6[%c0_42, %c0_43, %c0_44] : memref<1x1x10xf32, #tpu.memory_space<vmem>>, vector<1x1x10xf32>
      tpu.vector_store %arg6[%c0_42, %c0_43, %c0_44], %133 {strides = array<i32>} : memref<1x1x10xf32, #tpu.memory_space<vmem>>, vector<1x1x10xf32>,
    } else {
    }
    %c2_i32 = arith.constant 2 : i32
    %3 = arith.muli %arg0, %c2_i32 : i32
    %4 = arith.addi %3, %arg1 : i32
    %5 = tpu.iota {dimensions = array<i32: 0>} : vector<256x512xi32>
    %6 = tpu.iota {dimensions = array<i32: 1>} : vector<256x512xi32>
    %c256_i32 = arith.constant 256 : i32
    %7 = arith.muli %4, %c256_i32 : i32
    %8 = vector.broadcast %7 : i32 to vector<256x512xi32>
    %9 = arith.addi %8, %5 : vector<256x512xi32>
    %c1024_i32 = arith.constant 1024 : i32
    %10 = vector.broadcast %c1024_i32 : i32 to vector<256x512xi32>
    %11 = arith.muli %9, %10 : vector<256x512xi32>
    %12 = arith.addi %11, %6 : vector<256x512xi32>
    %c0 = arith.constant 0 : index
    %13 = memref.load %arg2[%c0] : memref<1xi32, #tpu.memory_space<smem>>
    %c-1640531527_i32 = arith.constant -1640531527 : i32
    %14 = arith.muli %13, %c-1640531527_i32 : i32
    %cst = arith.constant 0.000000e+00 : f32
    %15 = vector.broadcast %cst : f32 to vector<256x10xf32>
    %c0_i32_1 = arith.constant 0 : i32
    %c512_i32 = arith.constant 512 : i32
    %16 = arith.muli %c0_i32_1, %c512_i32 : i32
    %17 = vector.broadcast %16 : i32 to vector<256x512xi32>
    %18 = arith.addi %12, %17 : vector<256x512xi32>
    %19 = vector.broadcast %14 : i32 to vector<256x512xi32>
    %20 = arith.xori %18, %19 : vector<256x512xi32>
    %c16_i32 = arith.constant 16 : i32
    %21 = vector.broadcast %c16_i32 : i32 to vector<256x512xi32>
    %22 = arith.shrsi %20, %21 : vector<256x512xi32>
    %c65535_i32 = arith.constant 65535 : i32
    %23 = vector.broadcast %c65535_i32 : i32 to vector<256x512xi32>
    %24 = arith.andi %22, %23 : vector<256x512xi32>
    %25 = arith.xori %20, %24 : vector<256x512xi32>
    %c2146121005_i32 = arith.constant 2146121005 : i32
    %26 = vector.broadcast %c2146121005_i32 : i32 to vector<256x512xi32>
    %27 = arith.muli %25, %26 : vector<256x512xi32>
    %c15_i32 = arith.constant 15 : i32
    %28 = vector.broadcast %c15_i32 : i32 to vector<256x512xi32>
    %29 = arith.shrsi %27, %28 : vector<256x512xi32>
    %c131071_i32 = arith.constant 131071 : i32
    %30 = vector.broadcast %c131071_i32 : i32 to vector<256x512xi32>
    %31 = arith.andi %29, %30 : vector<256x512xi32>
    %32 = arith.xori %27, %31 : vector<256x512xi32>
    %c-2073254261_i32 = arith.constant -2073254261 : i32
    %33 = vector.broadcast %c-2073254261_i32 : i32 to vector<256x512xi32>
    %34 = arith.muli %32, %33 : vector<256x512xi32>
    %c16_i32_2 = arith.constant 16 : i32
    %35 = vector.broadcast %c16_i32_2 : i32 to vector<256x512xi32>
    %36 = arith.shrsi %34, %35 : vector<256x512xi32>
    %c65535_i32_3 = arith.constant 65535 : i32
    %37 = vector.broadcast %c65535_i32_3 : i32 to vector<256x512xi32>
    %38 = arith.andi %36, %37 : vector<256x512xi32>
    %39 = arith.xori %34, %38 : vector<256x512xi32>
    %c8388607_i32 = arith.constant 8388607 : i32
    %40 = vector.broadcast %c8388607_i32 : i32 to vector<256x512xi32>
    %41 = arith.andi %39, %40 : vector<256x512xi32>
    %c1065353216_i32 = arith.constant 1065353216 : i32
    %42 = vector.broadcast %c1065353216_i32 : i32 to vector<256x512xi32>
    %43 = arith.ori %41, %42 : vector<256x512xi32>
    %44 = tpu.bitcast %43 : vector<256x512xi32> -> vector<256x512xf32>
    %cst_4 = arith.constant 2.000000e+00 : f32
    %45 = vector.broadcast %cst_4 : f32 to vector<256x512xf32>
    %46 = arith.subf %45, %44 : vector<256x512xf32>
    %47 = math.log %46 : vector<256x512xf32>
    %cst_5 = arith.constant -1.000000e-01 : f32
    %48 = vector.broadcast %cst_5 : f32 to vector<256x512xf32>
    %49 = arith.mulf %47, %48 : vector<256x512xf32>
    %c-2147483648_i32 = arith.constant -2147483648 : i32
    %50 = vector.broadcast %c-2147483648_i32 : i32 to vector<256x512xi32>
    %51 = arith.andi %39, %50 : vector<256x512xi32>
    %52 = tpu.bitcast %49 : vector<256x512xf32> -> vector<256x512xi32>
    %53 = arith.ori %52, %51 : vector<256x512xi32>
    %54 = tpu.bitcast %53 : vector<256x512xi32> -> vector<256x512xf32>
    %c512_i32_6 = arith.constant 512 : i32
    %55 = arith.muli %c0_i32_1, %c512_i32_6 : i32
    %56 = arith.index_cast %55 : i32 to index
    %c0_7 = arith.constant 0 : index
    %57 = vector.load %arg4[%56, %c0_7] : memref<1024x10xbf16, #tpu.memory_space<vmem>>, vector<512x10xbf16>
    %58 = arith.truncf %54 : vector<256x512xf32> to vector<256x512xbf16>
    %cst_8 = arith.constant dense<0.000000e+00> : vector<256x10xf32>
    %59 = tpu.matmul %58, %57, %cst_8 {dimension_numbers = #tpu.dot_dimension_numbers<[1], [0], [0], [1], [0, 0, 1, 1], [], []>} : vector<256x512xbf16>, vector<512x10xbf16>, vector<256x10xf32> -> vector<256x10xf32>
    %60 = arith.addf %15, %59 : vector<256x10xf32>
    %c1_i32 = arith.constant 1 : i32
    %c512_i32_9 = arith.constant 512 : i32
    %61 = arith.muli %c1_i32, %c512_i32_9 : i32
    %62 = vector.broadcast %61 : i32 to vector<256x512xi32>
    %63 = arith.addi %12, %62 : vector<256x512xi32>
    %64 = vector.broadcast %14 : i32 to vector<256x512xi32>
    %65 = arith.xori %63, %64 : vector<256x512xi32>
    %c16_i32_10 = arith.constant 16 : i32
    %66 = vector.broadcast %c16_i32_10 : i32 to vector<256x512xi32>
    %67 = arith.shrsi %65, %66 : vector<256x512xi32>
    %c65535_i32_11 = arith.constant 65535 : i32
    %68 = vector.broadcast %c65535_i32_11 : i32 to vector<256x512xi32>
    %69 = arith.andi %67, %68 : vector<256x512xi32>
    %70 = arith.xori %65, %69 : vector<256x512xi32>
    %c2146121005_i32_12 = arith.constant 2146121005 : i32
    %71 = vector.broadcast %c2146121005_i32_12 : i32 to vector<256x512xi32>
    %72 = arith.muli %70, %71 : vector<256x512xi32>
    %c15_i32_13 = arith.constant 15 : i32
    %73 = vector.broadcast %c15_i32_13 : i32 to vector<256x512xi32>
    %74 = arith.shrsi %72, %73 : vector<256x512xi32>
    %c131071_i32_14 = arith.constant 131071 : i32
    %75 = vector.broadcast %c131071_i32_14 : i32 to vector<256x512xi32>
    %76 = arith.andi %74, %75 : vector<256x512xi32>
    %77 = arith.xori %72, %76 : vector<256x512xi32>
    %c-2073254261_i32_15 = arith.constant -2073254261 : i32
    %78 = vector.broadcast %c-2073254261_i32_15 : i32 to vector<256x512xi32>
    %79 = arith.muli %77, %78 : vector<256x512xi32>
    %c16_i32_16 = arith.constant 16 : i32
    %80 = vector.broadcast %c16_i32_16 : i32 to vector<256x512xi32>
    %81 = arith.shrsi %79, %80 : vector<256x512xi32>
    %c65535_i32_17 = arith.constant 65535 : i32
    %82 = vector.broadcast %c65535_i32_17 : i32 to vector<256x512xi32>
    %83 = arith.andi %81, %82 : vector<256x512xi32>
    %84 = arith.xori %79, %83 : vector<256x512xi32>
    %c8388607_i32_18 = arith.constant 8388607 : i32
    %85 = vector.broadcast %c8388607_i32_18 : i32 to vector<256x512xi32>
    %86 = arith.andi %84, %85 : vector<256x512xi32>
    %c1065353216_i32_19 = arith.constant 1065353216 : i32
    %87 = vector.broadcast %c1065353216_i32_19 : i32 to vector<256x512xi32>
    %88 = arith.ori %86, %87 : vector<256x512xi32>
    %89 = tpu.bitcast %88 : vector<256x512xi32> -> vector<256x512xf32>
    %cst_20 = arith.constant 2.000000e+00 : f32
    %90 = vector.broadcast %cst_20 : f32 to vector<256x512xf32>
    %91 = arith.subf %90, %89 : vector<256x512xf32>
    %92 = math.log %91 : vector<256x512xf32>
    %cst_21 = arith.constant -1.000000e-01 : f32
    %93 = vector.broadcast %cst_21 : f32 to vector<256x512xf32>
    %94 = arith.mulf %92, %93 : vector<256x512xf32>
    %c-2147483648_i32_22 = arith.constant -2147483648 : i32
    %95 = vector.broadcast %c-2147483648_i32_22 : i32 to vector<256x512xi32>
    %96 = arith.andi %84, %95 : vector<256x512xi32>
    %97 = tpu.bitcast %94 : vector<256x512xf32> -> vector<256x512xi32>
    %98 = arith.ori %97, %96 : vector<256x512xi32>
    %99 = tpu.bitcast %98 : vector<256x512xi32> -> vector<256x512xf32>
    %c512_i32_23 = arith.constant 512 : i32
    %100 = arith.muli %c1_i32, %c512_i32_23 : i32
    %101 = arith.index_cast %100 : i32 to index
    %c0_24 = arith.constant 0 : index
    %102 = vector.load %arg4[%101, %c0_24] : memref<1024x10xbf16, #tpu.memory_space<vmem>>, vector<512x10xbf16>
    %103 = arith.truncf %99 : vector<256x512xf32> to vector<256x512xbf16>
    %cst_25 = arith.constant dense<0.000000e+00> : vector<256x10xf32>
    %104 = tpu.matmul %103, %102, %cst_25 {dimension_numbers = #tpu.dot_dimension_numbers<[1], [0], [0], [1], [0, 0, 1, 1], [], []>} : vector<256x512xbf16>, vector<512x10xbf16>, vector<256x10xf32> -> vector<256x10xf32>
    %105 = arith.addf %60, %104 : vector<256x10xf32>
    %c2_i32_26 = arith.constant 2 : i32
    %c0_27 = arith.constant 0 : index
    %c0_28 = arith.constant 0 : index
    %106 = vector.load %arg3[%c0_27, %c0_28] : memref<1x10xf32, #tpu.memory_space<vmem>>, vector<1x10xf32>
    %107 = vector.broadcast %106 : vector<1x10xf32> to vector<256x10xf32>
    %108 = arith.addf %105, %107 : vector<256x10xf32>
    %109 = tpu.iota {dimensions = array<i32: 1>} : vector<256x10xi32>
    %110 = arith.sitofp %109 : vector<256x10xi32> to vector<256x10xf32>
    %cst_29 = arith.constant dense<0xFF800000> : vector<256xf32>
    %111 = vector.multi_reduction <maximumf>, %108, %cst_29 [1] : vector<256x10xf32> to vector<256xf32>
    %112 = vector.shape_cast %111 : vector<256xf32> to vector<256x1xf32>
    %113 = vector.broadcast %112 : vector<256x1xf32> to vector<256x10xf32>
    %114 = arith.cmpf oge, %108, %113 : vector<256x10xf32>
    %cst_30 = arith.constant 1.000000e+01 : f32
    %115 = vector.broadcast %cst_30 : f32 to vector<256x10xf32>
    %116 = arith.select %114, %110, %115 : vector<256x10xi1>, vector<256x10xf32>
    %cst_31 = arith.constant dense<0x7F800000> : vector<256xf32>
    %117 = vector.multi_reduction <minimumf>, %116, %cst_31 [1] : vector<256x10xf32> to vector<256xf32>
    %118 = vector.shape_cast %117 : vector<256xf32> to vector<256x1xf32>
    %119 = vector.broadcast %118 : vector<256x1xf32> to vector<256x10xf32>
    %120 = arith.cmpf oeq, %110, %119 : vector<256x10xf32>
    %121 = arith.extui %120 : vector<256x10xi1> to vector<256x10xi32>
    %122 = arith.sitofp %121 : vector<256x10xi32> to vector<256x10xf32>
    %c256_i32_32 = arith.constant 256 : i32
    %123 = arith.muli %4, %c256_i32_32 : i32
    %c500_i32 = arith.constant 500 : i32
    %124 = arith.subi %c500_i32, %123 : i32
    %c256_i32_33 = arith.constant 256 : i32
    %125 = arith.cmpi sge, %124, %c256_i32_33 : i32
    %126 = arith.extui %125 : i1 to i32
    %c0_i32_34 = arith.constant 0 : i32
    %127 = arith.cmpi ne, %126, %c0_i32_34 : i32
    scf.if %127 {
      %cst_37 = arith.constant 1.000000e+00 : f32
      %131 = vector.broadcast %cst_37 : f32 to vector<1x256xf32>
      %c0_38 = arith.constant 0 : index
      %c0_39 = arith.constant 0 : index
      %c0_40 = arith.constant 0 : index
      %132 = vector.load %arg5[%c0_38, %c0_39, %c0_40] : memref<1x1x10xf32, #tpu.memory_space<vmem>>, vector<1x1x10xf32>
      %133 = vector.shape_cast %132 : vector<1x1x10xf32> to vector<1x10xf32>
      %cst_41 = arith.constant dense<0.000000e+00> : vector<1x10xf32>
      %134 = tpu.matmul %131, %108, %cst_41 {dimension_numbers = #tpu.dot_dimension_numbers<[1], [0], [0], [1], [0, 0, 1, 1], [], []>} : vector<1x256xf32>, vector<256x10xf32>, vector<1x10xf32> -> vector<1x10xf32>
      %135 = arith.addf %133, %134 : vector<1x10xf32>
      %c0_42 = arith.constant 0 : index
      %c0_43 = arith.constant 0 : index
      %c0_44 = arith.constant 0 : index
      %136 = vector.load %arg5[%c0_42, %c0_43, %c0_44] : memref<1x1x10xf32, #tpu.memory_space<vmem>>, vector<1x1x10xf32>
      %137 = vector.shape_cast %136 : vector<1x1x10xf32> to vector<1x10xf32>
      %138 = vector.shape_cast %135 : vector<1x10xf32> to vector<1x1x10xf32>
      tpu.vector_store %arg5[%c0_42, %c0_43, %c0_44], %138 {strides = array<i32>} : memref<1x1x10xf32, #tpu.memory_space<vmem>>, vector<1x1x10xf32>,
      %c0_45 = arith.constant 0 : index
      %c0_46 = arith.constant 0 : index
      %c0_47 = arith.constant 0 : index
      %139 = vector.load %arg6[%c0_45, %c0_46, %c0_47] : memref<1x1x10xf32, #tpu.memory_space<vmem>>, vector<1x1x10xf32>
      %140 = vector.shape_cast %139 : vector<1x1x10xf32> to vector<1x10xf32>
      %cst_48 = arith.constant dense<0.000000e+00> : vector<1x10xf32>
      %141 = tpu.matmul %131, %122, %cst_48 {dimension_numbers = #tpu.dot_dimension_numbers<[1], [0], [0], [1], [0, 0, 1, 1], [], []>} : vector<1x256xf32>, vector<256x10xf32>, vector<1x10xf32> -> vector<1x10xf32>
      %142 = arith.addf %140, %141 : vector<1x10xf32>
      %c0_49 = arith.constant 0 : index
      %c0_50 = arith.constant 0 : index
      %c0_51 = arith.constant 0 : index
      %143 = vector.load %arg6[%c0_49, %c0_50, %c0_51] : memref<1x1x10xf32, #tpu.memory_space<vmem>>, vector<1x1x10xf32>
      %144 = vector.shape_cast %143 : vector<1x1x10xf32> to vector<1x10xf32>
      %145 = vector.shape_cast %142 : vector<1x10xf32> to vector<1x1x10xf32>
      tpu.vector_store %arg6[%c0_49, %c0_50, %c0_51], %145 {strides = array<i32>} : memref<1x1x10xf32, #tpu.memory_space<vmem>>, vector<1x1x10xf32>,
    } else {
    }
    %c256_i32_35 = arith.constant 256 : i32
    %128 = arith.cmpi slt, %124, %c256_i32_35 : i32
    %129 = arith.extui %128 : i1 to i32
    %c0_i32_36 = arith.constant 0 : i32
    %130 = arith.cmpi ne, %129, %c0_i32_36 : i32
    scf.if %130 {
      %131 = tpu.iota {dimensions = array<i32: 1>} : vector<1x256xi32>
      %132 = vector.broadcast %124 : i32 to vector<1x256xi32>
      %133 = arith.cmpi slt, %131, %132 : vector<1x256xi32>
      %134 = arith.extui %133 : vector<1x256xi1> to vector<1x256xi32>
      %135 = arith.sitofp %134 : vector<1x256xi32> to vector<1x256xf32>
      %c0_37 = arith.constant 0 : index
      %c0_38 = arith.constant 0 : index
      %c0_39 = arith.constant 0 : index
      %136 = vector.load %arg5[%c0_37, %c0_38, %c0_39] : memref<1x1x10xf32, #tpu.memory_space<vmem>>, vector<1x1x10xf32>
      %137 = vector.shape_cast %136 : vector<1x1x10xf32> to vector<1x10xf32>
      %cst_40 = arith.constant dense<0.000000e+00> : vector<1x10xf32>
      %138 = tpu.matmul %135, %108, %cst_40 {dimension_numbers = #tpu.dot_dimension_numbers<[1], [0], [0], [1], [0, 0, 1, 1], [], []>} : vector<1x256xf32>, vector<256x10xf32>, vector<1x10xf32> -> vector<1x10xf32>
      %139 = arith.addf %137, %138 : vector<1x10xf32>
      %c0_41 = arith.constant 0 : index
      %c0_42 = arith.constant 0 : index
      %c0_43 = arith.constant 0 : index
      %140 = vector.load %arg5[%c0_41, %c0_42, %c0_43] : memref<1x1x10xf32, #tpu.memory_space<vmem>>, vector<1x1x10xf32>
      %141 = vector.shape_cast %140 : vector<1x1x10xf32> to vector<1x10xf32>
      %142 = vector.shape_cast %139 : vector<1x10xf32> to vector<1x1x10xf32>
      tpu.vector_store %arg5[%c0_41, %c0_42, %c0_43], %142 {strides = array<i32>} : memref<1x1x10xf32, #tpu.memory_space<vmem>>, vector<1x1x10xf32>,
      %c0_44 = arith.constant 0 : index
      %c0_45 = arith.constant 0 : index
      %c0_46 = arith.constant 0 : index
      %143 = vector.load %arg6[%c0_44, %c0_45, %c0_46] : memref<1x1x10xf32, #tpu.memory_space<vmem>>, vector<1x1x10xf32>
      %144 = vector.shape_cast %143 : vector<1x1x10xf32> to vector<1x10xf32>
      %cst_47 = arith.constant dense<0.000000e+00> : vector<1x10xf32>
      %145 = tpu.matmul %135, %122, %cst_47 {dimension_numbers = #tpu.dot_dimension_numbers<[1], [0], [0], [1], [0, 0, 1, 1], [], []>} : vector<1x256xf32>, vector<256x10xf32>, vector<1x10xf32> -> vector<1x10xf32>
      %146 = arith.addf %144, %145 : vector<1x10xf32>
      %c0_48 = arith.constant 0 : index
      %c0_49 = arith.constant 0 : index
      %c0_50 = arith.constant 0 : index
      %147 = vector.load %arg6[%c0_48, %c0_49, %c0_50] : memref<1x1x10xf32, #tpu.memory_space<vmem>>, vector<1x1x10xf32>
      %148 = vector.shape_cast %147 : vector<1x1x10xf32> to vector<1x10xf32>
      %149 = vector.shape_cast %146 : vector<1x10xf32> to vector<1x1x10xf32>
      tpu.vector_store %arg6[%c0_48, %c0_49, %c0_50], %149 {strides = array<i32>} : memref<1x1x10xf32, #tpu.memory_space<vmem>>, vector<1x1x10xf32>,
    } else {
    }
    return
  }
  func.func @transform_0(%arg0: i32, %arg1: i32, %arg2: memref<1xi32, #tpu.memory_space<smem>>) -> (i32, i32) {
    %c0_i32 = arith.constant 0 : i32
    %c0_i32_0 = arith.constant 0 : i32
    %c0_i32_1 = arith.constant 0 : i32
    return %c0_i32, %c0_i32_0 : i32, i32
  }
  func.func @transform_1(%arg0: i32, %arg1: i32, %arg2: memref<1xi32, #tpu.memory_space<smem>>) -> (i32, i32) {
    %c0_i32 = arith.constant 0 : i32
    %c0_i32_0 = arith.constant 0 : i32
    %c0_i32_1 = arith.constant 0 : i32
    return %c0_i32, %c0_i32_0 : i32, i32
  }
  func.func @transform_2(%arg0: i32, %arg1: i32, %arg2: memref<1xi32, #tpu.memory_space<smem>>) -> (i32, i32, i32) {
    %c0_i32 = arith.constant 0 : i32
    %c0_i32_0 = arith.constant 0 : i32
    %c0_i32_1 = arith.constant 0 : i32
    return %arg0, %c0_i32, %c0_i32_0 : i32, i32, i32
  }
  func.func @transform_3(%arg0: i32, %arg1: i32, %arg2: memref<1xi32, #tpu.memory_space<smem>>) -> (i32, i32, i32) {
    %c0_i32 = arith.constant 0 : i32
    %c0_i32_0 = arith.constant 0 : i32
    %c0_i32_1 = arith.constant 0 : i32
    return %arg0, %c0_i32, %c0_i32_0 : i32, i32, i32
  }
}

</mosaic_0001>

<bundles_post_ra>
// kernel: tpu_custom_call.1
= control target key start
LH: loop header
LB: loop body
LE: loop exit
PB: predicated region body
PF: predicated region fallthrough
CT: control target
= control target key end

     0   :  { %s14921_s0 = inlined_call_operand.<no memory space> [shape: s32[1], index: 0, kind: input, shape index: {}]   ;;  %s14922_s1 = inlined_call_operand.vmem [shape: f32[1,10], index: 1, kind: input, shape index: {}]   ;;  %s14923_s2 = inlined_call_operand.vmem [shape: bf16[1024,10], index: 2, kind: input, shape index: {}]   ;;  %s14924_s3 = inlined_call_operand.hbm [shape: f32[1,1,10], index: 3, kind: output, shape index: {0}]   ;;  %s14925_s4 = inlined_call_operand.hbm [shape: f32[1,1,10], index: 4, kind: output, shape index: {1}]  }
   0x1   :  { %10 = sst [smem:[#allocation3]] %s14921_s0 }
   0x2   :  { %11 = vsyncpa [#allocation5], 0 }
   0x3   :  { %12 = vsyncpa [#allocation7], 0  ;;  %s10747_s17 = smov 0   ;;  %s10749_s18 = smov 0  }
   0x4   :  { %s10751_s19 = smov 0  }
   0x5 LB: > { %s8481_s0 = sadd.s32 4294967295, %s10712_s19   ;;  %s27_s20 = sadd.s32 1, %s10708_s18  ;;  %s10712_s19 = sphi %s10751_s19, %s18_s19   ;;  %s10708_s18 = sphi %s10749_s18, %s15625_s18   ;;  %s10704_s17 = sphi %s10747_s17, %s15624_s17  }
   0x6   : > { %p28_p0 = scmp.ge.s32.totalorder %s27_s20, 2  ;;  %p8483_p1 = scmp.ge.s32.totalorder %s10712_s19, 1 }
   0x7   : > { %p146_p2 = scmp.lt.s32.totalorder %s10712_s19, 3 }
   0x8   : > { %s15627_s20 = smov (%p28_p0, %s27_s20), 0 }
   0x9   : > { %p147_p3 = pnand %p8483_p1, %p146_p2 }
   0xb   : > { %150 = sbr.rel (%p147_p3) target bundleno = 2274 (0x8e2), region = 28 }
  0x10   : > { %p8484_p4 = scmp.ne.s32.totalorder %s10704_s17, 0 }
  0x12   : > { %164 = sbr.rel (%p8484_p4) target bundleno = 25 (0x19), region = 32 }
  0x17   : > { %vm165_vm0 = vcmask 73728   ;;  %v10714_v0 = vmov 0.0  }
  0x18   : > { %166 = vst.msk [vmem:[#allocation4] sm:$0x1] %vm165_vm0, %v10714_v0  ;;  %167 = vst.msk [vmem:[#allocation6] sm:$0x1] %vm165_vm0, %v10714_v0 }
  0x19 PF: > { %v10058_v1 = vld [vmem:[%s14923_s2 + $0x178] sm:$0xff]   ;;  %v170_v2 = vlaneseq  ;;  %s8485_s23 = sshll.u32 %s10704_s17, 8  ;;  %v10062_v9 = vld [vmem:[%s14923_s2 + $0x170] sm:$0xff]   ;;  %v10066_v19 = vld [vmem:[%s14923_s2 + $0x168] sm:$0xff]   ;;  %s402_s17 = sld [smem:[#allocation3]]  ;;  %vm7745_vm1 = vcmask 80896  }
  0x1a   : > { %v10059_v3 = vld [vmem:[%s14923_s2 + $0x138] sm:$0xff]   ;;  %v10772_v4 = vstv %s8485_s23  ;;  %s10774_s26 = ssub.s32 500, %s8485_s23  ;;  %9429 = vmatprep.subr.bf16.mxu0 %v10058_v1  ;;  %v10063_v12 = vld [vmem:[%s14923_s2 + $0x130] sm:$0xff]   ;;  %v10067_v21 = vld [vmem:[%s14923_s2 + $0x128] sm:$0xff]  }
  0x1b   : > { %v10060_v5 = vld [vmem:[%s14923_s2 + $0x1f8] sm:$0xff]   ;;  %v10779_v6 = vshrl.u32 %v170_v2, 7  ;;  %9430 = vmatpush3.bf16.msra.mxu0 %v10059_v3  ;;  %v10784_v8 = vand.u32 127, %v170_v2  ;;  %v10064_v14 = vld [vmem:[%s14923_s2 + $0x1f0] sm:$0xff]   ;;  %v10068_v22 = vld [vmem:[%s14923_s2 + $0x1e8] sm:$0xff]   ;;  %p9351_p5 = scmp.lt.s32.totalorder %s10774_s26, 256 }
  0x1c   : > { %v10061_v7 = vld [vmem:[%s14923_s2 + $0x1b8] sm:$0xff]   ;;  %9541 = vmatprep.subr.bf16.mxu1 %v10060_v5  ;;  %9431 = vmatprep.subr.bf16.mxu0 %v10062_v9  ;;  %v10065_v17 = vld [vmem:[%s14923_s2 + $0x1b0] sm:$0xff]   ;;  %v10069_v24 = vld [vmem:[%s14923_s2 + $0x1a8] sm:$0xff]  }
  0x1d   : > { %15048 = vst [vmem:[#allocation10_spill] sm:$0xff] %v10784_v8  ;;  %v172_v10 = vadd.s32 8, %v10779_v6  ;;  %v210_v11 = vadd.s32 %v10772_v4, %v10779_v6  ;;  %9542 = vmatpush3.bf16.msra.mxu1 %v10061_v7  ;;  %v10796_v13 = vadd.s32 128, %v10784_v8  ;;  %v10806_v18 = vadd.s32 384, %v10784_v8  ;;  %v10070_v26 = vld [vmem:[%s14923_s2 + $0x160] sm:$0xff]   ;;  %v10074_v35 = vld [vmem:[%s14923_s2 + $0x158] sm:$0xff]  }
  0x1e   : > { %9543 = vmatprep.subr.bf16.mxu1 %v10064_v14  ;;  %v10071_v28 = vld [vmem:[%s14923_s2 + $0x120] sm:$0xff]   ;;  %v10839_v30 = vadd.s32 256, %v10784_v8  ;;  %v10075_v38 = vld [vmem:[%s14923_s2 + $0x118] sm:$0xff]   ;;  %v173_v42 = vadd.s32 16, %v10779_v6  ;;  %v174_v44 = vadd.s32 24, %v10779_v6  ;;  %v10078_v45 = vld [vmem:[%s14923_s2 + $0x150] sm:$0xff]  }
  0x1f   : > { %15049 = vst [vmem:[#allocation11_spill] sm:$0xff] %v10796_v13  ;;  %v211_v15 = vadd.s32 %v10772_v4, %v172_v10  ;;  %v242_v16 = vmul.u32 1024, %v210_v11  ;;  %9432 = vmatpush3.bf16.msra.mxu0 %v10063_v12  ;;  %v10072_v31 = vld [vmem:[%s14923_s2 + $0x1e0] sm:$0xff]   ;;  %v10076_v41 = vld [vmem:[%s14923_s2 + $0x1d8] sm:$0xff]   ;;  %v10079_v49 = vld [vmem:[%s14923_s2 + $0x110] sm:$0xff]   ;;  %v175_v1 = vadd.s32 32, %v10779_v6 }
  0x20   : > { %9433 = vmatprep.subr.bf16.mxu0 %v10066_v19  ;;  %v10073_v33 = vld [vmem:[%s14923_s2 + $0x1a0] sm:$0xff]   ;;  %v10077_v43 = vld [vmem:[%s14923_s2 + $0x198] sm:$0xff]   ;;  %v212_v48 = vadd.s32 %v10772_v4, %v173_v42  ;;  %v213_v52 = vadd.s32 %v10772_v4, %v174_v44  ;;  %v10080_v53 = vld [vmem:[%s14923_s2 + $0x1d0] sm:$0xff]   ;;  %v176_v5 = vadd.s32 40, %v10779_v6  ;;  %s403_s25 = smul.u32 2654435769, %s402_s17 }
  0x21   : > { %v243_v20 = vmul.u32 1024, %v211_v15  ;;  %9544 = vmatpush3.bf16.msra.mxu1 %v10065_v17  ;;  %v10818_v23 = vadd.s32 %v242_v16, %v10796_v13  ;;  %v10824_v25 = vadd.s32 %v242_v16, %v10806_v18  ;;  %v10860_v37 = vadd.s32 %v242_v16, %v10784_v8  ;;  %v10081_v55 = vld [vmem:[%s14923_s2 + $0x190] sm:$0xff]   ;;  %v10082_v57 = vld [vmem:[%s14923_s2 + $0x148] sm:$0xff]   ;;  %v10086_v7 = vld [vmem:[%s14923_s2 + $0x140] sm:$0xff]  }
  0x22   : > { %9545 = vmatprep.subr.bf16.mxu1 %v10068_v22  ;;  %v10886_v47 = vadd.s32 %v242_v16, %v10839_v30  ;;  %v244_v54 = vmul.u32 1024, %v212_v48  ;;  %v245_v56 = vmul.u32 1024, %v213_v52  ;;  %v10083_v60 = vld [vmem:[%s14923_s2 + $0x108] sm:$0xff]   ;;  %v10087_v10 = vld [vmem:[%s14923_s2 + $0x100] sm:$0xff]  }
  0x23   : > { %9434 = vmatpush3.bf16.msra.mxu0 %v10067_v21  ;;  %v10830_v27 = vadd.s32 %v243_v20, %v10796_v13  ;;  %v10836_v29 = vadd.s32 %v243_v20, %v10806_v18  ;;  %v10845_v32 = vadd.s32 512, %v10818_v23  ;;  %v10851_v34 = vadd.s32 512, %v10824_v25  ;;  %v10084_v63 = vld [vmem:[%s14923_s2 + $0x1c8] sm:$0xff]   ;;  %v10088_v14 = vld [vmem:[%s14923_s2 + $0x1c0] sm:$0xff]  }
  0x24   : > { %9435 = vmatprep.subr.bf16.mxu0 %v10070_v26  ;;  %v10869_v40 = vadd.s32 %v243_v20, %v10784_v8  ;;  %v10883_v46 = vadd.s32 512, %v10860_v37  ;;  %v10896_v51 = vadd.s32 %v243_v20, %v10839_v30  ;;  %v10909_v58 = vadd.s32 512, %v10886_v47  ;;  %v10085_v2 = vld [vmem:[%s14923_s2 + $0x188] sm:$0xff]   ;;  %v10089_v19 = vld [vmem:[%s14923_s2 + $0x180] sm:$0xff]   ;;  %v10090_v26 = vld [vmem:[%s14923_s2 + $0x78] sm:$0xff]  }
  0x25   : > { %9546 = vmatpush3.bf16.msra.mxu1 %v10069_v24  ;;  %v10857_v36 = vadd.s32 512, %v10830_v27  ;;  %v10866_v39 = vadd.s32 512, %v10836_v29  ;;  %v10912_v59 = vadd.s32 %v244_v54, %v10796_v13  ;;  %v10921_v62 = vadd.s32 %v245_v56, %v10796_v13 }
  0x26   : > { %9547 = vmatprep.subr.bf16.mxu1 %v10072_v31  ;;  %v10893_v50 = vadd.s32 512, %v10869_v40  ;;  %v10918_v61 = vadd.s32 512, %v10896_v51  ;;  %v10927_v0 = vadd.s32 %v244_v54, %v10806_v18  ;;  %v10934_v3 = vadd.s32 %v245_v56, %v10806_v18 }
  0x27   : > { %9436 = vmatpush3.bf16.msra.mxu0 %v10071_v28  ;;  %15050 = vst [vmem:[#allocation12_spill] sm:$0xff] %v10912_v59  ;;  %15051 = vst [vmem:[#allocation13_spill] sm:$0xff] %v10921_v62  ;;  %v10941_v9 = vadd.s32 512, %v10912_v59  ;;  %v10947_v11 = vadd.s32 512, %v10921_v62  ;;  %v10950_v12 = vadd.s32 %v244_v54, %v10784_v8  ;;  %v10959_v16 = vadd.s32 %v245_v56, %v10784_v8 }
  0x28   : > { %9437 = vmatprep.subr.bf16.mxu0 %v10074_v35  ;;  %15052 = vst [vmem:[#allocation14_spill] sm:$0xff] %v10927_v0  ;;  %15053 = vst [vmem:[#allocation15_spill] sm:$0xff] %v10934_v3  ;;  %v10956_v15 = vadd.s32 512, %v10927_v0  ;;  %v10962_v17 = vadd.s32 %v244_v54, %v10839_v30  ;;  %v10968_v20 = vadd.s32 512, %v10934_v3  ;;  %v214_v21 = vadd.s32 %v10772_v4, %v175_v1  ;;  %v10092_v35 = vld [vmem:[%s14923_s2 + $0xf8] sm:$0xff]  }
  0x29   : > { %9548 = vmatpush3.bf16.msra.mxu1 %v10073_v33  ;;  %15054 = vst [vmem:[#allocation16_spill] sm:$0xff] %v10950_v12  ;;  %15055 = vst [vmem:[#allocation17_spill] sm:$0xff] %v10959_v16  ;;  %v10972_v22 = vadd.s32 %v245_v56, %v10839_v30  ;;  %v215_v24 = vadd.s32 %v10772_v4, %v176_v5  ;;  %v10979_v28 = vadd.s32 512, %v10950_v12  ;;  %v10982_v31 = vadd.s32 512, %v10959_v16 }
  0x2a   : > { %9549 = vmatprep.subr.bf16.mxu1 %v10076_v41  ;;  %15056 = vst [vmem:[#allocation18_spill] sm:$0xff] %v10962_v17  ;;  %v10985_v33 = vadd.s32 512, %v10962_v17 }
  0x2b   : > { %9438 = vmatpush3.bf16.msra.mxu0 %v10075_v38  ;;  %15057 = vst [vmem:[#allocation19_spill] sm:$0xff] %v10972_v22  ;;  %v246_v38 = vmul.u32 1024, %v214_v21  ;;  %v10991_v41 = vadd.s32 512, %v10972_v22  ;;  %v247_v42 = vmul.u32 1024, %v215_v24 }
  0x2c   : > { %9439 = vmatprep.subr.bf16.mxu0 %v10078_v45 }
  0x2d   : > { %9550 = vmatpush3.bf16.msra.mxu1 %v10077_v43  ;;  %v10994_v43 = vadd.s32 %v246_v38, %v10796_v13  ;;  %v10997_v44 = vadd.s32 %v246_v38, %v10806_v18  ;;  %v11000_v45 = vadd.s32 %v246_v38, %v10784_v8  ;;  %v11003_v48 = vadd.s32 %v246_v38, %v10839_v30 }
  0x2e   : > { %9551 = vmatprep.subr.bf16.mxu1 %v10080_v53  ;;  %v11009_v52 = vadd.s32 %v247_v42, %v10806_v18  ;;  %v11012_v53 = vadd.s32 %v247_v42, %v10784_v8  ;;  %v11050_v24 = vadd.s32 %v247_v42, %v10839_v30 }
  0x2f   : > { %9440 = vmatpush3.bf16.msra.mxu0 %v10079_v49  ;;  %15058 = vst [vmem:[#allocation20_spill] sm:$0xff] %v10994_v43  ;;  %15059 = vst [vmem:[#allocation21_spill] sm:$0xff] %v10997_v44  ;;  %v11006_v49 = vadd.s32 %v247_v42, %v10796_v13  ;;  %v11015_v54 = vadd.s32 512, %v10994_v43  ;;  %v11021_v56 = vadd.s32 512, %v11000_v45 }
  0x30   : > { %9441 = vmatprep.subr.bf16.mxu0 %v10082_v57  ;;  %15060 = vst [vmem:[#allocation22_spill] sm:$0xff] %v11000_v45  ;;  %15061 = vst [vmem:[#allocation23_spill] sm:$0xff] %v11003_v48  ;;  %v11024_v57 = vadd.s32 512, %v11003_v48  ;;  %v11032_v1 = vadd.s32 512, %v11009_v52 }
  0x31   : > { %9552 = vmatpush3.bf16.msra.mxu1 %v10081_v55  ;;  %15062 = vst [vmem:[#allocation24_spill] sm:$0xff] %v11006_v49  ;;  %15063 = vst [vmem:[#allocation25_spill] sm:$0xff] %v11009_v52  ;;  %v11018_v55 = vadd.s32 512, %v10997_v44 }
  0x32   : > { %9553 = vmatprep.subr.bf16.mxu1 %v10084_v63  ;;  %15064 = vst [vmem:[#allocation26_spill] sm:$0xff] %v11012_v53  ;;  %v11029_v63 = vadd.s32 512, %v11006_v49 }
  0x33   : > { %9442 = vmatpush3.bf16.msra.mxu0 %v10083_v60  ;;  %v11026_v60 = vstv %s403_s25 }
  0x34   : > { %9443 = vmatprep.subr.bf16.mxu0 %v10086_v7  ;;  %v3606_v5 = vxor.u32 %v10845_v32, %v11026_v60  ;;  %v3610_v7 = vxor.u32 %v10857_v36, %v11026_v60  ;;  %v3609_v21 = vxor.u32 %v10893_v50, %v11026_v60  ;;  %v11054_v36 = vxor.u32 %v11026_v60, %v10860_v37 }
  0x35   : > { %9554 = vmatpush3.bf16.msra.mxu1 %v10085_v2  ;;  %v11035_v2 = vadd.s32 512, %v11012_v53  ;;  %v3607_v44 = vxor.u32 %v10909_v58, %v11026_v60  ;;  %v3611_v49 = vxor.u32 %v10918_v61, %v11026_v60 }
  0x36   : > { %9555 = vmatprep.subr.bf16.mxu1 %v10088_v14  ;;  %v3612_v14 = vxor.u32 %v10866_v39, %v11026_v60  ;;  %v8875_v32 = vshrl.u32 %v3610_v7, 16 }
  0x37   : > { %9444 = vmatpush3.bf16.msra.mxu0 %v10087_v10  ;;  %v3608_v10 = vxor.u32 %v10851_v34, %v11026_v60  ;;  %v11058_v34 = vxor.u32 %v11026_v60, %v10869_v40  ;;  %v11066_v40 = vxor.u32 %v11026_v60, %v10886_v47 }
  0x38   : > { %9653 = vmatprep.subr.bf16.mxu0 %v10090_v26  ;;  %v8871_v26 = vshrl.u32 %v3606_v5, 16  ;;  %v8877_v38 = vshrl.u32 %v3612_v14, 16  ;;  %v3994_v53 = vxor.u32 %v8875_v32, %v3610_v7 }
  0x39   : > { %9556 = vmatpush3.bf16.msra.mxu1 %v10089_v19  ;;  %v3605_v19 = vxor.u32 %v10883_v46, %v11026_v60  ;;  %v8874_v46 = vshrl.u32 %v3609_v21, 16 }
  0x3a   : > { %9765 = vmatprep.subr.bf16.mxu1 %v10092_v35  ;;  %v8873_v35 = vshrl.u32 %v3608_v10, 16  ;;  %v3990_v48 = vxor.u32 %v8871_v26, %v3606_v5  ;;  %v3996_v45 = vxor.u32 %v8877_v38, %v3612_v14  ;;  %v4122_v43 = vmul.u32 2146121005, %v3994_v53 }
  0x3b   : > { %v8870_v39 = vshrl.u32 %v3605_v19, 16  ;;  %v3993_v52 = vxor.u32 %v8874_v46, %v3609_v21  ;;  %v11070_v5 = vxor.u32 %v11026_v60, %v10896_v51  ;;  %v8872_v14 = vshrl.u32 %v3607_v44, 16 }
  0x3c   : > { %v3992_v50 = vxor.u32 %v8873_v35, %v3608_v10  ;;  %v4118_v37 = vmul.u32 2146121005, %v3990_v48  ;;  %v4124_v10 = vmul.u32 2146121005, %v3996_v45  ;;  %v9003_v26 = vshrl.u32 %v4122_v43, 15 }
  0x3d   : > { %v3989_v42 = vxor.u32 %v8870_v39, %v3605_v19  ;;  %15065 = vst [vmem:[#allocation27_spill] sm:$0xff] %v11070_v5  ;;  %v8876_v19 = vshrl.u32 %v3611_v49, 16  ;;  %v4121_v32 = vmul.u32 2146121005, %v3993_v52  ;;  %v3991_v48 = vxor.u32 %v8872_v14, %v3607_v44 }
  0x3e   : > { %v4120_v7 = vmul.u32 2146121005, %v3992_v50  ;;  %v8999_v21 = vshrl.u32 %v4118_v37, 15  ;;  %v9005_v61 = vshrl.u32 %v4124_v10, 15  ;;  %v4506_v39 = vxor.u32 %v9003_v26, %v4122_v43 }
  0x3f   : > { %v4117_v58 = vmul.u32 2146121005, %v3989_v42  ;;  %v3995_v53 = vxor.u32 %v8876_v19, %v3611_v49  ;;  %v9002_v46 = vshrl.u32 %v4121_v32, 15  ;;  %v4119_v51 = vmul.u32 2146121005, %v3991_v48 }
  0x40   : > { %v9001_v35 = vshrl.u32 %v4120_v7, 15  ;;  %v4502_v38 = vxor.u32 %v8999_v21, %v4118_v37  ;;  %v4508_v17 = vxor.u32 %v9005_v61, %v4124_v10  ;;  %v4634_v45 = vmul.u32 2221713035, %v4506_v39 }
  0x41   : > { %v8998_v47 = vshrl.u32 %v4117_v58, 15  ;;  %v4123_v16 = vmul.u32 2146121005, %v3995_v53  ;;  %v4505_v3 = vxor.u32 %v9002_v46, %v4121_v32  ;;  %v9000_v42 = vshrl.u32 %v4119_v51, 15 }
  0x42   : > { %v4504_v22 = vxor.u32 %v9001_v35, %v4120_v7  ;;  %v4630_v50 = vmul.u32 2221713035, %v4502_v38  ;;  %v4636_v62 = vmul.u32 2221713035, %v4508_v17  ;;  %v9131_v5 = vshrl.u32 %v4634_v45, 16 }
  0x43   : > { %v4501_v12 = vxor.u32 %v8998_v47, %v4117_v58  ;;  %v9004_v52 = vshrl.u32 %v4123_v16, 15  ;;  %v4633_v49 = vmul.u32 2221713035, %v4505_v3  ;;  %v4503_v14 = vxor.u32 %v9000_v42, %v4119_v51 }
  0x44   : > { %v4632_v0 = vmul.u32 2221713035, %v4504_v22  ;;  %v9127_v59 = vshrl.u32 %v4630_v50, 16  ;;  %v9133_v43 = vshrl.u32 %v4636_v62, 16  ;;  %v11074_v10 = vxor.u32 %v9131_v5, %v4634_v45 }
  0x45   : > { %v4629_v44 = vmul.u32 2221713035, %v4501_v12  ;;  %v4507_v19 = vxor.u32 %v9004_v52, %v4123_v16  ;;  %v9130_v26 = vshrl.u32 %v4633_v49, 16  ;;  %v4631_v17 = vmul.u32 2221713035, %v4503_v14 }
  0x46   : > { %v9129_v37 = vshrl.u32 %v4632_v0, 16  ;;  %v11072_v7 = vxor.u32 %v9127_v59, %v4630_v50  ;;  %v11078_v22 = vxor.u32 %v9133_v43, %v4636_v62  ;;  %v5146_v3 = vand.u32 8388607, %v11074_v10 }
  0x47   : > { %v9126_v21 = vshrl.u32 %v4629_v44, 16  ;;  %v4635_v32 = vmul.u32 2221713035, %v4507_v19  ;;  %v3614_v12 = vxor.u32 %v10941_v9, %v11026_v60  ;;  %v3618_v59 = vxor.u32 %v10947_v11, %v11026_v60 }
  0x48   : > { %v11076_v58 = vxor.u32 %v9129_v37, %v4632_v0  ;;  %v5142_v35 = vand.u32 8388607, %v11072_v7  ;;  %v6038_v16 = vand.u32 2147483648, %v11072_v7  ;;  %v6042_v5 = vand.u32 2147483648, %v11074_v10 }
  0x49   : > { %v5148_v62 = vand.u32 8388607, %v11078_v22  ;;  %v5274_v48 = vor.u32 1065353216, %v5146_v3  ;;  %v11090_v53 = vxor.u32 %v9126_v21, %v4629_v44  ;;  %v11092_v38 = vxor.u32 %v9130_v26, %v4633_v49 }
  0x4a   : > { %v5144_v0 = vand.u32 8388607, %v11076_v58  ;;  %v5270_v61 = vor.u32 1065353216, %v5142_v35  ;;  %v9128_v9 = vshrl.u32 %v4631_v17, 16  ;;  %v9132_v46 = vshrl.u32 %v4635_v32, 16 }
  0x4b   : > { %v5276_v47 = vor.u32 1065353216, %v5148_v62  ;;  %v5530_v11 = vsub.f32 2.0, %v5274_v48  ;;  %v5141_v50 = vand.u32 8388607, %v11090_v53  ;;  %v5145_v45 = vand.u32 8388607, %v11092_v38 }
  0x4c   : > { %v5272_v39 = vor.u32 1065353216, %v5144_v0  ;;  %v5526_v51 = vsub.f32 2.0, %v5270_v61  ;;  %v6040_v37 = vand.u32 2147483648, %v11076_v58  ;;  %v6044_v43 = vand.u32 2147483648, %v11078_v22  ;;  %v10091_v22 = vld [vmem:[%s14923_s2 + $0x38] sm:$0xff]  }
  0x4d   : > { %v5532_v52 = vsub.f32 2.0, %v5276_v47  ;;  %v5269_v44 = vor.u32 1065353216, %v5141_v50  ;;  %v5273_v49 = vor.u32 1065353216, %v5145_v45  ;;  %v11098_v14 = vxor.u32 %v9128_v9, %v4631_v17 }
  0x4e   : > { %v5528_v42 = vsub.f32 2.0, %v5272_v39  ;;  %10122 = vlog2.f32 %v5526_v51  ;;  %v11100_v19 = vxor.u32 %v9132_v46, %v4635_v32  ;;  %v8879_v21 = vshrl.u32 %v3614_v12, 16 }
  0x4f   : > { %10124 = vlog2.f32 %v5530_v11  ;;  %v8883_v26 = vshrl.u32 %v3618_v59, 16  ;;  %v5525_v35 = vsub.f32 2.0, %v5269_v44  ;;  %v5529_v3 = vsub.f32 2.0, %v5273_v49 }
  0x50   : > { %10126 = vlog2.f32 %v5528_v42  ;;  %v5143_v0 = vand.u32 8388607, %v11098_v14  ;;  %v5147_v48 = vand.u32 8388607, %v11100_v19  ;;  %v3998_v39 = vxor.u32 %v8879_v21, %v3614_v12 }
  0x51   : > { %10128 = vlog2.f32 %v5532_v52  ;;  %v4002_v47 = vxor.u32 %v8883_v26, %v3618_v59  ;;  %v3616_v9 = vxor.u32 %v10956_v15, %v11026_v60  ;;  %v3620_v46 = vxor.u32 %v10968_v20, %v11026_v60 }
  0x52   : > { %10130 = vlog2.f32 %v5525_v35  ;;  %v5271_v17 = vor.u32 1065353216, %v5143_v0  ;;  %v5275_v32 = vor.u32 1065353216, %v5147_v48  ;;  %v4126_v11 = vmul.u32 2146121005, %v3998_v39 }
  0x53   : > { %10132 = vlog2.f32 %v5529_v3  ;;  %v4130_v50 = vmul.u32 2146121005, %v4002_v47  ;;  %v3613_v45 = vxor.u32 %v10979_v28, %v11026_v60  ;;  %v8881_v52 = vshrl.u32 %v3616_v9, 16 }
  0x54   : > { %v5527_v51 = vsub.f32 2.0, %v5271_v17  ;;  %v5531_v42 = vsub.f32 2.0, %v5275_v32  ;;  %v8885_v44 = vshrl.u32 %v3620_v46, 16  ;;  %v3617_v12 = vxor.u32 %v10982_v31, %v11026_v60 }
  0x55   : > { %v9007_v59 = vshrl.u32 %v4126_v11, 15  ;;  %v9011_v49 = vshrl.u32 %v4130_v50, 15  ;;  %v8878_v21 = vshrl.u32 %v3613_v45, 16  ;;  %v4000_v15 = vxor.u32 %v8881_v52, %v3616_v9 }
  0x56   : > { %10134 = vlog2.f32 %v5527_v51  ;;  %v4004_v26 = vxor.u32 %v8885_v44, %v3620_v46  ;;  %v8882_v20 = vshrl.u32 %v3617_v12, 16  ;;  %v11116_v28 = vxor.u32 %v10985_v33, %v11026_v60 }
  0x57   : > { %10136 = vlog2.f32 %v5531_v42  ;;  %v4510_v35 = vxor.u32 %v9007_v59, %v4126_v11  ;;  %v4514_v3 = vxor.u32 %v9011_v49, %v4130_v50  ;;  %v3997_v0 = vxor.u32 %v8878_v21, %v3613_v45 }
  0x58   : > { %v4128_v48 = vmul.u32 2146121005, %v4000_v15  ;;  %v4132_v17 = vmul.u32 2146121005, %v4004_v26  ;;  %v11118_v39 = vxor.u32 %v8882_v20, %v3617_v12  ;;  %v11122_v31 = vxor.u32 %v10991_v41, %v11026_v60 }
  0x59   : > { %v4638_v9 = vmul.u32 2221713035, %v4510_v35  ;;  %v4642_v46 = vmul.u32 2221713035, %v4514_v3  ;;  %v11131_v26 = vxor.u32 %v11015_v54, %v11026_v60  ;;  %v15066_v10 = vand.u32 2147483648, %v11090_v53 }
  0x5a   : > { %v9009_v11 = vshrl.u32 %v4128_v48, 15  ;;  %v9013_v50 = vshrl.u32 %v4132_v17, 15  ;;  %v4125_v45 = vmul.u32 2146121005, %v3997_v0  ;;  %v4129_v59 = vmul.u32 2146121005, %v11118_v39 }
  0x5b   : > { %v10123_v51 = vpop.eup %10122  ;;  %v9135_v44 = vshrl.u32 %v4638_v9, 16  ;;  %v9139_v12 = vshrl.u32 %v4642_v46, 16  ;;  %v8884_v15 = vshrl.u32 %v11122_v31, 16 }
  0x5c   : > { %v10125_v42 = vpop.eup %10124  ;;  %v5656_v52 = vmul.f32 0.6931472, %v10123_v51  ;;  %v4512_v21 = vxor.u32 %v9009_v11, %v4128_v48  ;;  %v4516_v39 = vxor.u32 %v9013_v50, %v4132_v17  ;;  %v9006_v61 = vshrl.u32 %v4125_v45, 15 }
  0x5d   : > { %v10127_v41 = vpop.eup %10126  ;;  %v5664_v49 = vmul.f32 0.6931472, %v10125_v42  ;;  %v11133_v0 = vxor.u32 %v9135_v44, %v4638_v9  ;;  %v11135_v33 = vxor.u32 %v9139_v12, %v4642_v46 }
  0x5e   : > { %v10129_v20 = vpop.eup %10128  ;;  %v5910_v35 = vmul.f32 -0.1, %v5656_v52  ;;  %v5660_v3 = vmul.f32 0.6931472, %v10127_v41  ;;  %v4640_v41 = vmul.u32 2221713035, %v4512_v21 }
  0x5f   : > { %v10131_v51 = vpop.eup %10130  ;;  %v5914_v32 = vmul.f32 -0.1, %v5664_v49  ;;  %v5668_v47 = vmul.f32 0.6931472, %v10129_v20  ;;  %v5150_v54 = vand.u32 8388607, %v11133_v0 }
  0x60   : > { %v10133_v42 = vpop.eup %10132  ;;  %v6294_v48 = vor.u32 %v6038_v16, %v5910_v35  ;;  %v5912_v11 = vmul.f32 -0.1, %v5660_v3  ;;  %v5654_v62 = vmul.f32 0.6931472, %v10131_v51  ;;  %v5154_v46 = vand.u32 8388607, %v11135_v33 }
  0x61   : > { %v6298_v52 = vor.u32 %v6042_v5, %v5914_v32  ;;  %v5916_v9 = vmul.f32 -0.1, %v5668_v47  ;;  %v5662_v44 = vmul.f32 0.6931472, %v10133_v42  ;;  %v5278_v50 = vor.u32 1065353216, %v5150_v54 }
  0x62   : > { %v6296_v12 = vor.u32 %v6040_v37, %v5912_v11  ;;  %v5909_v17 = vmul.f32 -0.1, %v5654_v62  ;;  %v5282_v35 = vor.u32 1065353216, %v5154_v46  ;;  %v4509_v51 = vxor.u32 %v9006_v61, %v4125_v45 }
  0x63   : > { %v10135_v49 = vpop.eup %10134  ;;  %v6614_v7 = vpack.c.bf16 %v6298_v52, %v6294_v48  ;;  %v6300_v16 = vor.u32 %v6044_v43, %v5916_v9  ;;  %v5913_v20 = vmul.f32 -0.1, %v5662_v44  ;;  %v5534_v32 = vsub.f32 2.0, %v5278_v50 }
  0x64   : > { %v10137_v3 = vpop.eup %10136  ;;  %v6293_v5 = vor.u32 %v15066_v10, %v5909_v17  ;;  %v5658_v47 = vmul.f32 0.6931472, %v10135_v49  ;;  %v15067_v37 = vand.u32 2147483648, %v11092_v38  ;;  %v5538_v42 = vsub.f32 2.0, %v5282_v35  ;;  %v10094_v38 = vld [vmem:[%s14923_s2 + $0x70] sm:$0xff]  }
  0x65   : > { %6901 = vmatprep.mubr.bf16.mxu0 %v6614_v7  ;;  %v6616_v58 = vpack.c.bf16 %v6300_v16, %v6296_v12  ;;  %v5666_v21 = vmul.f32 0.6931472, %v10137_v3  ;;  %10138 = vlog2.f32 %v5534_v32  ;;  %v4644_v43 = vmul.u32 2221713035, %v4516_v39 }
  0x66   : > { %v6297_v62 = vor.u32 %v15067_v37, %v5913_v20  ;;  %v5911_v48 = vmul.f32 -0.1, %v5658_v47  ;;  %v9137_v11 = vshrl.u32 %v4640_v41, 16  ;;  %10140 = vlog2.f32 %v5538_v42 }
  0x67   : > { %7062 = vmatprep.mubr.bf16.mxu1 %v6616_v58  ;;  %v5915_v54 = vmul.f32 -0.1, %v5666_v21  ;;  %v9010_v61 = vshrl.u32 %v4129_v59, 15  ;;  %v15068_v45 = vand.u32 2147483648, %v11098_v14  ;;  %v9141_v9 = vshrl.u32 %v4644_v43, 16  ;;  %v10093_v14 = vld [vmem:[%s14923_s2 + $0xb8] sm:$0xff]  }
  0x68   : > { %v6613_v53 = vpack.c.bf16 %v6297_v62, %v6293_v5  ;;  %v11159_v44 = vxor.u32 %v9137_v11, %v4640_v41  ;;  %v4637_v46 = vmul.u32 2221713035, %v4509_v51  ;;  %v15069_v39 = vand.u32 2147483648, %v11100_v19 }
  0x69   : > { %v6295_v52 = vor.u32 %v15068_v45, %v5911_v48  ;;  %v4513_v17 = vxor.u32 %v9010_v61, %v4129_v59  ;;  %v15070_v50 = vshrl.u32 %v11116_v28, 16  ;;  %v4003_v7 = vxor.u32 %v8884_v15, %v11122_v31  ;;  %v10095_v59 = vld [vmem:[%s14923_s2 + $0x30] sm:$0xff]  }
  0x6a   : > { %6902 = vmatmul.mubr.bf16.vlgmr.msra.gmra.mxu0 %v6613_v53  ;;  %v6299_v12 = vor.u32 %v15069_v39, %v5915_v54  ;;  %v6046_v41 = vand.u32 2147483648, %v11133_v0  ;;  %v11171_v16 = vxor.u32 %v9141_v9, %v4644_v43  ;;  %v5152_v20 = vand.u32 8388607, %v11159_v44  ;;  %v10096_v15 = vld [vmem:[%s14923_s2 + $0xf0] sm:$0xff]  }
  0x6b   : > { %v3999_v49 = vxor.u32 %v15070_v50, %v11116_v28  ;;  %9654 = vmatpush3.bf16.msra.mxu0 %v10091_v22  ;;  %v9134_v19 = vshrl.u32 %v4637_v46, 16  ;;  %v4641_v28 = vmul.u32 2221713035, %v4513_v17  ;;  %v3626_v31 = vxor.u32 %v11029_v63, %v11026_v60 }
  0x6c   : > { %v6615_v35 = vpack.c.bf16 %v6299_v12, %v6295_v52  ;;  %9655 = vmatprep.subr.bf16.mxu0 %v10094_v38  ;;  %v6050_v10 = vand.u32 2147483648, %v11135_v33  ;;  %v5156_v5 = vand.u32 8388607, %v11171_v16  ;;  %v5280_v47 = vor.u32 1065353216, %v5152_v20  ;;  %v10097_v33 = vld [vmem:[%s14923_s2 + $0xb0] sm:$0xff]  }
  0x6d   : > { %v4127_v3 = vmul.u32 2146121005, %v3999_v49  ;;  %v11184_v32 = vxor.u32 %v9134_v19, %v4637_v46  ;;  %v9138_v51 = vshrl.u32 %v4641_v28, 16  ;;  %v4131_v58 = vmul.u32 2146121005, %v4003_v7 }
  0x6e   : > { %7063 = vmatmul.mubr.bf16.vlgmr.msra.gmra.mxu1 %v6615_v35  ;;  %v8887_v62 = vshrl.u32 %v11131_v26, 16  ;;  %v5284_v63 = vor.u32 1065353216, %v5156_v5  ;;  %v5536_v21 = vsub.f32 2.0, %v5280_v47  ;;  %v6048_v42 = vand.u32 2147483648, %v11159_v44 }
  0x6f   : > { %v9008_v37 = vshrl.u32 %v4127_v3, 15  ;;  %9766 = vmatpush3.bf16.msra.mxu1 %v10093_v14  ;;  %v5149_v48 = vand.u32 8388607, %v11184_v32  ;;  %9656 = vmatpush3.bf16.msra.mxu0 %v10095_v59  ;;  %v11192_v22 = vxor.u32 %v9138_v51, %v4641_v28  ;;  %v9012_v43 = vshrl.u32 %v4131_v58, 15 }
  0x70   : > { %v8891_v53 = vshrl.u32 %v3626_v31, 16  ;;  %9767 = vmatprep.subr.bf16.mxu1 %v10096_v15  ;;  %v5540_v54 = vsub.f32 2.0, %v5284_v63  ;;  %10142 = vlog2.f32 %v5536_v21  ;;  %v4006_v38 = vxor.u32 %v8887_v62, %v11131_v26 }
  0x71   : > { %v4511_v11 = vxor.u32 %v9008_v37, %v4127_v3  ;;  %v5277_v61 = vor.u32 1065353216, %v5149_v48  ;;  %v6052_v45 = vand.u32 2147483648, %v11171_v16  ;;  %v5153_v52 = vand.u32 8388607, %v11192_v22 }
  0x72   : > { %v4515_v9 = vxor.u32 %v9012_v43, %v4131_v58  ;;  %10144 = vlog2.f32 %v5540_v54  ;;  %v4010_v12 = vxor.u32 %v8891_v53, %v3626_v31  ;;  %v4134_v17 = vmul.u32 2146121005, %v4006_v38  ;;  %v10139_v50 = vpop.eup %10138 }
  0x73   : > { %v4639_v46 = vmul.u32 2221713035, %v4511_v11  ;;  %v5533_v39 = vsub.f32 2.0, %v5277_v61  ;;  %9768 = vmatpush3.bf16.msra.mxu1 %v10097_v33  ;;  %v5281_v49 = vor.u32 1065353216, %v5153_v52  ;;  %v3624_v20 = vxor.u32 %v11018_v55, %v11026_v60  ;;  %v10141_v19 = vpop.eup %10140  ;;  %v10098_v55 = vld [vmem:[%s14923_s2 + $0x68] sm:$0xff]  }
  0x74   : > { %v4643_v7 = vmul.u32 2221713035, %v4515_v9  ;;  %v5672_v26 = vmul.f32 0.6931472, %v10139_v50  ;;  %v4138_v59 = vmul.u32 2146121005, %v4010_v12  ;;  %v3628_v58 = vxor.u32 %v11032_v1, %v11026_v60  ;;  %9657 = vmatprep.subr.bf16.mxu0 %v10098_v55 }
  0x75   : > { %v9136_v14 = vshrl.u32 %v4639_v46, 16  ;;  %10146 = vlog2.f32 %v5533_v39  ;;  %v9015_v35 = vshrl.u32 %v4134_v17, 15  ;;  %v5680_v28 = vmul.f32 0.6931472, %v10141_v19 }
  0x76   : > { %v5537_v3 = vsub.f32 2.0, %v5281_v49  ;;  %v9140_v15 = vshrl.u32 %v4643_v7, 16  ;;  %v5918_v31 = vmul.f32 -0.1, %v5672_v26  ;;  %v9019_v47 = vshrl.u32 %v4138_v59, 15 }
  0x77   : > { %v11199_v5 = vxor.u32 %v9136_v14, %v4639_v46  ;;  %v4518_v51 = vxor.u32 %v9015_v35, %v4134_v17  ;;  %v5922_v37 = vmul.f32 -0.1, %v5680_v28  ;;  %v6045_v48 = vand.u32 2147483648, %v11184_v32 }
  0x78   : > { %10148 = vlog2.f32 %v5537_v3  ;;  %v11206_v62 = vxor.u32 %v9140_v15, %v4643_v7  ;;  %v6302_v21 = vor.u32 %v6046_v41, %v5918_v31  ;;  %v4522_v33 = vxor.u32 %v9019_v47, %v4138_v59 }
  0x79   : > { %v5151_v63 = vand.u32 8388607, %v11199_v5  ;;  %v4646_v43 = vmul.u32 2221713035, %v4518_v51  ;;  %v6306_v11 = vor.u32 %v6050_v10, %v5922_v37  ;;  %v6049_v1 = vand.u32 2147483648, %v11192_v22 }
  0x7a   : > { %v5155_v53 = vand.u32 8388607, %v11206_v62  ;;  %v4650_v61 = vmul.u32 2221713035, %v4522_v33  ;;  %v8889_v52 = vshrl.u32 %v3624_v20, 16  ;;  %v8893_v9 = vshrl.u32 %v3628_v58, 16 }
  0x7b   : > { %v5279_v54 = vor.u32 1065353216, %v5151_v63  ;;  %v9143_v38 = vshrl.u32 %v4646_v43, 16  ;;  %v6618_v46 = vpack.c.bf16 %v6306_v11, %v6302_v21  ;;  %v3621_v0 = vxor.u32 %v11021_v56, %v11026_v60 }
  0x7c   : > { %v5283_v39 = vor.u32 1065353216, %v5155_v53  ;;  %v9147_v41 = vshrl.u32 %v4650_v61, 16  ;;  %v4008_v17 = vxor.u32 %v8889_v52, %v3624_v20  ;;  %v4012_v10 = vxor.u32 %v8893_v9, %v3628_v58 }
  0x7d   : > { %v5535_v12 = vsub.f32 2.0, %v5279_v54  ;;  %v11216_v32 = vxor.u32 %v9143_v38, %v4646_v43  ;;  %v10143_v50 = vpop.eup %10142  ;;  %6909 = vmatprep.mubr.bf16.mxu0 %v6618_v46  ;;  %v3625_v7 = vxor.u32 %v11035_v2, %v11026_v60  ;;  %v8886_v14 = vshrl.u32 %v3621_v0, 16 }
  0x7e   : > { %v5539_v49 = vsub.f32 2.0, %v5283_v39  ;;  %v5676_v19 = vmul.f32 0.6931472, %v10143_v50  ;;  %v6047_v26 = vand.u32 2147483648, %v11199_v5  ;;  %v11221_v59 = vxor.u32 %v9147_v41, %v4650_v61 }
  0x7f   : > { %10150 = vlog2.f32 %v5535_v12  ;;  %v5158_v56 = vand.u32 8388607, %v11216_v32  ;;  %v10145_v35 = vpop.eup %10144  ;;  %v4136_v28 = vmul.u32 2146121005, %v4008_v17  ;;  %v4140_v20 = vmul.u32 2146121005, %v4012_v10 }
  0x80   : > { %10152 = vlog2.f32 %v5539_v49  ;;  %v8890_v3 = vshrl.u32 %v3625_v7, 16  ;;  %v5684_v15 = vmul.f32 0.6931472, %v10145_v35  ;;  %v5920_v31 = vmul.f32 -0.1, %v5676_v19 }
  0x81   : > { %v5162_v47 = vand.u32 8388607, %v11221_v59  ;;  %v4005_v51 = vxor.u32 %v8886_v14, %v3621_v0  ;;  %v6051_v2 = vand.u32 2147483648, %v11206_v62  ;;  %v5286_v55 = vor.u32 1065353216, %v5158_v56 }
  0x82   : > { %v10147_v58 = vpop.eup %10146  ;;  %v9017_v37 = vshrl.u32 %v4136_v28, 15  ;;  %v9021_v63 = vshrl.u32 %v4140_v20, 15  ;;  %v5924_v21 = vmul.f32 -0.1, %v5684_v15  ;;  %v6304_v33 = vor.u32 %v6048_v42, %v5920_v31 }
  0x83   : > { %v5670_v43 = vmul.f32 0.6931472, %v10147_v58  ;;  %v5290_v11 = vor.u32 1065353216, %v5162_v47  ;;  %v5542_v53 = vsub.f32 2.0, %v5286_v55  ;;  %v4009_v38 = vxor.u32 %v8890_v3, %v3625_v7 }
  0x84   : > { %v4520_v54 = vxor.u32 %v9017_v37, %v4136_v28  ;;  %v4524_v61 = vxor.u32 %v9021_v63, %v4140_v20  ;;  %v6308_v9 = vor.u32 %v6052_v45, %v5924_v21  ;;  %v4133_v12 = vmul.u32 2146121005, %v4005_v51 }
  0x85   : > { %v10149_v52 = vpop.eup %10148  ;;  %v5917_v46 = vmul.f32 -0.1, %v5670_v43  ;;  %v5546_v39 = vsub.f32 2.0, %v5290_v11  ;;  %10154 = vlog2.f32 %v5542_v53  ;;  %v4137_v42 = vmul.u32 2146121005, %v4009_v38 }
  0x86   : > { %v5678_v0 = vmul.f32 0.6931472, %v10149_v52  ;;  %v4648_v41 = vmul.u32 2221713035, %v4520_v54  ;;  %v4652_v17 = vmul.u32 2221713035, %v4524_v61  ;;  %v6620_v10 = vpack.c.bf16 %v6308_v9, %v6304_v33 }
  0x87   : > { %v6301_v44 = vor.u32 %v6045_v48, %v5917_v46  ;;  %10156 = vlog2.f32 %v5546_v39  ;;  %v9014_v19 = vshrl.u32 %v4133_v12, 15  ;;  %v6054_v7 = vand.u32 2147483648, %v11216_v32  ;;  %v10099_v46 = vld [vmem:[%s14923_s2 + $0x28] sm:$0xff]  }
  0x88   : > { %v5921_v50 = vmul.f32 -0.1, %v5678_v0  ;;  %v9145_v49 = vshrl.u32 %v4648_v41, 16  ;;  %v9149_v14 = vshrl.u32 %v4652_v17, 16  ;;  %7070 = vmatprep.mubr.bf16.mxu1 %v6620_v10  ;;  %v9018_v16 = vshrl.u32 %v4137_v42, 15  ;;  %v10100_v39 = vld [vmem:[%s14923_s2 + $0xe8] sm:$0xff]   ;;  %9658 = vmatpush3.bf16.msra.mxu0 %v10099_v46 }
  0x89   : > { %v3499_v45 = vadd.s32 512, %v11050_v24  ;;  %v3623_v56 = vxor.u32 %v11024_v57, %v11026_v60  ;;  %v4517_v20 = vxor.u32 %v9014_v19, %v4133_v12  ;;  %v6058_v15 = vand.u32 2147483648, %v11221_v59  ;;  %v10101_v12 = vld [vmem:[%s14923_s2 + $0xa8] sm:$0xff]   ;;  %9769 = vmatprep.subr.bf16.mxu1 %v10100_v39 }
  0x8a   : > { %v6305_v35 = vor.u32 %v6049_v1, %v5921_v50  ;;  %v11236_v28 = vxor.u32 %v9145_v49, %v4648_v41  ;;  %v11238_v48 = vxor.u32 %v9149_v14, %v4652_v17  ;;  %v4521_v31 = vxor.u32 %v9018_v16, %v4137_v42  ;;  %9770 = vmatpush3.bf16.msra.mxu1 %v10101_v12 }
  0x8b   : > { %v3627_v47 = vxor.u32 %v3499_v45, %v11026_v60  ;;  %v8888_v51 = vshrl.u32 %v3623_v56, 16  ;;  %v4645_v1 = vmul.u32 2221713035, %v4517_v20  ;;  %v177_v21 = vadd.s32 48, %v10779_v6 }
  0x8c   : > { %v10151_v3 = vpop.eup %10150  ;;  %v6617_v58 = vpack.c.bf16 %v6305_v35, %v6301_v44  ;;  %v5160_v37 = vand.u32 8388607, %v11236_v28  ;;  %v5164_v57 = vand.u32 8388607, %v11238_v48  ;;  %v4649_v63 = vmul.u32 2221713035, %v4521_v31 }
  0x8d   : > { %v5674_v55 = vmul.f32 0.6931472, %v10151_v3  ;;  %v10153_v22 = vpop.eup %10152  ;;  %v178_v33 = vadd.s32 56, %v10779_v6  ;;  %v9142_v61 = vshrl.u32 %v4645_v1, 16  ;;  %v8892_v52 = vshrl.u32 %v3627_v47, 16 }
  0x8e   : > { %6910 = vmatmul.mubr.bf16.gmra.mxu0 %v6617_v58  ;;  %v5682_v43 = vmul.f32 0.6931472, %v10153_v22  ;;  %v5288_v53 = vor.u32 1065353216, %v5160_v37  ;;  %v5292_v54 = vor.u32 1065353216, %v5164_v57  ;;  %v9146_v38 = vshrl.u32 %v4649_v63, 16 }
  0x8f   : > { %v5919_v11 = vmul.f32 -0.1, %v5674_v55  ;;  %v4007_v9 = vxor.u32 %v8888_v51, %v3623_v56  ;;  %v11257_v44 = vxor.u32 %v9142_v61, %v4645_v1  ;;  %v4011_v50 = vxor.u32 %v8892_v52, %v3627_v47 }
  0x90   : > { %v5923_v0 = vmul.f32 -0.1, %v5682_v43  ;;  %v5544_v17 = vsub.f32 2.0, %v5288_v53  ;;  %v5548_v10 = vsub.f32 2.0, %v5292_v54  ;;  %v11259_v42 = vxor.u32 %v9146_v38, %v4649_v63 }
  0x91   : > { %v6303_v41 = vor.u32 %v6047_v26, %v5919_v11  ;;  %v4135_v49 = vmul.u32 2146121005, %v4007_v9  ;;  %v216_v19 = vadd.s32 %v10772_v4, %v177_v21  ;;  %v217_v16 = vadd.s32 %v10772_v4, %v178_v33 }
  0x92   : > { %v6307_v14 = vor.u32 %v6051_v2, %v5923_v0  ;;  %10158 = vlog2.f32 %v5544_v17  ;;  %v10155_v5 = vpop.eup %10154  ;;  %v6056_v26 = vand.u32 2147483648, %v11236_v28  ;;  %v5157_v45 = vand.u32 8388607, %v11257_v44 }
  0x93   : > { %10160 = vlog2.f32 %v5548_v10  ;;  %v5161_v56 = vand.u32 8388607, %v11259_v42  ;;  %v5688_v3 = vmul.f32 0.6931472, %v10155_v5  ;;  %v6060_v62 = vand.u32 2147483648, %v11238_v48 }
  0x94   : > { %v10157_v35 = vpop.eup %10156  ;;  %v6619_v20 = vpack.c.bf16 %v6307_v14, %v6303_v41  ;;  %v4139_v2 = vmul.u32 2146121005, %v4011_v50  ;;  %v5285_v47 = vor.u32 1065353216, %v5157_v45  ;;  %v9016_v58 = vshrl.u32 %v4135_v49, 15 }
  0x95   : > { %v5696_v31 = vmul.f32 0.6931472, %v10157_v35  ;;  %v5289_v51 = vor.u32 1065353216, %v5161_v56  ;;  %v5926_v55 = vmul.f32 -0.1, %v5688_v3  ;;  %v11269_v57 = vmul.u32 1024, %v216_v19 }
  0x96   : > { %7071 = vmatmul.mubr.bf16.gmra.mxu1 %v6619_v20  ;;  %v9020_v37 = vshrl.u32 %v4139_v2, 15  ;;  %v11271_v22 = vmul.u32 1024, %v217_v16  ;;  %v5541_v63 = vsub.f32 2.0, %v5285_v47  ;;  %v4519_v33 = vxor.u32 %v9016_v58, %v4135_v49 }
  0x97   : > { %v5930_v1 = vmul.f32 -0.1, %v5696_v31  ;;  %v5545_v21 = vsub.f32 2.0, %v5289_v51  ;;  %v6310_v43 = vor.u32 %v6054_v7, %v5926_v55  ;;  %v11277_v53 = vadd.s32 %v11269_v57, %v10796_v13 }
  0x98   : > { %v4523_v11 = vxor.u32 %v9020_v37, %v4139_v2  ;;  %v11281_v54 = vadd.s32 %v11271_v22, %v10796_v13  ;;  %10162 = vlog2.f32 %v5541_v63  ;;  %v4647_v38 = vmul.u32 2221713035, %v4519_v33 }
  0x99   : > { %v6314_v61 = vor.u32 %v6058_v15, %v5930_v1  ;;  %v11287_v52 = vadd.s32 %v11269_v57, %v10806_v18  ;;  %10164 = vlog2.f32 %v5545_v21  ;;  %v3502_v7 = vadd.s32 512, %v11277_v53 }
  0x9a   : > { %v4651_v32 = vmul.u32 2221713035, %v4523_v11  ;;  %v3506_v9 = vadd.s32 512, %v11281_v54  ;;  %v9144_v39 = vshrl.u32 %v4647_v38, 16  ;;  %v11293_v12 = vadd.s32 %v11271_v22, %v10806_v18 }
  0x9b   : > { %v6622_v46 = vpack.c.bf16 %v6314_v61, %v6310_v43  ;;  %v3504_v59 = vadd.s32 512, %v11287_v52  ;;  %v3630_v0 = vxor.u32 %v3502_v7, %v11026_v60  ;;  %v11300_v17 = vadd.s32 %v11269_v57, %v10784_v8 }
  0x9c   : > { %v9148_v15 = vshrl.u32 %v4651_v32, 16  ;;  %v3634_v41 = vxor.u32 %v3506_v9, %v11026_v60  ;;  %v6053_v10 = vand.u32 2147483648, %v11257_v44  ;;  %v11303_v50 = vxor.u32 %v9144_v39, %v4647_v38 }
  0x9d   : > { %6917 = vmatprep.mubr.bf16.mxu0 %v6622_v46  ;;  %v3508_v49 = vadd.s32 512, %v11293_v12  ;;  %v3632_v14 = vxor.u32 %v3504_v59, %v11026_v60  ;;  %v6057_v19 = vand.u32 2147483648, %v11259_v42  ;;  %v8895_v5 = vshrl.u32 %v3630_v0, 16 }
  0x9e   : > { %v11308_v16 = vxor.u32 %v9148_v15, %v4651_v32  ;;  %v8899_v45 = vshrl.u32 %v3634_v41, 16  ;;  %v5159_v35 = vand.u32 8388607, %v11303_v50  ;;  %v11314_v44 = vadd.s32 %v11271_v22, %v10784_v8 }
  0x9f   : > { %v10159_v56 = vpop.eup %10158  ;;  %v3636_v20 = vxor.u32 %v3508_v49, %v11026_v60  ;;  %v8897_v3 = vshrl.u32 %v3632_v14, 16  ;;  %v4014_v51 = vxor.u32 %v8895_v5, %v3630_v0  ;;  %v3501_v42 = vadd.s32 512, %v11300_v17 }
  0xa0   : > { %v10161_v2 = vpop.eup %10160  ;;  %v5692_v31 = vmul.f32 0.6931472, %v10159_v56  ;;  %v5163_v47 = vand.u32 8388607, %v11308_v16  ;;  %v5287_v55 = vor.u32 1065353216, %v5159_v35  ;;  %v4018_v37 = vxor.u32 %v8899_v45, %v3634_v41 }
  0xa1   : > { %v5700_v58 = vmul.f32 0.6931472, %v10161_v2  ;;  %v8901_v1 = vshrl.u32 %v3636_v20, 16  ;;  %v4142_v33 = vmul.u32 2146121005, %v4014_v51  ;;  %v4016_v43 = vxor.u32 %v8897_v3, %v3632_v14 }
  0xa2   : > { %v5928_v63 = vmul.f32 -0.1, %v5692_v31  ;;  %v5291_v21 = vor.u32 1065353216, %v5163_v47  ;;  %v5543_v61 = vsub.f32 2.0, %v5287_v55  ;;  %v4146_v38 = vmul.u32 2146121005, %v4018_v37 }
  0xa3   : > { %v5932_v11 = vmul.f32 -0.1, %v5700_v58  ;;  %v4020_v32 = vxor.u32 %v8901_v1, %v3636_v20  ;;  %v9023_v46 = vshrl.u32 %v4142_v33, 15  ;;  %v4144_v39 = vmul.u32 2146121005, %v4016_v43 }
  0xa4   : > { %v6312_v7 = vor.u32 %v6056_v26, %v5928_v63  ;;  %v5547_v9 = vsub.f32 2.0, %v5291_v21  ;;  %10166 = vlog2.f32 %v5543_v61  ;;  %v9027_v15 = vshrl.u32 %v4146_v38, 15 }
  0xa5   : > { %v6316_v59 = vor.u32 %v6060_v62, %v5932_v11  ;;  %v4148_v0 = vmul.u32 2146121005, %v4020_v32  ;;  %v10163_v41 = vpop.eup %10162  ;;  %v4526_v49 = vxor.u32 %v9023_v46, %v4142_v33  ;;  %v9025_v14 = vshrl.u32 %v4144_v39, 15 }
  0xa6   : > { %10168 = vlog2.f32 %v5547_v9  ;;  %v3505_v5 = vadd.s32 512, %v11314_v44  ;;  %v10165_v45 = vpop.eup %10164  ;;  %v5686_v35 = vmul.f32 0.6931472, %v10163_v41  ;;  %v4530_v28 = vxor.u32 %v9027_v15, %v4146_v38 }
  0xa7   : > { %v6624_v56 = vpack.c.bf16 %v6316_v59, %v6312_v7  ;;  %v9029_v26 = vshrl.u32 %v4148_v0, 15  ;;  %v5694_v20 = vmul.f32 0.6931472, %v10165_v45  ;;  %v4654_v3 = vmul.u32 2221713035, %v4526_v49 }
  0xa8   : > { %v4528_v2 = vxor.u32 %v9025_v14, %v4144_v39  ;;  %v3629_v48 = vxor.u32 %v3501_v42, %v11026_v60  ;;  %v5925_v62 = vmul.f32 -0.1, %v5686_v35  ;;  %v4658_v31 = vmul.u32 2221713035, %v4530_v28 }
  0xa9   : > { %7078 = vmatprep.mubr.bf16.mxu1 %v6624_v56  ;;  %v4532_v47 = vxor.u32 %v9029_v26, %v4148_v0  ;;  %v3633_v51 = vxor.u32 %v3505_v5, %v11026_v60  ;;  %v5929_v58 = vmul.f32 -0.1, %v5694_v20  ;;  %v9151_v55 = vshrl.u32 %v4654_v3, 16 }
  0xaa   : > { %v4656_v37 = vmul.u32 2221713035, %v4528_v2  ;;  %v8894_v1 = vshrl.u32 %v3629_v48, 16  ;;  %v6309_v63 = vor.u32 %v6053_v10, %v5925_v62  ;;  %v9155_v21 = vshrl.u32 %v4658_v31, 16 }
  0xab   : > { %v4660_v33 = vmul.u32 2221713035, %v4532_v47  ;;  %v8898_v43 = vshrl.u32 %v3633_v51, 16  ;;  %v6313_v11 = vor.u32 %v6057_v19, %v5929_v58  ;;  %v11325_v61 = vxor.u32 %v9151_v55, %v4654_v3 }
  0xac   : > { %v9153_v38 = vshrl.u32 %v4656_v37, 16  ;;  %v4013_v32 = vxor.u32 %v8894_v1, %v3629_v48  ;;  %v6055_v42 = vand.u32 2147483648, %v11303_v50  ;;  %v11328_v7 = vxor.u32 %v9155_v21, %v4658_v31 }
  0xad   : > { %v9157_v9 = vshrl.u32 %v4660_v33, 16  ;;  %v4017_v46 = vxor.u32 %v8898_v43, %v3633_v51  ;;  %v6621_v39 = vpack.c.bf16 %v6313_v11, %v6309_v63  ;;  %v6059_v59 = vand.u32 2147483648, %v11308_v16 }
  0xae   : > { %v5166_v15 = vand.u32 8388607, %v11325_v61  ;;  %v11332_v10 = vxor.u32 %v9153_v38, %v4656_v37  ;;  %v5170_v0 = vand.u32 8388607, %v11328_v7  ;;  %v4141_v41 = vmul.u32 2146121005, %v4013_v32 }
  0xaf   : > { %v11335_v19 = vxor.u32 %v9157_v9, %v4660_v33  ;;  %v11339_v49 = vadd.s32 %v11269_v57, %v10839_v30  ;;  %6918 = vmatmul.mubr.bf16.gmra.mxu0 %v6621_v39  ;;  %v6062_v14 = vand.u32 2147483648, %v11325_v61  ;;  %v4145_v16 = vmul.u32 2146121005, %v4017_v46 }
  0xb0   : > { %v5294_v50 = vor.u32 1065353216, %v5166_v15  ;;  %v5168_v5 = vand.u32 8388607, %v11332_v10  ;;  %v5298_v45 = vor.u32 1065353216, %v5170_v0  ;;  %v6066_v56 = vand.u32 2147483648, %v11328_v7 }
  0xb1   : > { %v5172_v35 = vand.u32 8388607, %v11335_v19  ;;  %v9022_v28 = vshrl.u32 %v4141_v41, 15  ;;  %v10167_v26 = vpop.eup %10166  ;;  %v9026_v2 = vshrl.u32 %v4145_v16, 15  ;;  %v11347_v57 = vadd.s32 %v11271_v22, %v10839_v30 }
  0xb2   : > { %v5550_v20 = vsub.f32 2.0, %v5294_v50  ;;  %v5296_v3 = vor.u32 1065353216, %v5168_v5  ;;  %v5690_v62 = vmul.f32 0.6931472, %v10167_v26  ;;  %v5554_v31 = vsub.f32 2.0, %v5298_v45 }
  0xb3   : > { %v10169_v48 = vpop.eup %10168  ;;  %v5300_v47 = vor.u32 1065353216, %v5172_v35  ;;  %v4525_v51 = vxor.u32 %v9022_v28, %v4141_v41  ;;  %v4529_v37 = vxor.u32 %v9026_v2, %v4145_v16  ;;  %v3503_v11 = vadd.s32 512, %v11339_v49 }
  0xb4   : > { %v5698_v58 = vmul.f32 0.6931472, %v10169_v48  ;;  %10170 = vlog2.f32 %v5550_v20  ;;  %v5552_v55 = vsub.f32 2.0, %v5296_v3  ;;  %v5927_v1 = vmul.f32 -0.1, %v5690_v62 }
  0xb5   : > { %10172 = vlog2.f32 %v5554_v31  ;;  %v5556_v63 = vsub.f32 2.0, %v5300_v47  ;;  %v4653_v21 = vmul.u32 2221713035, %v4525_v51  ;;  %v4657_v43 = vmul.u32 2221713035, %v4529_v37 }
  0xb6   : > { %v5931_v33 = vmul.f32 -0.1, %v5698_v58  ;;  %10174 = vlog2.f32 %v5552_v55  ;;  %v6311_v22 = vor.u32 %v6055_v42, %v5927_v1  ;;  %v3507_v32 = vadd.s32 512, %v11347_v57 }
  0xb7   : > { %10176 = vlog2.f32 %v5556_v63  ;;  %v9150_v38 = vshrl.u32 %v4653_v21, 16  ;;  %v9154_v46 = vshrl.u32 %v4657_v43, 16  ;;  %v3631_v39 = vxor.u32 %v3503_v11, %v11026_v60 }
  0xb8   : > { %v6315_v9 = vor.u32 %v6059_v59, %v5931_v33  ;;  %v179_v15 = vadd.s32 64, %v10779_v6  ;;  %v3635_v50 = vxor.u32 %v3507_v32, %v11026_v60  ;;  %v180_v5 = vadd.s32 72, %v10779_v6 }
  0xb9   : > { %v11354_v41 = vxor.u32 %v9150_v38, %v4653_v21  ;;  %v11358_v42 = vxor.u32 %v9154_v46, %v4657_v43  ;;  %v8896_v45 = vshrl.u32 %v3631_v39, 16  ;;  %v6068_v59 = vand.u32 2147483648, %v11335_v19 }
  0xba   : > { %v6623_v16 = vpack.c.bf16 %v6315_v9, %v6311_v22  ;;  %v218_v35 = vadd.s32 %v10772_v4, %v179_v15  ;;  %v8900_v26 = vshrl.u32 %v3635_v50, 16  ;;  %v219_v20 = vadd.s32 %v10772_v4, %v180_v5 }
  0xbb   : > { %v5165_v28 = vand.u32 8388607, %v11354_v41  ;;  %v5169_v3 = vand.u32 8388607, %v11358_v42  ;;  %v4015_v2 = vxor.u32 %v8896_v45, %v3631_v39  ;;  %v11368_v62 = vadd.s32 80, %v10779_v6 }
  0xbc   : > { %7079 = vmatmul.mubr.bf16.gmra.mxu1 %v6623_v16  ;;  %v11365_v48 = vmul.u32 1024, %v218_v35  ;;  %v4019_v51 = vxor.u32 %v8900_v26, %v3635_v50  ;;  %v11371_v58 = vmul.u32 1024, %v219_v20 }
  0xbd   : > { %v5293_v31 = vor.u32 1065353216, %v5165_v28  ;;  %v5297_v19 = vor.u32 1065353216, %v5169_v3  ;;  %v4143_v55 = vmul.u32 2146121005, %v4015_v2 }
  0xbe   : > { %v11375_v37 = vadd.s32 %v11365_v48, %v10796_v13  ;;  %v11379_v1 = vadd.s32 %v11365_v48, %v10806_v18  ;;  %v4147_v21 = vmul.u32 2146121005, %v4019_v51  ;;  %v11383_v33 = vadd.s32 %v11371_v58, %v10796_v13 }
  0xbf   : > { %v5549_v63 = vsub.f32 2.0, %v5293_v31  ;;  %v11387_v43 = vadd.s32 %v11371_v58, %v10806_v18  ;;  %v5553_v11 = vsub.f32 2.0, %v5297_v19  ;;  %v9024_v22 = vshrl.u32 %v4143_v55, 15 }
  0xc0   : > { %v3510_v38 = vadd.s32 512, %v11375_v37  ;;  %v3512_v32 = vadd.s32 512, %v11379_v1  ;;  %v9028_v46 = vshrl.u32 %v4147_v21, 15  ;;  %v3514_v39 = vadd.s32 512, %v11383_v33 }
  0xc1   : > { %15071 = vst [vmem:[#allocation28_spill] sm:$0xff] %v11387_v43  ;;  %v10171_v9 = vpop.eup %10170  ;;  %10178 = vlog2.f32 %v5549_v63  ;;  %v3516_v15 = vadd.s32 512, %v11387_v43  ;;  %v4527_v16 = vxor.u32 %v9024_v22, %v4143_v55  ;;  %v11399_v55 = vadd.s32 %v11365_v48, %v10784_v8 }
  0xc2   : > { %v10173_v50 = vpop.eup %10172  ;;  %v5704_v5 = vmul.f32 0.6931472, %v10171_v9  ;;  %10180 = vlog2.f32 %v5553_v11  ;;  %v3638_v45 = vxor.u32 %v3510_v38, %v11026_v60  ;;  %v4531_v26 = vxor.u32 %v9028_v46, %v4147_v21 }
  0xc3   : > { %v10175_v35 = vpop.eup %10174  ;;  %v5712_v28 = vmul.f32 0.6931472, %v10173_v50  ;;  %v3642_v20 = vxor.u32 %v3514_v39, %v11026_v60  ;;  %v3640_v3 = vxor.u32 %v3512_v32, %v11026_v60  ;;  %v4655_v19 = vmul.u32 2221713035, %v4527_v16  ;;  %15072 = vst [vmem:[#allocation29_spill] sm:$0xff] %v11399_v55 }
  0xc4   : > { %v10177_v2 = vpop.eup %10176  ;;  %v5934_v31 = vmul.f32 -0.1, %v5704_v5  ;;  %v5708_v51 = vmul.f32 0.6931472, %v10175_v35  ;;  %v3644_v63 = vxor.u32 %v3516_v15, %v11026_v60  ;;  %v4659_v9 = vmul.u32 2221713035, %v4531_v26 }
  0xc5   : > { %v5938_v47 = vmul.f32 -0.1, %v5712_v28  ;;  %v5716_v0 = vmul.f32 0.6931472, %v10177_v2  ;;  %v9152_v22 = vshrl.u32 %v4655_v19, 16  ;;  %v8903_v38 = vshrl.u32 %v3638_v45, 16 }
  0xc6   : > { %v6318_v21 = vor.u32 %v6062_v14, %v5934_v31  ;;  %v5936_v11 = vmul.f32 -0.1, %v5708_v51  ;;  %v9156_v39 = vshrl.u32 %v4659_v9, 16  ;;  %v8907_v50 = vshrl.u32 %v3642_v20, 16 }
  0xc7   : > { %v6322_v32 = vor.u32 %v6066_v56, %v5938_v47  ;;  %v5940_v46 = vmul.f32 -0.1, %v5716_v0  ;;  %v15073_v15 = vand.u32 2147483648, %v11332_v10  ;;  %v11407_v16 = vxor.u32 %v9152_v22, %v4655_v19 }
  0xc8   : > { %v4022_v35 = vxor.u32 %v8903_v38, %v3638_v45  ;;  %v8905_v28 = vshrl.u32 %v3640_v3, 16  ;;  %v11409_v61 = vxor.u32 %v9156_v39, %v4659_v9  ;;  %v4026_v14 = vxor.u32 %v8907_v50, %v3642_v20 }
  0xc9   : > { %v6320_v5 = vor.u32 %v15073_v15, %v5936_v11  ;;  %v6626_v26 = vpack.c.bf16 %v6322_v32, %v6318_v21  ;;  %v6324_v2 = vor.u32 %v6068_v59, %v5940_v46  ;;  %v6065_v31 = vand.u32 2147483648, %v11358_v42  ;;  %v10102_v59 = vld [vmem:[%s14923_s2 + $0x60] sm:$0xff]  }
  0xca   : > { %v5167_v7 = vand.u32 8388607, %v11407_v16  ;;  %v4150_v56 = vmul.u32 2146121005, %v4022_v35  ;;  %v8909_v0 = vshrl.u32 %v3644_v63, 16  ;;  %v11415_v19 = vadd.s32 88, %v10779_v6  ;;  %9659 = vmatprep.subr.bf16.mxu0 %v10102_v59 }
  0xcb   : > { %6925 = vmatprep.mubr.bf16.mxu0 %v6626_v26  ;;  %v6628_v47 = vpack.c.bf16 %v6324_v2, %v6320_v5  ;;  %v5171_v10 = vand.u32 8388607, %v11409_v61  ;;  %v4154_v51 = vmul.u32 2146121005, %v4026_v14  ;;  %v4024_v9 = vxor.u32 %v8905_v28, %v3640_v3 }
  0xcc   : > { %v5295_v45 = vor.u32 1065353216, %v5167_v7  ;;  %v9031_v20 = vshrl.u32 %v4150_v56, 15  ;;  %v4028_v42 = vxor.u32 %v8909_v0, %v3644_v63  ;;  %v11422_v22 = vadd.s32 %v11371_v58, %v10784_v8 }
  0xcd   : > { %7086 = vmatprep.mubr.bf16.mxu1 %v6628_v47  ;;  %v5299_v21 = vor.u32 1065353216, %v5171_v10  ;;  %v9035_v11 = vshrl.u32 %v4154_v51, 15  ;;  %v3509_v38 = vadd.s32 512, %v11399_v55  ;;  %v4152_v50 = vmul.u32 2146121005, %v4024_v9 }
  0xce   : > { %15074 = vst [vmem:[#allocation30_spill] sm:$0xff] %v11422_v22  ;;  %v10179_v32 = vpop.eup %10178  ;;  %v5551_v46 = vsub.f32 2.0, %v5295_v45  ;;  %v4534_v39 = vxor.u32 %v9031_v20, %v4150_v56  ;;  %v4156_v15 = vmul.u32 2146121005, %v4028_v42  ;;  %v3513_v63 = vadd.s32 512, %v11422_v22 }
  0xcf   : > { %v10181_v5 = vpop.eup %10180  ;;  %v5702_v35 = vmul.f32 0.6931472, %v10179_v32  ;;  %v5555_v26 = vsub.f32 2.0, %v5299_v21  ;;  %v4538_v3 = vxor.u32 %v9035_v11, %v4154_v51  ;;  %v9033_v14 = vshrl.u32 %v4152_v50, 15 }
  0xd0   : > { %v5710_v28 = vmul.f32 0.6931472, %v10181_v5  ;;  %10182 = vlog2.f32 %v5551_v46  ;;  %v4662_v2 = vmul.u32 2221713035, %v4534_v39  ;;  %v9037_v47 = vshrl.u32 %v4156_v15, 15 }
  0xd1   : > { %v5933_v7 = vmul.f32 -0.1, %v5702_v35  ;;  %10184 = vlog2.f32 %v5555_v26  ;;  %v4666_v0 = vmul.u32 2221713035, %v4538_v3  ;;  %v4536_v45 = vxor.u32 %v9033_v14, %v4152_v50 }
  0xd2   : > { %v5937_v10 = vmul.f32 -0.1, %v5710_v28  ;;  %v9159_v59 = vshrl.u32 %v4662_v2, 16  ;;  %v3637_v56 = vxor.u32 %v3509_v38, %v11026_v60  ;;  %v15075_v20 = vand.u32 2147483648, %v11354_v41 }
  0xd3   : > { %v9163_v42 = vshrl.u32 %v4666_v0, 16  ;;  %v4540_v51 = vxor.u32 %v9037_v47, %v4156_v15  ;;  %v3641_v21 = vxor.u32 %v3513_v63, %v11026_v60  ;;  %v4664_v46 = vmul.u32 2221713035, %v4536_v45 }
  0xd4   : > { %v6317_v9 = vor.u32 %v15075_v20, %v5933_v7  ;;  %v6321_v11 = vor.u32 %v6065_v31, %v5937_v10  ;;  %v11430_v32 = vxor.u32 %v9159_v59, %v4662_v2  ;;  %v8902_v39 = vshrl.u32 %v3637_v56, 16 }
  0xd5   : > { %v11432_v5 = vxor.u32 %v9163_v42, %v4666_v0  ;;  %v4668_v35 = vmul.u32 2221713035, %v4540_v51  ;;  %v8906_v26 = vshrl.u32 %v3641_v21, 16  ;;  %v11436_v50 = vadd.s32 %v11365_v48, %v10839_v30 }
  0xd6   : > { %v6625_v38 = vpack.c.bf16 %v6321_v11, %v6317_v9  ;;  %v6063_v41 = vand.u32 2147483648, %v11407_v16  ;;  %v5174_v15 = vand.u32 8388607, %v11430_v32  ;;  %v9161_v3 = vshrl.u32 %v4664_v46, 16 }
  0xd7   : > { %15076 = vst [vmem:[#allocation31_spill] sm:$0xff] %v11436_v50  ;;  %v6067_v31 = vand.u32 2147483648, %v11409_v61  ;;  %v5178_v63 = vand.u32 8388607, %v11432_v5  ;;  %v9165_v28 = vshrl.u32 %v4668_v35, 16  ;;  %v4021_v2 = vxor.u32 %v8902_v39, %v3637_v56 }
  0xd8   : > { %6926 = vmatmul.mubr.bf16.gmra.mxu0 %v6625_v38  ;;  %v5302_v14 = vor.u32 1065353216, %v5174_v15  ;;  %v11442_v7 = vxor.u32 %v9161_v3, %v4664_v46  ;;  %v4025_v0 = vxor.u32 %v8906_v26, %v3641_v21  ;;  %v11446_v48 = vadd.s32 %v11371_v58, %v10839_v30 }
  0xd9   : > { %v5306_v47 = vor.u32 1065353216, %v5178_v63  ;;  %v11448_v16 = vxor.u32 %v9165_v28, %v4668_v35  ;;  %v4149_v10 = vmul.u32 2146121005, %v4021_v2  ;;  %v3511_v59 = vadd.s32 512, %v11436_v50 }
  0xda   : > { %15077 = vst [vmem:[#allocation32_spill] sm:$0xff] %v11446_v48  ;;  %v5558_v61 = vsub.f32 2.0, %v5302_v14  ;;  %v5176_v56 = vand.u32 8388607, %v11442_v7  ;;  %v4153_v20 = vmul.u32 2146121005, %v4025_v0 }
  0xdb   : > { %v5562_v9 = vsub.f32 2.0, %v5306_v47  ;;  %v5180_v51 = vand.u32 8388607, %v11448_v16  ;;  %v9030_v21 = vshrl.u32 %v4149_v10, 15  ;;  %v3515_v46 = vadd.s32 512, %v11446_v48 }
  0xdc   : > { %10186 = vlog2.f32 %v5558_v61  ;;  %v5304_v58 = vor.u32 1065353216, %v5176_v56  ;;  %v9034_v11 = vshrl.u32 %v4153_v20, 15  ;;  %v3639_v38 = vxor.u32 %v3511_v59, %v11026_v60 }
  0xdd   : > { %v10183_v39 = vpop.eup %10182  ;;  %10188 = vlog2.f32 %v5562_v9  ;;  %v5308_v35 = vor.u32 1065353216, %v5180_v51  ;;  %v4533_v26 = vxor.u32 %v9030_v21, %v4149_v10  ;;  %v3643_v2 = vxor.u32 %v3515_v46, %v11026_v60  ;;  %v10103_v10 = vld [vmem:[%s14923_s2 + $0x20] sm:$0xff]  }
  0xde   : > { %v10185_v15 = vpop.eup %10184  ;;  %v5706_v3 = vmul.f32 0.6931472, %v10183_v39  ;;  %v5560_v63 = vsub.f32 2.0, %v5304_v58  ;;  %v4537_v28 = vxor.u32 %v9034_v11, %v4153_v20  ;;  %v8904_v61 = vshrl.u32 %v3639_v38, 16  ;;  %v10104_v20 = vld [vmem:[%s14923_s2 + $0xe0] sm:$0xff]   ;;  %9660 = vmatpush3.bf16.msra.mxu0 %v10103_v10 }
  0xdf   : > { %v5714_v14 = vmul.f32 0.6931472, %v10185_v15  ;;  %v5564_v0 = vsub.f32 2.0, %v5308_v35  ;;  %v4661_v47 = vmul.u32 2221713035, %v4533_v26  ;;  %v8908_v45 = vshrl.u32 %v3643_v2, 16  ;;  %9771 = vmatprep.subr.bf16.mxu1 %v10104_v20 }
  0xe0   : > { %v5935_v56 = vmul.f32 -0.1, %v5706_v3  ;;  %10190 = vlog2.f32 %v5560_v63  ;;  %v4665_v42 = vmul.u32 2221713035, %v4537_v28  ;;  %v4023_v51 = vxor.u32 %v8904_v61, %v3639_v38  ;;  %v10105_v21 = vld [vmem:[%s14923_s2 + $0xa0] sm:$0xff]  }
  0xe1   : > { %v5939_v9 = vmul.f32 -0.1, %v5714_v14  ;;  %10192 = vlog2.f32 %v5564_v0  ;;  %v9158_v59 = vshrl.u32 %v4661_v47, 16  ;;  %v4027_v46 = vxor.u32 %v8908_v45, %v3643_v2  ;;  %9772 = vmatpush3.bf16.msra.mxu1 %v10105_v21 }
  0xe2   : > { %v6319_v58 = vor.u32 %v6063_v41, %v5935_v56  ;;  %v9162_v11 = vshrl.u32 %v4665_v42, 16  ;;  %v220_v39 = vadd.s32 %v10772_v4, %v11368_v62  ;;  %v4151_v15 = vmul.u32 2146121005, %v4023_v51 }
  0xe3   : > { %v6323_v35 = vor.u32 %v6067_v31, %v5939_v9  ;;  %v11469_v26 = vxor.u32 %v9158_v59, %v4661_v47  ;;  %v221_v38 = vadd.s32 %v10772_v4, %v11415_v19  ;;  %v6072_v3 = vand.u32 2147483648, %v11442_v7 }
  0xe4   : > { %v11474_v63 = vxor.u32 %v9162_v11, %v4665_v42  ;;  %v4155_v28 = vmul.u32 2146121005, %v4027_v46  ;;  %v11476_v41 = vmul.u32 1024, %v220_v39  ;;  %v6076_v62 = vand.u32 2147483648, %v11448_v16 }
  0xe5   : > { %v6627_v45 = vpack.c.bf16 %v6323_v35, %v6319_v58  ;;  %v5173_v31 = vand.u32 8388607, %v11469_v26  ;;  %v9032_v2 = vshrl.u32 %v4151_v15, 15  ;;  %v11481_v47 = vmul.u32 1024, %v221_v38 }
  0xe6   : > { %v5177_v14 = vand.u32 8388607, %v11474_v63  ;;  %v9036_v0 = vshrl.u32 %v4155_v28, 15  ;;  %v11484_v19 = vadd.s32 96, %v10779_v6  ;;  %v11489_v56 = vadd.s32 %v11476_v41, %v10796_v13 }
  0xe7   : > { %7087 = vmatmul.mubr.bf16.gmra.mxu1 %v6627_v45  ;;  %v5301_v7 = vor.u32 1065353216, %v5173_v31  ;;  %v4535_v61 = vxor.u32 %v9032_v2, %v4151_v15  ;;  %v11493_v9 = vadd.s32 %v11481_v47, %v10796_v13  ;;  %v11497_v59 = vadd.s32 %v11476_v41, %v10806_v18 }
  0xe8   : > { %15078 = vst [vmem:[#allocation33_spill] sm:$0xff] %v11489_v56  ;;  %v5305_v16 = vor.u32 1065353216, %v5177_v14  ;;  %v4539_v10 = vxor.u32 %v9036_v0, %v4155_v28  ;;  %v3518_v58 = vadd.s32 512, %v11489_v56  ;;  %v11502_v11 = vadd.s32 %v11481_v47, %v10806_v18 }
  0xe9   : > { %15079 = vst [vmem:[#allocation34_spill] sm:$0xff] %v11493_v9  ;;  %15080 = vst [vmem:[#allocation35_spill] sm:$0xff] %v11497_v59  ;;  %v10187_v51 = vpop.eup %10186  ;;  %v5557_v20 = vsub.f32 2.0, %v5301_v7  ;;  %v4663_v21 = vmul.u32 2221713035, %v4535_v61  ;;  %v3522_v38 = vadd.s32 512, %v11493_v9 }
  0xea   : > { %15081 = vst [vmem:[#allocation36_spill] sm:$0xff] %v11502_v11  ;;  %v10189_v46 = vpop.eup %10188  ;;  %v5720_v39 = vmul.f32 0.6931472, %v10187_v51  ;;  %v5561_v35 = vsub.f32 2.0, %v5305_v16  ;;  %v4667_v15 = vmul.u32 2221713035, %v4539_v10  ;;  %v3646_v31 = vxor.u32 %v3518_v58, %v11026_v60 }
  0xeb   : > { %v5728_v28 = vmul.f32 0.6931472, %v10189_v46  ;;  %10194 = vlog2.f32 %v5557_v20  ;;  %v9160_v45 = vshrl.u32 %v4663_v21, 16  ;;  %v3650_v0 = vxor.u32 %v3522_v38, %v11026_v60 }
  0xec   : > { %v5942_v2 = vmul.f32 -0.1, %v5720_v39  ;;  %10196 = vlog2.f32 %v5561_v35  ;;  %v9164_v14 = vshrl.u32 %v4667_v15, 16  ;;  %v8911_v56 = vshrl.u32 %v3646_v31, 16 }
  0xed   : > { %v10191_v7 = vpop.eup %10190  ;;  %v5946_v61 = vmul.f32 -0.1, %v5728_v28  ;;  %v11507_v42 = vxor.u32 %v9160_v45, %v4663_v21  ;;  %v3520_v16 = vadd.s32 512, %v11497_v59  ;;  %v15082_v51 = vand.u32 2147483648, %v11430_v32 }
  0xee   : > { %v10193_v10 = vpop.eup %10192  ;;  %v5724_v20 = vmul.f32 0.6931472, %v10191_v7  ;;  %v11512_v9 = vxor.u32 %v9164_v14, %v4667_v15  ;;  %v8915_v58 = vshrl.u32 %v3650_v0, 16  ;;  %v15083_v39 = vand.u32 2147483648, %v11432_v5 }
  0xef   : > { %v6326_v46 = vor.u32 %v15082_v51, %v5942_v2  ;;  %v5732_v48 = vmul.f32 0.6931472, %v10193_v10  ;;  %v5175_v38 = vand.u32 8388607, %v11507_v42  ;;  %v3524_v21 = vadd.s32 512, %v11502_v11 }
  0xf0   : > { %v6330_v35 = vor.u32 %v15083_v39, %v5946_v61  ;;  %v5944_v28 = vmul.f32 -0.1, %v5724_v20  ;;  %v6073_v45 = vand.u32 2147483648, %v11474_v63  ;;  %v5179_v59 = vand.u32 8388607, %v11512_v9 }
  0xf1   : > { %v4030_v50 = vxor.u32 %v8911_v56, %v3646_v31  ;;  %v5948_v2 = vmul.f32 -0.1, %v5732_v48  ;;  %v5303_v7 = vor.u32 1065353216, %v5175_v38  ;;  %v4034_v15 = vxor.u32 %v8915_v58, %v3650_v0 }
  0xf2   : > { %v6630_v32 = vpack.c.bf16 %v6330_v35, %v6326_v46  ;;  %v6328_v14 = vor.u32 %v6072_v3, %v5944_v28  ;;  %v5307_v51 = vor.u32 1065353216, %v5179_v59  ;;  %v3648_v5 = vxor.u32 %v3520_v16, %v11026_v60 }
  0xf3   : > { %v4158_v22 = vmul.u32 2146121005, %v4030_v50  ;;  %v6332_v61 = vor.u32 %v6076_v62, %v5948_v2  ;;  %v5559_v10 = vsub.f32 2.0, %v5303_v7  ;;  %v4162_v39 = vmul.u32 2146121005, %v4034_v15 }
  0xf4   : > { %6933 = vmatprep.mubr.bf16.mxu0 %v6630_v32  ;;  %v3652_v20 = vxor.u32 %v3524_v21, %v11026_v60  ;;  %v5563_v11 = vsub.f32 2.0, %v5307_v51  ;;  %v8913_v55 = vshrl.u32 %v3648_v5, 16  ;;  %v11524_v56 = vadd.s32 %v11476_v41, %v10784_v8 }
  0xf5   : > { %v9039_v63 = vshrl.u32 %v4158_v22, 15  ;;  %v6632_v48 = vpack.c.bf16 %v6332_v61, %v6328_v14  ;;  %10198 = vlog2.f32 %v5559_v10  ;;  %v9043_v3 = vshrl.u32 %v4162_v39, 15 }
  0xf6   : > { %15084 = vst [vmem:[#allocation37_spill] sm:$0xff] %v11524_v56  ;;  %v8917_v59 = vshrl.u32 %v3652_v20, 16  ;;  %10200 = vlog2.f32 %v5563_v11  ;;  %v4032_v31 = vxor.u32 %v8913_v55, %v3648_v5  ;;  %v11528_v62 = vadd.s32 %v11481_v47, %v10784_v8 }
  0xf7   : > { %v4542_v50 = vxor.u32 %v9039_v63, %v4158_v22  ;;  %7094 = vmatprep.mubr.bf16.mxu1 %v6632_v48  ;;  %v6071_v0 = vand.u32 2147483648, %v11507_v42  ;;  %v4546_v16 = vxor.u32 %v9043_v3, %v4162_v39  ;;  %v3517_v58 = vadd.s32 512, %v11524_v56 }
  0xf8   : > { %15085 = vst [vmem:[#allocation38_spill] sm:$0xff] %v11528_v62  ;;  %v4036_v46 = vxor.u32 %v8917_v59, %v3652_v20  ;;  %v10195_v35 = vpop.eup %10194  ;;  %v4160_v21 = vmul.u32 2146121005, %v4032_v31  ;;  %v3521_v28 = vadd.s32 512, %v11528_v62  ;;  %v11535_v22 = vadd.s32 %v11476_v41, %v10839_v30 }
  0xf9   : > { %v4670_v38 = vmul.u32 2221713035, %v4542_v50  ;;  %v10197_v55 = vpop.eup %10196  ;;  %v5718_v11 = vmul.f32 0.6931472, %v10195_v35  ;;  %v4674_v32 = vmul.u32 2221713035, %v4546_v16  ;;  %v3645_v7 = vxor.u32 %v3517_v58, %v11026_v60 }
  0xfa   : > { %15086 = vst [vmem:[#allocation39_spill] sm:$0xff] %v11535_v22  ;;  %v4164_v2 = vmul.u32 2146121005, %v4036_v46  ;;  %v5726_v15 = vmul.f32 0.6931472, %v10197_v55  ;;  %v9041_v51 = vshrl.u32 %v4160_v21, 15  ;;  %v3649_v5 = vxor.u32 %v3521_v28, %v11026_v60 }
  0xfb   : > { %v9167_v14 = vshrl.u32 %v4670_v38, 16  ;;  %v5941_v61 = vmul.f32 -0.1, %v5718_v11  ;;  %v9171_v10 = vshrl.u32 %v4674_v32, 16  ;;  %v8910_v20 = vshrl.u32 %v3645_v7, 16 }
  0xfc   : > { %v9045_v39 = vshrl.u32 %v4164_v2, 15  ;;  %v5945_v63 = vmul.f32 -0.1, %v5726_v15  ;;  %v4544_v41 = vxor.u32 %v9041_v51, %v4160_v21  ;;  %v8914_v3 = vshrl.u32 %v3649_v5, 16 }
  0xfd   : > { %v11539_v48 = vxor.u32 %v9167_v14, %v4670_v38  ;;  %v15087_v59 = vand.u32 2147483648, %v11469_v26  ;;  %v11543_v31 = vxor.u32 %v9171_v10, %v4674_v32  ;;  %v4029_v46 = vxor.u32 %v8910_v20, %v3645_v7 }
  0xfe   : > { %v4548_v16 = vxor.u32 %v9045_v39, %v4164_v2  ;;  %v6329_v58 = vor.u32 %v6073_v45, %v5945_v63  ;;  %v4672_v28 = vmul.u32 2221713035, %v4544_v41  ;;  %v11548_v55 = vadd.s32 %v11481_v47, %v10839_v30 }
  0xff   : > { %v6325_v50 = vor.u32 %v15087_v59, %v5941_v61  ;;  %v5182_v35 = vand.u32 8388607, %v11539_v48  ;;  %v6075_v38 = vand.u32 2147483648, %v11512_v9  ;;  %v5186_v21 = vand.u32 8388607, %v11543_v31 }
 0x100   : > { %15088 = vst [vmem:[#allocation40_spill] sm:$0xff] %v11548_v55  ;;  %v4676_v11 = vmul.u32 2221713035, %v4548_v16  ;;  %v4033_v15 = vxor.u32 %v8914_v3, %v3649_v5  ;;  %v9169_v32 = vshrl.u32 %v4672_v28, 16  ;;  %v4157_v51 = vmul.u32 2146121005, %v4029_v46 }
 0x101   : > { %v6629_v26 = vpack.c.bf16 %v6329_v58, %v6325_v50  ;;  %v5310_v14 = vor.u32 1065353216, %v5182_v35  ;;  %v5314_v2 = vor.u32 1065353216, %v5186_v21  ;;  %v3519_v61 = vadd.s32 512, %v11535_v22 }
 0x102   : > { %v9173_v7 = vshrl.u32 %v4676_v11, 16  ;;  %v4161_v45 = vmul.u32 2146121005, %v4033_v15  ;;  %v10199_v10 = vpop.eup %10198  ;;  %v11553_v47 = vxor.u32 %v9169_v32, %v4672_v28  ;;  %v9038_v20 = vshrl.u32 %v4157_v51, 15 }
 0x103   : > { %6934 = vmatmul.mubr.bf16.gmra.mxu0 %v6629_v26  ;;  %v5566_v39 = vsub.f32 2.0, %v5310_v14  ;;  %v3523_v9 = vadd.s32 512, %v11548_v55  ;;  %v10201_v63 = vpop.eup %10200  ;;  %v5722_v41 = vmul.f32 0.6931472, %v10199_v10  ;;  %v5570_v5 = vsub.f32 2.0, %v5314_v2 }
 0x104   : > { %v11556_v3 = vxor.u32 %v9173_v7, %v4676_v11  ;;  %v9042_v59 = vshrl.u32 %v4161_v45, 15  ;;  %v5730_v50 = vmul.f32 0.6931472, %v10201_v63  ;;  %v5184_v46 = vand.u32 8388607, %v11553_v47 }
 0x105   : > { %10202 = vlog2.f32 %v5566_v39  ;;  %v5943_v58 = vmul.f32 -0.1, %v5722_v41  ;;  %v4541_v26 = vxor.u32 %v9038_v20, %v4157_v51  ;;  %v3647_v2 = vxor.u32 %v3519_v61, %v11026_v60 }
 0x106   : > { %10204 = vlog2.f32 %v5570_v5  ;;  %v5188_v28 = vand.u32 8388607, %v11556_v3  ;;  %v5947_v21 = vmul.f32 -0.1, %v5730_v50  ;;  %v5312_v15 = vor.u32 1065353216, %v5184_v46 }
 0x107   : > { %v4545_v14 = vxor.u32 %v9042_v59, %v4161_v45  ;;  %v6327_v11 = vor.u32 %v6071_v0, %v5943_v58  ;;  %v3651_v7 = vxor.u32 %v3523_v9, %v11026_v60  ;;  %v4669_v63 = vmul.u32 2221713035, %v4541_v26 }
 0x108   : > { %v5316_v32 = vor.u32 1065353216, %v5188_v28  ;;  %v6331_v10 = vor.u32 %v6075_v38, %v5947_v21  ;;  %v5568_v39 = vsub.f32 2.0, %v5312_v15  ;;  %v8912_v35 = vshrl.u32 %v3647_v2, 16 }
 0x109   : > { %v4673_v41 = vmul.u32 2221713035, %v4545_v14  ;;  %v8916_v16 = vshrl.u32 %v3651_v7, 16  ;;  %v184_v50 = vadd.s32 104, %v10779_v6  ;;  %v9166_v51 = vshrl.u32 %v4669_v63, 16 }
 0x10a   : > { %v5572_v5 = vsub.f32 2.0, %v5316_v32  ;;  %v6631_v46 = vpack.c.bf16 %v6331_v10, %v6327_v11  ;;  %10206 = vlog2.f32 %v5568_v39  ;;  %v4031_v42 = vxor.u32 %v8912_v35, %v3647_v2 }
 0x10b   : > { %v9170_v45 = vshrl.u32 %v4673_v41, 16  ;;  %v4035_v0 = vxor.u32 %v8916_v16, %v3651_v7  ;;  %v222_v61 = vadd.s32 %v10772_v4, %v11484_v19  ;;  %v11570_v20 = vxor.u32 %v9166_v51, %v4669_v63 }
 0x10c   : > { %10208 = vlog2.f32 %v5572_v5  ;;  %7095 = vmatmul.mubr.bf16.gmra.mxu1 %v6631_v46  ;;  %v223_v59 = vadd.s32 %v10772_v4, %v184_v50  ;;  %v4159_v28 = vmul.u32 2146121005, %v4031_v42  ;;  %v185_v15 = vadd.s32 112, %v10779_v6 }
 0x10d   : > { %v11572_v9 = vxor.u32 %v9170_v45, %v4673_v41  ;;  %v4163_v21 = vmul.u32 2146121005, %v4035_v0  ;;  %v5181_v16 = vand.u32 8388607, %v11570_v20  ;;  %v186_v19 = vadd.s32 120, %v10779_v6 }
 0x10e   : > { %v11581_v26 = vadd.s32 128, %v10779_v6  ;;  %v9040_v14 = vshrl.u32 %v4159_v28, 15  ;;  %v11583_v32 = vmul.u32 1024, %v222_v61  ;;  %v11585_v2 = vmul.u32 1024, %v223_v59 }
 0x10f   : > { %v5185_v35 = vand.u32 8388607, %v11572_v9  ;;  %v9044_v11 = vshrl.u32 %v4163_v21, 15  ;;  %v5309_v7 = vor.u32 1065353216, %v5181_v16  ;;  %v15093_v39 = vand.u32 2147483648, %v11539_v48 }
 0x110   : > { %v4543_v5 = vxor.u32 %v9040_v14, %v4159_v28  ;;  %v11591_v46 = vadd.s32 %v11583_v32, %v10796_v13  ;;  %v11595_v51 = vadd.s32 %v11585_v2, %v10796_v13  ;;  %v11599_v59 = vadd.s32 %v11583_v32, %v10806_v18 }
 0x111   : > { %v5313_v10 = vor.u32 1065353216, %v5185_v35  ;;  %v4547_v50 = vxor.u32 %v9044_v11, %v4163_v21  ;;  %v5565_v0 = vsub.f32 2.0, %v5309_v7  ;;  %v11603_v21 = vadd.s32 %v11585_v2, %v10806_v18 }
 0x112   : > { %v10203_v41 = vpop.eup %10202  ;;  %15089 = vst [vmem:[#allocation41_spill] sm:$0xff] %v11591_v46  ;;  %15090 = vst [vmem:[#allocation42_spill] sm:$0xff] %v11595_v51  ;;  %v4671_v35 = vmul.u32 2221713035, %v4543_v5  ;;  %v3526_v11 = vadd.s32 512, %v11591_v46  ;;  %v3530_v63 = vadd.s32 512, %v11595_v51 }
 0x113   : > { %v10205_v45 = vpop.eup %10204  ;;  %v5736_v42 = vmul.f32 0.6931472, %v10203_v41  ;;  %v5569_v61 = vsub.f32 2.0, %v5313_v10  ;;  %15091 = vst [vmem:[#allocation43_spill] sm:$0xff] %v11599_v59  ;;  %v4675_v28 = vmul.u32 2221713035, %v4547_v50  ;;  %10210 = vlog2.f32 %v5565_v0 }
 0x114   : > { %v5744_v16 = vmul.f32 0.6931472, %v10205_v45  ;;  %15092 = vst [vmem:[#allocation44_spill] sm:$0xff] %v11603_v21  ;;  %v9168_v7 = vshrl.u32 %v4671_v35, 16  ;;  %v3654_v5 = vxor.u32 %v3526_v11, %v11026_v60  ;;  %v3658_v50 = vxor.u32 %v3530_v63, %v11026_v60 }
 0x115   : > { %v5950_v14 = vmul.f32 -0.1, %v5736_v42  ;;  %10212 = vlog2.f32 %v5569_v61  ;;  %v9172_v10 = vshrl.u32 %v4675_v28, 16  ;;  %v3528_v45 = vadd.s32 512, %v11599_v59 }
 0x116   : > { %v5954_v41 = vmul.f32 -0.1, %v5744_v16  ;;  %v15094_v42 = vand.u32 2147483648, %v11543_v31  ;;  %v11614_v46 = vxor.u32 %v9168_v7, %v4671_v35  ;;  %v3532_v61 = vadd.s32 512, %v11603_v21 }
 0x117   : > { %v6334_v58 = vor.u32 %v15093_v39, %v5950_v14  ;;  %v10207_v38 = vpop.eup %10206  ;;  %v11616_v51 = vxor.u32 %v9172_v10, %v4675_v28  ;;  %v8919_v48 = vshrl.u32 %v3654_v5, 16  ;;  %v8923_v39 = vshrl.u32 %v3658_v50, 16 }
 0x118   : > { %v6338_v0 = vor.u32 %v15094_v42, %v5954_v41  ;;  %v5740_v55 = vmul.f32 0.6931472, %v10207_v38  ;;  %v3656_v14 = vxor.u32 %v3528_v45, %v11026_v60  ;;  %v5183_v59 = vand.u32 8388607, %v11614_v46 }
 0x119   : > { %v10209_v16 = vpop.eup %10208  ;;  %v5187_v22 = vand.u32 8388607, %v11616_v51  ;;  %v4038_v41 = vxor.u32 %v8919_v48, %v3654_v5  ;;  %v11623_v35 = vadd.s32 %v10772_v4, %v185_v15  ;;  %v11626_v28 = vadd.s32 %v10772_v4, %v186_v19 }
 0x11a   : > { %v6634_v11 = vpack.c.bf16 %v6338_v0, %v6334_v58  ;;  %v5748_v63 = vmul.f32 0.6931472, %v10209_v16  ;;  %v5952_v31 = vmul.f32 -0.1, %v5740_v55  ;;  %v5311_v7 = vor.u32 1065353216, %v5183_v59  ;;  %v10106_v58 = vld [vmem:[%s14923_s2 + $0x58] sm:$0xff]  }
 0x11b   : > { %v5315_v10 = vor.u32 1065353216, %v5187_v22  ;;  %v4042_v42 = vxor.u32 %v8923_v39, %v3658_v50  ;;  %v15095_v45 = vand.u32 2147483648, %v11553_v47  ;;  %v4166_v55 = vmul.u32 2146121005, %v4038_v41  ;;  %9661 = vmatprep.subr.bf16.mxu0 %v10106_v58 }
 0x11c   : > { %6941 = vmatprep.mubr.bf16.mxu0 %v6634_v11  ;;  %v5956_v38 = vmul.f32 -0.1, %v5748_v63  ;;  %v3660_v5 = vxor.u32 %v3532_v61, %v11026_v60  ;;  %v8921_v15 = vshrl.u32 %v3656_v14, 16  ;;  %v15096_v16 = vand.u32 2147483648, %v11556_v3 }
 0x11d   : > { %v6336_v0 = vor.u32 %v15095_v45, %v5952_v31  ;;  %v5567_v48 = vsub.f32 2.0, %v5311_v7  ;;  %v5571_v11 = vsub.f32 2.0, %v5315_v10  ;;  %v4170_v63 = vmul.u32 2146121005, %v4042_v42 }
 0x11e   : > { %v6340_v19 = vor.u32 %v15096_v16, %v5956_v38  ;;  %v9047_v22 = vshrl.u32 %v4166_v55, 15  ;;  %v8925_v59 = vshrl.u32 %v3660_v5, 16  ;;  %v4040_v50 = vxor.u32 %v8921_v15, %v3656_v14 }
 0x11f   : > { %v11638_v39 = vadd.s32 %v11583_v32, %v10784_v8  ;;  %10214 = vlog2.f32 %v5567_v48  ;;  %v9051_v31 = vshrl.u32 %v4170_v63, 15  ;;  %v11642_v61 = vadd.s32 %v11585_v2, %v10784_v8 }
 0x120   : > { %v6636_v47 = vpack.c.bf16 %v6340_v19, %v6336_v0  ;;  %10216 = vlog2.f32 %v5571_v11  ;;  %v4550_v3 = vxor.u32 %v9047_v22, %v4166_v55  ;;  %v4044_v41 = vxor.u32 %v8925_v59, %v3660_v5  ;;  %v10211_v7 = vpop.eup %10210 }
 0x121   : > { %15097 = vst [vmem:[#allocation45_spill] sm:$0xff] %v11638_v39  ;;  %15098 = vst [vmem:[#allocation46_spill] sm:$0xff] %v11642_v61  ;;  %v4168_v38 = vmul.u32 2146121005, %v4040_v50  ;;  %v4554_v14 = vxor.u32 %v9051_v31, %v4170_v63  ;;  %v3525_v42 = vadd.s32 512, %v11638_v39  ;;  %v3529_v58 = vadd.s32 512, %v11642_v61 }
 0x122   : > { %7102 = vmatprep.mubr.bf16.mxu1 %v6636_v47  ;;  %v10213_v45 = vpop.eup %10212  ;;  %v5734_v0 = vmul.f32 0.6931472, %v10211_v7  ;;  %v4678_v15 = vmul.u32 2221713035, %v4550_v3  ;;  %v4172_v16 = vmul.u32 2146121005, %v4044_v41  ;;  %v11649_v19 = vadd.s32 %v11583_v32, %v10839_v30 }
 0x123   : > { %v5742_v55 = vmul.f32 0.6931472, %v10213_v45  ;;  %v4682_v5 = vmul.u32 2221713035, %v4554_v14  ;;  %v9049_v48 = vshrl.u32 %v4168_v38, 15  ;;  %v3653_v11 = vxor.u32 %v3525_v42, %v11026_v60 }
 0x124   : > { %15099 = vst [vmem:[#allocation47_spill] sm:$0xff] %v11649_v19  ;;  %v5949_v22 = vmul.f32 -0.1, %v5734_v0  ;;  %v9175_v59 = vshrl.u32 %v4678_v15, 16  ;;  %v9053_v63 = vshrl.u32 %v4172_v16, 15  ;;  %v3657_v50 = vxor.u32 %v3529_v58, %v11026_v60 }
 0x125   : > { %v5953_v47 = vmul.f32 -0.1, %v5742_v55  ;;  %v9179_v31 = vshrl.u32 %v4682_v5, 16  ;;  %v4552_v10 = vxor.u32 %v9049_v48, %v4168_v38  ;;  %v8918_v7 = vshrl.u32 %v3653_v11, 16 }
 0x126   : > { %v15100_v3 = vand.u32 2147483648, %v11570_v20  ;;  %v11655_v61 = vxor.u32 %v9175_v59, %v4678_v15  ;;  %v4556_v32 = vxor.u32 %v9053_v63, %v4172_v16  ;;  %v8922_v45 = vshrl.u32 %v3657_v50, 16 }
 0x127   : > { %v15101_v14 = vand.u32 2147483648, %v11572_v9  ;;  %v11659_v42 = vxor.u32 %v9179_v31, %v4682_v5  ;;  %v4680_v0 = vmul.u32 2221713035, %v4552_v10  ;;  %v4037_v21 = vxor.u32 %v8918_v7, %v3653_v11 }
 0x128   : > { %v6333_v41 = vor.u32 %v15100_v3, %v5949_v22  ;;  %v6083_v58 = vand.u32 2147483648, %v11616_v51  ;;  %v5190_v55 = vand.u32 8388607, %v11655_v61  ;;  %v4684_v38 = vmul.u32 2221713035, %v4556_v32 }
 0x129   : > { %v6337_v39 = vor.u32 %v15101_v14, %v5953_v47  ;;  %v4041_v48 = vxor.u32 %v8922_v45, %v3657_v50  ;;  %v5194_v20 = vand.u32 8388607, %v11659_v42  ;;  %v9177_v15 = vshrl.u32 %v4680_v0, 16 }
 0x12a   : > { %v11666_v16 = vadd.s32 %v11585_v2, %v10839_v30  ;;  %v5318_v9 = vor.u32 1065353216, %v5190_v55  ;;  %v9181_v22 = vshrl.u32 %v4684_v38, 16  ;;  %v4165_v5 = vmul.u32 2146121005, %v4037_v21 }
 0x12b   : > { %v6633_v62 = vpack.c.bf16 %v6337_v39, %v6333_v41  ;;  %v4169_v59 = vmul.u32 2146121005, %v4041_v48  ;;  %v5322_v10 = vor.u32 1065353216, %v5194_v20  ;;  %v11669_v11 = vxor.u32 %v9177_v15, %v4680_v0  ;;  %v10107_v0 = vld [vmem:[%s14923_s2 + $0x18] sm:$0xff]  }
 0x12c   : > { %15102 = vst [vmem:[#allocation48_spill] sm:$0xff] %v11666_v16  ;;  %v3527_v63 = vadd.s32 512, %v11649_v19  ;;  %v10215_v39 = vpop.eup %10214  ;;  %v5574_v50 = vsub.f32 2.0, %v5318_v9  ;;  %v11672_v47 = vxor.u32 %v9181_v22, %v4684_v38  ;;  %v9046_v31 = vshrl.u32 %v4165_v5, 15  ;;  %v10108_v20 = vld [vmem:[%s14923_s2 + $0xd8] sm:$0xff]   ;;  %9662 = vmatpush3.bf16.msra.mxu0 %v10107_v0 }
 0x12d   : > { %6942 = vmatmul.mubr.bf16.gmra.mxu0 %v6633_v62  ;;  %v9050_v7 = vshrl.u32 %v4169_v59, 15  ;;  %v10217_v2 = vpop.eup %10216  ;;  %v5738_v3 = vmul.f32 0.6931472, %v10215_v39  ;;  %v5578_v41 = vsub.f32 2.0, %v5322_v10  ;;  %v5192_v21 = vand.u32 8388607, %v11669_v11  ;;  %9773 = vmatprep.subr.bf16.mxu1 %v10108_v20 }
 0x12e   : > { %v3531_v62 = vadd.s32 512, %v11666_v16  ;;  %v5746_v32 = vmul.f32 0.6931472, %v10217_v2  ;;  %10218 = vlog2.f32 %v5574_v50  ;;  %v5196_v14 = vand.u32 8388607, %v11672_v47  ;;  %v10109_v15 = vld [vmem:[%s14923_s2 + $0x98] sm:$0xff]  }
 0x12f   : > { %v5951_v55 = vmul.f32 -0.1, %v5738_v3  ;;  %10220 = vlog2.f32 %v5578_v41  ;;  %v5320_v38 = vor.u32 1065353216, %v5192_v21  ;;  %v4549_v48 = vxor.u32 %v9046_v31, %v4165_v5  ;;  %9774 = vmatpush3.bf16.msra.mxu1 %v10109_v15 }
 0x130   : > { %v5955_v9 = vmul.f32 -0.1, %v5746_v32  ;;  %v5324_v22 = vor.u32 1065353216, %v5196_v14  ;;  %v4553_v10 = vxor.u32 %v9050_v7, %v4169_v59  ;;  %v3655_v39 = vxor.u32 %v3527_v63, %v11026_v60 }
 0x131   : > { %v15103_v50 = vand.u32 2147483648, %v11614_v46  ;;  %v5576_v3 = vsub.f32 2.0, %v5320_v38  ;;  %v4677_v41 = vmul.u32 2221713035, %v4549_v48  ;;  %v3659_v5 = vxor.u32 %v3531_v62, %v11026_v60 }
 0x132   : > { %v6339_v31 = vor.u32 %v6083_v58, %v5955_v9  ;;  %v5580_v21 = vsub.f32 2.0, %v5324_v22  ;;  %v4681_v45 = vmul.u32 2221713035, %v4553_v10  ;;  %v8920_v51 = vshrl.u32 %v3655_v39, 16 }
 0x133   : > { %v6335_v2 = vor.u32 %v15103_v50, %v5951_v55  ;;  %10222 = vlog2.f32 %v5576_v3  ;;  %v9174_v32 = vshrl.u32 %v4677_v41, 16  ;;  %v8924_v14 = vshrl.u32 %v3659_v5, 16 }
 0x134   : > { %v11692_v59 = vmul.u32 1024, %v11623_v35  ;;  %10224 = vlog2.f32 %v5580_v21  ;;  %v9178_v46 = vshrl.u32 %v4681_v45, 16  ;;  %v4039_v7 = vxor.u32 %v8920_v51, %v3655_v39 }
 0x135   : > { %v6635_v63 = vpack.c.bf16 %v6339_v31, %v6335_v2  ;;  %v11694_v0 = vxor.u32 %v9174_v32, %v4677_v41  ;;  %v4043_v55 = vxor.u32 %v8924_v14, %v3659_v5  ;;  %v11697_v62 = vmul.u32 1024, %v11626_v28 }
 0x136   : > { %v11701_v58 = vadd.s32 %v11692_v59, %v10796_v13  ;;  %v11704_v48 = vxor.u32 %v9178_v46, %v4681_v45  ;;  %v4167_v35 = vmul.u32 2146121005, %v4039_v7  ;;  %v11708_v20 = vadd.s32 %v11692_v59, %v10806_v18 }
 0x137   : > { %7103 = vmatmul.mubr.bf16.gmra.mxu1 %v6635_v63  ;;  %v5189_v15 = vand.u32 8388607, %v11694_v0  ;;  %v4171_v28 = vmul.u32 2146121005, %v4043_v55  ;;  %v11714_v9 = vadd.s32 %v11697_v62, %v10796_v13  ;;  %v11720_v39 = vadd.s32 %v11692_v59, %v10784_v8 }
 0x138   : > { %15104 = vst [vmem:[#allocation49_spill] sm:$0xff] %v11701_v58  ;;  %15105 = vst [vmem:[#allocation50_spill] sm:$0xff] %v11708_v20  ;;  %v5193_v22 = vand.u32 8388607, %v11704_v48  ;;  %v9048_v10 = vshrl.u32 %v4167_v35, 15  ;;  %v3534_v45 = vadd.s32 512, %v11701_v58  ;;  %v11725_v41 = vadd.s32 %v11697_v62, %v10806_v18 }
 0x139   : > { %15106 = vst [vmem:[#allocation51_spill] sm:$0xff] %v11714_v9  ;;  %15107 = vst [vmem:[#allocation52_spill] sm:$0xff] %v11720_v39  ;;  %v5317_v50 = vor.u32 1065353216, %v5189_v15  ;;  %v9052_v2 = vshrl.u32 %v4171_v28, 15  ;;  %v3538_v3 = vadd.s32 512, %v11714_v9  ;;  %v3536_v32 = vadd.s32 512, %v11708_v20 }
 0x13a   : > { %15108 = vst [vmem:[#allocation53_spill] sm:$0xff] %v11725_v41  ;;  %v5321_v5 = vor.u32 1065353216, %v5193_v22  ;;  %v4551_v31 = vxor.u32 %v9048_v10, %v4167_v35  ;;  %v3662_v21 = vxor.u32 %v3534_v45, %v11026_v60  ;;  %v3540_v55 = vadd.s32 512, %v11725_v41 }
 0x13b   : > { %v10219_v14 = vpop.eup %10218  ;;  %v5573_v63 = vsub.f32 2.0, %v5317_v50  ;;  %v4555_v46 = vxor.u32 %v9052_v2, %v4171_v28  ;;  %v3666_v7 = vxor.u32 %v3538_v3, %v11026_v60  ;;  %v3664_v2 = vxor.u32 %v3536_v32, %v11026_v60 }
 0x13c   : > { %v10221_v15 = vpop.eup %10220  ;;  %v5752_v51 = vmul.f32 0.6931472, %v10219_v14  ;;  %v5577_v38 = vsub.f32 2.0, %v5321_v5  ;;  %v4679_v9 = vmul.u32 2221713035, %v4551_v31  ;;  %v8927_v58 = vshrl.u32 %v3662_v21, 16 }
 0x13d   : > { %v5760_v16 = vmul.f32 0.6931472, %v10221_v15  ;;  %10226 = vlog2.f32 %v5573_v63  ;;  %v4683_v22 = vmul.u32 2221713035, %v4555_v46  ;;  %v8931_v35 = vshrl.u32 %v3666_v7, 16 }
 0x13e   : > { %v5958_v10 = vmul.f32 -0.1, %v5752_v51  ;;  %10228 = vlog2.f32 %v5577_v38  ;;  %v9176_v45 = vshrl.u32 %v4679_v9, 16  ;;  %v4046_v20 = vxor.u32 %v8927_v58, %v3662_v21 }
 0x13f   : > { %v5962_v19 = vmul.f32 -0.1, %v5760_v16  ;;  %v9180_v50 = vshrl.u32 %v4683_v22, 16  ;;  %v4050_v28 = vxor.u32 %v8931_v35, %v3666_v7  ;;  %v15109_v41 = vand.u32 2147483648, %v11655_v61 }
 0x140   : > { %v10223_v3 = vpop.eup %10222  ;;  %v11734_v5 = vxor.u32 %v9176_v45, %v4679_v9  ;;  %v4174_v31 = vmul.u32 2146121005, %v4046_v20  ;;  %v3668_v63 = vxor.u32 %v3540_v55, %v11026_v60  ;;  %v15110_v51 = vand.u32 2147483648, %v11659_v42 }
 0x141   : > { %v6342_v14 = vor.u32 %v15109_v41, %v5958_v10  ;;  %v10225_v46 = vpop.eup %10224  ;;  %v5756_v15 = vmul.f32 0.6931472, %v10223_v3  ;;  %v11739_v58 = vxor.u32 %v9180_v50, %v4683_v22  ;;  %v4178_v16 = vmul.u32 2146121005, %v4050_v28 }
 0x142   : > { %v6346_v38 = vor.u32 %v15110_v51, %v5962_v19  ;;  %v5764_v21 = vmul.f32 0.6931472, %v10225_v46  ;;  %v6085_v32 = vand.u32 2147483648, %v11694_v0  ;;  %v5191_v7 = vand.u32 8388607, %v11734_v5 }
 0x143   : > { %v9055_v61 = vshrl.u32 %v4174_v31, 15  ;;  %v5960_v9 = vmul.f32 -0.1, %v5756_v15  ;;  %v6089_v20 = vand.u32 2147483648, %v11704_v48  ;;  %v5195_v55 = vand.u32 8388607, %v11739_v58 }
 0x144   : > { %v6638_v41 = vpack.c.bf16 %v6346_v38, %v6342_v14  ;;  %v5964_v35 = vmul.f32 -0.1, %v5764_v21  ;;  %v5319_v10 = vor.u32 1065353216, %v5191_v7  ;;  %v9059_v42 = vshrl.u32 %v4178_v16, 15 }
 0x145   : > { %v4558_v19 = vxor.u32 %v9055_v61, %v4174_v31  ;;  %v15111_v22 = vand.u32 2147483648, %v11669_v11  ;;  %v5323_v50 = vor.u32 1065353216, %v5195_v55  ;;  %v8929_v28 = vshrl.u32 %v3664_v2, 16 }
 0x146   : > { %6949 = vmatprep.mubr.bf16.mxu0 %v6638_v41  ;;  %v8933_v0 = vshrl.u32 %v3668_v63, 16  ;;  %v15112_v3 = vand.u32 2147483648, %v11672_v47  ;;  %v5575_v14 = vsub.f32 2.0, %v5319_v10  ;;  %v4562_v51 = vxor.u32 %v9059_v42, %v4178_v16 }
 0x147   : > { %v6344_v45 = vor.u32 %v15111_v22, %v5960_v9  ;;  %v4686_v38 = vmul.u32 2221713035, %v4558_v19  ;;  %v5579_v48 = vsub.f32 2.0, %v5323_v50  ;;  %v4048_v15 = vxor.u32 %v8929_v28, %v3664_v2 }
 0x148   : > { %v6348_v46 = vor.u32 %v15112_v3, %v5964_v35  ;;  %v4052_v56 = vxor.u32 %v8933_v0, %v3668_v63  ;;  %v11751_v21 = vadd.s32 %v11697_v62, %v10784_v8  ;;  %10230 = vlog2.f32 %v5575_v14 }
 0x149   : > { %v4690_v11 = vmul.u32 2221713035, %v4562_v51  ;;  %v9183_v7 = vshrl.u32 %v4686_v38, 16  ;;  %10232 = vlog2.f32 %v5579_v48  ;;  %v4176_v61 = vmul.u32 2146121005, %v4048_v15 }
 0x14a   : > { %15113 = vst [vmem:[#allocation54_spill] sm:$0xff] %v11751_v21  ;;  %v6640_v31 = vpack.c.bf16 %v6348_v46, %v6344_v45  ;;  %v4180_v41 = vmul.u32 2146121005, %v4052_v56  ;;  %v3533_v47 = vadd.s32 512, %v11720_v39  ;;  %v10227_v9 = vpop.eup %10226  ;;  %v6087_v16 = vand.u32 2147483648, %v11734_v5 }
 0x14b   : > { %v9187_v55 = vshrl.u32 %v4690_v11, 16  ;;  %v11755_v2 = vxor.u32 %v9183_v7, %v4686_v38  ;;  %v3537_v63 = vadd.s32 512, %v11751_v21  ;;  %v10229_v35 = vpop.eup %10228  ;;  %v5750_v10 = vmul.f32 0.6931472, %v10227_v9 }
 0x14c   : > { %7110 = vmatprep.mubr.bf16.mxu1 %v6640_v31  ;;  %v9057_v42 = vshrl.u32 %v4176_v61, 15  ;;  %v9061_v19 = vshrl.u32 %v4180_v41, 15  ;;  %v3661_v22 = vxor.u32 %v3533_v47, %v11026_v60  ;;  %v5758_v45 = vmul.f32 0.6931472, %v10229_v35 }
 0x14d   : > { %v6091_v56 = vand.u32 2147483648, %v11739_v58  ;;  %v11760_v50 = vxor.u32 %v9187_v55, %v4690_v11  ;;  %v5198_v28 = vand.u32 8388607, %v11755_v2  ;;  %v5957_v0 = vmul.f32 -0.1, %v5750_v10 }
 0x14e   : > { %v4560_v3 = vxor.u32 %v9057_v42, %v4176_v61  ;;  %v4564_v46 = vxor.u32 %v9061_v19, %v4180_v41  ;;  %v3665_v14 = vxor.u32 %v3537_v63, %v11026_v60  ;;  %v5961_v51 = vmul.f32 -0.1, %v5758_v45 }
 0x14f   : > { %v5202_v38 = vand.u32 8388607, %v11760_v50  ;;  %v5326_v48 = vor.u32 1065353216, %v5198_v28  ;;  %v11767_v15 = vadd.s32 %v11692_v59, %v10839_v30  ;;  %v6341_v31 = vor.u32 %v6085_v32, %v5957_v0 }
 0x150   : > { %v4688_v7 = vmul.u32 2221713035, %v4560_v3  ;;  %v4692_v58 = vmul.u32 2221713035, %v4564_v46  ;;  %v8926_v11 = vshrl.u32 %v3661_v22, 16  ;;  %v6345_v47 = vor.u32 %v6089_v20, %v5961_v51 }
 0x151   : > { %15114 = vst [vmem:[#allocation55_spill] sm:$0xff] %v11767_v15  ;;  %v5330_v9 = vor.u32 1065353216, %v5202_v38  ;;  %v5582_v55 = vsub.f32 2.0, %v5326_v48  ;;  %v8930_v35 = vshrl.u32 %v3665_v14, 16  ;;  %v11771_v63 = vadd.s32 %v11697_v62, %v10839_v30 }
 0x152   : > { %v9185_v61 = vshrl.u32 %v4688_v7, 16  ;;  %v9189_v41 = vshrl.u32 %v4692_v58, 16  ;;  %v4045_v10 = vxor.u32 %v8926_v11, %v3661_v22  ;;  %v6637_v42 = vpack.c.bf16 %v6345_v47, %v6341_v31 }
 0x153   : > { %15115 = vst [vmem:[#allocation56_spill] sm:$0xff] %v11771_v63  ;;  %v5586_v19 = vsub.f32 2.0, %v5330_v9  ;;  %10234 = vlog2.f32 %v5582_v55  ;;  %v4049_v59 = vxor.u32 %v8930_v35, %v3665_v14  ;;  %v3535_v20 = vadd.s32 512, %v11767_v15 }
 0x154   : > { %v11773_v45 = vxor.u32 %v9185_v61, %v4688_v7  ;;  %v11775_v32 = vxor.u32 %v9189_v41, %v4692_v58  ;;  %v4173_v28 = vmul.u32 2146121005, %v4045_v10  ;;  %6950 = vmatmul.mubr.bf16.gmra.mxu0 %v6637_v42  ;;  %v3539_v3 = vadd.s32 512, %v11771_v63 }
 0x155   : > { %10236 = vlog2.f32 %v5586_v19  ;;  %v4177_v22 = vmul.u32 2146121005, %v4049_v59  ;;  %v10231_v62 = vpop.eup %10230  ;;  %v188_v38 = vadd.s32 136, %v10779_v6  ;;  %v3663_v11 = vxor.u32 %v3535_v20, %v11026_v60 }
 0x156   : > { %v5200_v51 = vand.u32 8388607, %v11773_v45  ;;  %v5204_v14 = vand.u32 8388607, %v11775_v32  ;;  %v10233_v48 = vpop.eup %10232  ;;  %v5754_v31 = vmul.f32 0.6931472, %v10231_v62  ;;  %v3667_v35 = vxor.u32 %v3539_v3, %v11026_v60 }
 0x157   : > { %v9054_v7 = vshrl.u32 %v4173_v28, 15  ;;  %v9058_v58 = vshrl.u32 %v4177_v22, 15  ;;  %v5762_v47 = vmul.f32 0.6931472, %v10233_v48  ;;  %v8928_v42 = vshrl.u32 %v3663_v11, 16 }
 0x158   : > { %v5328_v9 = vor.u32 1065353216, %v5200_v51  ;;  %v5332_v55 = vor.u32 1065353216, %v5204_v14  ;;  %v5959_v61 = vmul.f32 -0.1, %v5754_v31  ;;  %v8932_v0 = vshrl.u32 %v3667_v35, 16 }
 0x159   : > { %v4557_v41 = vxor.u32 %v9054_v7, %v4173_v28  ;;  %v4561_v10 = vxor.u32 %v9058_v58, %v4177_v22  ;;  %v5963_v19 = vmul.f32 -0.1, %v5762_v47  ;;  %v4047_v21 = vxor.u32 %v8928_v42, %v3663_v11 }
 0x15a   : > { %v5584_v59 = vsub.f32 2.0, %v5328_v9  ;;  %v5588_v46 = vsub.f32 2.0, %v5332_v55  ;;  %v6343_v62 = vor.u32 %v6087_v16, %v5959_v61  ;;  %v4051_v51 = vxor.u32 %v8932_v0, %v3667_v35 }
 0x15b   : > { %v4685_v63 = vmul.u32 2221713035, %v4557_v41  ;;  %v4689_v15 = vmul.u32 2221713035, %v4561_v10  ;;  %v6347_v20 = vor.u32 %v6091_v56, %v5963_v19  ;;  %v226_v3 = vadd.s32 %v10772_v4, %v11581_v26 }
 0x15c   : > { %10238 = vlog2.f32 %v5584_v59  ;;  %v4175_v14 = vmul.u32 2146121005, %v4047_v21  ;;  %v4179_v31 = vmul.u32 2146121005, %v4051_v51  ;;  %v227_v7 = vadd.s32 %v10772_v4, %v188_v38 }
 0x15d   : > { %10240 = vlog2.f32 %v5588_v46  ;;  %v9182_v28 = vshrl.u32 %v4685_v63, 16  ;;  %v9186_v22 = vshrl.u32 %v4689_v15, 16  ;;  %v6639_v48 = vpack.c.bf16 %v6347_v20, %v6343_v62 }
 0x15e   : > { %v11791_v58 = vmul.u32 1024, %v226_v3  ;;  %v9056_v0 = vshrl.u32 %v4175_v14, 15  ;;  %v9060_v46 = vshrl.u32 %v4179_v31, 15  ;;  %v11799_v47 = vmul.u32 1024, %v227_v7 }
 0x15f   : > { %v11794_v16 = vxor.u32 %v9182_v28, %v4685_v63  ;;  %v11796_v56 = vxor.u32 %v9186_v22, %v4689_v15  ;;  %7111 = vmatmul.mubr.bf16.gmra.mxu1 %v6639_v48  ;;  %v11816_v10 = vadd.s32 144, %v10779_v6 }
 0x160   : > { %v10235_v11 = vpop.eup %10234  ;;  %v11803_v21 = vadd.s32 %v11791_v58, %v10796_v13  ;;  %v4559_v55 = vxor.u32 %v9056_v0, %v4175_v14  ;;  %v4563_v35 = vxor.u32 %v9060_v46, %v4179_v31  ;;  %v11809_v61 = vadd.s32 %v11799_v47, %v10796_v13 }
 0x161   : > { %v5768_v38 = vmul.f32 0.6931472, %v10235_v11  ;;  %v5197_v9 = vand.u32 8388607, %v11794_v16  ;;  %v5201_v63 = vand.u32 8388607, %v11796_v56  ;;  %v11813_v41 = vadd.s32 %v11791_v58, %v10806_v18 }
 0x162   : > { %15116 = vst [vmem:[#allocation57_spill] sm:$0xff] %v11803_v21  ;;  %v10237_v15 = vpop.eup %10236  ;;  %15117 = vst [vmem:[#allocation58_spill] sm:$0xff] %v11809_v61  ;;  %v4687_v20 = vmul.u32 2221713035, %v4559_v55  ;;  %v4691_v51 = vmul.u32 2221713035, %v4563_v35  ;;  %v11828_v55 = vadd.s32 %v11799_v47, %v10806_v18 }
 0x163   : > { %15118 = vst [vmem:[#allocation59_spill] sm:$0xff] %v11813_v41  ;;  %v5776_v42 = vmul.f32 0.6931472, %v10237_v15  ;;  %v5966_v19 = vmul.f32 -0.1, %v5768_v38  ;;  %v5325_v59 = vor.u32 1065353216, %v5197_v9 }
 0x164   : > { %v5329_v62 = vor.u32 1065353216, %v5201_v63  ;;  %v3542_v3 = vadd.s32 512, %v11803_v21  ;;  %v3546_v28 = vadd.s32 512, %v11809_v61  ;;  %v15119_v14 = vand.u32 2147483648, %v11755_v2  ;;  %15121 = vst [vmem:[#allocation60_spill] sm:$0xff] %v11828_v55 }
 0x165   : > { %v5970_v22 = vmul.f32 -0.1, %v5776_v42  ;;  %v5581_v31 = vsub.f32 2.0, %v5325_v59  ;;  %v9184_v0 = vshrl.u32 %v4687_v20, 16  ;;  %v9188_v11 = vshrl.u32 %v4691_v51, 16 }
 0x166   : > { %v6350_v48 = vor.u32 %v15119_v14, %v5966_v19  ;;  %v5585_v7 = vsub.f32 2.0, %v5329_v62  ;;  %v3670_v46 = vxor.u32 %v3542_v3, %v11026_v60  ;;  %v3674_v38 = vxor.u32 %v3546_v28, %v11026_v60 }
 0x167   : > { %v15120_v9 = vand.u32 2147483648, %v11760_v50  ;;  %10242 = vlog2.f32 %v5581_v31  ;;  %v3544_v15 = vadd.s32 512, %v11813_v41  ;;  %v11831_v2 = vxor.u32 %v9184_v0, %v4687_v20 }
 0x168   : > { %10244 = vlog2.f32 %v5585_v7  ;;  %v11833_v35 = vxor.u32 %v9188_v11, %v4691_v51  ;;  %v8935_v42 = vshrl.u32 %v3670_v46, 16  ;;  %v8939_v62 = vshrl.u32 %v3674_v38, 16 }
 0x169   : > { %v6354_v63 = vor.u32 %v15120_v9, %v5970_v22  ;;  %v10239_v19 = vpop.eup %10238  ;;  %v3548_v3 = vadd.s32 512, %v11828_v55  ;;  %v3672_v50 = vxor.u32 %v3544_v15, %v11026_v60  ;;  %v5199_v14 = vand.u32 8388607, %v11831_v2 }
 0x16a   : > { %v10241_v28 = vpop.eup %10240  ;;  %v5772_v22 = vmul.f32 0.6931472, %v10239_v19  ;;  %v5203_v31 = vand.u32 8388607, %v11833_v35  ;;  %v4054_v9 = vxor.u32 %v8935_v42, %v3670_v46  ;;  %v6093_v51 = vand.u32 2147483648, %v11794_v16  ;;  %v10110_v46 = vld [vmem:[%s14923_s2 + $0x50] sm:$0xff]  }
 0x16b   : > { %v6642_v59 = vpack.c.bf16 %v6354_v63, %v6350_v48  ;;  %v5780_v20 = vmul.f32 0.6931472, %v10241_v28  ;;  %v4058_v0 = vxor.u32 %v8939_v62, %v3674_v38  ;;  %v5327_v11 = vor.u32 1065353216, %v5199_v14  ;;  %9663 = vmatprep.subr.bf16.mxu0 %v10110_v46 }
 0x16c   : > { %v5968_v48 = vmul.f32 -0.1, %v5772_v22  ;;  %v5331_v63 = vor.u32 1065353216, %v5203_v31  ;;  %v4182_v26 = vmul.u32 2146121005, %v4054_v9  ;;  %v3676_v19 = vxor.u32 %v3548_v3, %v11026_v60 }
 0x16d   : > { %6957 = vmatprep.mubr.bf16.mxu0 %v6642_v59  ;;  %v5972_v5 = vmul.f32 -0.1, %v5780_v20  ;;  %v4186_v15 = vmul.u32 2146121005, %v4058_v0  ;;  %v8937_v55 = vshrl.u32 %v3672_v50, 16  ;;  %v15122_v42 = vand.u32 2147483648, %v11773_v45 }
 0x16e   : > { %v5583_v16 = vsub.f32 2.0, %v5327_v11  ;;  %v5587_v28 = vsub.f32 2.0, %v5331_v63  ;;  %v9063_v7 = vshrl.u32 %v4182_v26, 15  ;;  %v15123_v38 = vand.u32 2147483648, %v11775_v32 }
 0x16f   : > { %v6352_v59 = vor.u32 %v15122_v42, %v5968_v48  ;;  %v9067_v22 = vshrl.u32 %v4186_v15, 15  ;;  %v8941_v14 = vshrl.u32 %v3676_v19, 16  ;;  %v4056_v31 = vxor.u32 %v8937_v55, %v3672_v50 }
 0x170   : > { %v6356_v62 = vor.u32 %v15123_v38, %v5972_v5  ;;  %10246 = vlog2.f32 %v5583_v16  ;;  %v4566_v3 = vxor.u32 %v9063_v7, %v4182_v26  ;;  %v11851_v9 = vadd.s32 %v11791_v58, %v10784_v8 }
 0x171   : > { %v11855_v45 = vadd.s32 %v11799_v47, %v10784_v8  ;;  %10248 = vlog2.f32 %v5587_v28  ;;  %v4570_v0 = vxor.u32 %v9067_v22, %v4186_v15  ;;  %v4060_v48 = vxor.u32 %v8941_v14, %v3676_v19 }
 0x172   : > { %15124 = vst [vmem:[#allocation61_spill] sm:$0xff] %v11851_v9  ;;  %v6644_v20 = vpack.c.bf16 %v6356_v62, %v6352_v59  ;;  %v4694_v32 = vmul.u32 2221713035, %v4566_v3  ;;  %v4184_v5 = vmul.u32 2146121005, %v4056_v31  ;;  %v3541_v11 = vadd.s32 512, %v11851_v9 }
 0x173   : > { %15125 = vst [vmem:[#allocation62_spill] sm:$0xff] %v11855_v45  ;;  %v3545_v55 = vadd.s32 512, %v11855_v45  ;;  %v4698_v50 = vmul.u32 2221713035, %v4570_v0  ;;  %v4188_v7 = vmul.u32 2146121005, %v4060_v48  ;;  %v11862_v63 = vadd.s32 %v11791_v58, %v10839_v30 }
 0x174   : > { %7118 = vmatprep.mubr.bf16.mxu1 %v6644_v20  ;;  %v10243_v46 = vpop.eup %10242  ;;  %v9191_v42 = vshrl.u32 %v4694_v32, 16  ;;  %v9065_v59 = vshrl.u32 %v4184_v5, 15  ;;  %v3669_v15 = vxor.u32 %v3541_v11, %v11026_v60  ;;  %v11868_v22 = vadd.s32 %v11799_v47, %v10839_v30 }
 0x175   : > { %15126 = vst [vmem:[#allocation63_spill] sm:$0xff] %v11862_v63  ;;  %v3673_v19 = vxor.u32 %v3545_v55, %v11026_v60  ;;  %v10245_v16 = vpop.eup %10244  ;;  %v5766_v28 = vmul.f32 0.6931472, %v10243_v46  ;;  %v9195_v38 = vshrl.u32 %v4698_v50, 16  ;;  %v9069_v62 = vshrl.u32 %v4188_v7, 15 }
 0x176   : > { %15127 = vst [vmem:[#allocation64_spill] sm:$0xff] %v11868_v22  ;;  %v5774_v14 = vmul.f32 0.6931472, %v10245_v16  ;;  %v11870_v31 = vxor.u32 %v9191_v42, %v4694_v32  ;;  %v4568_v58 = vxor.u32 %v9065_v59, %v4184_v5  ;;  %v8934_v3 = vshrl.u32 %v3669_v15, 16 }
 0x177   : > { %v5965_v20 = vmul.f32 -0.1, %v5766_v28  ;;  %v11872_v0 = vxor.u32 %v9195_v38, %v4698_v50  ;;  %v4572_v48 = vxor.u32 %v9069_v62, %v4188_v7  ;;  %v8938_v11 = vshrl.u32 %v3673_v19, 16 }
 0x178   : > { %v5969_v26 = vmul.f32 -0.1, %v5774_v14  ;;  %v6099_v55 = vand.u32 2147483648, %v11833_v35  ;;  %v5206_v46 = vand.u32 8388607, %v11870_v31  ;;  %v4053_v45 = vxor.u32 %v8934_v3, %v3669_v15 }
 0x179   : > { %v6349_v9 = vor.u32 %v6093_v51, %v5965_v20  ;;  %v5210_v47 = vand.u32 8388607, %v11872_v0  ;;  %v4696_v41 = vmul.u32 2221713035, %v4568_v58  ;;  %v3543_v32 = vadd.s32 512, %v11862_v63 }
 0x17a   : > { %v15128_v5 = vand.u32 2147483648, %v11796_v56  ;;  %v5334_v59 = vor.u32 1065353216, %v5206_v46  ;;  %v4700_v50 = vmul.u32 2221713035, %v4572_v48  ;;  %v4057_v16 = vxor.u32 %v8938_v11, %v3673_v19 }
 0x17b   : > { %v5338_v7 = vor.u32 1065353216, %v5210_v47  ;;  %v9193_v28 = vshrl.u32 %v4696_v41, 16  ;;  %v4181_v38 = vmul.u32 2146121005, %v4053_v45  ;;  %v3547_v35 = vadd.s32 512, %v11868_v22 }
 0x17c   : > { %v6353_v42 = vor.u32 %v15128_v5, %v5969_v26  ;;  %v5590_v14 = vsub.f32 2.0, %v5334_v59  ;;  %v9197_v15 = vshrl.u32 %v4700_v50, 16  ;;  %v4185_v51 = vmul.u32 2146121005, %v4057_v16 }
 0x17d   : > { %v10247_v3 = vpop.eup %10246  ;;  %v5594_v20 = vsub.f32 2.0, %v5338_v7  ;;  %v11881_v58 = vxor.u32 %v9193_v28, %v4696_v41  ;;  %v9062_v63 = vshrl.u32 %v4181_v38, 15  ;;  %v3671_v56 = vxor.u32 %v3543_v32, %v11026_v60 }
 0x17e   : > { %v6641_v62 = vpack.c.bf16 %v6353_v42, %v6349_v9  ;;  %v10249_v26 = vpop.eup %10248  ;;  %v5770_v48 = vmul.f32 0.6931472, %v10247_v3  ;;  %10250 = vlog2.f32 %v5590_v14  ;;  %v11884_v19 = vxor.u32 %v9197_v15, %v4700_v50  ;;  %v10111_v3 = vld [vmem:[%s14923_s2 + $0x10] sm:$0xff]  }
 0x17f   : > { %v9066_v45 = vshrl.u32 %v4185_v51, 15  ;;  %v5778_v11 = vmul.f32 0.6931472, %v10249_v26  ;;  %10252 = vlog2.f32 %v5594_v20  ;;  %v5208_v46 = vand.u32 8388607, %v11881_v58  ;;  %v10112_v20 = vld [vmem:[%s14923_s2 + $0xd0] sm:$0xff]   ;;  %9664 = vmatpush3.bf16.msra.mxu0 %v10111_v3 }
 0x180   : > { %6958 = vmatmul.mubr.bf16.gmra.mxu0 %v6641_v62  ;;  %v5967_v47 = vmul.f32 -0.1, %v5770_v48  ;;  %v5212_v5 = vand.u32 8388607, %v11884_v19  ;;  %v4565_v42 = vxor.u32 %v9062_v63, %v4181_v38  ;;  %v3675_v7 = vxor.u32 %v3547_v35, %v11026_v60  ;;  %9775 = vmatprep.subr.bf16.mxu1 %v10112_v20 }
 0x181   : > { %v5971_v32 = vmul.f32 -0.1, %v5778_v11  ;;  %v5336_v59 = vor.u32 1065353216, %v5208_v46  ;;  %v4569_v16 = vxor.u32 %v9066_v45, %v4185_v51  ;;  %v15129_v50 = vand.u32 2147483648, %v11831_v2  ;;  %v10113_v2 = vld [vmem:[%s14923_s2 + $0x90] sm:$0xff]  }
 0x182   : > { %v5340_v62 = vor.u32 1065353216, %v5212_v5  ;;  %v4693_v14 = vmul.u32 2221713035, %v4565_v42  ;;  %v8936_v15 = vshrl.u32 %v3671_v56, 16  ;;  %v8940_v51 = vshrl.u32 %v3675_v7, 16  ;;  %9776 = vmatpush3.bf16.msra.mxu1 %v10113_v2 }
 0x183   : > { %v6351_v28 = vor.u32 %v15129_v50, %v5967_v47  ;;  %v6355_v63 = vor.u32 %v6099_v55, %v5971_v32  ;;  %v5592_v38 = vsub.f32 2.0, %v5336_v59  ;;  %v4697_v26 = vmul.u32 2221713035, %v4569_v16 }
 0x184   : > { %v5596_v35 = vsub.f32 2.0, %v5340_v62  ;;  %v9190_v48 = vshrl.u32 %v4693_v14, 16  ;;  %v4055_v45 = vxor.u32 %v8936_v15, %v3671_v56  ;;  %v190_v11 = vadd.s32 152, %v10779_v6 }
 0x185   : > { %v6643_v46 = vpack.c.bf16 %v6355_v63, %v6351_v28  ;;  %10254 = vlog2.f32 %v5592_v38  ;;  %v9194_v47 = vshrl.u32 %v4697_v26, 16  ;;  %v4059_v5 = vxor.u32 %v8940_v51, %v3675_v7 }
 0x186   : > { %10256 = vlog2.f32 %v5596_v35  ;;  %v11903_v55 = vxor.u32 %v9190_v48, %v4693_v14  ;;  %v4183_v42 = vmul.u32 2146121005, %v4055_v45  ;;  %v228_v32 = vadd.s32 %v10772_v4, %v11816_v10 }
 0x187   : > { %7119 = vmatmul.mubr.bf16.gmra.mxu1 %v6643_v46  ;;  %v11908_v56 = vxor.u32 %v9194_v47, %v4697_v26  ;;  %v4187_v16 = vmul.u32 2146121005, %v4059_v5  ;;  %v229_v50 = vadd.s32 %v10772_v4, %v190_v11  ;;  %v11919_v10 = vadd.s32 160, %v10779_v6 }
 0x188   : > { %v5205_v7 = vand.u32 8388607, %v11903_v55  ;;  %v9064_v62 = vshrl.u32 %v4183_v42, 15  ;;  %v11913_v15 = vmul.u32 1024, %v228_v32 }
 0x189   : > { %v5209_v14 = vand.u32 8388607, %v11908_v56  ;;  %v9068_v3 = vshrl.u32 %v4187_v16, 15  ;;  %v11916_v20 = vmul.u32 1024, %v229_v50 }
 0x18a   : > { %v5333_v63 = vor.u32 1065353216, %v5205_v7  ;;  %v4567_v38 = vxor.u32 %v9064_v62, %v4183_v42  ;;  %v11923_v26 = vadd.s32 %v11913_v15, %v10796_v13  ;;  %v11927_v51 = vadd.s32 %v11913_v15, %v10806_v18 }
 0x18b   : > { %v10251_v2 = vpop.eup %10250  ;;  %v5337_v35 = vor.u32 1065353216, %v5209_v14  ;;  %v4571_v48 = vxor.u32 %v9068_v3, %v4187_v16  ;;  %v11931_v45 = vadd.s32 %v11916_v20, %v10796_v13  ;;  %v11935_v11 = vadd.s32 %v11916_v20, %v10806_v18 }
 0x18c   : > { %15130 = vst [vmem:[#allocation65_spill] sm:$0xff] %v11923_v26  ;;  %15131 = vst [vmem:[#allocation66_spill] sm:$0xff] %v11927_v51  ;;  %v10253_v46 = vpop.eup %10252  ;;  %v5784_v47 = vmul.f32 0.6931472, %v10251_v2  ;;  %v5589_v5 = vsub.f32 2.0, %v5333_v63  ;;  %v3550_v32 = vadd.s32 512, %v11923_v26 }
 0x18d   : > { %15132 = vst [vmem:[#allocation67_spill] sm:$0xff] %v11931_v45  ;;  %15133 = vst [vmem:[#allocation68_spill] sm:$0xff] %v11935_v11  ;;  %v4695_v42 = vmul.u32 2221713035, %v4567_v38  ;;  %v5792_v50 = vmul.f32 0.6931472, %v10253_v46 }
 0x18e   : > { %v5593_v7 = vsub.f32 2.0, %v5337_v35  ;;  %v4699_v62 = vmul.u32 2221713035, %v4571_v48  ;;  %v3554_v14 = vadd.s32 512, %v11931_v45  ;;  %v5974_v16 = vmul.f32 -0.1, %v5784_v47 }
 0x18f   : > { %10258 = vlog2.f32 %v5589_v5  ;;  %v9192_v3 = vshrl.u32 %v4695_v42, 16  ;;  %v3678_v28 = vxor.u32 %v3550_v32, %v11026_v60  ;;  %v5978_v59 = vmul.f32 -0.1, %v5792_v50 }
 0x190   : > { %10260 = vlog2.f32 %v5593_v7  ;;  %v9196_v41 = vshrl.u32 %v4699_v62, 16  ;;  %v3682_v9 = vxor.u32 %v3554_v14, %v11026_v60  ;;  %v15134_v63 = vand.u32 2147483648, %v11870_v31 }
 0x191   : > { %v11943_v2 = vxor.u32 %v9192_v3, %v4695_v42  ;;  %v8943_v46 = vshrl.u32 %v3678_v28, 16  ;;  %v3552_v35 = vadd.s32 512, %v11927_v51  ;;  %v15135_v48 = vand.u32 2147483648, %v11872_v0 }
 0x192   : > { %v6358_v38 = vor.u32 %v15134_v63, %v5974_v16  ;;  %v11948_v5 = vxor.u32 %v9196_v41, %v4699_v62  ;;  %v8947_v45 = vshrl.u32 %v3682_v9, 16  ;;  %v3556_v32 = vadd.s32 512, %v11935_v11  ;;  %v10255_v50 = vpop.eup %10254 }
 0x193   : > { %v6362_v47 = vor.u32 %v15135_v48, %v5978_v59  ;;  %v6101_v7 = vand.u32 2147483648, %v11903_v55  ;;  %v5207_v14 = vand.u32 8388607, %v11943_v2  ;;  %v4062_v31 = vxor.u32 %v8943_v46, %v3678_v28  ;;  %v10257_v16 = vpop.eup %10256 }
 0x194   : > { %v3680_v42 = vxor.u32 %v3552_v35, %v11026_v60  ;;  %v5788_v63 = vmul.f32 0.6931472, %v10255_v50  ;;  %v6105_v51 = vand.u32 2147483648, %v11908_v56  ;;  %v5211_v0 = vand.u32 8388607, %v11948_v5 }
 0x195   : > { %v6646_v3 = vpack.c.bf16 %v6362_v47, %v6358_v38  ;;  %v5796_v41 = vmul.f32 0.6931472, %v10257_v16  ;;  %v5335_v59 = vor.u32 1065353216, %v5207_v14  ;;  %v4066_v62 = vxor.u32 %v8947_v45, %v3682_v9 }
 0x196   : > { %v4190_v48 = vmul.u32 2146121005, %v4062_v31  ;;  %v5976_v11 = vmul.f32 -0.1, %v5788_v63  ;;  %v5339_v26 = vor.u32 1065353216, %v5211_v0  ;;  %v3684_v55 = vxor.u32 %v3556_v32, %v11026_v60 }
 0x197   : > { %6965 = vmatprep.mubr.bf16.mxu0 %v6646_v3  ;;  %v8945_v22 = vshrl.u32 %v3680_v42, 16  ;;  %v5980_v28 = vmul.f32 -0.1, %v5796_v41  ;;  %v5591_v46 = vsub.f32 2.0, %v5335_v59  ;;  %v4194_v35 = vmul.u32 2146121005, %v4066_v62 }
 0x198   : > { %v9071_v61 = vshrl.u32 %v4190_v48, 15  ;;  %v15136_v38 = vand.u32 2147483648, %v11881_v58  ;;  %v5595_v56 = vsub.f32 2.0, %v5339_v26  ;;  %v8949_v50 = vshrl.u32 %v3684_v55, 16 }
 0x199   : > { %v4064_v21 = vxor.u32 %v8945_v22, %v3680_v42  ;;  %v15137_v14 = vand.u32 2147483648, %v11884_v19  ;;  %10262 = vlog2.f32 %v5591_v46  ;;  %v9075_v45 = vshrl.u32 %v4194_v35, 15 }
 0x19a   : > { %v6360_v47 = vor.u32 %v15136_v38, %v5976_v11  ;;  %v4574_v31 = vxor.u32 %v9071_v61, %v4190_v48  ;;  %10264 = vlog2.f32 %v5595_v56  ;;  %v4068_v16 = vxor.u32 %v8949_v50, %v3684_v55 }
 0x19b   : > { %v6364_v9 = vor.u32 %v15137_v14, %v5980_v28  ;;  %v4192_v32 = vmul.u32 2146121005, %v4064_v21  ;;  %v11963_v3 = vadd.s32 %v11913_v15, %v10784_v8  ;;  %v4578_v0 = vxor.u32 %v9075_v45, %v4194_v35 }
 0x19c   : > { %v4702_v58 = vmul.u32 2221713035, %v4574_v31  ;;  %v11967_v26 = vadd.s32 %v11916_v20, %v10784_v8  ;;  %v10259_v22 = vpop.eup %10258  ;;  %v6103_v19 = vand.u32 2147483648, %v11943_v2  ;;  %v4196_v11 = vmul.u32 2146121005, %v4068_v16 }
 0x19d   : > { %15138 = vst [vmem:[#allocation69_spill] sm:$0xff] %v11963_v3  ;;  %v6648_v63 = vpack.c.bf16 %v6364_v9, %v6360_v47  ;;  %v9073_v42 = vshrl.u32 %v4192_v32, 15  ;;  %v3549_v61 = vadd.s32 512, %v11963_v3  ;;  %v10261_v41 = vpop.eup %10260  ;;  %v5782_v21 = vmul.f32 0.6931472, %v10259_v22 }
 0x19e   : > { %15139 = vst [vmem:[#allocation70_spill] sm:$0xff] %v11967_v26  ;;  %v4706_v59 = vmul.u32 2221713035, %v4578_v0  ;;  %v9199_v62 = vshrl.u32 %v4702_v58, 16  ;;  %v3553_v48 = vadd.s32 512, %v11967_v26  ;;  %v9077_v28 = vshrl.u32 %v4196_v11, 15 }
 0x19f   : > { %7126 = vmatprep.mubr.bf16.mxu1 %v6648_v63  ;;  %v5790_v55 = vmul.f32 0.6931472, %v10261_v41  ;;  %v4576_v46 = vxor.u32 %v9073_v42, %v4192_v32  ;;  %v3677_v35 = vxor.u32 %v3549_v61, %v11026_v60  ;;  %v5973_v38 = vmul.f32 -0.1, %v5782_v21 }
 0x1a0   : > { %v9203_v47 = vshrl.u32 %v4706_v59, 16  ;;  %v11973_v56 = vxor.u32 %v9199_v62, %v4702_v58  ;;  %v3681_v50 = vxor.u32 %v3553_v48, %v11026_v60  ;;  %v4580_v9 = vxor.u32 %v9077_v28, %v4196_v11 }
 0x1a1   : > { %v5977_v14 = vmul.f32 -0.1, %v5790_v55  ;;  %v4704_v45 = vmul.u32 2221713035, %v4576_v46  ;;  %v8942_v31 = vshrl.u32 %v3677_v35, 16  ;;  %v6357_v16 = vor.u32 %v6101_v7, %v5973_v38 }
 0x1a2   : > { %v6107_v63 = vand.u32 2147483648, %v11948_v5  ;;  %v11977_v0 = vxor.u32 %v9203_v47, %v4706_v59  ;;  %v5214_v22 = vand.u32 8388607, %v11973_v56  ;;  %v4708_v42 = vmul.u32 2221713035, %v4580_v9 }
 0x1a3   : > { %v6361_v32 = vor.u32 %v6105_v51, %v5977_v14  ;;  %v9201_v61 = vshrl.u32 %v4704_v45, 16  ;;  %v8946_v41 = vshrl.u32 %v3681_v50, 16  ;;  %v4061_v62 = vxor.u32 %v8942_v31, %v3677_v35 }
 0x1a4   : > { %v5218_v58 = vand.u32 8388607, %v11977_v0  ;;  %v5342_v21 = vor.u32 1065353216, %v5214_v22  ;;  %v11983_v11 = vadd.s32 %v11913_v15, %v10839_v30  ;;  %v9205_v7 = vshrl.u32 %v4708_v42, 16 }
 0x1a5   : > { %v6645_v48 = vpack.c.bf16 %v6361_v32, %v6357_v16  ;;  %v11985_v55 = vxor.u32 %v9201_v61, %v4704_v45  ;;  %v4065_v5 = vxor.u32 %v8946_v41, %v3681_v50  ;;  %v4189_v46 = vmul.u32 2146121005, %v4061_v62 }
 0x1a6   : > { %15140 = vst [vmem:[#allocation71_spill] sm:$0xff] %v11983_v11  ;;  %v5346_v59 = vor.u32 1065353216, %v5218_v58  ;;  %v5598_v28 = vsub.f32 2.0, %v5342_v21  ;;  %v10263_v38 = vpop.eup %10262  ;;  %v11988_v47 = vxor.u32 %v9205_v7, %v4708_v42  ;;  %v11993_v15 = vadd.s32 %v11916_v20, %v10839_v30 }
 0x1a7   : > { %6966 = vmatmul.mubr.bf16.gmra.mxu0 %v6645_v48  ;;  %v5216_v35 = vand.u32 8388607, %v11985_v55  ;;  %v4193_v14 = vmul.u32 2146121005, %v4065_v5  ;;  %v10265_v9 = vpop.eup %10264  ;;  %v5786_v45 = vmul.f32 0.6931472, %v10263_v38  ;;  %v230_v2 = vadd.s32 %v10772_v4, %v11919_v10 }
 0x1a8   : > { %15141 = vst [vmem:[#allocation72_spill] sm:$0xff] %v11993_v15  ;;  %v5602_v31 = vsub.f32 2.0, %v5346_v59  ;;  %10266 = vlog2.f32 %v5598_v28  ;;  %v9070_v50 = vshrl.u32 %v4189_v46, 15  ;;  %v5794_v16 = vmul.f32 0.6931472, %v10265_v9 }
 0x1a9   : > { %v5220_v32 = vand.u32 8388607, %v11988_v47  ;;  %v5344_v61 = vor.u32 1065353216, %v5216_v35  ;;  %v5975_v42 = vmul.f32 -0.1, %v5786_v45  ;;  %v9074_v41 = vshrl.u32 %v4193_v14, 15 }
 0x1aa   : > { %10268 = vlog2.f32 %v5602_v31  ;;  %v4573_v58 = vxor.u32 %v9070_v50, %v4189_v46  ;;  %v5979_v21 = vmul.f32 -0.1, %v5794_v16  ;;  %v3551_v20 = vadd.s32 512, %v11983_v11 }
 0x1ab   : > { %v5348_v62 = vor.u32 1065353216, %v5220_v32  ;;  %v5600_v48 = vsub.f32 2.0, %v5344_v61  ;;  %v6359_v7 = vor.u32 %v6103_v19, %v5975_v42  ;;  %v4577_v5 = vxor.u32 %v9074_v41, %v4193_v14 }
 0x1ac   : > { %v4701_v59 = vmul.u32 2221713035, %v4573_v58  ;;  %v3555_v28 = vadd.s32 512, %v11993_v15  ;;  %v6363_v38 = vor.u32 %v6107_v63, %v5979_v21  ;;  %v3679_v35 = vxor.u32 %v3551_v20, %v11026_v60 }
 0x1ad   : > { %v5604_v9 = vsub.f32 2.0, %v5348_v62  ;;  %10270 = vlog2.f32 %v5600_v48  ;;  %v4705_v45 = vmul.u32 2221713035, %v4577_v5  ;;  %v192_v50 = vadd.s32 168, %v10779_v6 }
 0x1ae   : > { %v9198_v31 = vshrl.u32 %v4701_v59, 16  ;;  %v3683_v46 = vxor.u32 %v3555_v28, %v11026_v60  ;;  %v6647_v16 = vpack.c.bf16 %v6363_v38, %v6359_v7  ;;  %v8944_v32 = vshrl.u32 %v3679_v35, 16 }
 0x1af   : > { %10272 = vlog2.f32 %v5604_v9  ;;  %v9202_v19 = vshrl.u32 %v4705_v45, 16  ;;  %v231_v61 = vadd.s32 %v10772_v4, %v192_v50  ;;  %v6112_v42 = vand.u32 2147483648, %v11985_v55 }
 0x1b0   : > { %v12006_v14 = vxor.u32 %v9198_v31, %v4701_v59  ;;  %v8948_v63 = vshrl.u32 %v3683_v46, 16  ;;  %7127 = vmatmul.mubr.bf16.gmra.mxu1 %v6647_v16  ;;  %v4063_v58 = vxor.u32 %v8944_v32, %v3679_v35  ;;  %v12011_v21 = vmul.u32 1024, %v230_v2 }
 0x1b1   : > { %v12013_v62 = vxor.u32 %v9202_v19, %v4705_v45  ;;  %v12017_v10 = vadd.s32 176, %v10779_v6  ;;  %v12019_v5 = vmul.u32 1024, %v231_v61  ;;  %v12031_v35 = vadd.s32 184, %v10779_v6 }
 0x1b2   : > { %v5213_v48 = vand.u32 8388607, %v12006_v14  ;;  %v4067_v20 = vxor.u32 %v8948_v63, %v3683_v46  ;;  %v4191_v7 = vmul.u32 2146121005, %v4063_v58  ;;  %v12023_v59 = vadd.s32 %v12011_v21, %v10796_v13 }
 0x1b3   : > { %v12027_v55 = vadd.s32 %v12011_v21, %v10806_v18  ;;  %v5217_v28 = vand.u32 8388607, %v12013_v62  ;;  %v12035_v46 = vadd.s32 %v12019_v5, %v10796_v13  ;;  %v12040_v16 = vadd.s32 %v12019_v5, %v10806_v18 }
 0x1b4   : > { %15142 = vst [vmem:[#allocation73_spill] sm:$0xff] %v12023_v59  ;;  %v5341_v38 = vor.u32 1065353216, %v5213_v48  ;;  %v4195_v9 = vmul.u32 2146121005, %v4067_v20  ;;  %v9072_v31 = vshrl.u32 %v4191_v7, 15  ;;  %v3558_v50 = vadd.s32 512, %v12023_v59 }
 0x1b5   : > { %15143 = vst [vmem:[#allocation74_spill] sm:$0xff] %v12027_v55  ;;  %v10267_v45 = vpop.eup %10266  ;;  %15144 = vst [vmem:[#allocation75_spill] sm:$0xff] %v12035_v46  ;;  %v5345_v2 = vor.u32 1065353216, %v5217_v28  ;;  %v3562_v48 = vadd.s32 512, %v12035_v46  ;;  %v3560_v41 = vadd.s32 512, %v12027_v55  ;;  %v15146_v3 = vand.u32 2147483648, %v11973_v56 }
 0x1b6   : > { %15145 = vst [vmem:[#allocation76_spill] sm:$0xff] %v12040_v16  ;;  %v5800_v32 = vmul.f32 0.6931472, %v10267_v45  ;;  %v5597_v19 = vsub.f32 2.0, %v5341_v38  ;;  %v9076_v63 = vshrl.u32 %v4195_v9, 15  ;;  %v4575_v58 = vxor.u32 %v9072_v31, %v4191_v7 }
 0x1b7   : > { %v10269_v61 = vpop.eup %10268  ;;  %v3686_v20 = vxor.u32 %v3558_v50, %v11026_v60  ;;  %v5601_v15 = vsub.f32 2.0, %v5345_v2  ;;  %v3690_v26 = vxor.u32 %v3562_v48, %v11026_v60  ;;  %v3564_v31 = vadd.s32 512, %v12040_v16 }
 0x1b8   : > { %v5808_v22 = vmul.f32 0.6931472, %v10269_v61  ;;  %v5982_v51 = vmul.f32 -0.1, %v5800_v32  ;;  %10274 = vlog2.f32 %v5597_v19  ;;  %v4579_v59 = vxor.u32 %v9076_v63, %v4195_v9 }
 0x1b9   : > { %v4703_v11 = vmul.u32 2221713035, %v4575_v58  ;;  %v8951_v45 = vshrl.u32 %v3686_v20, 16  ;;  %10276 = vlog2.f32 %v5601_v15  ;;  %v8955_v61 = vshrl.u32 %v3690_v26, 16 }
 0x1ba   : > { %v10271_v28 = vpop.eup %10270  ;;  %v5986_v38 = vmul.f32 -0.1, %v5808_v22  ;;  %v6366_v7 = vor.u32 %v15146_v3, %v5982_v51  ;;  %v4707_v46 = vmul.u32 2221713035, %v4579_v59  ;;  %v15147_v2 = vand.u32 2147483648, %v11977_v0 }
 0x1bb   : > { %v5804_v50 = vmul.f32 0.6931472, %v10271_v28  ;;  %v9200_v55 = vshrl.u32 %v4703_v11, 16  ;;  %v4070_v19 = vxor.u32 %v8951_v45, %v3686_v20  ;;  %v3688_v63 = vxor.u32 %v3560_v41, %v11026_v60 }
 0x1bc   : > { %v10273_v32 = vpop.eup %10272  ;;  %v6370_v9 = vor.u32 %v15147_v2, %v5986_v38  ;;  %v3692_v58 = vxor.u32 %v3564_v31, %v11026_v60  ;;  %v9204_v56 = vshrl.u32 %v4707_v46, 16  ;;  %v4074_v15 = vxor.u32 %v8955_v61, %v3690_v26 }
 0x1bd   : > { %v5812_v22 = vmul.f32 0.6931472, %v10273_v32  ;;  %v5984_v48 = vmul.f32 -0.1, %v5804_v50  ;;  %v12053_v3 = vxor.u32 %v9200_v55, %v4703_v11  ;;  %v4198_v28 = vmul.u32 2146121005, %v4070_v19 }
 0x1be   : > { %v6650_v51 = vpack.c.bf16 %v6370_v9, %v6366_v7  ;;  %v8953_v59 = vshrl.u32 %v3688_v63, 16  ;;  %v12055_v43 = vxor.u32 %v9204_v56, %v4707_v46  ;;  %v6109_v41 = vand.u32 2147483648, %v12006_v14  ;;  %v10114_v11 = vld [vmem:[%s14923_s2 + $0x48] sm:$0xff]  }
 0x1bf   : > { %v5988_v16 = vmul.f32 -0.1, %v5812_v22  ;;  %v6368_v39 = vor.u32 %v6112_v42, %v5984_v48  ;;  %v5215_v0 = vand.u32 8388607, %v12053_v3  ;;  %v4202_v20 = vmul.u32 2146121005, %v4074_v15  ;;  %9665 = vmatprep.subr.bf16.mxu0 %v10114_v11 }
 0x1c0   : > { %6973 = vmatprep.mubr.bf16.mxu0 %v6650_v51  ;;  %v9079_v45 = vshrl.u32 %v4198_v28, 15  ;;  %v8957_v38 = vshrl.u32 %v3692_v58, 16  ;;  %v15148_v26 = vand.u32 2147483648, %v11988_v47  ;;  %v6113_v7 = vand.u32 2147483648, %v12013_v62 }
 0x1c1   : > { %v5219_v42 = vand.u32 8388607, %v12055_v43  ;;  %v5343_v46 = vor.u32 1065353216, %v5215_v0  ;;  %v9083_v31 = vshrl.u32 %v4202_v20, 15  ;;  %v4072_v61 = vxor.u32 %v8953_v59, %v3688_v63 }
 0x1c2   : > { %v6372_v55 = vor.u32 %v15148_v26, %v5988_v16  ;;  %v4582_v50 = vxor.u32 %v9079_v45, %v4198_v28  ;;  %v4076_v32 = vxor.u32 %v8957_v38, %v3692_v58  ;;  %v12068_v19 = vadd.s32 %v12011_v21, %v10784_v8 }
 0x1c3   : > { %v5347_v2 = vor.u32 1065353216, %v5219_v42  ;;  %v5599_v9 = vsub.f32 2.0, %v5343_v46  ;;  %v4586_v22 = vxor.u32 %v9083_v31, %v4202_v20  ;;  %v4200_v16 = vmul.u32 2146121005, %v4072_v61 }
 0x1c4   : > { %v6652_v14 = vpack.c.bf16 %v6372_v55, %v6368_v39  ;;  %v4710_v47 = vmul.u32 2221713035, %v4582_v50  ;;  %v12072_v62 = vadd.s32 %v12019_v5, %v10784_v8  ;;  %v4204_v63 = vmul.u32 2146121005, %v4076_v32 }
 0x1c5   : > { %v10275_v48 = vpop.eup %10274  ;;  %v5603_v56 = vsub.f32 2.0, %v5347_v2  ;;  %10278 = vlog2.f32 %v5599_v9  ;;  %v3557_v39 = vadd.s32 512, %v12068_v19  ;;  %v4714_v51 = vmul.u32 2221713035, %v4586_v22 }
 0x1c6   : > { %15149 = vst [vmem:[#allocation77_spill] sm:$0xff] %v12072_v62  ;;  %7134 = vmatprep.mubr.bf16.mxu1 %v6652_v14  ;;  %v5798_v58 = vmul.f32 0.6931472, %v10275_v48  ;;  %v9207_v15 = vshrl.u32 %v4710_v47, 16  ;;  %v9081_v28 = vshrl.u32 %v4200_v16, 15  ;;  %v10277_v59 = vpop.eup %10276  ;;  %v9085_v0 = vshrl.u32 %v4204_v63, 15 }
 0x1c7   : > { %10280 = vlog2.f32 %v5603_v56  ;;  %v3561_v20 = vadd.s32 512, %v12072_v62  ;;  %v3685_v45 = vxor.u32 %v3557_v39, %v11026_v60  ;;  %v5806_v38 = vmul.f32 0.6931472, %v10277_v59 }
 0x1c8   : > { %v5981_v11 = vmul.f32 -0.1, %v5798_v58  ;;  %v9211_v26 = vshrl.u32 %v4714_v51, 16  ;;  %v12077_v55 = vxor.u32 %v9207_v15, %v4710_v47  ;;  %v4584_v42 = vxor.u32 %v9081_v28, %v4200_v16 }
 0x1c9   : > { %v4588_v46 = vxor.u32 %v9085_v0, %v4204_v63  ;;  %v3689_v31 = vxor.u32 %v3561_v20, %v11026_v60  ;;  %v8950_v50 = vshrl.u32 %v3685_v45, 16  ;;  %v5985_v61 = vmul.f32 -0.1, %v5806_v38 }
 0x1ca   : > { %v6365_v32 = vor.u32 %v6109_v41, %v5981_v11  ;;  %v12080_v14 = vxor.u32 %v9211_v26, %v4714_v51  ;;  %v5222_v2 = vand.u32 8388607, %v12077_v55  ;;  %v6111_v9 = vand.u32 2147483648, %v12053_v3 }
 0x1cb   : > { %v4712_v22 = vmul.u32 2221713035, %v4584_v42  ;;  %v4716_v48 = vmul.u32 2221713035, %v4588_v46  ;;  %v8954_v56 = vshrl.u32 %v3689_v31, 16  ;;  %v6369_v39 = vor.u32 %v6113_v7, %v5985_v61 }
 0x1cc   : > { %v6115_v47 = vand.u32 2147483648, %v12055_v43  ;;  %v5226_v16 = vand.u32 8388607, %v12080_v14  ;;  %v5350_v63 = vor.u32 1065353216, %v5222_v2  ;;  %v4069_v28 = vxor.u32 %v8950_v50, %v3685_v45 }
 0x1cd   : > { %v9209_v58 = vshrl.u32 %v4712_v22, 16  ;;  %v9213_v15 = vshrl.u32 %v4716_v48, 16  ;;  %v4073_v59 = vxor.u32 %v8954_v56, %v3689_v31  ;;  %v6649_v41 = vpack.c.bf16 %v6369_v39, %v6365_v32 }
 0x1ce   : > { %v5354_v51 = vor.u32 1065353216, %v5226_v16  ;;  %v5606_v0 = vsub.f32 2.0, %v5350_v63  ;;  %v12088_v20 = vadd.s32 %v12011_v21, %v10839_v30  ;;  %v4197_v7 = vmul.u32 2146121005, %v4069_v28 }
 0x1cf   : > { %v12090_v3 = vxor.u32 %v9209_v58, %v4712_v22  ;;  %v12092_v38 = vxor.u32 %v9213_v15, %v4716_v48  ;;  %v4201_v43 = vmul.u32 2146121005, %v4073_v59  ;;  %6974 = vmatmul.mubr.bf16.gmra.mxu0 %v6649_v41  ;;  %v12096_v45 = vadd.s32 %v12019_v5, %v10839_v30 }
 0x1d0   : > { %15150 = vst [vmem:[#allocation78_spill] sm:$0xff] %v12088_v20  ;;  %v5610_v11 = vsub.f32 2.0, %v5354_v51  ;;  %10282 = vlog2.f32 %v5606_v0  ;;  %v3559_v26 = vadd.s32 512, %v12088_v20  ;;  %v9078_v61 = vshrl.u32 %v4197_v7, 15 }
 0x1d1   : > { %15151 = vst [vmem:[#allocation79_spill] sm:$0xff] %v12096_v45  ;;  %v5224_v46 = vand.u32 8388607, %v12090_v3  ;;  %v5228_v31 = vand.u32 8388607, %v12092_v38  ;;  %v9082_v32 = vshrl.u32 %v4201_v43, 15  ;;  %v232_v15 = vadd.s32 %v10772_v4, %v12017_v10 }
 0x1d2   : > { %v10279_v50 = vpop.eup %10278  ;;  %10284 = vlog2.f32 %v5610_v11  ;;  %v3563_v2 = vadd.s32 512, %v12096_v45  ;;  %v3687_v56 = vxor.u32 %v3559_v26, %v11026_v60  ;;  %v4581_v16 = vxor.u32 %v9078_v61, %v4197_v7  ;;  %v10116_v10 = vld [vmem:[%s14923_s2 + $0xc8] sm:$0xff]  }
 0x1d3   : > { %v5802_v22 = vmul.f32 0.6931472, %v10279_v50  ;;  %v5352_v48 = vor.u32 1065353216, %v5224_v46  ;;  %v5356_v5 = vor.u32 1065353216, %v5228_v31  ;;  %v4585_v63 = vxor.u32 %v9082_v32, %v4201_v43  ;;  %v10115_v43 = vld [vmem:[%s14923_s2 + $0x8] sm:$0xff]   ;;  %9777 = vmatprep.subr.bf16.mxu1 %v10116_v10 }
 0x1d4   : > { %v10281_v39 = vpop.eup %10280  ;;  %v3691_v58 = vxor.u32 %v3563_v2, %v11026_v60  ;;  %v4709_v0 = vmul.u32 2221713035, %v4581_v16  ;;  %v8952_v21 = vshrl.u32 %v3687_v56, 16  ;;  %v233_v7 = vadd.s32 %v10772_v4, %v12031_v35  ;;  %v10117_v26 = vld [vmem:[%s14923_s2 + $0x88] sm:$0xff]   ;;  %9666 = vmatpush3.bf16.msra.mxu0 %v10115_v43 }
 0x1d5   : > { %v5810_v28 = vmul.f32 0.6931472, %v10281_v39  ;;  %v5983_v59 = vmul.f32 -0.1, %v5802_v22  ;;  %v5608_v41 = vsub.f32 2.0, %v5352_v48  ;;  %v5612_v51 = vsub.f32 2.0, %v5356_v5  ;;  %9778 = vmatpush3.bf16.msra.mxu1 %v10117_v26 }
 0x1d6   : > { %v4713_v11 = vmul.u32 2221713035, %v4585_v63  ;;  %v8956_v50 = vshrl.u32 %v3691_v58, 16  ;;  %v9206_v61 = vshrl.u32 %v4709_v0, 16  ;;  %v12119_v48 = vmul.u32 1024, %v232_v15 }
 0x1d7   : > { %v5987_v46 = vmul.f32 -0.1, %v5810_v28  ;;  %v6367_v31 = vor.u32 %v6111_v9, %v5983_v59  ;;  %10286 = vlog2.f32 %v5608_v41  ;;  %v4071_v9 = vxor.u32 %v8952_v21, %v3687_v56 }
 0x1d8   : > { %10288 = vlog2.f32 %v5612_v51  ;;  %v9210_v32 = vshrl.u32 %v4713_v11, 16  ;;  %v4075_v22 = vxor.u32 %v8956_v50, %v3691_v58  ;;  %v12121_v35 = vmul.u32 1024, %v233_v7 }
 0x1d9   : > { %v6371_v2 = vor.u32 %v6115_v47, %v5987_v46  ;;  %v12124_v39 = vxor.u32 %v9206_v61, %v4709_v0  ;;  %v4199_v63 = vmul.u32 2146121005, %v4071_v9  ;;  %v12130_v47 = vadd.s32 %v12119_v48, %v10796_v13 }
 0x1da   : > { %v12126_v16 = vxor.u32 %v9210_v32, %v4713_v11  ;;  %v4203_v59 = vmul.u32 2146121005, %v4075_v22  ;;  %v12134_v21 = vadd.s32 %v12121_v35, %v10796_v13  ;;  %v6124_v56 = vand.u32 2147483648, %v12092_v38 }
 0x1db   : > { %v6651_v28 = vpack.c.bf16 %v6371_v2, %v6367_v31  ;;  %15152 = vst [vmem:[#allocation80_spill] sm:$0xff] %v12130_v47  ;;  %v5221_v58 = vand.u32 8388607, %v12124_v39  ;;  %v12140_v41 = vadd.s32 192, %v10779_v6  ;;  %v9080_v0 = vshrl.u32 %v4199_v63, 15 }
 0x1dc   : > { %15153 = vst [vmem:[#allocation81_spill] sm:$0xff] %v12134_v21  ;;  %v5225_v15 = vand.u32 8388607, %v12126_v16  ;;  %v9084_v11 = vshrl.u32 %v4203_v59, 15  ;;  %v3566_v50 = vadd.s32 512, %v12130_v47  ;;  %v3570_v46 = vadd.s32 512, %v12134_v21 }
 0x1dd   : > { %v10283_v51 = vpop.eup %10282  ;;  %7135 = vmatmul.mubr.bf16.gmra.mxu1 %v6651_v28  ;;  %v5349_v7 = vor.u32 1065353216, %v5221_v58  ;;  %v12146_v38 = vadd.s32 %v12119_v48, %v10806_v18  ;;  %v4583_v26 = vxor.u32 %v9080_v0, %v4199_v63  ;;  %v15155_v47 = vand.u32 2147483648, %v12077_v55 }
 0x1de   : > { %v5816_v31 = vmul.f32 0.6931472, %v10283_v51  ;;  %v5353_v43 = vor.u32 1065353216, %v5225_v15  ;;  %v4587_v61 = vxor.u32 %v9084_v11, %v4203_v59  ;;  %v3694_v32 = vxor.u32 %v3566_v50, %v11026_v60 }
 0x1df   : > { %15154 = vst [vmem:[#allocation82_spill] sm:$0xff] %v12146_v38  ;;  %v10285_v10 = vpop.eup %10284  ;;  %v3698_v9 = vxor.u32 %v3570_v46, %v11026_v60  ;;  %v5605_v28 = vsub.f32 2.0, %v5349_v7  ;;  %v4711_v42 = vmul.u32 2221713035, %v4583_v26  ;;  %v12154_v63 = vadd.s32 %v12121_v35, %v10806_v18 }
 0x1e0   : > { %v5824_v2 = vmul.f32 0.6931472, %v10285_v10  ;;  %v5990_v22 = vmul.f32 -0.1, %v5816_v31  ;;  %v5609_v5 = vsub.f32 2.0, %v5353_v43  ;;  %v8959_v51 = vshrl.u32 %v3694_v32, 16 }
 0x1e1   : > { %v4715_v21 = vmul.u32 2221713035, %v4587_v61  ;;  %v8963_v58 = vshrl.u32 %v3698_v9, 16  ;;  %10290 = vlog2.f32 %v5605_v28  ;;  %15156 = vst [vmem:[#allocation83_spill] sm:$0xff] %v12154_v63  ;;  %v9208_v59 = vshrl.u32 %v4711_v42, 16 }
 0x1e2   : > { %v5994_v15 = vmul.f32 -0.1, %v5824_v2  ;;  %v6374_v45 = vor.u32 %v15155_v47, %v5990_v22  ;;  %10292 = vlog2.f32 %v5609_v5  ;;  %v4078_v11 = vxor.u32 %v8959_v51, %v3694_v32 }
 0x1e3   : > { %v9212_v0 = vshrl.u32 %v4715_v21, 16  ;;  %v15157_v46 = vand.u32 2147483648, %v12080_v14  ;;  %v4082_v7 = vxor.u32 %v8963_v58, %v3698_v9  ;;  %v3568_v43 = vadd.s32 512, %v12146_v38 }
 0x1e4   : > { %v10287_v50 = vpop.eup %10286  ;;  %v3572_v10 = vadd.s32 512, %v12154_v63  ;;  %v12160_v26 = vxor.u32 %v9208_v59, %v4711_v42  ;;  %v4206_v2 = vmul.u32 2146121005, %v4078_v11  ;;  %v6117_v42 = vand.u32 2147483648, %v12124_v39 }
 0x1e5   : > { %v6378_v31 = vor.u32 %v15157_v46, %v5994_v15  ;;  %v10289_v55 = vpop.eup %10288  ;;  %v5820_v47 = vmul.f32 0.6931472, %v10287_v50  ;;  %v12162_v61 = vxor.u32 %v9212_v0, %v4715_v21  ;;  %v4210_v28 = vmul.u32 2146121005, %v4082_v7 }
 0x1e6   : > { %v5828_v22 = vmul.f32 0.6931472, %v10289_v55  ;;  %v3696_v32 = vxor.u32 %v3568_v43, %v11026_v60  ;;  %v5223_v14 = vand.u32 8388607, %v12160_v26  ;;  %v3700_v58 = vxor.u32 %v3572_v10, %v11026_v60 }
 0x1e7   : > { %v6654_v5 = vpack.c.bf16 %v6378_v31, %v6374_v45  ;;  %v5992_v51 = vmul.f32 -0.1, %v5820_v47  ;;  %v5227_v9 = vand.u32 8388607, %v12162_v61  ;;  %v6121_v21 = vand.u32 2147483648, %v12126_v16 }
 0x1e8   : > { %v5996_v15 = vmul.f32 -0.1, %v5828_v22  ;;  %v9087_v59 = vshrl.u32 %v4206_v2, 15  ;;  %v15158_v45 = vand.u32 2147483648, %v12090_v3  ;;  %v5351_v11 = vor.u32 1065353216, %v5223_v14 }
 0x1e9   : > { %6981 = vmatprep.mubr.bf16.mxu0 %v6654_v5  ;;  %v5355_v50 = vor.u32 1065353216, %v5227_v9  ;;  %v9091_v46 = vshrl.u32 %v4210_v28, 15  ;;  %v8961_v43 = vshrl.u32 %v3696_v32, 16  ;;  %v8965_v55 = vshrl.u32 %v3700_v58, 16 }
 0x1ea   : > { %v6376_v0 = vor.u32 %v15158_v45, %v5992_v51  ;;  %v6380_v31 = vor.u32 %v6124_v56, %v5996_v15  ;;  %v4590_v7 = vxor.u32 %v9087_v59, %v4206_v2  ;;  %v5607_v47 = vsub.f32 2.0, %v5351_v11 }
 0x1eb   : > { %v5611_v63 = vsub.f32 2.0, %v5355_v50  ;;  %v4594_v10 = vxor.u32 %v9091_v46, %v4210_v28  ;;  %v12174_v5 = vadd.s32 %v12119_v48, %v10784_v8  ;;  %v4080_v22 = vxor.u32 %v8961_v43, %v3696_v32 }
 0x1ec   : > { %v6656_v39 = vpack.c.bf16 %v6380_v31, %v6376_v0  ;;  %v4718_v16 = vmul.u32 2221713035, %v4590_v7  ;;  %v4084_v38 = vxor.u32 %v8965_v55, %v3700_v58  ;;  %10294 = vlog2.f32 %v5607_v47 }
 0x1ed   : > { %15159 = vst [vmem:[#allocation84_spill] sm:$0xff] %v12174_v5  ;;  %v4722_v3 = vmul.u32 2221713035, %v4594_v10  ;;  %v12178_v51 = vadd.s32 %v12121_v35, %v10784_v8  ;;  %v3565_v56 = vadd.s32 512, %v12174_v5  ;;  %10296 = vlog2.f32 %v5611_v63 }
 0x1ee   : > { %7142 = vmatprep.mubr.bf16.mxu1 %v6656_v39  ;;  %v9215_v2 = vshrl.u32 %v4718_v16, 16  ;;  %v4208_v28 = vmul.u32 2146121005, %v4080_v22  ;;  %v4212_v14 = vmul.u32 2146121005, %v4084_v38  ;;  %v10291_v9 = vpop.eup %10290  ;;  %v6123_v55 = vand.u32 2147483648, %v12162_v61 }
 0x1ef   : > { %15160 = vst [vmem:[#allocation85_spill] sm:$0xff] %v12178_v51  ;;  %v9219_v59 = vshrl.u32 %v4722_v3, 16  ;;  %v3569_v32 = vadd.s32 512, %v12178_v51  ;;  %v3693_v58 = vxor.u32 %v3565_v56, %v11026_v60  ;;  %v10293_v45 = vpop.eup %10292  ;;  %v5814_v0 = vmul.f32 0.6931472, %v10291_v9 }
 0x1f0   : > { %v12184_v11 = vxor.u32 %v9215_v2, %v4718_v16  ;;  %v9089_v50 = vshrl.u32 %v4208_v28, 15  ;;  %v9093_v46 = vshrl.u32 %v4212_v14, 15  ;;  %v5822_v31 = vmul.f32 0.6931472, %v10293_v45 }
 0x1f1   : > { %v12186_v7 = vxor.u32 %v9219_v59, %v4722_v3  ;;  %v3697_v63 = vxor.u32 %v3569_v32, %v11026_v60  ;;  %v8958_v38 = vshrl.u32 %v3693_v58, 16  ;;  %v5989_v43 = vmul.f32 -0.1, %v5814_v0 }
 0x1f2   : > { %v5230_v47 = vand.u32 8388607, %v12184_v11  ;;  %v4592_v10 = vxor.u32 %v9089_v50, %v4208_v28  ;;  %v5993_v39 = vmul.f32 -0.1, %v5822_v31  ;;  %v4596_v56 = vxor.u32 %v9093_v46, %v4212_v14 }
 0x1f3   : > { %v5234_v22 = vand.u32 8388607, %v12186_v7  ;;  %v12194_v16 = vadd.s32 %v12119_v48, %v10839_v30  ;;  %v6373_v2 = vor.u32 %v6117_v42, %v5989_v43  ;;  %v8962_v59 = vshrl.u32 %v3697_v63, 16 }
 0x1f4   : > { %v5358_v3 = vor.u32 1065353216, %v5230_v47  ;;  %v4720_v9 = vmul.u32 2221713035, %v4592_v10  ;;  %v6377_v32 = vor.u32 %v6121_v21, %v5993_v39  ;;  %v4724_v0 = vmul.u32 2221713035, %v4596_v56 }
 0x1f5   : > { %15161 = vst [vmem:[#allocation86_spill] sm:$0xff] %v12194_v16  ;;  %v5362_v45 = vor.u32 1065353216, %v5234_v22  ;;  %v4077_v15 = vxor.u32 %v8958_v38, %v3693_v58  ;;  %v4081_v5 = vxor.u32 %v8962_v59, %v3697_v63  ;;  %v12198_v28 = vadd.s32 %v12121_v35, %v10839_v30 }
 0x1f6   : > { %v5614_v61 = vsub.f32 2.0, %v5358_v3  ;;  %v9217_v51 = vshrl.u32 %v4720_v9, 16  ;;  %v6653_v14 = vpack.c.bf16 %v6377_v32, %v6373_v2  ;;  %v9221_v46 = vshrl.u32 %v4724_v0, 16 }
 0x1f7   : > { %15162 = vst [vmem:[#allocation87_spill] sm:$0xff] %v12198_v28  ;;  %v5618_v50 = vsub.f32 2.0, %v5362_v45  ;;  %v4205_v48 = vmul.u32 2146121005, %v4077_v15  ;;  %v4209_v31 = vmul.u32 2146121005, %v4081_v5 }
 0x1f8   : > { %10298 = vlog2.f32 %v5614_v61  ;;  %v12200_v42 = vxor.u32 %v9217_v51, %v4720_v9  ;;  %v3567_v21 = vadd.s32 512, %v12194_v16  ;;  %6982 = vmatmul.mubr.bf16.gmra.mxu0 %v6653_v14  ;;  %v12203_v58 = vxor.u32 %v9221_v46, %v4724_v0 }
 0x1f9   : > { %10300 = vlog2.f32 %v5618_v50  ;;  %v9086_v38 = vshrl.u32 %v4205_v48, 15  ;;  %v3571_v63 = vadd.s32 512, %v12198_v28  ;;  %v10295_v43 = vpop.eup %10294  ;;  %v9090_v10 = vshrl.u32 %v4209_v31, 15 }
 0x1fa   : > { %v5232_v47 = vand.u32 8388607, %v12200_v42  ;;  %v3695_v15 = vxor.u32 %v3567_v21, %v11026_v60  ;;  %v10297_v51 = vpop.eup %10296  ;;  %v5818_v39 = vmul.f32 0.6931472, %v10295_v43  ;;  %v5236_v22 = vand.u32 8388607, %v12203_v58 }
 0x1fb   : > { %v4589_v56 = vxor.u32 %v9086_v38, %v4205_v48  ;;  %v5826_v2 = vmul.f32 0.6931472, %v10297_v51  ;;  %v4593_v9 = vxor.u32 %v9090_v10, %v4209_v31  ;;  %v3699_v59 = vxor.u32 %v3571_v63, %v11026_v60 }
 0x1fc   : > { %v5360_v3 = vor.u32 1065353216, %v5232_v47  ;;  %v5991_v32 = vmul.f32 -0.1, %v5818_v39  ;;  %v5364_v45 = vor.u32 1065353216, %v5236_v22  ;;  %v8960_v61 = vshrl.u32 %v3695_v15, 16 }
 0x1fd   : > { %v4717_v0 = vmul.u32 2221713035, %v4589_v56  ;;  %v5995_v14 = vmul.f32 -0.1, %v5826_v2  ;;  %v4721_v46 = vmul.u32 2221713035, %v4593_v9 }
 0x1fe   : > { %v5616_v50 = vsub.f32 2.0, %v5360_v3  ;;  %v8964_v21 = vshrl.u32 %v3699_v59, 16  ;;  %v15163_v43 = vand.u32 2147483648, %v12160_v26  ;;  %v5620_v5 = vsub.f32 2.0, %v5364_v45 }
 0x1ff   : > { %v9214_v28 = vshrl.u32 %v4717_v0, 16  ;;  %v4079_v16 = vxor.u32 %v8960_v61, %v3695_v15  ;;  %v6379_v48 = vor.u32 %v6123_v55, %v5995_v14  ;;  %v9218_v38 = vshrl.u32 %v4721_v46, 16 }
 0x200   : > { %v6375_v35 = vor.u32 %v15163_v43, %v5991_v32  ;;  %10302 = vlog2.f32 %v5616_v50  ;;  %v4083_v31 = vxor.u32 %v8964_v21, %v3699_v59  ;;  %v196_v10 = vadd.s32 200, %v10779_v6 }
 0x201   : > { %10304 = vlog2.f32 %v5620_v5  ;;  %v12214_v63 = vxor.u32 %v9214_v28, %v4717_v0  ;;  %v4207_v47 = vmul.u32 2146121005, %v4079_v16  ;;  %v12217_v39 = vxor.u32 %v9218_v38, %v4721_v46 }
 0x202   : > { %v6655_v51 = vpack.c.bf16 %v6379_v48, %v6375_v35  ;;  %v4211_v22 = vmul.u32 2146121005, %v4083_v31  ;;  %v234_v26 = vadd.s32 %v10772_v4, %v12140_v41  ;;  %v235_v2 = vadd.s32 %v10772_v4, %v196_v10 }
 0x203   : > { %v5229_v55 = vand.u32 8388607, %v12214_v63  ;;  %v9088_v15 = vshrl.u32 %v4207_v47, 15  ;;  %v5233_v16 = vand.u32 8388607, %v12217_v39 }
 0x204   : > { %7143 = vmatmul.mubr.bf16.gmra.mxu1 %v6655_v51  ;;  %v9092_v5 = vshrl.u32 %v4211_v22, 15  ;;  %v12226_v35 = vmul.u32 1024, %v234_v26  ;;  %v12229_v32 = vmul.u32 1024, %v235_v2 }
 0x205   : > { %v10299_v3 = vpop.eup %10298  ;;  %v5357_v9 = vor.u32 1065353216, %v5229_v55  ;;  %v4591_v41 = vxor.u32 %v9088_v15, %v4207_v47  ;;  %v5361_v61 = vor.u32 1065353216, %v5233_v16  ;;  %v15166_v55 = vand.u32 2147483648, %v12184_v11 }
 0x206   : > { %v10301_v45 = vpop.eup %10300  ;;  %v5832_v0 = vmul.f32 0.6931472, %v10299_v3  ;;  %v4595_v14 = vxor.u32 %v9092_v5, %v4211_v22  ;;  %v12233_v50 = vadd.s32 %v12226_v35, %v10796_v13  ;;  %v12237_v48 = vadd.s32 %v12229_v32, %v10796_v13 }
 0x207   : > { %v5840_v46 = vmul.f32 0.6931472, %v10301_v45  ;;  %v5613_v21 = vsub.f32 2.0, %v5357_v9  ;;  %v4719_v43 = vmul.u32 2221713035, %v4591_v41  ;;  %v5617_v31 = vsub.f32 2.0, %v5361_v61 }
 0x208   : > { %15164 = vst [vmem:[#allocation88_spill] sm:$0xff] %v12233_v50  ;;  %15165 = vst [vmem:[#allocation89_spill] sm:$0xff] %v12237_v48  ;;  %v5998_v38 = vmul.f32 -0.1, %v5832_v0  ;;  %v4723_v47 = vmul.u32 2221713035, %v4595_v14  ;;  %v12251_v45 = vadd.s32 %v12226_v35, %v10806_v18  ;;  %v12258_v14 = vadd.s32 %v12229_v32, %v10806_v18 }
 0x209   : > { %v3574_v10 = vadd.s32 512, %v12233_v50  ;;  %v6002_v51 = vmul.f32 -0.1, %v5840_v46  ;;  %10306 = vlog2.f32 %v5613_v21  ;;  %v9216_v26 = vshrl.u32 %v4719_v43, 16 }
 0x20a   : > { %v3578_v22 = vadd.s32 512, %v12237_v48  ;;  %v6382_v15 = vor.u32 %v15166_v55, %v5998_v38  ;;  %10308 = vlog2.f32 %v5617_v31  ;;  %v9220_v2 = vshrl.u32 %v4723_v47, 16  ;;  %15168 = vst [vmem:[#allocation90_spill] sm:$0xff] %v12251_v45  ;;  %15169 = vst [vmem:[#allocation91_spill] sm:$0xff] %v12258_v14 }
 0x20b   : > { %v3702_v16 = vxor.u32 %v3574_v10, %v11026_v60  ;;  %v15167_v5 = vand.u32 2147483648, %v12186_v7  ;;  %v12246_v9 = vxor.u32 %v9216_v26, %v4719_v43  ;;  %v12262_v38 = vadd.s32 208, %v10779_v6 }
 0x20c   : > { %v3706_v41 = vxor.u32 %v3578_v22, %v11026_v60  ;;  %v12254_v61 = vxor.u32 %v9220_v2, %v4723_v47  ;;  %v12267_v47 = vadd.s32 %v12226_v35, %v10784_v8  ;;  %v3580_v59 = vadd.s32 512, %v12258_v14 }
 0x20d   : > { %v6386_v3 = vor.u32 %v15167_v5, %v6002_v51  ;;  %v8967_v11 = vshrl.u32 %v3702_v16, 16  ;;  %v10303_v46 = vpop.eup %10302  ;;  %v5231_v21 = vand.u32 8388607, %v12246_v9 }
 0x20e   : > { %v8971_v43 = vshrl.u32 %v3706_v41, 16  ;;  %v10305_v31 = vpop.eup %10304  ;;  %v5836_v10 = vmul.f32 0.6931472, %v10303_v46  ;;  %v5235_v51 = vand.u32 8388607, %v12254_v61  ;;  %15170 = vst [vmem:[#allocation92_spill] sm:$0xff] %v12267_v47 }
 0x20f   : > { %v6658_v7 = vpack.c.bf16 %v6386_v3, %v6382_v15  ;;  %v4086_v26 = vxor.u32 %v8967_v11, %v3702_v16  ;;  %v5844_v22 = vmul.f32 0.6931472, %v10305_v31  ;;  %v5359_v55 = vor.u32 1065353216, %v5231_v21 }
 0x210   : > { %v4090_v2 = vxor.u32 %v8971_v43, %v3706_v41  ;;  %v3576_v15 = vadd.s32 512, %v12251_v45  ;;  %v6000_v5 = vmul.f32 -0.1, %v5836_v10  ;;  %v5363_v3 = vor.u32 1065353216, %v5235_v51  ;;  %v10118_v51 = vld [vmem:[%s14923_s2 + $0x40] sm:$0xff]  }
 0x211   : > { %6989 = vmatprep.mubr.bf16.mxu0 %v6658_v7  ;;  %v4214_v0 = vmul.u32 2146121005, %v4086_v26  ;;  %v6004_v28 = vmul.f32 -0.1, %v5844_v22  ;;  %v5615_v46 = vsub.f32 2.0, %v5359_v55  ;;  %v15171_v11 = vand.u32 2147483648, %v12200_v42  ;;  %9667 = vmatprep.subr.bf16.mxu0 %v10118_v51 }
 0x212   : > { %v4218_v56 = vmul.u32 2146121005, %v4090_v2  ;;  %v3704_v16 = vxor.u32 %v3576_v15, %v11026_v60  ;;  %v5619_v50 = vsub.f32 2.0, %v5363_v3  ;;  %v3708_v21 = vxor.u32 %v3580_v59, %v11026_v60 }
 0x213   : > { %v6384_v48 = vor.u32 %v15171_v11, %v6000_v5  ;;  %v9095_v7 = vshrl.u32 %v4214_v0, 15  ;;  %v15172_v41 = vand.u32 2147483648, %v12203_v58  ;;  %10310 = vlog2.f32 %v5615_v46 }
 0x214   : > { %v9099_v31 = vshrl.u32 %v4218_v56, 15  ;;  %v8969_v10 = vshrl.u32 %v3704_v16, 16  ;;  %10312 = vlog2.f32 %v5619_v50  ;;  %v8973_v22 = vshrl.u32 %v3708_v21, 16 }
 0x215   : > { %v6388_v43 = vor.u32 %v15172_v41, %v6004_v28  ;;  %v4598_v26 = vxor.u32 %v9095_v7, %v4214_v0  ;;  %v12282_v42 = vadd.s32 %v12229_v32, %v10784_v8  ;;  %v3573_v58 = vadd.s32 512, %v12267_v47 }
 0x216   : > { %v4602_v2 = vxor.u32 %v9099_v31, %v4218_v56  ;;  %v4088_v59 = vxor.u32 %v8969_v10, %v3704_v16  ;;  %v10307_v28 = vpop.eup %10306  ;;  %v4092_v3 = vxor.u32 %v8973_v22, %v3708_v21 }
 0x217   : > { %15173 = vst [vmem:[#allocation93_spill] sm:$0xff] %v12282_v42  ;;  %v6660_v55 = vpack.c.bf16 %v6388_v43, %v6384_v48  ;;  %v4726_v5 = vmul.u32 2221713035, %v4598_v26  ;;  %v3577_v46 = vadd.s32 512, %v12282_v42  ;;  %v10309_v50 = vpop.eup %10308  ;;  %v5830_v0 = vmul.f32 0.6931472, %v10307_v28 }
 0x218   : > { %v4730_v11 = vmul.u32 2221713035, %v4602_v2  ;;  %v4216_v7 = vmul.u32 2146121005, %v4088_v59  ;;  %v3701_v41 = vxor.u32 %v3573_v58, %v11026_v60  ;;  %v5838_v48 = vmul.f32 0.6931472, %v10309_v50 }
 0x219   : > { %7150 = vmatprep.mubr.bf16.mxu1 %v6660_v55  ;;  %v9223_v56 = vshrl.u32 %v4726_v5, 16  ;;  %v4220_v16 = vmul.u32 2146121005, %v4092_v3  ;;  %v3705_v43 = vxor.u32 %v3577_v46, %v11026_v60  ;;  %v5997_v31 = vmul.f32 -0.1, %v5830_v0 }
 0x21a   : > { %v9227_v10 = vshrl.u32 %v4730_v11, 16  ;;  %v9097_v51 = vshrl.u32 %v4216_v7, 15  ;;  %v8966_v15 = vshrl.u32 %v3701_v41, 16  ;;  %v6001_v26 = vmul.f32 -0.1, %v5838_v48 }
 0x21b   : > { %v12289_v21 = vxor.u32 %v9223_v56, %v4726_v5  ;;  %v9101_v22 = vshrl.u32 %v4220_v16, 15  ;;  %v8970_v42 = vshrl.u32 %v3705_v43, 16  ;;  %v15174_v55 = vand.u32 2147483648, %v12214_v63 }
 0x21c   : > { %v12293_v59 = vxor.u32 %v9227_v10, %v4730_v11  ;;  %v4600_v58 = vxor.u32 %v9097_v51, %v4216_v7  ;;  %v4085_v28 = vxor.u32 %v8966_v15, %v3701_v41  ;;  %v15175_v3 = vand.u32 2147483648, %v12217_v39 }
 0x21d   : > { %v6381_v2 = vor.u32 %v15174_v55, %v5997_v31  ;;  %v5238_v46 = vand.u32 8388607, %v12289_v21  ;;  %v4604_v0 = vxor.u32 %v9101_v22, %v4220_v16  ;;  %v12300_v48 = vadd.s32 %v12226_v35, %v10839_v30 }
 0x21e   : > { %v6385_v50 = vor.u32 %v15175_v3, %v6001_v26  ;;  %v6131_v5 = vand.u32 2147483648, %v12254_v61  ;;  %v5242_v56 = vand.u32 8388607, %v12293_v59  ;;  %v4728_v63 = vmul.u32 2221713035, %v4600_v58 }
 0x21f   : > { %15176 = vst [vmem:[#allocation94_spill] sm:$0xff] %v12300_v48  ;;  %v4089_v31 = vxor.u32 %v8970_v42, %v3705_v43  ;;  %v5366_v10 = vor.u32 1065353216, %v5238_v46  ;;  %v4732_v7 = vmul.u32 2221713035, %v4604_v0  ;;  %v4213_v15 = vmul.u32 2146121005, %v4085_v28 }
 0x220   : > { %v6657_v11 = vpack.c.bf16 %v6385_v50, %v6381_v2  ;;  %v5370_v41 = vor.u32 1065353216, %v5242_v56  ;;  %v9225_v39 = vshrl.u32 %v4728_v63, 16  ;;  %v12306_v16 = vadd.s32 %v12229_v32, %v10839_v30  ;;  %v10311_v26 = vpop.eup %10310 }
 0x221   : > { %v4217_v51 = vmul.u32 2146121005, %v4089_v31  ;;  %v5622_v35 = vsub.f32 2.0, %v5366_v10  ;;  %v9229_v22 = vshrl.u32 %v4732_v7, 16  ;;  %v9094_v61 = vshrl.u32 %v4213_v15, 15  ;;  %v10313_v58 = vpop.eup %10312 }
 0x222   : > { %15177 = vst [vmem:[#allocation95_spill] sm:$0xff] %v12306_v16  ;;  %6990 = vmatmul.mubr.bf16.gmra.mxu0 %v6657_v11  ;;  %v3575_v55 = vadd.s32 512, %v12300_v48  ;;  %v5834_v42 = vmul.f32 0.6931472, %v10311_v26  ;;  %v5626_v43 = vsub.f32 2.0, %v5370_v41  ;;  %v12309_v2 = vxor.u32 %v9225_v39, %v4728_v63 }
 0x223   : > { %v9098_v28 = vshrl.u32 %v4217_v51, 15  ;;  %v5842_v3 = vmul.f32 0.6931472, %v10313_v58  ;;  %10314 = vlog2.f32 %v5622_v35  ;;  %v12311_v50 = vxor.u32 %v9229_v22, %v4732_v7  ;;  %v10120_v22 = vld [vmem:[%s14923_s2 + $0xc0] sm:$0xff]  }
 0x224   : > { %v4597_v46 = vxor.u32 %v9094_v61, %v4213_v15  ;;  %v5999_v32 = vmul.f32 -0.1, %v5834_v42  ;;  %10316 = vlog2.f32 %v5626_v43  ;;  %v5240_v56 = vand.u32 8388607, %v12309_v2  ;;  %v10119_v15 = vld [vmem:[%s14923_s2] sm:$0xff]   ;;  %9779 = vmatprep.subr.bf16.mxu1 %v10120_v22 }
 0x225   : > { %v6003_v31 = vmul.f32 -0.1, %v5842_v3  ;;  %v5244_v10 = vand.u32 8388607, %v12311_v50  ;;  %v4601_v41 = vxor.u32 %v9098_v28, %v4217_v51  ;;  %v15178_v63 = vand.u32 2147483648, %v12246_v9  ;;  %v10121_v9 = vld [vmem:[%s14923_s2 + $0x80] sm:$0xff]   ;;  %9668 = vmatpush3.bf16.msra.mxu0 %v10119_v15 }
 0x226   : > { %v5368_v26 = vor.u32 1065353216, %v5240_v56  ;;  %v4725_v35 = vmul.u32 2221713035, %v4597_v46  ;;  %v3579_v7 = vadd.s32 512, %v12306_v16  ;;  %v3703_v51 = vxor.u32 %v3575_v55, %v11026_v60  ;;  %9780 = vmatpush3.bf16.msra.mxu1 %v10121_v9 }
 0x227   : > { %v6383_v39 = vor.u32 %v15178_v63, %v5999_v32  ;;  %v6387_v61 = vor.u32 %v6131_v5, %v6003_v31  ;;  %v5372_v58 = vor.u32 1065353216, %v5244_v10  ;;  %v4729_v42 = vmul.u32 2221713035, %v4601_v41 }
 0x228   : > { %v5624_v43 = vsub.f32 2.0, %v5368_v26  ;;  %v9222_v28 = vshrl.u32 %v4725_v35, 16  ;;  %v3707_v3 = vxor.u32 %v3579_v7, %v11026_v60  ;;  %v198_v46 = vadd.s32 216, %v10779_v6 }
 0x229   : > { %v6659_v32 = vpack.c.bf16 %v6387_v61, %v6383_v39  ;;  %v5628_v56 = vsub.f32 2.0, %v5372_v58  ;;  %v9226_v63 = vshrl.u32 %v4729_v42, 16  ;;  %v8968_v5 = vshrl.u32 %v3703_v51, 16 }
 0x22a   : > { %10318 = vlog2.f32 %v5624_v43  ;;  %v12332_v31 = vxor.u32 %v9222_v28, %v4725_v35  ;;  %v8972_v55 = vshrl.u32 %v3707_v3, 16  ;;  %v236_v10 = vadd.s32 %v10772_v4, %v12262_v38 }
 0x22b   : > { %7151 = vmatmul.mubr.bf16.gmra.mxu1 %v6659_v32  ;;  %10320 = vlog2.f32 %v5628_v56  ;;  %v12336_v41 = vxor.u32 %v9226_v63, %v4729_v42  ;;  %v4087_v26 = vxor.u32 %v8968_v5, %v3703_v51  ;;  %v237_v7 = vadd.s32 %v10772_v4, %v198_v46 }
 0x22c   : > { %v5237_v15 = vand.u32 8388607, %v12332_v31  ;;  %v4091_v22 = vxor.u32 %v8972_v55, %v3707_v3  ;;  %v12341_v61 = vmul.u32 1024, %v236_v10 }
 0x22d   : > { %v5241_v58 = vand.u32 8388607, %v12336_v41  ;;  %v4215_v9 = vmul.u32 2146121005, %v4087_v26  ;;  %v12345_v38 = vmul.u32 1024, %v237_v7 }
 0x22e   : > { %v5365_v43 = vor.u32 1065353216, %v5237_v15  ;;  %v4219_v42 = vmul.u32 2146121005, %v4091_v22  ;;  %v12349_v51 = vadd.s32 %v12341_v61, %v10796_v13  ;;  %v12353_v28 = vadd.s32 %v12341_v61, %v10806_v18 }
 0x22f   : > { %v5369_v3 = vor.u32 1065353216, %v5241_v58  ;;  %v9096_v46 = vshrl.u32 %v4215_v9, 15  ;;  %v12357_v32 = vadd.s32 %v12345_v38, %v10796_v13  ;;  %v12361_v56 = vadd.s32 %v12345_v38, %v10806_v18 }
 0x230   : > { %15179 = vst [vmem:[#allocation96_spill] sm:$0xff] %v12349_v51  ;;  %15180 = vst [vmem:[#allocation97_spill] sm:$0xff] %v12353_v28  ;;  %v10315_v63 = vpop.eup %10314  ;;  %v5621_v5 = vsub.f32 2.0, %v5365_v43  ;;  %v9100_v55 = vshrl.u32 %v4219_v42, 15  ;;  %v3582_v10 = vadd.s32 512, %v12349_v51  ;;  %v3584_v26 = vadd.s32 512, %v12353_v28 }
 0x231   : > { %15181 = vst [vmem:[#allocation98_spill] sm:$0xff] %v12357_v32  ;;  %15182 = vst [vmem:[#allocation99_spill] sm:$0xff] %v12361_v56  ;;  %v10317_v7 = vpop.eup %10316  ;;  %v5848_v15 = vmul.f32 0.6931472, %v10315_v63  ;;  %v5625_v22 = vsub.f32 2.0, %v5369_v3  ;;  %v4599_v58 = vxor.u32 %v9096_v46, %v4215_v9  ;;  %v3586_v35 = vadd.s32 512, %v12357_v32 }
 0x232   : > { %v5856_v39 = vmul.f32 0.6931472, %v10317_v7  ;;  %10322 = vlog2.f32 %v5621_v5  ;;  %v4603_v11 = vxor.u32 %v9100_v55, %v4219_v42  ;;  %v3710_v0 = vxor.u32 %v3582_v10, %v11026_v60 }
 0x233   : > { %v6006_v16 = vmul.f32 -0.1, %v5848_v15  ;;  %10324 = vlog2.f32 %v5625_v22  ;;  %v4727_v48 = vmul.u32 2221713035, %v4599_v58  ;;  %v3714_v43 = vxor.u32 %v3586_v35, %v11026_v60 }
 0x234   : > { %v6010_v47 = vmul.f32 -0.1, %v5856_v39  ;;  %v4731_v51 = vmul.u32 2221713035, %v4603_v11  ;;  %v8975_v14 = vshrl.u32 %v3710_v0, 16  ;;  %v3588_v28 = vadd.s32 512, %v12361_v56 }
 0x235   : > { %v15183_v3 = vand.u32 2147483648, %v12289_v21  ;;  %v9224_v46 = vshrl.u32 %v4727_v48, 16  ;;  %v8979_v63 = vshrl.u32 %v3714_v43, 16  ;;  %v3712_v5 = vxor.u32 %v3584_v26, %v11026_v60 }
 0x236   : > { %v15184_v42 = vand.u32 2147483648, %v12293_v59  ;;  %v9228_v10 = vshrl.u32 %v4731_v51, 16  ;;  %v4094_v7 = vxor.u32 %v8975_v14, %v3710_v0  ;;  %v3716_v15 = vxor.u32 %v3588_v28, %v11026_v60 }
 0x237   : > { %v6390_v9 = vor.u32 %v15183_v3, %v6006_v16  ;;  %v10319_v35 = vpop.eup %10318  ;;  %v6133_v11 = vand.u32 2147483648, %v12332_v31  ;;  %v12376_v39 = vxor.u32 %v9224_v46, %v4727_v48  ;;  %v4098_v22 = vxor.u32 %v8979_v63, %v3714_v43 }
 0x238   : > { %v6394_v55 = vor.u32 %v15184_v42, %v6010_v47  ;;  %v8977_v58 = vshrl.u32 %v3712_v5, 16  ;;  %v10321_v21 = vpop.eup %10320  ;;  %v5852_v3 = vmul.f32 0.6931472, %v10319_v35  ;;  %v12378_v56 = vxor.u32 %v9228_v10, %v4731_v51 }
 0x239   : > { %v4222_v26 = vmul.u32 2146121005, %v4094_v7  ;;  %v5860_v32 = vmul.f32 0.6931472, %v10321_v21  ;;  %v6137_v47 = vand.u32 2147483648, %v12336_v41  ;;  %v8981_v59 = vshrl.u32 %v3716_v15, 16 }
 0x23a   : > { %v6662_v16 = vpack.c.bf16 %v6394_v55, %v6390_v9  ;;  %v5239_v14 = vand.u32 8388607, %v12376_v39  ;;  %v6008_v0 = vmul.f32 -0.1, %v5852_v3  ;;  %v5243_v31 = vand.u32 8388607, %v12378_v56 }
 0x23b   : > { %v9103_v48 = vshrl.u32 %v4222_v26, 15  ;;  %v12385_v28 = vadd.s32 %v12341_v61, %v10784_v8  ;;  %v6012_v43 = vmul.f32 -0.1, %v5860_v32  ;;  %v4226_v51 = vmul.u32 2146121005, %v4098_v22 }
 0x23c   : > { %6997 = vmatprep.mubr.bf16.mxu0 %v6662_v16  ;;  %v5367_v9 = vor.u32 1065353216, %v5239_v14  ;;  %v4096_v46 = vxor.u32 %v8977_v58, %v3712_v5  ;;  %v15185_v63 = vand.u32 2147483648, %v12309_v2  ;;  %v5371_v41 = vor.u32 1065353216, %v5243_v31 }
 0x23d   : > { %v4606_v55 = vxor.u32 %v9103_v48, %v4222_v26  ;;  %v4100_v10 = vxor.u32 %v8981_v59, %v3716_v15  ;;  %v15186_v7 = vand.u32 2147483648, %v12311_v50  ;;  %v9107_v16 = vshrl.u32 %v4226_v51, 15 }
 0x23e   : > { %v6392_v42 = vor.u32 %v15185_v63, %v6008_v0  ;;  %v5623_v21 = vsub.f32 2.0, %v5367_v9  ;;  %v4224_v3 = vmul.u32 2146121005, %v4096_v46  ;;  %v5627_v45 = vsub.f32 2.0, %v5371_v41 }
 0x23f   : > { %v6396_v35 = vor.u32 %v15186_v7, %v6012_v43  ;;  %v4734_v20 = vmul.u32 2221713035, %v4606_v55  ;;  %v4228_v62 = vmul.u32 2146121005, %v4100_v10  ;;  %v12393_v32 = vadd.s32 %v12345_v38, %v10784_v8  ;;  %v10323_v5 = vpop.eup %10322 }
 0x240   : > { %10326 = vlog2.f32 %v5623_v21  ;;  %v4610_v2 = vxor.u32 %v9107_v16, %v4226_v51  ;;  %v9105_v58 = vshrl.u32 %v4224_v3, 15  ;;  %v10325_v26 = vpop.eup %10324  ;;  %v5846_v15 = vmul.f32 0.6931472, %v10323_v5 }
 0x241   : > { %v6664_v22 = vpack.c.bf16 %v6396_v35, %v6392_v42  ;;  %10328 = vlog2.f32 %v5627_v45  ;;  %v9231_v50 = vshrl.u32 %v4734_v20, 16  ;;  %v9109_v14 = vshrl.u32 %v4228_v62, 15 }
 0x242   : > { %v5854_v59 = vmul.f32 0.6931472, %v10325_v26  ;;  %v4738_v0 = vmul.u32 2221713035, %v4610_v2  ;;  %v4608_v31 = vxor.u32 %v9105_v58, %v4224_v3  ;;  %v3581_v48 = vadd.s32 512, %v12385_v28 }
 0x243   : > { %7158 = vmatprep.mubr.bf16.mxu1 %v6664_v22  ;;  %v6005_v43 = vmul.f32 -0.1, %v5846_v15  ;;  %v12396_v9 = vxor.u32 %v9231_v50, %v4734_v20  ;;  %v4612_v46 = vxor.u32 %v9109_v14, %v4228_v62  ;;  %v3585_v63 = vadd.s32 512, %v12393_v32 }
 0x244   : > { %v6009_v42 = vmul.f32 -0.1, %v5854_v59  ;;  %v9235_v51 = vshrl.u32 %v4738_v0, 16  ;;  %v4736_v41 = vmul.u32 2221713035, %v4608_v31  ;;  %v3709_v55 = vxor.u32 %v3581_v48, %v11026_v60 }
 0x245   : > { %v6389_v45 = vor.u32 %v6133_v11, %v6005_v43  ;;  %v6135_v10 = vand.u32 2147483648, %v12376_v39  ;;  %v5246_v7 = vand.u32 8388607, %v12396_v9  ;;  %v4740_v35 = vmul.u32 2221713035, %v4612_v46 }
 0x246   : > { %v6393_v21 = vor.u32 %v6137_v47, %v6009_v42  ;;  %v12402_v16 = vxor.u32 %v9235_v51, %v4738_v0  ;;  %v9233_v3 = vshrl.u32 %v4736_v41, 16  ;;  %v3713_v20 = vxor.u32 %v3585_v63, %v11026_v60 }
 0x247   : > { %v6139_v62 = vand.u32 2147483648, %v12378_v56  ;;  %v5374_v5 = vor.u32 1065353216, %v5246_v7  ;;  %v9237_v22 = vshrl.u32 %v4740_v35, 16  ;;  %v8974_v2 = vshrl.u32 %v3709_v55, 16 }
 0x248   : > { %v6661_v58 = vpack.c.bf16 %v6393_v21, %v6389_v45  ;;  %v5250_v26 = vand.u32 8388607, %v12402_v16  ;;  %v12407_v11 = vxor.u32 %v9233_v3, %v4736_v41  ;;  %v12411_v39 = vadd.s32 %v12341_v61, %v10839_v30 }
 0x249   : > { %v5630_v47 = vsub.f32 2.0, %v5374_v5  ;;  %v12413_v15 = vxor.u32 %v9237_v22, %v4740_v35  ;;  %v8978_v50 = vshrl.u32 %v3713_v20, 16  ;;  %v4093_v14 = vxor.u32 %v8974_v2, %v3709_v55 }
 0x24a   : > { %15187 = vst [vmem:[#allocation100_spill] sm:$0xff] %v12411_v39  ;;  %6998 = vmatmul.mubr.bf16.gmra.mxu0 %v6661_v58  ;;  %v5378_v59 = vor.u32 1065353216, %v5250_v26  ;;  %v6142_v56 = vand.u32 2147483648, %v12396_v9  ;;  %v5248_v0 = vand.u32 8388607, %v12407_v11  ;;  %v12419_v31 = vadd.s32 %v12345_v38, %v10839_v30 }
 0x24b   : > { %10330 = vlog2.f32 %v5630_v47  ;;  %v5252_v61 = vand.u32 8388607, %v12413_v15  ;;  %v4097_v43 = vxor.u32 %v8978_v50, %v3713_v20  ;;  %v4221_v42 = vmul.u32 2146121005, %v4093_v14 }
 0x24c   : > { %15188 = vst [vmem:[#allocation101_spill] sm:$0xff] %v12419_v31  ;;  %v5634_v46 = vsub.f32 2.0, %v5378_v59  ;;  %v5376_v63 = vor.u32 1065353216, %v5248_v0  ;;  %v3583_v51 = vadd.s32 512, %v12411_v39  ;;  %v3587_v7 = vadd.s32 512, %v12419_v31 }
 0x24d   : > { %v10327_v41 = vpop.eup %10326  ;;  %v5380_v55 = vor.u32 1065353216, %v5252_v61  ;;  %v4225_v45 = vmul.u32 2146121005, %v4097_v43  ;;  %v199_v35 = vadd.s32 224, %v10779_v6  ;;  %v9102_v5 = vshrl.u32 %v4221_v42, 15 }
 0x24e   : > { %v10329_v38 = vpop.eup %10328  ;;  %v5850_v21 = vmul.f32 0.6931472, %v10327_v41  ;;  %10332 = vlog2.f32 %v5634_v46  ;;  %v5632_v3 = vsub.f32 2.0, %v5376_v63  ;;  %v3711_v58 = vxor.u32 %v3583_v51, %v11026_v60 }
 0x24f   : > { %v5858_v22 = vmul.f32 0.6931472, %v10329_v38  ;;  %v5636_v2 = vsub.f32 2.0, %v5380_v55  ;;  %v9106_v20 = vshrl.u32 %v4225_v45, 15  ;;  %v4605_v47 = vxor.u32 %v9102_v5, %v4221_v42 }
 0x250   : > { %v6007_v26 = vmul.f32 -0.1, %v5850_v21  ;;  %10334 = vlog2.f32 %v5632_v3  ;;  %v3715_v50 = vxor.u32 %v3587_v7, %v11026_v60  ;;  %v8976_v0 = vshrl.u32 %v3711_v58, 16 }
 0x251   : > { %v6011_v14 = vmul.f32 -0.1, %v5858_v22  ;;  %10336 = vlog2.f32 %v5636_v2  ;;  %v4609_v59 = vxor.u32 %v9106_v20, %v4225_v45  ;;  %v4733_v43 = vmul.u32 2221713035, %v4605_v47 }
 0x252   : > { %v6391_v61 = vor.u32 %v6135_v10, %v6007_v26  ;;  %v8980_v41 = vshrl.u32 %v3715_v50, 16  ;;  %v200_v46 = vadd.s32 232, %v10779_v6  ;;  %v4095_v55 = vxor.u32 %v8976_v0, %v3711_v58 }
 0x253   : > { %v6395_v63 = vor.u32 %v6139_v62, %v6011_v14  ;;  %v4737_v38 = vmul.u32 2221713035, %v4609_v59  ;;  %v238_v48 = vadd.s32 %v10772_v4, %v199_v35  ;;  %v6144_v51 = vand.u32 2147483648, %v12407_v11 }
 0x254   : > { %v9230_v21 = vshrl.u32 %v4733_v43, 16  ;;  %v4099_v42 = vxor.u32 %v8980_v41, %v3715_v50  ;;  %v239_v7 = vadd.s32 %v10772_v4, %v200_v46  ;;  %v4223_v45 = vmul.u32 2146121005, %v4095_v55 }
 0x255   : > { %v6663_v3 = vpack.c.bf16 %v6395_v63, %v6391_v61  ;;  %v9234_v5 = vshrl.u32 %v4737_v38, 16  ;;  %v12432_v22 = vmul.u32 1024, %v238_v48  ;;  %v6148_v10 = vand.u32 2147483648, %v12413_v15 }
 0x256   : > { %v12435_v2 = vxor.u32 %v9230_v21, %v4733_v43  ;;  %v4227_v62 = vmul.u32 2146121005, %v4099_v42  ;;  %v12437_v20 = vmul.u32 1024, %v239_v7  ;;  %v9104_v11 = vshrl.u32 %v4223_v45, 15 }
 0x257   : > { %7159 = vmatmul.mubr.bf16.gmra.mxu1 %v6663_v3  ;;  %v12439_v35 = vxor.u32 %v9234_v5, %v4737_v38  ;;  %v12443_v58 = vadd.s32 %v12432_v22, %v10796_v13  ;;  %v12446_v26 = vadd.s32 240, %v10779_v6  ;;  %v12454_v14 = vadd.s32 248, %v10779_v6 }
 0x258   : > { %v10331_v48 = vpop.eup %10330  ;;  %v5245_v47 = vand.u32 8388607, %v12435_v2  ;;  %v9108_v15 = vshrl.u32 %v4227_v62, 15  ;;  %v12451_v50 = vadd.s32 %v12437_v20, %v10796_v13  ;;  %v4607_v61 = vxor.u32 %v9104_v11, %v4223_v45 }
 0x259   : > { %15189 = vst [vmem:[#allocation102_spill] sm:$0xff] %v12443_v58  ;;  %v5864_v59 = vmul.f32 0.6931472, %v10331_v48  ;;  %v5249_v0 = vand.u32 8388607, %v12439_v35  ;;  %v12459_v43 = vadd.s32 %v12432_v22, %v10806_v18  ;;  %v3590_v63 = vadd.s32 512, %v12443_v58 }
 0x25a   : > { %15190 = vst [vmem:[#allocation103_spill] sm:$0xff] %v12451_v50  ;;  %v5373_v41 = vor.u32 1065353216, %v5245_v47  ;;  %v4611_v46 = vxor.u32 %v9108_v15, %v4227_v62  ;;  %v3594_v38 = vadd.s32 512, %v12451_v50  ;;  %v4735_v7 = vmul.u32 2221713035, %v4607_v61 }
 0x25b   : > { %v10333_v55 = vpop.eup %10332  ;;  %v6014_v21 = vmul.f32 -0.1, %v5864_v59  ;;  %v5377_v42 = vor.u32 1065353216, %v5249_v0  ;;  %v12465_v6 = vadd.s32 %v12437_v20, %v10806_v18  ;;  %v3718_v11 = vxor.u32 %v3590_v63, %v11026_v60 }
 0x25c   : > { %v5872_v3 = vmul.f32 0.6931472, %v10333_v55  ;;  %v5629_v5 = vsub.f32 2.0, %v5373_v41  ;;  %v4739_v45 = vmul.u32 2221713035, %v4611_v46  ;;  %v9232_v15 = vshrl.u32 %v4735_v7, 16 }
 0x25d   : > { %15191 = vst [vmem:[#allocation104_spill] sm:$0xff] %v12465_v6  ;;  %v10335_v48 = vpop.eup %10334  ;;  %v6398_v62 = vor.u32 %v6142_v56, %v6014_v21  ;;  %v5633_v47 = vsub.f32 2.0, %v5377_v42  ;;  %v3722_v50 = vxor.u32 %v3594_v38, %v11026_v60  ;;  %v8983_v41 = vshrl.u32 %v3718_v11, 16 }
 0x25e   : > { %v10337_v59 = vpop.eup %10336  ;;  %v6018_v0 = vmul.f32 -0.1, %v5872_v3  ;;  %v5868_v61 = vmul.f32 0.6931472, %v10335_v48  ;;  %10338 = vlog2.f32 %v5629_v5  ;;  %v9236_v58 = vshrl.u32 %v4739_v45, 16 }
 0x25f   : > { %v5876_v31 = vmul.f32 0.6931472, %v10337_v59  ;;  %10340 = vlog2.f32 %v5633_v47  ;;  %v12471_v55 = vxor.u32 %v9232_v15, %v4735_v7  ;;  %v15192_v46 = vand.u32 2147483648, %v12402_v16 }
 0x260   : > { %v6016_v39 = vmul.f32 -0.1, %v5868_v61  ;;  %v12475_v9 = vxor.u32 %v9236_v58, %v4739_v45  ;;  %v8987_v56 = vshrl.u32 %v3722_v50, 16  ;;  %v4102_v3 = vxor.u32 %v8983_v41, %v3718_v11 }
 0x261   : > { %v6402_v63 = vor.u32 %v15192_v46, %v6018_v0  ;;  %v6020_v21 = vmul.f32 -0.1, %v5876_v31  ;;  %v5247_v42 = vand.u32 8388607, %v12471_v55  ;;  %v6145_v47 = vand.u32 2147483648, %v12439_v35 }
 0x262   : > { %v6400_v48 = vor.u32 %v6144_v51, %v6016_v39  ;;  %v5251_v7 = vand.u32 8388607, %v12475_v9  ;;  %v4106_v16 = vxor.u32 %v8987_v56, %v3722_v50  ;;  %v4230_v0 = vmul.u32 2146121005, %v4102_v3 }
 0x263   : > { %v6666_v5 = vpack.c.bf16 %v6402_v63, %v6398_v62  ;;  %v6404_v15 = vor.u32 %v6148_v10, %v6020_v21  ;;  %v5375_v59 = vor.u32 1065353216, %v5247_v42  ;;  %v3592_v45 = vadd.s32 512, %v12459_v43 }
 0x264   : > { %v5379_v58 = vor.u32 1065353216, %v5251_v7  ;;  %v3596_v31 = vadd.s32 512, %v12465_v6  ;;  %v12485_v61 = vadd.s32 %v12432_v22, %v10784_v8  ;;  %v4234_v51 = vmul.u32 2146121005, %v4106_v16 }
 0x265   : > { %7005 = vmatprep.mubr.bf16.mxu0 %v6666_v5  ;;  %v6668_v11 = vpack.c.bf16 %v6404_v15, %v6400_v48  ;;  %v5631_v39 = vsub.f32 2.0, %v5375_v59  ;;  %v9111_v35 = vshrl.u32 %v4230_v0, 15  ;;  %v3720_v10 = vxor.u32 %v3592_v45, %v11026_v60 }
 0x266   : > { %15193 = vst [vmem:[#allocation105_spill] sm:$0xff] %v12485_v61  ;;  %v5635_v62 = vsub.f32 2.0, %v5379_v58  ;;  %v3724_v50 = vxor.u32 %v3596_v31, %v11026_v60  ;;  %v12491_v41 = vadd.s32 %v12437_v20, %v10784_v8  ;;  %v9115_v46 = vshrl.u32 %v4234_v51, 15 }
 0x267   : > { %7166 = vmatprep.mubr.bf16.mxu1 %v6668_v11  ;;  %10342 = vlog2.f32 %v5631_v39  ;;  %v4614_v63 = vxor.u32 %v9111_v35, %v4230_v0  ;;  %v3589_v56 = vadd.s32 512, %v12485_v61  ;;  %v8985_v21 = vshrl.u32 %v3720_v10, 16 }
 0x268   : > { %15194 = vst [vmem:[#allocation106_spill] sm:$0xff] %v12491_v41  ;;  %10344 = vlog2.f32 %v5635_v62  ;;  %v8989_v42 = vshrl.u32 %v3724_v50, 16  ;;  %v3593_v3 = vadd.s32 512, %v12491_v41  ;;  %v4618_v48 = vxor.u32 %v9115_v46, %v4234_v51 }
 0x269   : > { %v4742_v7 = vmul.u32 2221713035, %v4614_v63  ;;  %v3717_v15 = vxor.u32 %v3589_v56, %v11026_v60  ;;  %v4104_v59 = vxor.u32 %v8985_v21, %v3720_v10  ;;  %v12500_v0 = vadd.s32 %v12432_v22, %v10839_v30 }
 0x26a   : > { %v4108_v16 = vxor.u32 %v8989_v42, %v3724_v50  ;;  %v3721_v58 = vxor.u32 %v3593_v3, %v11026_v60  ;;  %v4746_v11 = vmul.u32 2221713035, %v4618_v48  ;;  %v12505_v10 = vadd.s32 %v12437_v20, %v10839_v30 }
 0x26b   : > { %15195 = vst [vmem:[#allocation107_spill] sm:$0xff] %v12500_v0  ;;  %v10339_v45 = vpop.eup %10338  ;;  %v9239_v39 = vshrl.u32 %v4742_v7, 16  ;;  %v8982_v35 = vshrl.u32 %v3717_v15, 16  ;;  %v4232_v51 = vmul.u32 2146121005, %v4104_v59  ;;  %v3591_v48 = vadd.s32 512, %v12500_v0 }
 0x26c   : > { %v10341_v62 = vpop.eup %10340  ;;  %v5862_v5 = vmul.f32 0.6931472, %v10339_v45  ;;  %v4236_v46 = vmul.u32 2146121005, %v4108_v16  ;;  %v9243_v63 = vshrl.u32 %v4746_v11, 16  ;;  %v8986_v22 = vshrl.u32 %v3721_v58, 16 }
 0x26d   : > { %v5870_v50 = vmul.f32 0.6931472, %v10341_v62  ;;  %v12507_v56 = vxor.u32 %v9239_v39, %v4742_v7  ;;  %v9113_v42 = vshrl.u32 %v4232_v51, 15  ;;  %v4101_v16 = vxor.u32 %v8982_v35, %v3717_v15 }
 0x26e   : > { %v6013_v21 = vmul.f32 -0.1, %v5862_v5  ;;  %v9117_v3 = vshrl.u32 %v4236_v46, 15  ;;  %v12510_v38 = vxor.u32 %v9243_v63, %v4746_v11  ;;  %v15196_v45 = vand.u32 2147483648, %v12435_v2 }
 0x26f   : > { %v6017_v31 = vmul.f32 -0.1, %v5870_v50  ;;  %v5254_v59 = vand.u32 8388607, %v12507_v56  ;;  %v4616_v41 = vxor.u32 %v9113_v42, %v4232_v51  ;;  %v4105_v61 = vxor.u32 %v8986_v22, %v3721_v58 }
 0x270   : > { %v6397_v20 = vor.u32 %v15196_v45, %v6013_v21  ;;  %v4620_v62 = vxor.u32 %v9117_v3, %v4236_v46  ;;  %v5258_v39 = vand.u32 8388607, %v12510_v38  ;;  %v240_v6 = vadd.s32 %v10772_v4, %v12446_v26 }
 0x271   : > { %v6401_v7 = vor.u32 %v6145_v47, %v6017_v31  ;;  %v5382_v5 = vor.u32 1065353216, %v5254_v59  ;;  %v4744_v0 = vmul.u32 2221713035, %v4616_v41  ;;  %v3595_v11 = vadd.s32 512, %v12505_v10 }
 0x272   : > { %v4748_v50 = vmul.u32 2221713035, %v4620_v62  ;;  %v3719_v63 = vxor.u32 %v3591_v48, %v11026_v60  ;;  %v5386_v35 = vor.u32 1065353216, %v5258_v39  ;;  %v4229_v21 = vmul.u32 2146121005, %v4101_v16 }
 0x273   : > { %v6665_v15 = vpack.c.bf16 %v6401_v7, %v6397_v20  ;;  %v5638_v2 = vsub.f32 2.0, %v5382_v5  ;;  %v9241_v46 = vshrl.u32 %v4744_v0, 16  ;;  %v4233_v47 = vmul.u32 2146121005, %v4105_v61 }
 0x274   : > { %v10343_v51 = vpop.eup %10342  ;;  %v9245_v58 = vshrl.u32 %v4748_v50, 16  ;;  %v3723_v31 = vxor.u32 %v3595_v11, %v11026_v60  ;;  %v5642_v26 = vsub.f32 2.0, %v5386_v35  ;;  %v9110_v41 = vshrl.u32 %v4229_v21, 15 }
 0x275   : > { %v10345_v22 = vpop.eup %10344  ;;  %7006 = vmatmul.mubr.bf16.gmra.mxu0 %v6665_v15  ;;  %v5866_v42 = vmul.f32 0.6931472, %v10343_v51  ;;  %10346 = vlog2.f32 %v5638_v2  ;;  %v12521_v59 = vxor.u32 %v9241_v46, %v4744_v0  ;;  %v9114_v45 = vshrl.u32 %v4233_v47, 15 }
 0x276   : > { %v5874_v3 = vmul.f32 0.6931472, %v10345_v22  ;;  %v12523_v48 = vxor.u32 %v9245_v58, %v4748_v50  ;;  %10348 = vlog2.f32 %v5642_v26  ;;  %v4613_v16 = vxor.u32 %v9110_v41, %v4229_v21 }
 0x277   : > { %v6015_v20 = vmul.f32 -0.1, %v5866_v42  ;;  %v8984_v62 = vshrl.u32 %v3719_v63, 16  ;;  %v5256_v61 = vand.u32 8388607, %v12521_v59  ;;  %v4617_v5 = vxor.u32 %v9114_v45, %v4233_v47 }
 0x278   : > { %v6019_v7 = vmul.f32 -0.1, %v5874_v3  ;;  %v5260_v39 = vand.u32 8388607, %v12523_v48  ;;  %v15197_v11 = vand.u32 2147483648, %v12471_v55  ;;  %v6150_v35 = vand.u32 2147483648, %v12507_v56 }
 0x279   : > { %v6154_v0 = vand.u32 2147483648, %v12510_v38  ;;  %v4741_v50 = vmul.u32 2221713035, %v4613_v16  ;;  %v15198_v2 = vand.u32 2147483648, %v12475_v9  ;;  %v5384_v46 = vor.u32 1065353216, %v5256_v61 }
 0x27a   : > { %v6399_v15 = vor.u32 %v15197_v11, %v6015_v20  ;;  %v5388_v21 = vor.u32 1065353216, %v5260_v39  ;;  %v4745_v58 = vmul.u32 2221713035, %v4617_v5  ;;  %v8988_v42 = vshrl.u32 %v3723_v31, 16 }
 0x27b   : > { %v6403_v51 = vor.u32 %v15198_v2, %v6019_v7  ;;  %v9238_v22 = vshrl.u32 %v4741_v50, 16  ;;  %v4103_v26 = vxor.u32 %v8984_v62, %v3719_v63  ;;  %v241_v47 = vadd.s32 %v10772_v4, %v12454_v14 }
 0x27c   : > { %v5640_v55 = vsub.f32 2.0, %v5384_v46  ;;  %v5644_v3 = vsub.f32 2.0, %v5388_v21  ;;  %v9242_v45 = vshrl.u32 %v4745_v58, 16  ;;  %v4107_v20 = vxor.u32 %v8988_v42, %v3723_v31 }
 0x27d   : > { %v6667_v41 = vpack.c.bf16 %v6403_v51, %v6399_v15  ;;  %v12535_v56 = vxor.u32 %v9238_v22, %v4741_v50  ;;  %v4231_v16 = vmul.u32 2146121005, %v4103_v26  ;;  %v12537_v11 = vmul.u32 1024, %v240_v6 }
 0x27e   : > { %10350 = vlog2.f32 %v5640_v55  ;;  %v12540_v7 = vxor.u32 %v9242_v45, %v4745_v58  ;;  %v12542_v63 = vmul.u32 1024, %v241_v47  ;;  %v4235_v62 = vmul.u32 2146121005, %v4107_v20 }
 0x27f   : > { %7167 = vmatmul.mubr.bf16.gmra.mxu1 %v6667_v41  ;;  %10352 = vlog2.f32 %v5644_v3  ;;  %v5253_v14 = vand.u32 8388607, %v12535_v56  ;;  %v9112_v31 = vshrl.u32 %v4231_v16, 15  ;;  %v12549_v6 = vadd.s32 %v12537_v11, %v10796_v13 }
 0x280   : > { %v5257_v61 = vand.u32 8388607, %v12540_v7  ;;  %v12553_v39 = vxor.u32 %v11026_v60, %v10818_v23  ;;  %v9116_v15 = vshrl.u32 %v4235_v62, 15  ;;  %v12557_v50 = vadd.s32 %v12542_v63, %v10796_v13 }
 0x281   : > { %15199 = vst [vmem:[#allocation108_spill] sm:$0xff] %v12549_v6  ;;  %v5381_v5 = vor.u32 1065353216, %v5253_v14  ;;  %v12561_v2 = vadd.s32 %v12537_v11, %v10806_v18  ;;  %v4615_v21 = vxor.u32 %v9112_v31, %v4231_v16  ;;  %v3598_v58 = vadd.s32 512, %v12549_v6 }
 0x282   : > { %15200 = vst [vmem:[#allocation109_spill] sm:$0xff] %v12557_v50  ;;  %v10347_v51 = vpop.eup %10346  ;;  %v5385_v46 = vor.u32 1065353216, %v5257_v61  ;;  %v12566_v22 = vadd.s32 %v12542_v63, %v10806_v18  ;;  %v4619_v26 = vxor.u32 %v9116_v15, %v4235_v62  ;;  %v3602_v47 = vadd.s32 512, %v12557_v50 }
 0x283   : > { %15201 = vst [vmem:[#allocation110_spill] sm:$0xff] %v12561_v2  ;;  %v5880_v23 = vmul.f32 0.6931472, %v10347_v51  ;;  %v5637_v42 = vsub.f32 2.0, %v5381_v5  ;;  %v10349_v41 = vpop.eup %10348  ;;  %v4743_v3 = vmul.u32 2221713035, %v4615_v21  ;;  %v3726_v45 = vxor.u32 %v3598_v58, %v11026_v60 }
 0x284   : > { %15202 = vst [vmem:[#allocation111_spill] sm:$0xff] %v12566_v22  ;;  %v5641_v55 = vsub.f32 2.0, %v5385_v46  ;;  %v3600_v20 = vadd.s32 512, %v12561_v2  ;;  %v5888_v14 = vmul.f32 0.6931472, %v10349_v41  ;;  %v3730_v18 = vxor.u32 %v3602_v47, %v11026_v60 }
 0x285   : > { %v6022_v16 = vmul.f32 -0.1, %v5880_v23  ;;  %10354 = vlog2.f32 %v5637_v42  ;;  %v4747_v61 = vmul.u32 2221713035, %v4619_v26  ;;  %v9240_v31 = vshrl.u32 %v4743_v3, 16 }
 0x286   : > { %10356 = vlog2.f32 %v5641_v55  ;;  %v8991_v51 = vshrl.u32 %v3726_v45, 16  ;;  %v6026_v5 = vmul.f32 -0.1, %v5888_v14  ;;  %v3604_v4 = vadd.s32 512, %v12566_v22 }
 0x287   : > { %v6406_v62 = vor.u32 %v6150_v35, %v6022_v16  ;;  %v9244_v15 = vshrl.u32 %v4747_v61, 16  ;;  %v12573_v46 = vxor.u32 %v9240_v31, %v4743_v3  ;;  %v8995_v21 = vshrl.u32 %v3730_v18, 16 }
 0x288   : > { %v4110_v58 = vxor.u32 %v8991_v51, %v3726_v45  ;;  %v3728_v9 = vxor.u32 %v3600_v20, %v11026_v60  ;;  %v6410_v23 = vor.u32 %v6154_v0, %v6026_v5  ;;  %v6149_v42 = vand.u32 2147483648, %v12535_v56 }
 0x289   : > { %v12579_v26 = vxor.u32 %v9244_v15, %v4747_v61  ;;  %v3732_v47 = vxor.u32 %v3604_v4, %v11026_v60  ;;  %v6153_v35 = vand.u32 2147483648, %v12540_v7  ;;  %v5255_v41 = vand.u32 8388607, %v12573_v46 }
 0x28a   : > { %v4114_v55 = vxor.u32 %v8995_v21, %v3730_v18  ;;  %v4238_v3 = vmul.u32 2146121005, %v4110_v58  ;;  %v6670_v16 = vpack.c.bf16 %v6410_v23, %v6406_v62  ;;  %v8993_v20 = vshrl.u32 %v3728_v9, 16 }
 0x28b   : > { %v10351_v14 = vpop.eup %10350  ;;  %v5259_v45 = vand.u32 8388607, %v12579_v26  ;;  %v12587_v38 = vadd.s32 %v12537_v11, %v10784_v8  ;;  %v5383_v61 = vor.u32 1065353216, %v5255_v41  ;;  %v8997_v5 = vshrl.u32 %v3732_v47, 16 }
 0x28c   : > { %v10353_v0 = vpop.eup %10352  ;;  %v5884_v56 = vmul.f32 0.6931472, %v10351_v14  ;;  %v4242_v31 = vmul.u32 2146121005, %v4114_v55  ;;  %v9119_v4 = vshrl.u32 %v4238_v3, 15  ;;  %7013 = vmatprep.mubr.bf16.mxu0 %v6670_v16  ;;  %v4112_v18 = vxor.u32 %v8993_v20, %v3728_v9 }
 0x28d   : > { %15203 = vst [vmem:[#allocation112_spill] sm:$0xff] %v12587_v38  ;;  %v5892_v7 = vmul.f32 0.6931472, %v10353_v0  ;;  %v5387_v51 = vor.u32 1065353216, %v5259_v45  ;;  %v5639_v21 = vsub.f32 2.0, %v5383_v61  ;;  %v4116_v22 = vxor.u32 %v8997_v5, %v3732_v47 }
 0x28e   : > { %v6024_v15 = vmul.f32 -0.1, %v5884_v56  ;;  %v9123_v62 = vshrl.u32 %v4242_v31, 15  ;;  %v4622_v58 = vxor.u32 %v9119_v4, %v4238_v3  ;;  %v4240_v2 = vmul.u32 2146121005, %v4112_v18 }
 0x28f   : > { %v6028_v23 = vmul.f32 -0.1, %v5892_v7  ;;  %v5643_v13 = vsub.f32 2.0, %v5387_v51  ;;  %v15204_v50 = vand.u32 2147483648, %v12521_v59  ;;  %10358 = vlog2.f32 %v5639_v21 }
 0x290   : > { %v4626_v41 = vxor.u32 %v9123_v62, %v4242_v31  ;;  %v4750_v55 = vmul.u32 2221713035, %v4622_v58  ;;  %v15205_v14 = vand.u32 2147483648, %v12523_v48  ;;  %v4244_v45 = vmul.u32 2146121005, %v4116_v22 }
 0x291   : > { %v6408_v6 = vor.u32 %v15204_v50, %v6024_v15  ;;  %10360 = vlog2.f32 %v5643_v13  ;;  %v9121_v9 = vshrl.u32 %v4240_v2, 15  ;;  %v12595_v3 = vadd.s32 %v12542_v63, %v10784_v8 }
 0x292   : > { %v6412_v16 = vor.u32 %v15205_v14, %v6028_v23  ;;  %v10355_v20 = vpop.eup %10354  ;;  %v4754_v0 = vmul.u32 2221713035, %v4626_v41  ;;  %v9247_v56 = vshrl.u32 %v4750_v55, 16  ;;  %v3597_v47 = vadd.s32 512, %v12587_v38 }
 0x293   : > { %15206 = vst [vmem:[#allocation113_spill] sm:$0xff] %v12595_v3  ;;  %v10357_v59 = vpop.eup %10356  ;;  %v5878_v61 = vmul.f32 0.6931472, %v10355_v20  ;;  %v9125_v31 = vshrl.u32 %v4244_v45, 15  ;;  %v4624_v4 = vxor.u32 %v9121_v9, %v4240_v2  ;;  %v3601_v13 = vadd.s32 512, %v12595_v3 }
 0x294   : > { %v6672_v50 = vpack.c.bf16 %v6412_v16, %v6408_v6  ;;  %v5886_v7 = vmul.f32 0.6931472, %v10357_v59  ;;  %v9251_v48 = vshrl.u32 %v4754_v0, 16  ;;  %v12598_v51 = vxor.u32 %v9247_v56, %v4750_v55 }
 0x295   : > { %v6021_v22 = vmul.f32 -0.1, %v5878_v61  ;;  %v4628_v5 = vxor.u32 %v9125_v31, %v4244_v45  ;;  %v4752_v18 = vmul.u32 2221713035, %v4624_v4  ;;  %v3725_v15 = vxor.u32 %v3597_v47, %v11026_v60 }
 0x296   : > { %7174 = vmatprep.mubr.bf16.mxu1 %v6672_v50  ;;  %v6025_v21 = vmul.f32 -0.1, %v5886_v7  ;;  %v6151_v62 = vand.u32 2147483648, %v12573_v46  ;;  %v12603_v58 = vxor.u32 %v9251_v48, %v4754_v0  ;;  %v5262_v6 = vand.u32 8388607, %v12598_v51 }
 0x297   : > { %v6405_v2 = vor.u32 %v6149_v42, %v6021_v22  ;;  %v4756_v23 = vmul.u32 2221713035, %v4628_v5  ;;  %v9249_v41 = vshrl.u32 %v4752_v18, 16  ;;  %v3729_v55 = vxor.u32 %v3601_v13, %v11026_v60 }
 0x298   : > { %v6409_v14 = vor.u32 %v6153_v35, %v6025_v21  ;;  %v6155_v16 = vand.u32 2147483648, %v12579_v26  ;;  %v5266_v45 = vand.u32 8388607, %v12603_v58  ;;  %v5390_v9 = vor.u32 1065353216, %v5262_v6 }
 0x299   : > { %v9253_v20 = vshrl.u32 %v4756_v23, 16  ;;  %v12609_v56 = vxor.u32 %v9249_v41, %v4752_v18  ;;  %v8990_v47 = vshrl.u32 %v3725_v15, 16  ;;  %v8994_v46 = vshrl.u32 %v3729_v55, 16 }
 0x29a   : > { %v6669_v0 = vpack.c.bf16 %v6409_v14, %v6405_v2  ;;  %v5394_v59 = vor.u32 1065353216, %v5266_v45  ;;  %v5646_v50 = vsub.f32 2.0, %v5390_v9  ;;  %v12613_v42 = vadd.s32 %v12537_v11, %v10839_v30 }
 0x29b   : > { %v6158_v61 = vand.u32 2147483648, %v12598_v51  ;;  %v12616_v35 = vxor.u32 %v9253_v20, %v4756_v23  ;;  %v5264_v26 = vand.u32 8388607, %v12609_v56  ;;  %v4109_v31 = vxor.u32 %v8990_v47, %v3725_v15 }
 0x29c   : > { %15207 = vst [vmem:[#allocation114_spill] sm:$0xff] %v12613_v42  ;;  %7014 = vmatmul.mubr.bf16.gmra.mxu0 %v6669_v0  ;;  %v5650_v4 = vsub.f32 2.0, %v5394_v59  ;;  %10362 = vlog2.f32 %v5646_v50  ;;  %v4113_v7 = vxor.u32 %v8994_v46, %v3729_v55  ;;  %v12621_v48 = vadd.s32 %v12542_v63, %v10839_v30  ;;  %v10359_v13 = vpop.eup %10358 }
 0x29d   : > { %v5268_v11 = vand.u32 8388607, %v12616_v35  ;;  %v5392_v5 = vor.u32 1065353216, %v5264_v26  ;;  %v4237_v18 = vmul.u32 2146121005, %v4109_v31  ;;  %v3599_v15 = vadd.s32 512, %v12613_v42 }
 0x29e   : > { %15208 = vst [vmem:[#allocation115_spill] sm:$0xff] %v12621_v48  ;;  %v10361_v21 = vpop.eup %10360  ;;  %v5882_v6 = vmul.f32 0.6931472, %v10359_v13  ;;  %10364 = vlog2.f32 %v5650_v4  ;;  %v4241_v2 = vmul.u32 2146121005, %v4113_v7  ;;  %v3603_v63 = vadd.s32 512, %v12621_v48 }
 0x29f   : > { %v5890_v23 = vmul.f32 0.6931472, %v10361_v21  ;;  %v5396_v41 = vor.u32 1065353216, %v5268_v11  ;;  %v5648_v55 = vsub.f32 2.0, %v5392_v5  ;;  %v9118_v14 = vshrl.u32 %v4237_v18, 15 }
 0x2a0   : > { %v6023_v45 = vmul.f32 -0.1, %v5882_v6  ;;  %v9122_v30 = vshrl.u32 %v4241_v2, 15  ;;  %v3727_v9 = vxor.u32 %v3599_v15, %v11026_v60  ;;  %v3731_v50 = vxor.u32 %v3603_v63, %v11026_v60 }
 0x2a1   : > { %v6027_v20 = vmul.f32 -0.1, %v5890_v23  ;;  %v5652_v47 = vsub.f32 2.0, %v5396_v41  ;;  %10366 = vlog2.f32 %v5648_v55  ;;  %v4621_v46 = vxor.u32 %v9118_v14, %v4237_v18 }
 0x2a2   : > { %v6407_v0 = vor.u32 %v6151_v62, %v6023_v45  ;;  %v4625_v59 = vxor.u32 %v9122_v30, %v4241_v2  ;;  %v8992_v26 = vshrl.u32 %v3727_v9, 16  ;;  %v410_v7 = vxor.u32 %v11026_v60, %v10830_v27 }
 0x2a3   : > { %v6411_v31 = vor.u32 %v6155_v16, %v6027_v20  ;;  %10368 = vlog2.f32 %v5652_v47  ;;  %v4749_v4 = vmul.u32 2221713035, %v4621_v46  ;;  %v8996_v11 = vshrl.u32 %v3731_v50, 16 }
 0x2a4   : > { %v4753_v13 = vmul.u32 2221713035, %v4625_v59  ;;  %v4111_v5 = vxor.u32 %v8992_v26, %v3727_v9  ;;  %v8487_v21 = vshrl.u32 %v12553_v39, 16  ;;  %v8491_v23 = vshrl.u32 %v410_v7, 16 }
 0x2a5   : > { %v6671_v6 = vpack.c.bf16 %v6411_v31, %v6407_v0  ;;  %v9246_v15 = vshrl.u32 %v4749_v4, 16  ;;  %v408_v62 = vxor.u32 %v11026_v60, %v10824_v25  ;;  %v4115_v2 = vxor.u32 %v8996_v11, %v3731_v50 }
 0x2a6   : > { %v9250_v18 = vshrl.u32 %v4753_v13, 16  ;;  %v4239_v41 = vmul.u32 2146121005, %v4111_v5  ;;  %v790_v16 = vxor.u32 %v8487_v21, %v12553_v39  ;;  %v6160_v55 = vand.u32 2147483648, %v12609_v56 }
 0x2a7   : > { %7175 = vmatmul.mubr.bf16.gmra.mxu1 %v6671_v6  ;;  %v12636_v27 = vxor.u32 %v9246_v15, %v4749_v4  ;;  %v794_v14 = vxor.u32 %v8491_v23, %v410_v7  ;;  %v412_v45 = vxor.u32 %v11026_v60, %v10836_v29  ;;  %v4243_v63 = vmul.u32 2146121005, %v4115_v2 }
 0x2a8   : > { %v12640_v30 = vxor.u32 %v9250_v18, %v4753_v13  ;;  %v9120_v9 = vshrl.u32 %v4239_v41, 15  ;;  %v918_v20 = vmul.u32 2146121005, %v790_v16  ;;  %v6164_v47 = vand.u32 2147483648, %v12616_v35 }
 0x2a9   : > { %v10363_v25 = vpop.eup %10362  ;;  %v5261_v46 = vand.u32 8388607, %v12636_v27  ;;  %v922_v39 = vmul.u32 2146121005, %v794_v14  ;;  %v8489_v0 = vshrl.u32 %v408_v62, 16  ;;  %v9124_v50 = vshrl.u32 %v4243_v63, 15 }
 0x2aa   : > { %v5896_v59 = vmul.f32 0.6931472, %v10363_v25  ;;  %v5265_v56 = vand.u32 8388607, %v12640_v30  ;;  %v8493_v26 = vshrl.u32 %v412_v45, 16  ;;  %v4623_v29 = vxor.u32 %v9120_v9, %v4239_v41 }
 0x2ab   : > { %v10365_v31 = vpop.eup %10364  ;;  %v5389_v4 = vor.u32 1065353216, %v5261_v46  ;;  %v8615_v7 = vshrl.u32 %v918_v20, 15  ;;  %v8619_v13 = vshrl.u32 %v922_v39, 15  ;;  %v4627_v6 = vxor.u32 %v9124_v50, %v4243_v63 }
 0x2ac   : > { %v5904_v11 = vmul.f32 0.6931472, %v10365_v31  ;;  %v6030_v5 = vmul.f32 -0.1, %v5896_v59  ;;  %v5393_v21 = vor.u32 1065353216, %v5265_v56  ;;  %v15209_v59 = vand.u32 2147483648, %v12603_v58 }
 0x2ad   : > { %v5645_v15 = vsub.f32 2.0, %v5389_v4  ;;  %v4751_v35 = vmul.u32 2221713035, %v4623_v29  ;;  %v1302_v23 = vxor.u32 %v8615_v7, %v918_v20  ;;  %v1306_v18 = vxor.u32 %v8619_v13, %v922_v39 }
 0x2ae   : > { %v10367_v2 = vpop.eup %10366  ;;  %v6034_v16 = vmul.f32 -0.1, %v5904_v11  ;;  %v6414_v14 = vor.u32 %v6158_v61, %v6030_v5  ;;  %v5649_v25 = vsub.f32 2.0, %v5393_v21  ;;  %v4755_v22 = vmul.u32 2221713035, %v4627_v6 }
 0x2af   : > { %v5900_v8 = vmul.f32 0.6931472, %v10367_v2  ;;  %10370 = vlog2.f32 %v5645_v15  ;;  %v9248_v41 = vshrl.u32 %v4751_v35, 16  ;;  %v1430_v9 = vmul.u32 2221713035, %v1302_v23 }
 0x2b0   : > { %v10369_v46 = vpop.eup %10368  ;;  %v6418_v56 = vor.u32 %v15209_v59, %v6034_v16  ;;  %10372 = vlog2.f32 %v5649_v25  ;;  %v9252_v63 = vshrl.u32 %v4755_v22, 16  ;;  %v1434_v50 = vmul.u32 2221713035, %v1306_v18 }
 0x2b1   : > { %v5908_v20 = vmul.f32 0.6931472, %v10369_v46  ;;  %v6032_v39 = vmul.f32 -0.1, %v5900_v8  ;;  %v12649_v31 = vxor.u32 %v9248_v41, %v4751_v35  ;;  %v8743_v4 = vshrl.u32 %v1430_v9, 16 }
 0x2b2   : > { %v6674_v51 = vpack.c.bf16 %v6418_v56, %v6414_v14  ;;  %v12651_v61 = vxor.u32 %v9252_v63, %v4755_v22  ;;  %v8747_v29 = vshrl.u32 %v1434_v50, 16  ;;  %v792_v7 = vxor.u32 %v8489_v0, %v408_v62 }
 0x2b3   : > { %v6036_v13 = vmul.f32 -0.1, %v5908_v20  ;;  %v6416_v11 = vor.u32 %v6160_v55, %v6032_v39  ;;  %v6157_v5 = vand.u32 2147483648, %v12636_v27  ;;  %v5263_v58 = vand.u32 8388607, %v12649_v31 }
 0x2b4   : > { %7021 = vmatprep.mubr.bf16.mxu0 %v6674_v51  ;;  %v6161_v21 = vand.u32 2147483648, %v12640_v30  ;;  %v5267_v6 = vand.u32 8388607, %v12651_v61  ;;  %v12657_v8 = vxor.u32 %v8743_v4, %v1430_v9  ;;  %v12659_v15 = vxor.u32 %v8747_v29, %v1434_v50 }
 0x2b5   : > { %v6420_v35 = vor.u32 %v6164_v47, %v6036_v13  ;;  %v5391_v22 = vor.u32 1065353216, %v5263_v58  ;;  %v796_v23 = vxor.u32 %v8493_v26, %v412_v45  ;;  %v920_v18 = vmul.u32 2146121005, %v792_v7  ;;  %v15210_v13 = vld [vmem:[#allocation27_spill] sm:$0xff] }
 0x2b6   : > { %v5395_v62 = vor.u32 1065353216, %v5267_v6  ;;  %v6159_v55 = vand.u32 2147483648, %v12649_v31  ;;  %v1942_v27 = vand.u32 8388607, %v12657_v8  ;;  %v1946_v0 = vand.u32 8388607, %v12659_v15 }
 0x2b7   : > { %v6676_v2 = vpack.c.bf16 %v6420_v35, %v6416_v11  ;;  %v5647_v16 = vsub.f32 2.0, %v5391_v22  ;;  %v6163_v30 = vand.u32 2147483648, %v12651_v61  ;;  %v924_v14 = vmul.u32 2146121005, %v796_v23 }
 0x2b8   : > { %v5651_v25 = vsub.f32 2.0, %v5395_v62  ;;  %v2070_v41 = vor.u32 1065353216, %v1942_v27  ;;  %v2074_v9 = vor.u32 1065353216, %v1946_v0  ;;  %v8617_v46 = vshrl.u32 %v920_v18, 15 }
 0x2b9   : > { %7182 = vmatprep.mubr.bf16.mxu1 %v6676_v2  ;;  %10374 = vlog2.f32 %v5647_v16  ;;  %v8621_v45 = vshrl.u32 %v924_v14, 15  ;;  %v8486_v47 = vshrl.u32 %v11054_v36, 16  ;;  %v8490_v26 = vshrl.u32 %v11058_v34, 16 }
 0x2ba   : > { %10376 = vlog2.f32 %v5651_v25  ;;  %v2326_v59 = vsub.f32 2.0, %v2070_v41  ;;  %v2330_v56 = vsub.f32 2.0, %v2074_v9  ;;  %v1304_v63 = vxor.u32 %v8617_v46, %v920_v18 }
 0x2bb   : > { %v1308_v50 = vxor.u32 %v8621_v45, %v924_v14  ;;  %v789_v20 = vxor.u32 %v8486_v47, %v11054_v36  ;;  %v793_v39 = vxor.u32 %v8490_v26, %v11058_v34  ;;  %v8488_v4 = vshrl.u32 %v11066_v40, 16 }
 0x2bc   : > { %v10371_v51 = vpop.eup %10370  ;;  %10378 = vlog2.f32 %v2326_v59  ;;  %v2838_v29 = vand.u32 2147483648, %v12657_v8  ;;  %v1432_v7 = vmul.u32 2221713035, %v1304_v63  ;;  %v8492_v11 = vshrl.u32 %v15210_v13, 16 }
 0x2bd   : > { %v10373_v58 = vpop.eup %10372  ;;  %v5894_v6 = vmul.f32 0.6931472, %v10371_v51  ;;  %10380 = vlog2.f32 %v2330_v56  ;;  %v1436_v35 = vmul.u32 2221713035, %v1308_v50  ;;  %v917_v22 = vmul.u32 2146121005, %v789_v20 }
 0x2be   : > { %v5902_v23 = vmul.f32 0.6931472, %v10373_v58  ;;  %v8745_v18 = vshrl.u32 %v1432_v7, 16  ;;  %v921_v62 = vmul.u32 2146121005, %v793_v39  ;;  %v791_v36 = vxor.u32 %v8488_v4, %v11066_v40  ;;  %v15211_v39 = vld [vmem:[#allocation12_spill] sm:$0xff] }
 0x2bf   : > { %v6029_v34 = vmul.f32 -0.1, %v5894_v6  ;;  %v8749_v27 = vshrl.u32 %v1436_v35, 16  ;;  %v8614_v0 = vshrl.u32 %v917_v22, 15  ;;  %v795_v2 = vxor.u32 %v8492_v11, %v15210_v13 }
 0x2c0   : > { %v6033_v16 = vmul.f32 -0.1, %v5902_v23  ;;  %v12674_v14 = vxor.u32 %v8745_v18, %v1432_v7  ;;  %v8618_v25 = vshrl.u32 %v921_v62, 15  ;;  %v919_v41 = vmul.u32 2146121005, %v791_v36  ;;  %v15212_v18 = vld [vmem:[#allocation13_spill] sm:$0xff] }
 0x2c1   : > { %v6413_v9 = vor.u32 %v6157_v5, %v6029_v34  ;;  %v12676_v46 = vxor.u32 %v8749_v27, %v1436_v35  ;;  %v1301_v45 = vxor.u32 %v8614_v0, %v917_v22  ;;  %v923_v47 = vmul.u32 2146121005, %v795_v2 }
 0x2c2   : > { %v6417_v26 = vor.u32 %v6161_v21, %v6033_v16  ;;  %v2842_v59 = vand.u32 2147483648, %v12659_v15  ;;  %v1944_v40 = vand.u32 8388607, %v12674_v14  ;;  %v1305_v56 = vxor.u32 %v8618_v25, %v921_v62 }
 0x2c3   : > { %v1948_v63 = vand.u32 8388607, %v12676_v46  ;;  %v1429_v50 = vmul.u32 2221713035, %v1301_v45  ;;  %v8616_v20 = vshrl.u32 %v919_v41, 15  ;;  %v414_v4 = vxor.u32 %v11026_v60, %v15211_v39 }
 0x2c4   : > { %v6673_v51 = vpack.c.bf16 %v6417_v26, %v6413_v9  ;;  %v2072_v7 = vor.u32 1065353216, %v1944_v40  ;;  %v1433_v5 = vmul.u32 2221713035, %v1305_v56  ;;  %v8620_v13 = vshrl.u32 %v923_v47, 15 }
 0x2c5   : > { %v2076_v11 = vor.u32 1065353216, %v1948_v63  ;;  %v2840_v58 = vand.u32 2147483648, %v12674_v14  ;;  %v8742_v21 = vshrl.u32 %v1429_v50, 16  ;;  %v1303_v6 = vxor.u32 %v8616_v20, %v919_v41 }
 0x2c6   : > { %v10375_v15 = vpop.eup %10374  ;;  %7022 = vmatmul.mubr.bf16.gmra.mxu0 %v6673_v51  ;;  %v2328_v35 = vsub.f32 2.0, %v2072_v7  ;;  %v8746_v22 = vshrl.u32 %v1433_v5, 16  ;;  %v1307_v23 = vxor.u32 %v8620_v13, %v923_v47  ;;  %v418_v62 = vxor.u32 %v11026_v60, %v15212_v18 }
 0x2c7   : > { %v10377_v36 = vpop.eup %10376  ;;  %v5898_v34 = vmul.f32 0.6931472, %v10375_v15  ;;  %v2332_v27 = vsub.f32 2.0, %v2076_v11  ;;  %v12686_v0 = vxor.u32 %v8742_v21, %v1429_v50  ;;  %v8495_v2 = vshrl.u32 %v414_v4, 16 }
 0x2c8   : > { %v5906_v16 = vmul.f32 0.6931472, %v10377_v36  ;;  %10382 = vlog2.f32 %v2328_v35  ;;  %v12688_v25 = vxor.u32 %v8746_v22, %v1433_v5  ;;  %v1431_v9 = vmul.u32 2221713035, %v1303_v6 }
 0x2c9   : > { %v10379_v41 = vpop.eup %10378  ;;  %v6031_v45 = vmul.f32 -0.1, %v5898_v34  ;;  %10384 = vlog2.f32 %v2332_v27  ;;  %v1941_v26 = vand.u32 8388607, %v12686_v0  ;;  %v1435_v47 = vmul.u32 2221713035, %v1307_v23 }
 0x2ca   : > { %v10381_v40 = vpop.eup %10380  ;;  %v6035_v56 = vmul.f32 -0.1, %v5906_v16  ;;  %v2456_v63 = vmul.f32 0.6931472, %v10379_v41  ;;  %v1945_v20 = vand.u32 8388607, %v12688_v25  ;;  %v798_v7 = vxor.u32 %v8495_v2, %v414_v4 }
 0x2cb   : > { %v6415_v50 = vor.u32 %v6159_v55, %v6031_v45  ;;  %v2464_v39 = vmul.f32 0.6931472, %v10381_v40  ;;  %v2069_v51 = vor.u32 1065353216, %v1941_v26  ;;  %v8744_v21 = vshrl.u32 %v1431_v9, 16  ;;  %v15214_v26 = vld [vmem:[#allocation15_spill] sm:$0xff]  ;;  %v15215_v40 = vld [vmem:[#allocation16_spill] sm:$0xff] }
 0x2cc   : > { %v6419_v5 = vor.u32 %v6163_v30, %v6035_v56  ;;  %v2710_v13 = vmul.f32 -0.1, %v2456_v63  ;;  %v2073_v11 = vor.u32 1065353216, %v1945_v20  ;;  %v8748_v35 = vshrl.u32 %v1435_v47, 16  ;;  %v15216_v63 = vld [vmem:[#allocation17_spill] sm:$0xff] }
 0x2cd   : > { %v2714_v6 = vmul.f32 -0.1, %v2464_v39  ;;  %v2325_v15 = vsub.f32 2.0, %v2069_v51  ;;  %v8499_v22 = vshrl.u32 %v418_v62, 16  ;;  %v12698_v31 = vxor.u32 %v8744_v21, %v1431_v9 }
 0x2ce   : > { %v6675_v23 = vpack.c.bf16 %v6419_v5, %v6415_v50  ;;  %v3094_v18 = vor.u32 %v2838_v29, %v2710_v13  ;;  %v2329_v36 = vsub.f32 2.0, %v2073_v11  ;;  %v12700_v4 = vxor.u32 %v8748_v35, %v1435_v47 }
 0x2cf   : > { %v3098_v55 = vor.u32 %v2842_v59, %v2714_v6  ;;  %10386 = vlog2.f32 %v2325_v15  ;;  %v802_v61 = vxor.u32 %v8499_v22, %v418_v62  ;;  %v2844_v30 = vand.u32 2147483648, %v12676_v46  ;;  %v15213_v59 = vld [vmem:[#allocation14_spill] sm:$0xff] }
 0x2d0   : > { %7183 = vmatmul.mubr.bf16.gmra.mxu1 %v6675_v23  ;;  %10388 = vlog2.f32 %v2329_v36  ;;  %v1943_v34 = vand.u32 8388607, %v12698_v31  ;;  %v926_v27 = vmul.u32 2146121005, %v798_v7  ;;  %v2837_v16 = vand.u32 2147483648, %v12686_v0 }
 0x2d1   : > { %v3414_v2 = vpack.c.bf16 %v3098_v55, %v3094_v18  ;;  %v1947_v8 = vand.u32 8388607, %v12700_v4  ;;  %v930_v29 = vmul.u32 2146121005, %v802_v61  ;;  %v416_v45 = vxor.u32 %v11026_v60, %v15213_v59 }
 0x2d2   : > { %v2071_v9 = vor.u32 1065353216, %v1943_v34  ;;  %v8623_v41 = vshrl.u32 %v926_v27, 15  ;;  %v420_v62 = vxor.u32 %v11026_v60, %v15214_v26  ;;  %v413_v56 = vxor.u32 %v11026_v60, %v15215_v40 }
 0x2d3   : > { %7415 = vmatprep.mubr.bf16.mxu0 %v3414_v2  ;;  %v2075_v46 = vor.u32 1065353216, %v1947_v8  ;;  %v8627_v47 = vshrl.u32 %v930_v29, 15  ;;  %v417_v20 = vxor.u32 %v11026_v60, %v15216_v63  ;;  %v8497_v51 = vshrl.u32 %v416_v45, 16 }
 0x2d4   : > { %v2327_v50 = vsub.f32 2.0, %v2071_v9  ;;  %v1310_v39 = vxor.u32 %v8623_v41, %v926_v27  ;;  %v8501_v7 = vshrl.u32 %v420_v62, 16  ;;  %v8494_v21 = vshrl.u32 %v413_v56, 16 }
 0x2d5   : > { %v10383_v5 = vpop.eup %10382  ;;  %v2331_v13 = vsub.f32 2.0, %v2075_v46  ;;  %v1314_v11 = vxor.u32 %v8627_v47, %v930_v29  ;;  %v8498_v6 = vshrl.u32 %v417_v20, 16  ;;  %v800_v23 = vxor.u32 %v8497_v51, %v416_v45 }
 0x2d6   : > { %v10385_v15 = vpop.eup %10384  ;;  %v2460_v35 = vmul.f32 0.6931472, %v10383_v5  ;;  %10390 = vlog2.f32 %v2327_v50  ;;  %v1438_v22 = vmul.u32 2221713035, %v1310_v39  ;;  %v804_v55 = vxor.u32 %v8501_v7, %v420_v62 }
 0x2d7   : > { %v2468_v18 = vmul.f32 0.6931472, %v10385_v15  ;;  %10392 = vlog2.f32 %v2331_v13  ;;  %v1442_v36 = vmul.u32 2221713035, %v1314_v11  ;;  %v928_v2 = vmul.u32 2146121005, %v800_v23 }
 0x2d8   : > { %v2712_v61 = vmul.f32 -0.1, %v2460_v35  ;;  %v8751_v34 = vshrl.u32 %v1438_v22, 16  ;;  %v797_v27 = vxor.u32 %v8494_v21, %v413_v56  ;;  %v932_v41 = vmul.u32 2146121005, %v804_v55 }
 0x2d9   : > { %v2716_v8 = vmul.f32 -0.1, %v2468_v18  ;;  %v8755_v9 = vshrl.u32 %v1442_v36, 16  ;;  %v801_v59 = vxor.u32 %v8498_v6, %v417_v20  ;;  %v8625_v46 = vshrl.u32 %v928_v2, 15 }
 0x2da   : > { %v3096_v29 = vor.u32 %v2840_v58, %v2712_v61  ;;  %v12716_v26 = vxor.u32 %v8751_v34, %v1438_v22  ;;  %v925_v47 = vmul.u32 2146121005, %v797_v27  ;;  %v8629_v63 = vshrl.u32 %v932_v41, 15 }
 0x2db   : > { %v3100_v45 = vor.u32 %v2844_v30, %v2716_v8  ;;  %v12718_v40 = vxor.u32 %v8755_v9, %v1442_v36  ;;  %v929_v62 = vmul.u32 2146121005, %v801_v59  ;;  %v2841_v39 = vand.u32 2147483648, %v12688_v25 }
 0x2dc   : > { %v10387_v50 = vpop.eup %10386  ;;  %v1950_v56 = vand.u32 8388607, %v12716_v26  ;;  %v1312_v51 = vxor.u32 %v8625_v46, %v928_v2  ;;  %v8622_v7 = vshrl.u32 %v925_v47, 15  ;;  %v2839_v58 = vand.u32 2147483648, %v12698_v31 }
 0x2dd   : > { %v10389_v20 = vpop.eup %10388  ;;  %v3416_v5 = vpack.c.bf16 %v3100_v45, %v3096_v29  ;;  %v2454_v14 = vmul.f32 0.6931472, %v10387_v50  ;;  %v1954_v13 = vand.u32 8388607, %v12718_v40  ;;  %v1316_v21 = vxor.u32 %v8629_v63, %v932_v41 }
 0x2de   : > { %v2462_v11 = vmul.f32 0.6931472, %v10389_v20  ;;  %v2078_v30 = vor.u32 1065353216, %v1950_v56  ;;  %v1440_v6 = vmul.u32 2221713035, %v1312_v51  ;;  %v8626_v22 = vshrl.u32 %v929_v62, 15 }
 0x2df   : > { %7576 = vmatprep.mubr.bf16.mxu1 %v3416_v5  ;;  %v2709_v15 = vmul.f32 -0.1, %v2454_v14  ;;  %v2082_v35 = vor.u32 1065353216, %v1954_v13  ;;  %v1309_v25 = vxor.u32 %v8622_v7, %v925_v47  ;;  %v1444_v36 = vmul.u32 2221713035, %v1316_v21  ;;  %v15217_v20 = vld [vmem:[#allocation18_spill] sm:$0xff] }
 0x2e0   : > { %v2713_v23 = vmul.f32 -0.1, %v2462_v11  ;;  %v2334_v18 = vsub.f32 2.0, %v2078_v30  ;;  %v8753_v55 = vshrl.u32 %v1440_v6, 16  ;;  %v1313_v31 = vxor.u32 %v8626_v22, %v929_v62 }
 0x2e1   : > { %v3093_v61 = vor.u32 %v2837_v16, %v2709_v15  ;;  %v2338_v34 = vsub.f32 2.0, %v2082_v35  ;;  %v1437_v2 = vmul.u32 2221713035, %v1309_v25  ;;  %v8757_v8 = vshrl.u32 %v1444_v36, 16  ;;  %v15218_v35 = vld [vmem:[#allocation19_spill] sm:$0xff] }
 0x2e2   : > { %v3097_v27 = vor.u32 %v2841_v39, %v2713_v23  ;;  %10394 = vlog2.f32 %v2334_v18  ;;  %v12726_v9 = vxor.u32 %v8753_v55, %v1440_v6  ;;  %v2843_v59 = vand.u32 2147483648, %v12700_v4 }
 0x2e3   : > { %v10391_v41 = vpop.eup %10390  ;;  %10396 = vlog2.f32 %v2338_v34  ;;  %v1441_v29 = vmul.u32 2221713035, %v1313_v31  ;;  %v8750_v46 = vshrl.u32 %v1437_v2, 16  ;;  %v12729_v50 = vxor.u32 %v8757_v8, %v1444_v36 }
 0x2e4   : > { %v10393_v47 = vpop.eup %10392  ;;  %v3413_v45 = vpack.c.bf16 %v3097_v27, %v3093_v61  ;;  %v2458_v63 = vmul.f32 0.6931472, %v10391_v41  ;;  %v1952_v0 = vand.u32 8388607, %v12726_v9  ;;  %v2846_v62 = vand.u32 2147483648, %v12716_v26  ;;  %v15219_v27 = vld [vmem:[#allocation20_spill] sm:$0xff] }
 0x2e5   : > { %v2466_v16 = vmul.f32 0.6931472, %v10393_v47  ;;  %v8754_v39 = vshrl.u32 %v1441_v29, 16  ;;  %v12733_v56 = vxor.u32 %v8750_v46, %v1437_v2  ;;  %v1956_v4 = vand.u32 8388607, %v12729_v50 }
 0x2e6   : > { %7416 = vmatmul.mubr.bf16.vlgmr.msra.gmra.mxu0 %v3413_v45  ;;  %v2711_v51 = vmul.f32 -0.1, %v2458_v63  ;;  %v2080_v7 = vor.u32 1065353216, %v1952_v0  ;;  %v415_v5 = vxor.u32 %v11026_v60, %v15217_v20  ;;  %v2850_v13 = vand.u32 2147483648, %v12718_v40  ;;  %v15221_v45 = vld [vmem:[#allocation21_spill] sm:$0xff] }
 0x2e7   : > { %v2715_v14 = vmul.f32 -0.1, %v2466_v16  ;;  %v12739_v11 = vxor.u32 %v8754_v39, %v1441_v29  ;;  %v1949_v30 = vand.u32 8388607, %v12733_v56  ;;  %v2084_v6 = vor.u32 1065353216, %v1956_v4  ;;  %v15220_v29 = vld [vmem:[#allocation24_spill] sm:$0xff] }
 0x2e8   : > { %v3095_v21 = vor.u32 %v2839_v58, %v2711_v51  ;;  %v2336_v15 = vsub.f32 2.0, %v2080_v7  ;;  %v419_v22 = vxor.u32 %v11026_v60, %v15218_v35  ;;  %v2848_v23 = vand.u32 2147483648, %v12726_v9  ;;  %v15222_v51 = vld [vmem:[#allocation25_spill] sm:$0xff] }
 0x2e9   : > { %v3099_v25 = vor.u32 %v2843_v59, %v2715_v14  ;;  %v1953_v18 = vand.u32 8388607, %v12739_v11  ;;  %v2077_v36 = vor.u32 1065353216, %v1949_v30  ;;  %v2340_v55 = vsub.f32 2.0, %v2084_v6 }
 0x2ea   : > { %10398 = vlog2.f32 %v2336_v15  ;;  %v8496_v61 = vshrl.u32 %v415_v5, 16  ;;  %v8500_v40 = vshrl.u32 %v419_v22, 16  ;;  %v422_v58 = vxor.u32 %v11026_v60, %v15219_v27 }
 0x2eb   : > { %v3415_v34 = vpack.c.bf16 %v3099_v25, %v3095_v21  ;;  %v2081_v31 = vor.u32 1065353216, %v1953_v18  ;;  %v2333_v2 = vsub.f32 2.0, %v2077_v36  ;;  %10400 = vlog2.f32 %v2340_v55 }
 0x2ec   : > { %v799_v8 = vxor.u32 %v8496_v61, %v415_v5  ;;  %v803_v41 = vxor.u32 %v8500_v40, %v419_v22  ;;  %v426_v59 = vxor.u32 %v11026_v60, %v15220_v29  ;;  %v8503_v47 = vshrl.u32 %v422_v58, 16 }
 0x2ed   : > { %7577 = vmatmul.mubr.bf16.vlgmr.msra.gmra.mxu1 %v3415_v34  ;;  %v2337_v46 = vsub.f32 2.0, %v2081_v31  ;;  %10402 = vlog2.f32 %v2333_v2  ;;  %v424_v63 = vxor.u32 %v11026_v60, %v15221_v45  ;;  %v428_v4 = vxor.u32 %v11026_v60, %v15222_v51 }
 0x2ee   : > { %v927_v0 = vmul.u32 2146121005, %v799_v8  ;;  %v931_v16 = vmul.u32 2146121005, %v803_v41  ;;  %v8507_v39 = vshrl.u32 %v426_v59, 16  ;;  %v2852_v20 = vand.u32 2147483648, %v12729_v50 }
 0x2ef   : > { %v10395_v7 = vpop.eup %10394  ;;  %10404 = vlog2.f32 %v2337_v46  ;;  %v806_v5 = vxor.u32 %v8503_v47, %v422_v58  ;;  %v8505_v14 = vshrl.u32 %v424_v63, 16  ;;  %v8509_v18 = vshrl.u32 %v428_v4, 16 }
 0x2f0   : > { %v10397_v30 = vpop.eup %10396  ;;  %v2472_v21 = vmul.f32 0.6931472, %v10395_v7  ;;  %v8624_v6 = vshrl.u32 %v927_v0, 15  ;;  %v8628_v15 = vshrl.u32 %v931_v16, 15  ;;  %v810_v35 = vxor.u32 %v8507_v39, %v426_v59 }
 0x2f1   : > { %v2480_v22 = vmul.f32 0.6931472, %v10397_v30  ;;  %v934_v25 = vmul.u32 2146121005, %v806_v5  ;;  %v808_v36 = vxor.u32 %v8505_v14, %v424_v63  ;;  %v812_v27 = vxor.u32 %v8509_v18, %v428_v4 }
 0x2f2   : > { %v2718_v55 = vmul.f32 -0.1, %v2472_v21  ;;  %v1311_v61 = vxor.u32 %v8624_v6, %v927_v0  ;;  %v1315_v40 = vxor.u32 %v8628_v15, %v931_v16  ;;  %v938_v34 = vmul.u32 2146121005, %v810_v35  ;;  %v15223_v0 = vld [vmem:[#allocation22_spill] sm:$0xff] }
 0x2f3   : > { %v2722_v31 = vmul.f32 -0.1, %v2480_v22  ;;  %v8631_v2 = vshrl.u32 %v934_v25, 15  ;;  %v936_v8 = vmul.u32 2146121005, %v808_v36  ;;  %v421_v16 = vxor.u32 %v11026_v60, %v15223_v0 }
 0x2f4   : > { %v3102_v58 = vor.u32 %v2846_v62, %v2718_v55  ;;  %v1439_v41 = vmul.u32 2221713035, %v1311_v61  ;;  %v1443_v29 = vmul.u32 2221713035, %v1315_v40  ;;  %v8635_v46 = vshrl.u32 %v938_v34, 15 }
 0x2f5   : > { %v3106_v47 = vor.u32 %v2850_v13, %v2722_v31  ;;  %v1318_v59 = vxor.u32 %v8631_v2, %v934_v25  ;;  %v940_v45 = vmul.u32 2146121005, %v812_v27  ;;  %v8633_v39 = vshrl.u32 %v936_v8, 15  ;;  %v15224_v27 = vld [vmem:[#allocation26_spill] sm:$0xff] }
 0x2f6   : > { %v8752_v51 = vshrl.u32 %v1439_v41, 16  ;;  %v8756_v63 = vshrl.u32 %v1443_v29, 16  ;;  %v1322_v7 = vxor.u32 %v8635_v46, %v938_v34  ;;  %v2845_v35 = vand.u32 2147483648, %v12733_v56 }
 0x2f7   : > { %v10399_v5 = vpop.eup %10398  ;;  %v3418_v14 = vpack.c.bf16 %v3106_v47, %v3102_v58  ;;  %v1446_v4 = vmul.u32 2221713035, %v1318_v59  ;;  %v8637_v30 = vshrl.u32 %v940_v45, 15  ;;  %v1320_v21 = vxor.u32 %v8633_v39, %v936_v8 }
 0x2f8   : > { %v2476_v26 = vmul.f32 0.6931472, %v10399_v5  ;;  %v12759_v62 = vxor.u32 %v8752_v51, %v1439_v41  ;;  %v12761_v6 = vxor.u32 %v8756_v63, %v1443_v29  ;;  %v1450_v13 = vmul.u32 2221713035, %v1322_v7  ;;  %v10401_v15 = vpop.eup %10400 }
 0x2f9   : > { %7423 = vmatprep.mubr.bf16.mxu0 %v3418_v14  ;;  %v2849_v22 = vand.u32 2147483648, %v12739_v11  ;;  %v8759_v25 = vshrl.u32 %v1446_v4, 16  ;;  %v1448_v18 = vmul.u32 2221713035, %v1320_v21  ;;  %v2484_v55 = vmul.f32 0.6931472, %v10401_v15 }
 0x2fa   : > { %v10403_v36 = vpop.eup %10402  ;;  %v2720_v61 = vmul.f32 -0.1, %v2476_v26  ;;  %v1951_v40 = vand.u32 8388607, %v12759_v62  ;;  %v1324_v34 = vxor.u32 %v8637_v30, %v940_v45  ;;  %v1955_v2 = vand.u32 8388607, %v12761_v6 }
 0x2fb   : > { %v2470_v31 = vmul.f32 0.6931472, %v10403_v36  ;;  %v425_v8 = vxor.u32 %v11026_v60, %v15224_v27  ;;  %v8502_v58 = vshrl.u32 %v421_v16, 16  ;;  %v2724_v29 = vmul.f32 -0.1, %v2484_v55  ;;  %v15225_v26 = vld [vmem:[#allocation23_spill] sm:$0xff] }
 0x2fc   : > { %v10405_v41 = vpop.eup %10404  ;;  %v3104_v56 = vor.u32 %v2848_v23, %v2720_v61  ;;  %v2079_v11 = vor.u32 1065353216, %v1951_v40  ;;  %v8763_v46 = vshrl.u32 %v1450_v13, 16  ;;  %v2083_v39 = vor.u32 1065353216, %v1955_v2 }
 0x2fd   : > { %v2478_v47 = vmul.f32 0.6931472, %v10405_v41  ;;  %v2717_v59 = vmul.f32 -0.1, %v2470_v31  ;;  %v12771_v51 = vxor.u32 %v8759_v25, %v1446_v4  ;;  %v3108_v45 = vor.u32 %v2852_v20, %v2724_v29 }
 0x2fe   : > { %v2335_v63 = vsub.f32 2.0, %v2079_v11  ;;  %v12775_v7 = vxor.u32 %v8763_v46, %v1450_v13  ;;  %v1452_v0 = vmul.u32 2221713035, %v1324_v34  ;;  %v2339_v30 = vsub.f32 2.0, %v2083_v39 }
 0x2ff   : > { %v2721_v5 = vmul.f32 -0.1, %v2478_v47  ;;  %v3101_v14 = vor.u32 %v2845_v35, %v2717_v59  ;;  %v1958_v9 = vand.u32 8388607, %v12771_v51  ;;  %v3420_v23 = vpack.c.bf16 %v3108_v45, %v3104_v56 }
 0x300   : > { %10406 = vlog2.f32 %v2335_v63  ;;  %v1962_v21 = vand.u32 8388607, %v12775_v7  ;;  %v423_v4 = vxor.u32 %v11026_v60, %v15225_v26  ;;  %v2847_v50 = vand.u32 2147483648, %v12759_v62 }
 0x301   : > { %v3105_v15 = vor.u32 %v2849_v22, %v2721_v5  ;;  %10408 = vlog2.f32 %v2339_v30  ;;  %v2086_v20 = vor.u32 1065353216, %v1958_v9  ;;  %7584 = vmatprep.mubr.bf16.mxu1 %v3420_v23  ;;  %v8761_v25 = vshrl.u32 %v1448_v18, 16 }
 0x302   : > { %v2090_v13 = vor.u32 1065353216, %v1962_v21  ;;  %v8765_v36 = vshrl.u32 %v1452_v0, 16  ;;  %v8506_v35 = vshrl.u32 %v425_v8, 16  ;;  %v805_v40 = vxor.u32 %v8502_v58, %v421_v16 }
 0x303   : > { %v3417_v55 = vpack.c.bf16 %v3105_v15, %v3101_v14  ;;  %v2342_v61 = vsub.f32 2.0, %v2086_v20  ;;  %v427_v34 = vxor.u32 %v11026_v60, %v11050_v24  ;;  %v12784_v2 = vxor.u32 %v8761_v25, %v1448_v18 }
 0x304   : > { %v2346_v31 = vsub.f32 2.0, %v2090_v13  ;;  %v12786_v27 = vxor.u32 %v8765_v36, %v1452_v0  ;;  %v809_v22 = vxor.u32 %v8506_v35, %v425_v8  ;;  %v933_v41 = vmul.u32 2146121005, %v805_v40 }
 0x305   : > { %7424 = vmatmul.mubr.bf16.gmra.mxu0 %v3417_v55  ;;  %10410 = vlog2.f32 %v2342_v61  ;;  %v8504_v29 = vshrl.u32 %v423_v4, 16  ;;  %v8508_v56 = vshrl.u32 %v427_v34, 16  ;;  %v2851_v11 = vand.u32 2147483648, %v12761_v6 }
 0x306   : > { %10412 = vlog2.f32 %v2346_v31  ;;  %v1960_v46 = vand.u32 8388607, %v12784_v2  ;;  %v1964_v16 = vand.u32 8388607, %v12786_v27  ;;  %v2854_v24 = vand.u32 2147483648, %v12771_v51 }
 0x307   : > { %v937_v58 = vmul.u32 2146121005, %v809_v22  ;;  %v8630_v18 = vshrl.u32 %v933_v41, 15  ;;  %v807_v47 = vxor.u32 %v8504_v29, %v423_v4  ;;  %v811_v8 = vxor.u32 %v8508_v56, %v427_v34 }
 0x308   : > { %v2088_v59 = vor.u32 1065353216, %v1960_v46  ;;  %v2092_v39 = vor.u32 1065353216, %v1964_v16  ;;  %v430_v45 = vxor.u32 %v11026_v60, %v11277_v53  ;;  %v434_v6 = vxor.u32 %v11026_v60, %v11281_v54 }
 0x309   : > { %v8634_v63 = vshrl.u32 %v937_v58, 15  ;;  %v1317_v0 = vxor.u32 %v8630_v18, %v933_v41  ;;  %v935_v5 = vmul.u32 2146121005, %v807_v47  ;;  %v939_v9 = vmul.u32 2146121005, %v811_v8 }
 0x30a   : > { %v2344_v14 = vsub.f32 2.0, %v2088_v59  ;;  %v2348_v30 = vsub.f32 2.0, %v2092_v39  ;;  %v8511_v23 = vshrl.u32 %v430_v45, 16  ;;  %v2858_v21 = vand.u32 2147483648, %v12775_v7 }
 0x30b   : > { %v1321_v26 = vxor.u32 %v8634_v63, %v937_v58  ;;  %v1445_v4 = vmul.u32 2221713035, %v1317_v0  ;;  %v8632_v15 = vshrl.u32 %v935_v5, 15  ;;  %v8636_v20 = vshrl.u32 %v939_v9, 15 }
 0x30c   : > { %10414 = vlog2.f32 %v2344_v14  ;;  %v8515_v13 = vshrl.u32 %v434_v6, 16  ;;  %v814_v25 = vxor.u32 %v8511_v23, %v430_v45  ;;  %v2856_v40 = vand.u32 2147483648, %v12784_v2 }
 0x30d   : > { %v10407_v53 = vpop.eup %10406  ;;  %10416 = vlog2.f32 %v2348_v30  ;;  %v1449_v36 = vmul.u32 2221713035, %v1321_v26  ;;  %v8758_v35 = vshrl.u32 %v1445_v4, 16  ;;  %v1319_v55 = vxor.u32 %v8632_v15, %v935_v5 }
 0x30e   : > { %v10409_v61 = vpop.eup %10408  ;;  %v2474_v54 = vmul.f32 0.6931472, %v10407_v53  ;;  %v1323_v34 = vxor.u32 %v8636_v20, %v939_v9  ;;  %v942_v31 = vmul.u32 2146121005, %v814_v25  ;;  %v2860_v46 = vand.u32 2147483648, %v12786_v27 }
 0x30f   : > { %v2482_v22 = vmul.f32 0.6931472, %v10409_v61  ;;  %v8762_v7 = vshrl.u32 %v1449_v36, 16  ;;  %v12798_v41 = vxor.u32 %v8758_v35, %v1445_v4  ;;  %v1447_v29 = vmul.u32 2221713035, %v1319_v55 }
 0x310   : > { %v2719_v56 = vmul.f32 -0.1, %v2474_v54  ;;  %v1451_v16 = vmul.u32 2221713035, %v1323_v34  ;;  %v818_v58 = vxor.u32 %v8515_v13, %v434_v6  ;;  %v432_v39 = vxor.u32 %v11026_v60, %v11287_v52 }
 0x311   : > { %v2723_v18 = vmul.f32 -0.1, %v2482_v22  ;;  %v12801_v47 = vxor.u32 %v8762_v7, %v1449_v36  ;;  %v1957_v59 = vand.u32 8388607, %v12798_v41  ;;  %v8760_v63 = vshrl.u32 %v1447_v29, 16 }
 0x312   : > { %v10411_v8 = vpop.eup %10410  ;;  %v3103_v45 = vor.u32 %v2847_v50, %v2719_v56  ;;  %v8764_v0 = vshrl.u32 %v1451_v16, 16  ;;  %v8639_v5 = vshrl.u32 %v942_v31, 15  ;;  %v946_v20 = vmul.u32 2146121005, %v818_v58 }
 0x313   : > { %v10413_v14 = vpop.eup %10412  ;;  %v3107_v30 = vor.u32 %v2851_v11, %v2723_v18  ;;  %v2488_v9 = vmul.f32 0.6931472, %v10411_v8  ;;  %v1961_v6 = vand.u32 8388607, %v12801_v47  ;;  %v2085_v23 = vor.u32 1065353216, %v1957_v59 }
 0x314   : > { %v2496_v26 = vmul.f32 0.6931472, %v10413_v14  ;;  %v12809_v4 = vxor.u32 %v8760_v63, %v1447_v29  ;;  %v12811_v15 = vxor.u32 %v8764_v0, %v1451_v16  ;;  %v1326_v11 = vxor.u32 %v8639_v5, %v942_v31 }
 0x315   : > { %v3419_v52 = vpack.c.bf16 %v3107_v30, %v3103_v45  ;;  %v2726_v13 = vmul.f32 -0.1, %v2488_v9  ;;  %v2089_v25 = vor.u32 1065353216, %v1961_v6  ;;  %v2341_v62 = vsub.f32 2.0, %v2085_v23 }
 0x316   : > { %v2730_v50 = vmul.f32 -0.1, %v2496_v26  ;;  %v1959_v53 = vand.u32 8388607, %v12809_v4  ;;  %v1963_v36 = vand.u32 8388607, %v12811_v15  ;;  %v436_v61 = vxor.u32 %v11026_v60, %v11293_v12 }
 0x317   : > { %7585 = vmatmul.mubr.bf16.gmra.mxu1 %v3419_v52  ;;  %v3110_v35 = vor.u32 %v2854_v24, %v2726_v13  ;;  %v2345_v55 = vsub.f32 2.0, %v2089_v25  ;;  %10418 = vlog2.f32 %v2341_v62  ;;  %v2853_v34 = vand.u32 2147483648, %v12798_v41 }
 0x318   : > { %v3114_v54 = vor.u32 %v2858_v21, %v2730_v50  ;;  %v2087_v22 = vor.u32 1065353216, %v1959_v53  ;;  %v2091_v7 = vor.u32 1065353216, %v1963_v36  ;;  %v8643_v56 = vshrl.u32 %v946_v20, 15 }
 0x319   : > { %v10415_v29 = vpop.eup %10414  ;;  %10420 = vlog2.f32 %v2345_v55  ;;  %v1454_v16 = vmul.u32 2221713035, %v1326_v11  ;;  %v8513_v58 = vshrl.u32 %v432_v39, 16  ;;  %v8517_v0 = vshrl.u32 %v436_v61, 16 }
 0x31a   : > { %v10417_v31 = vpop.eup %10416  ;;  %v3422_v18 = vpack.c.bf16 %v3114_v54, %v3110_v35  ;;  %v2492_v59 = vmul.f32 0.6931472, %v10415_v29  ;;  %v2343_v51 = vsub.f32 2.0, %v2087_v22  ;;  %v2347_v24 = vsub.f32 2.0, %v2091_v7 }
 0x31b   : > { %v2500_v8 = vmul.f32 0.6931472, %v10417_v31  ;;  %v1330_v45 = vxor.u32 %v8643_v56, %v946_v20  ;;  %v8767_v63 = vshrl.u32 %v1454_v16, 16  ;;  %v816_v21 = vxor.u32 %v8513_v58, %v432_v39 }
 0x31c   : > { %7431 = vmatprep.mubr.bf16.mxu0 %v3422_v18  ;;  %v2728_v12 = vmul.f32 -0.1, %v2492_v59  ;;  %10422 = vlog2.f32 %v2343_v51  ;;  %v429_v5 = vxor.u32 %v11026_v60, %v11300_v17  ;;  %v820_v23 = vxor.u32 %v8517_v0, %v436_v61 }
 0x31d   : > { %v2732_v14 = vmul.f32 -0.1, %v2500_v8  ;;  %10424 = vlog2.f32 %v2347_v24  ;;  %v1458_v30 = vmul.u32 2221713035, %v1330_v45  ;;  %v12822_v9 = vxor.u32 %v8767_v63, %v1454_v16 }
 0x31e   : > { %v3112_v6 = vor.u32 %v2856_v40, %v2728_v12  ;;  %v944_v26 = vmul.u32 2146121005, %v816_v21  ;;  %v433_v20 = vxor.u32 %v11026_v60, %v11314_v44  ;;  %v2857_v39 = vand.u32 2147483648, %v12801_v47 }
 0x31f   : > { %v3116_v52 = vor.u32 %v2860_v46, %v2732_v14  ;;  %v8771_v13 = vshrl.u32 %v1458_v30, 16  ;;  %v1966_v17 = vand.u32 8388607, %v12822_v9  ;;  %v948_v25 = vmul.u32 2146121005, %v820_v23 }
 0x320   : > { %v8641_v62 = vshrl.u32 %v944_v26, 15  ;;  %v8510_v50 = vshrl.u32 %v429_v5, 16  ;;  %v8514_v53 = vshrl.u32 %v433_v20, 16  ;;  %v431_v11 = vxor.u32 %v11026_v60, %v11339_v49 }
 0x321   : > { %v3424_v36 = vpack.c.bf16 %v3116_v52, %v3112_v6  ;;  %v12832_v2 = vxor.u32 %v8771_v13, %v1458_v30  ;;  %v2094_v40 = vor.u32 1065353216, %v1966_v17  ;;  %v8645_v44 = vshrl.u32 %v948_v25, 15 }
 0x322   : > { %v1328_v35 = vxor.u32 %v8641_v62, %v944_v26  ;;  %v813_v27 = vxor.u32 %v8510_v50, %v429_v5  ;;  %v817_v46 = vxor.u32 %v8514_v53, %v433_v20  ;;  %v2855_v47 = vand.u32 2147483648, %v12809_v4 }
 0x323   : > { %7592 = vmatprep.mubr.bf16.mxu1 %v3424_v36  ;;  %v2859_v55 = vand.u32 2147483648, %v12811_v15  ;;  %v1970_v61 = vand.u32 8388607, %v12832_v2  ;;  %v2350_v54 = vsub.f32 2.0, %v2094_v40  ;;  %v1332_v7 = vxor.u32 %v8645_v44, %v948_v25 }
 0x324   : > { %v10419_v22 = vpop.eup %10418  ;;  %v1456_v29 = vmul.u32 2221713035, %v1328_v35  ;;  %v941_v56 = vmul.u32 2146121005, %v813_v27  ;;  %v435_v16 = vxor.u32 %v11026_v60, %v11347_v57  ;;  %v8512_v24 = vshrl.u32 %v431_v11, 16 }
 0x325   : > { %v2486_v49 = vmul.f32 0.6931472, %v10419_v22  ;;  %v2098_v58 = vor.u32 1065353216, %v1970_v61  ;;  %10426 = vlog2.f32 %v2350_v54  ;;  %v945_v31 = vmul.u32 2146121005, %v817_v46 }
 0x326   : > { %v10421_v18 = vpop.eup %10420  ;;  %v1460_v59 = vmul.u32 2221713035, %v1332_v7  ;;  %v8769_v51 = vshrl.u32 %v1456_v29, 16  ;;  %v8638_v4 = vshrl.u32 %v941_v56, 15  ;;  %v8516_v5 = vshrl.u32 %v435_v16, 16 }
 0x327   : > { %v2494_v15 = vmul.f32 0.6931472, %v10421_v18  ;;  %v2725_v8 = vmul.f32 -0.1, %v2486_v49  ;;  %v2354_v45 = vsub.f32 2.0, %v2098_v58  ;;  %v8642_v63 = vshrl.u32 %v945_v31, 15 }
 0x328   : > { %v8773_v0 = vshrl.u32 %v1460_v59, 16  ;;  %v12841_v12 = vxor.u32 %v8769_v51, %v1456_v29  ;;  %v1325_v21 = vxor.u32 %v8638_v4, %v941_v56  ;;  %v815_v13 = vxor.u32 %v8512_v24, %v431_v11 }
 0x329   : > { %v10423_v14 = vpop.eup %10422  ;;  %v2729_v57 = vmul.f32 -0.1, %v2494_v15  ;;  %v3109_v30 = vor.u32 %v2853_v34, %v2725_v8  ;;  %10428 = vlog2.f32 %v2354_v45  ;;  %v1329_v6 = vxor.u32 %v8642_v63, %v945_v31 }
 0x32a   : > { %v10425_v23 = vpop.eup %10424  ;;  %v2490_v26 = vmul.f32 0.6931472, %v10423_v14  ;;  %v12845_v20 = vxor.u32 %v8773_v0, %v1460_v59  ;;  %v1968_v52 = vand.u32 8388607, %v12841_v12  ;;  %v1453_v62 = vmul.u32 2221713035, %v1325_v21 }
 0x32b   : > { %v3113_v17 = vor.u32 %v2857_v39, %v2729_v57  ;;  %v2498_v25 = vmul.f32 0.6931472, %v10425_v23  ;;  %v1457_v50 = vmul.u32 2221713035, %v1329_v6  ;;  %v2862_v36 = vand.u32 2147483648, %v12822_v9 }
 0x32c   : > { %v2727_v53 = vmul.f32 -0.1, %v2490_v26  ;;  %v1972_v40 = vand.u32 8388607, %v12845_v20  ;;  %v2096_v41 = vor.u32 1065353216, %v1968_v52  ;;  %v8766_v35 = vshrl.u32 %v1453_v62, 16 }
 0x32d   : > { %v3421_v34 = vpack.c.bf16 %v3113_v17, %v3109_v30  ;;  %v2731_v44 = vmul.f32 -0.1, %v2498_v25  ;;  %v8770_v27 = vshrl.u32 %v1457_v50, 16  ;;  %v819_v22 = vxor.u32 %v8516_v5, %v435_v16  ;;  %v15226_v26 = vld [vmem:[#allocation28_spill] sm:$0xff] }
 0x32e   : > { %v3111_v46 = vor.u32 %v2855_v47, %v2727_v53  ;;  %v2100_v61 = vor.u32 1065353216, %v1972_v40  ;;  %v2352_v54 = vsub.f32 2.0, %v2096_v41  ;;  %v12850_v39 = vxor.u32 %v8766_v35, %v1453_v62 }
 0x32f   : > { %7432 = vmatmul.mubr.bf16.gmra.mxu0 %v3421_v34  ;;  %v3115_v11 = vor.u32 %v2859_v55, %v2731_v44  ;;  %v12852_v7 = vxor.u32 %v8770_v27, %v1457_v50  ;;  %v943_v29 = vmul.u32 2146121005, %v815_v13  ;;  %v947_v9 = vmul.u32 2146121005, %v819_v22 }
 0x330   : > { %v2356_v56 = vsub.f32 2.0, %v2100_v61  ;;  %10430 = vlog2.f32 %v2352_v54  ;;  %v438_v49 = vxor.u32 %v11026_v60, %v11375_v37  ;;  %v2866_v31 = vand.u32 2147483648, %v12832_v2 }
 0x331   : > { %v3423_v58 = vpack.c.bf16 %v3115_v11, %v3111_v46  ;;  %v1965_v47 = vand.u32 8388607, %v12850_v39  ;;  %v1969_v16 = vand.u32 8388607, %v12852_v7  ;;  %v2864_v55 = vand.u32 2147483648, %v12841_v12 }
 0x332   : > { %v10427_v18 = vpop.eup %10426  ;;  %10432 = vlog2.f32 %v2356_v56  ;;  %v8640_v59 = vshrl.u32 %v943_v29, 15  ;;  %v8644_v51 = vshrl.u32 %v947_v9, 15  ;;  %v442_v37 = vxor.u32 %v11026_v60, %v11383_v33  ;;  %v15227_v56 = vld [vmem:[#allocation29_spill] sm:$0xff] }
 0x333   : > { %7593 = vmatmul.mubr.bf16.gmra.mxu1 %v3423_v58  ;;  %v2504_v4 = vmul.f32 0.6931472, %v10427_v18  ;;  %v2093_v24 = vor.u32 1065353216, %v1965_v47  ;;  %v2097_v15 = vor.u32 1065353216, %v1969_v16  ;;  %v8519_v2 = vshrl.u32 %v438_v49, 16 }
 0x334   : > { %v1327_v8 = vxor.u32 %v8640_v59, %v943_v29  ;;  %v1331_v45 = vxor.u32 %v8644_v51, %v947_v9  ;;  %v440_v63 = vxor.u32 %v11026_v60, %v11379_v1  ;;  %v8523_v14 = vshrl.u32 %v442_v37, 16 }
 0x335   : > { %v2734_v0 = vmul.f32 -0.1, %v2504_v4  ;;  %v2349_v21 = vsub.f32 2.0, %v2093_v24  ;;  %v2353_v5 = vsub.f32 2.0, %v2097_v15  ;;  %v822_v23 = vxor.u32 %v8519_v2, %v438_v49 }
 0x336   : > { %v10429_v57 = vpop.eup %10428  ;;  %v1455_v30 = vmul.u32 2221713035, %v1327_v8  ;;  %v1459_v6 = vmul.u32 2221713035, %v1331_v45  ;;  %v444_v52 = vxor.u32 %v11026_v60, %v15226_v26  ;;  %v826_v33 = vxor.u32 %v8523_v14, %v442_v37  ;;  %v15228_v37 = vld [vmem:[#allocation30_spill] sm:$0xff] }
 0x337   : > { %v2512_v13 = vmul.f32 0.6931472, %v10429_v57  ;;  %v3118_v17 = vor.u32 %v2862_v36, %v2734_v0  ;;  %10434 = vlog2.f32 %v2349_v21  ;;  %v950_v50 = vmul.u32 2146121005, %v822_v23 }
 0x338   : > { %10436 = vlog2.f32 %v2353_v5  ;;  %v8768_v25 = vshrl.u32 %v1455_v30, 16  ;;  %v8772_v62 = vshrl.u32 %v1459_v6, 16  ;;  %v954_v53 = vmul.u32 2146121005, %v826_v33 }
 0x339   : > { %v2738_v1 = vmul.f32 -0.1, %v2512_v13  ;;  %v8521_v40 = vshrl.u32 %v440_v63, 16  ;;  %v8525_v41 = vshrl.u32 %v444_v52, 16  ;;  %v2868_v34 = vand.u32 2147483648, %v12845_v20 }
 0x33a   : > { %v12867_v44 = vxor.u32 %v8768_v25, %v1455_v30  ;;  %v12869_v35 = vxor.u32 %v8772_v62, %v1459_v6  ;;  %v8647_v27 = vshrl.u32 %v950_v50, 15  ;;  %v8651_v61 = vshrl.u32 %v954_v53, 15 }
 0x33b   : > { %v3122_v46 = vor.u32 %v2866_v31, %v2738_v1  ;;  %v824_v36 = vxor.u32 %v8521_v40, %v440_v63  ;;  %v828_v54 = vxor.u32 %v8525_v41, %v444_v52  ;;  %v2861_v22 = vand.u32 2147483648, %v12850_v39 }
 0x33c   : > { %v1967_v11 = vand.u32 8388607, %v12867_v44  ;;  %v1971_v29 = vand.u32 8388607, %v12869_v35  ;;  %v437_v9 = vxor.u32 %v11026_v60, %v15227_v56  ;;  %v1334_v58 = vxor.u32 %v8647_v27, %v950_v50 }
 0x33d   : > { %v10431_v49 = vpop.eup %10430  ;;  %v3426_v20 = vpack.c.bf16 %v3122_v46, %v3118_v17  ;;  %v1338_v47 = vxor.u32 %v8651_v61, %v954_v53  ;;  %v952_v16 = vmul.u32 2146121005, %v824_v36  ;;  %v956_v51 = vmul.u32 2146121005, %v828_v54  ;;  %v15229_v46 = vld [vmem:[#allocation31_spill] sm:$0xff] }
 0x33e   : > { %v2508_v18 = vmul.f32 0.6931472, %v10431_v49  ;;  %v2095_v59 = vor.u32 1065353216, %v1967_v11  ;;  %v2099_v31 = vor.u32 1065353216, %v1971_v29  ;;  %v1462_v24 = vmul.u32 2221713035, %v1334_v58 }
 0x33f   : > { %v10433_v4 = vpop.eup %10432  ;;  %7439 = vmatprep.mubr.bf16.mxu0 %v3426_v20  ;;  %v1466_v39 = vmul.u32 2221713035, %v1338_v47  ;;  %v8649_v15 = vshrl.u32 %v952_v16, 15  ;;  %v441_v8 = vxor.u32 %v11026_v60, %v15228_v37  ;;  %v8653_v14 = vshrl.u32 %v956_v51, 15 }
 0x340   : > { %v2516_v45 = vmul.f32 0.6931472, %v10433_v4  ;;  %v2736_v2 = vmul.f32 -0.1, %v2508_v18  ;;  %v2351_v63 = vsub.f32 2.0, %v2095_v59  ;;  %v2355_v0 = vsub.f32 2.0, %v2099_v31 }
 0x341   : > { %v8775_v21 = vshrl.u32 %v1462_v24, 16  ;;  %v8779_v5 = vshrl.u32 %v1466_v39, 16  ;;  %v1336_v57 = vxor.u32 %v8649_v15, %v952_v16  ;;  %v8518_v23 = vshrl.u32 %v437_v9, 16  ;;  %v15230_v4 = vld [vmem:[#allocation32_spill] sm:$0xff] }
 0x342   : > { %v2740_v30 = vmul.f32 -0.1, %v2516_v45  ;;  %v3120_v6 = vor.u32 %v2864_v55, %v2736_v2  ;;  %10438 = vlog2.f32 %v2351_v63  ;;  %v1340_v13 = vxor.u32 %v8653_v14, %v956_v51  ;;  %v15231_v14 = vld [vmem:[#allocation33_spill] sm:$0xff] }
 0x343   : > { %10440 = vlog2.f32 %v2355_v0  ;;  %v12880_v26 = vxor.u32 %v8775_v21, %v1462_v24  ;;  %v12882_v52 = vxor.u32 %v8779_v5, %v1466_v39  ;;  %v1464_v25 = vmul.u32 2221713035, %v1336_v57 }
 0x344   : > { %v10435_v17 = vpop.eup %10434  ;;  %v3124_v33 = vor.u32 %v2868_v34, %v2740_v30  ;;  %v8522_v62 = vshrl.u32 %v441_v8, 16  ;;  %v821_v50 = vxor.u32 %v8518_v23, %v437_v9  ;;  %v2865_v27 = vand.u32 2147483648, %v12852_v7 }
 0x345   : > { %v10437_v1 = vpop.eup %10436  ;;  %v2502_v53 = vmul.f32 0.6931472, %v10435_v17  ;;  %v1974_v40 = vand.u32 8388607, %v12880_v26  ;;  %v1978_v12 = vand.u32 8388607, %v12882_v52  ;;  %v439_v61 = vxor.u32 %v11026_v60, %v15229_v46 }
 0x346   : > { %v3428_v55 = vpack.c.bf16 %v3124_v33, %v3120_v6  ;;  %v2510_v41 = vmul.f32 0.6931472, %v10437_v1  ;;  %v1468_v34 = vmul.u32 2221713035, %v1340_v13  ;;  %v8777_v56 = vshrl.u32 %v1464_v25, 16  ;;  %v15232_v13 = vld [vmem:[#allocation34_spill] sm:$0xff] }
 0x347   : > { %v2733_v36 = vmul.f32 -0.1, %v2502_v53  ;;  %v2102_v54 = vor.u32 1065353216, %v1974_v40  ;;  %v2106_v11 = vor.u32 1065353216, %v1978_v12  ;;  %v825_v9 = vxor.u32 %v8522_v62, %v441_v8 }
 0x348   : > { %7600 = vmatprep.mubr.bf16.mxu1 %v3428_v55  ;;  %v2737_v29 = vmul.f32 -0.1, %v2510_v41  ;;  %v949_v49 = vmul.u32 2146121005, %v821_v50  ;;  %v8781_v16 = vshrl.u32 %v1468_v34, 16  ;;  %v12889_v59 = vxor.u32 %v8777_v56, %v1464_v25 }
 0x349   : > { %v3117_v20 = vor.u32 %v2861_v22, %v2733_v36  ;;  %v2358_v58 = vsub.f32 2.0, %v2102_v54  ;;  %v2362_v47 = vsub.f32 2.0, %v2106_v11  ;;  %v953_v7 = vmul.u32 2146121005, %v825_v9 }
 0x34a   : > { %v3121_v18 = vor.u32 %v2865_v27, %v2737_v29  ;;  %v8646_v31 = vshrl.u32 %v949_v49, 15  ;;  %v12891_v51 = vxor.u32 %v8781_v16, %v1468_v34  ;;  %v443_v24 = vxor.u32 %v11026_v60, %v15230_v4 }
 0x34b   : > { %10442 = vlog2.f32 %v2358_v58  ;;  %v8520_v39 = vshrl.u32 %v439_v61, 16  ;;  %v2863_v37 = vand.u32 2147483648, %v12867_v44  ;;  %v1976_v22 = vand.u32 8388607, %v12889_v59 }
 0x34c   : > { %v3425_v15 = vpack.c.bf16 %v3121_v18, %v3117_v20  ;;  %10444 = vlog2.f32 %v2362_v47  ;;  %v2867_v8 = vand.u32 2147483648, %v12869_v35  ;;  %v1980_v45 = vand.u32 8388607, %v12891_v51 }
 0x34d   : > { %v8650_v2 = vshrl.u32 %v953_v7, 15  ;;  %v1333_v63 = vxor.u32 %v8646_v31, %v949_v49  ;;  %v2104_v0 = vor.u32 1065353216, %v1976_v22  ;;  %v8524_v21 = vshrl.u32 %v443_v24, 16 }
 0x34e   : > { %7440 = vmatmul.mubr.bf16.gmra.mxu0 %v3425_v15  ;;  %v823_v5 = vxor.u32 %v8520_v39, %v439_v61  ;;  %v446_v57 = vxor.u32 %v11026_v60, %v15231_v14  ;;  %v2108_v6 = vor.u32 1065353216, %v1980_v45  ;;  %v450_v17 = vxor.u32 %v11026_v60, %v15232_v13 }
 0x34f   : > { %v10439_v30 = vpop.eup %10438  ;;  %v1337_v23 = vxor.u32 %v8650_v2, %v953_v7  ;;  %v1461_v44 = vmul.u32 2221713035, %v1333_v63  ;;  %v2360_v25 = vsub.f32 2.0, %v2104_v0  ;;  %v827_v62 = vxor.u32 %v8524_v21, %v443_v24  ;;  %v15233_v0 = vld [vmem:[#allocation35_spill] sm:$0xff] }
 0x350   : > { %v10441_v33 = vpop.eup %10440  ;;  %v2506_v35 = vmul.f32 0.6931472, %v10439_v30  ;;  %v951_v50 = vmul.u32 2146121005, %v823_v5  ;;  %v2364_v53 = vsub.f32 2.0, %v2108_v6  ;;  %v8527_v29 = vshrl.u32 %v446_v57, 16 }
 0x351   : > { %v2514_v1 = vmul.f32 0.6931472, %v10441_v33  ;;  %v1465_v40 = vmul.u32 2221713035, %v1337_v23  ;;  %v8774_v12 = vshrl.u32 %v1461_v44, 16  ;;  %10446 = vlog2.f32 %v2360_v25 }
 0x352   : > { %v2735_v55 = vmul.f32 -0.1, %v2506_v35  ;;  %v955_v41 = vmul.u32 2146121005, %v827_v62  ;;  %v8648_v27 = vshrl.u32 %v951_v50, 15  ;;  %10448 = vlog2.f32 %v2364_v53 }
 0x353   : > { %v2739_v46 = vmul.f32 -0.1, %v2514_v1  ;;  %v8778_v61 = vshrl.u32 %v1465_v40, 16  ;;  %v12903_v36 = vxor.u32 %v8774_v12, %v1461_v44  ;;  %v2870_v9 = vand.u32 2147483648, %v12880_v26 }
 0x354   : > { %v3119_v54 = vor.u32 %v2863_v37, %v2735_v55  ;;  %v8652_v11 = vshrl.u32 %v955_v41, 15  ;;  %v1335_v34 = vxor.u32 %v8648_v27, %v951_v50  ;;  %v8531_v16 = vshrl.u32 %v450_v17, 16  ;;  %v15234_v27 = vld [vmem:[#allocation36_spill] sm:$0xff] }
 0x355   : > { %v3123_v56 = vor.u32 %v2867_v8, %v2739_v46  ;;  %v12906_v49 = vxor.u32 %v8778_v61, %v1465_v40  ;;  %v1973_v20 = vand.u32 8388607, %v12903_v36  ;;  %v830_v18 = vxor.u32 %v8527_v29, %v446_v57 }
 0x356   : > { %v1339_v58 = vxor.u32 %v8652_v11, %v955_v41  ;;  %v1463_v47 = vmul.u32 2221713035, %v1335_v34  ;;  %v2874_v31 = vand.u32 2147483648, %v12882_v52  ;;  %v834_v22 = vxor.u32 %v8531_v16, %v450_v17 }
 0x357   : > { %v3427_v7 = vpack.c.bf16 %v3123_v56, %v3119_v54  ;;  %v1977_v4 = vand.u32 8388607, %v12906_v49  ;;  %v2101_v24 = vor.u32 1065353216, %v1973_v20  ;;  %v958_v8 = vmul.u32 2146121005, %v830_v18 }
 0x358   : > { %v10443_v39 = vpop.eup %10442  ;;  %v1467_v15 = vmul.u32 2221713035, %v1339_v58  ;;  %v8776_v37 = vshrl.u32 %v1463_v47, 16  ;;  %v448_v21 = vxor.u32 %v11026_v60, %v15233_v0  ;;  %v962_v52 = vmul.u32 2146121005, %v834_v22  ;;  %v15236_v0 = vld [vmem:[#allocation38_spill] sm:$0xff] }
 0x359   : > { %v10445_v26 = vpop.eup %10444  ;;  %7601 = vmatmul.mubr.bf16.gmra.mxu1 %v3427_v7  ;;  %v2520_v45 = vmul.f32 0.6931472, %v10443_v39  ;;  %v2105_v2 = vor.u32 1065353216, %v1977_v4  ;;  %v2357_v63 = vsub.f32 2.0, %v2101_v24  ;;  %v8655_v23 = vshrl.u32 %v958_v8, 15 }
 0x35a   : > { %v2528_v5 = vmul.f32 0.6931472, %v10445_v26  ;;  %v8780_v14 = vshrl.u32 %v1467_v15, 16  ;;  %v12913_v57 = vxor.u32 %v8776_v37, %v1463_v47  ;;  %v2872_v13 = vand.u32 2147483648, %v12889_v59 }
 0x35b   : > { %v2742_v30 = vmul.f32 -0.1, %v2520_v45  ;;  %v2361_v6 = vsub.f32 2.0, %v2105_v2  ;;  %10450 = vlog2.f32 %v2357_v63  ;;  %v8659_v25 = vshrl.u32 %v962_v52, 15 }
 0x35c   : > { %v2746_v44 = vmul.f32 -0.1, %v2528_v5  ;;  %v12916_v17 = vxor.u32 %v8780_v14, %v1467_v15  ;;  %v1975_v33 = vand.u32 8388607, %v12913_v57  ;;  %v1342_v62 = vxor.u32 %v8655_v23, %v958_v8  ;;  %v15235_v15 = vld [vmem:[#allocation37_spill] sm:$0xff] }
 0x35d   : > { %v3126_v35 = vor.u32 %v2870_v9, %v2742_v30  ;;  %10452 = vlog2.f32 %v2361_v6  ;;  %v2876_v1 = vand.u32 2147483648, %v12891_v51  ;;  %v1346_v55 = vxor.u32 %v8659_v25, %v962_v52 }
 0x35e   : > { %v3130_v50 = vor.u32 %v2874_v31, %v2746_v44  ;;  %v1979_v53 = vand.u32 8388607, %v12916_v17  ;;  %v2103_v40 = vor.u32 1065353216, %v1975_v33  ;;  %v10447_v12 = vpop.eup %10446  ;;  %v1470_v41 = vmul.u32 2221713035, %v1342_v62 }
 0x35f   : > { %v452_v59 = vxor.u32 %v11026_v60, %v15234_v27  ;;  %v8529_v46 = vshrl.u32 %v448_v21, 16  ;;  %v10449_v61 = vpop.eup %10448  ;;  %v2524_v11 = vmul.f32 0.6931472, %v10447_v12  ;;  %v1474_v9 = vmul.u32 2221713035, %v1346_v55 }
 0x360   : > { %v3430_v54 = vpack.c.bf16 %v3130_v50, %v3126_v35  ;;  %v2107_v34 = vor.u32 1065353216, %v1979_v53  ;;  %v2359_v29 = vsub.f32 2.0, %v2103_v40  ;;  %v2532_v56 = vmul.f32 0.6931472, %v10449_v61  ;;  %v15237_v50 = vld [vmem:[#allocation39_spill] sm:$0xff] }
 0x361   : > { %v8783_v20 = vshrl.u32 %v1470_v41, 16  ;;  %v8533_v58 = vshrl.u32 %v452_v59, 16  ;;  %v2744_v51 = vmul.f32 -0.1, %v2524_v11  ;;  %v832_v16 = vxor.u32 %v8529_v46, %v448_v21 }
 0x362   : > { %7447 = vmatprep.mubr.bf16.mxu0 %v3430_v54  ;;  %v2363_v47 = vsub.f32 2.0, %v2107_v34  ;;  %10454 = vlog2.f32 %v2359_v29  ;;  %v2748_v18 = vmul.f32 -0.1, %v2532_v56  ;;  %v8787_v7 = vshrl.u32 %v1474_v9, 16  ;;  %v15238_v56 = vld [vmem:[#allocation40_spill] sm:$0xff] }
 0x363   : > { %v12923_v31 = vxor.u32 %v8783_v20, %v1470_v41  ;;  %v836_v4 = vxor.u32 %v8533_v58, %v452_v59  ;;  %v3128_v24 = vor.u32 %v2872_v13, %v2744_v51  ;;  %v960_v39 = vmul.u32 2146121005, %v832_v16 }
 0x364   : > { %10456 = vlog2.f32 %v2363_v47  ;;  %v445_v37 = vxor.u32 %v11026_v60, %v15235_v15  ;;  %v3132_v22 = vor.u32 %v2876_v1, %v2748_v18  ;;  %v2869_v8 = vand.u32 2147483648, %v12903_v36 }
 0x365   : > { %v12928_v26 = vxor.u32 %v8787_v7, %v1474_v9  ;;  %v1982_v45 = vand.u32 8388607, %v12923_v31  ;;  %v964_v2 = vmul.u32 2146121005, %v836_v4  ;;  %v8657_v63 = vshrl.u32 %v960_v39, 15 }
 0x366   : > { %v449_v21 = vxor.u32 %v11026_v60, %v15236_v0  ;;  %v8526_v5 = vshrl.u32 %v445_v37, 16  ;;  %v3432_v14 = vpack.c.bf16 %v3132_v22, %v3128_v24  ;;  %v2873_v52 = vand.u32 2147483648, %v12906_v49 }
 0x367   : > { %v1986_v30 = vand.u32 8388607, %v12928_v26  ;;  %v2110_v6 = vor.u32 1065353216, %v1982_v45  ;;  %v8661_v44 = vshrl.u32 %v964_v2, 15  ;;  %v1344_v13 = vxor.u32 %v8657_v63, %v960_v39 }
 0x368   : > { %v10451_v23 = vpop.eup %10450  ;;  %v8530_v36 = vshrl.u32 %v449_v21, 16  ;;  %v829_v33 = vxor.u32 %v8526_v5, %v445_v37  ;;  %7608 = vmatprep.mubr.bf16.mxu1 %v3432_v14  ;;  %v447_v1 = vxor.u32 %v11026_v60, %v15237_v50  ;;  %v451_v9 = vxor.u32 %v11026_v60, %v15238_v56 }
 0x369   : > { %v2518_v35 = vmul.f32 0.6931472, %v10451_v23  ;;  %v2114_v25 = vor.u32 1065353216, %v1986_v30  ;;  %v2366_v62 = vsub.f32 2.0, %v2110_v6  ;;  %v1348_v40 = vxor.u32 %v8661_v44, %v964_v2  ;;  %v15239_v23 = vld [vmem:[#allocation41_spill] sm:$0xff] }
 0x36a   : > { %v10453_v53 = vpop.eup %10452  ;;  %v1472_v12 = vmul.u32 2221713035, %v1344_v13  ;;  %v833_v55 = vxor.u32 %v8530_v36, %v449_v21  ;;  %v957_v49 = vmul.u32 2146121005, %v829_v33  ;;  %v2871_v7 = vand.u32 2147483648, %v12913_v57 }
 0x36b   : > { %v2526_v41 = vmul.f32 0.6931472, %v10453_v53  ;;  %v2741_v27 = vmul.f32 -0.1, %v2518_v35  ;;  %v2370_v59 = vsub.f32 2.0, %v2114_v25  ;;  %10458 = vlog2.f32 %v2366_v62 }
 0x36c   : > { %v1476_v46 = vmul.u32 2221713035, %v1348_v40  ;;  %v8785_v61 = vshrl.u32 %v1472_v12, 16  ;;  %v961_v54 = vmul.u32 2146121005, %v833_v55  ;;  %v8654_v11 = vshrl.u32 %v957_v49, 15 }
 0x36d   : > { %v2745_v34 = vmul.f32 -0.1, %v2526_v41  ;;  %v3125_v29 = vor.u32 %v2869_v8, %v2741_v27  ;;  %10460 = vlog2.f32 %v2370_v59  ;;  %v8528_v4 = vshrl.u32 %v447_v1, 16 }
 0x36e   : > { %v8789_v20 = vshrl.u32 %v1476_v46, 16  ;;  %v12939_v58 = vxor.u32 %v8785_v61, %v1472_v12  ;;  %v8658_v51 = vshrl.u32 %v961_v54, 15  ;;  %v1341_v47 = vxor.u32 %v8654_v11, %v957_v49  ;;  %v15240_v12 = vld [vmem:[#allocation42_spill] sm:$0xff] }
 0x36f   : > { %v10455_v16 = vpop.eup %10454  ;;  %v3129_v18 = vor.u32 %v2873_v52, %v2745_v34  ;;  %v8532_v24 = vshrl.u32 %v451_v9, 16  ;;  %v2875_v15 = vand.u32 2147483648, %v12916_v17  ;;  %v831_v0 = vxor.u32 %v8528_v4, %v447_v1 }
 0x370   : > { %v2522_v39 = vmul.f32 0.6931472, %v10455_v16  ;;  %v12943_v37 = vxor.u32 %v8789_v20, %v1476_v46  ;;  %v1984_v22 = vand.u32 8388607, %v12939_v58  ;;  %v1345_v2 = vxor.u32 %v8658_v51, %v961_v54 }
 0x371   : > { %v10457_v8 = vpop.eup %10456  ;;  %v3429_v45 = vpack.c.bf16 %v3129_v18, %v3125_v29  ;;  %v1469_v63 = vmul.u32 2221713035, %v1341_v47  ;;  %v835_v52 = vxor.u32 %v8532_v24, %v451_v9  ;;  %v454_v17 = vxor.u32 %v11026_v60, %v15239_v23 }
 0x372   : > { %v2530_v21 = vmul.f32 0.6931472, %v10457_v8  ;;  %v2743_v5 = vmul.f32 -0.1, %v2522_v39  ;;  %v1988_v14 = vand.u32 8388607, %v12943_v37  ;;  %v458_v55 = vxor.u32 %v11026_v60, %v15240_v12 }
 0x373   : > { %7448 = vmatmul.mubr.bf16.gmra.mxu0 %v3429_v45  ;;  %v2112_v57 = vor.u32 1065353216, %v1984_v22  ;;  %v1473_v30 = vmul.u32 2221713035, %v1345_v2  ;;  %v8782_v6 = vshrl.u32 %v1469_v63, 16  ;;  %v959_v33 = vmul.u32 2146121005, %v831_v0 }
 0x374   : > { %v2747_v44 = vmul.f32 -0.1, %v2530_v21  ;;  %v3127_v13 = vor.u32 %v2871_v7, %v2743_v5  ;;  %v2116_v36 = vor.u32 1065353216, %v1988_v14  ;;  %v963_v50 = vmul.u32 2146121005, %v835_v52  ;;  %v15241_v14 = vld [vmem:[#allocation43_spill] sm:$0xff] }
 0x375   : > { %v2368_v35 = vsub.f32 2.0, %v2112_v57  ;;  %v8786_v25 = vshrl.u32 %v1473_v30, 16  ;;  %v12949_v62 = vxor.u32 %v8782_v6, %v1469_v63  ;;  %v8656_v40 = vshrl.u32 %v959_v33, 15  ;;  %v15242_v57 = vld [vmem:[#allocation44_spill] sm:$0xff] }
 0x376   : > { %v3131_v1 = vor.u32 %v2875_v15, %v2747_v44  ;;  %v2372_v53 = vsub.f32 2.0, %v2116_v36  ;;  %v2878_v49 = vand.u32 2147483648, %v12923_v31  ;;  %v8660_v61 = vshrl.u32 %v963_v50, 15 }
 0x377   : > { %10462 = vlog2.f32 %v2368_v35  ;;  %v12954_v41 = vxor.u32 %v8786_v25, %v1473_v30  ;;  %v1981_v27 = vand.u32 8388607, %v12949_v62  ;;  %v1343_v54 = vxor.u32 %v8656_v40, %v959_v33 }
 0x378   : > { %v10459_v59 = vpop.eup %10458  ;;  %v3431_v46 = vpack.c.bf16 %v3131_v1, %v3127_v13  ;;  %10464 = vlog2.f32 %v2372_v53  ;;  %v2882_v34 = vand.u32 2147483648, %v12928_v26  ;;  %v1347_v20 = vxor.u32 %v8660_v61, %v963_v50  ;;  %v15243_v61 = vld [vmem:[#allocation45_spill] sm:$0xff] }
 0x379   : > { %v2536_v11 = vmul.f32 0.6931472, %v10459_v59  ;;  %v1985_v29 = vand.u32 8388607, %v12954_v41  ;;  %v2109_v56 = vor.u32 1065353216, %v1981_v27  ;;  %v8535_v51 = vshrl.u32 %v454_v17, 16 }
 0x37a   : > { %v10461_v9 = vpop.eup %10460  ;;  %7609 = vmatmul.mubr.bf16.gmra.mxu1 %v3431_v46  ;;  %v1471_v31 = vmul.u32 2221713035, %v1343_v54  ;;  %v8539_v47 = vshrl.u32 %v458_v55, 16  ;;  %v1475_v24 = vmul.u32 2221713035, %v1347_v20  ;;  %v456_v52 = vxor.u32 %v11026_v60, %v15241_v14 }
 0x37b   : > { %v2544_v16 = vmul.f32 0.6931472, %v10461_v9  ;;  %v2750_v18 = vmul.f32 -0.1, %v2536_v11  ;;  %v2113_v7 = vor.u32 1065353216, %v1985_v29  ;;  %v2365_v4 = vsub.f32 2.0, %v2109_v56 }
 0x37c   : > { %v8784_v39 = vshrl.u32 %v1471_v31, 16  ;;  %v838_v15 = vxor.u32 %v8535_v51, %v454_v17  ;;  %v842_v22 = vxor.u32 %v8539_v47, %v458_v55  ;;  %v8788_v2 = vshrl.u32 %v1475_v24, 16  ;;  %v15244_v56 = vld [vmem:[#allocation46_spill] sm:$0xff] }
 0x37d   : > { %v2754_v8 = vmul.f32 -0.1, %v2544_v16  ;;  %v3134_v45 = vor.u32 %v2878_v49, %v2750_v18  ;;  %v2369_v26 = vsub.f32 2.0, %v2113_v7  ;;  %10466 = vlog2.f32 %v2365_v4 }
 0x37e   : > { %v12959_v63 = vxor.u32 %v8784_v39, %v1471_v31  ;;  %v966_v0 = vmul.u32 2146121005, %v838_v15  ;;  %v970_v21 = vmul.u32 2146121005, %v842_v22  ;;  %v460_v30 = vxor.u32 %v11026_v60, %v15242_v57  ;;  %v15245_v57 = vld [vmem:[#allocation47_spill] sm:$0xff] }
 0x37f   : > { %v3138_v5 = vor.u32 %v2882_v34, %v2754_v8  ;;  %10468 = vlog2.f32 %v2369_v26  ;;  %v2880_v6 = vand.u32 2147483648, %v12939_v58  ;;  %v12966_v23 = vxor.u32 %v8788_v2, %v1475_v24 }
 0x380   : > { %v1983_v17 = vand.u32 8388607, %v12959_v63  ;;  %v8663_v44 = vshrl.u32 %v966_v0, 15  ;;  %v8667_v36 = vshrl.u32 %v970_v21, 15  ;;  %v8537_v33 = vshrl.u32 %v456_v52, 16 }
 0x381   : > { %v3434_v13 = vpack.c.bf16 %v3138_v5, %v3134_v45  ;;  %v8541_v35 = vshrl.u32 %v460_v30, 16  ;;  %v2884_v25 = vand.u32 2147483648, %v12943_v37  ;;  %v1987_v50 = vand.u32 8388607, %v12966_v23 }
 0x382   : > { %v2111_v1 = vor.u32 1065353216, %v1983_v17  ;;  %v1350_v53 = vxor.u32 %v8663_v44, %v966_v0  ;;  %v2877_v40 = vand.u32 2147483648, %v12949_v62  ;;  %v1354_v12 = vxor.u32 %v8667_v36, %v970_v21 }
 0x383   : > { %7455 = vmatprep.mubr.bf16.mxu0 %v3434_v13  ;;  %v840_v58 = vxor.u32 %v8537_v33, %v456_v52  ;;  %v844_v55 = vxor.u32 %v8541_v35, %v460_v30  ;;  %v2115_v27 = vor.u32 1065353216, %v1987_v50  ;;  %v453_v54 = vxor.u32 %v11026_v60, %v15243_v61 }
 0x384   : > { %v10463_v49 = vpop.eup %10462  ;;  %v2367_v59 = vsub.f32 2.0, %v2111_v1  ;;  %v1478_v46 = vmul.u32 2221713035, %v1350_v53  ;;  %v1482_v37 = vmul.u32 2221713035, %v1354_v12  ;;  %v457_v9 = vxor.u32 %v11026_v60, %v15244_v56 }
 0x385   : > { %v10465_v11 = vpop.eup %10464  ;;  %v2540_v34 = vmul.f32 0.6931472, %v10463_v49  ;;  %v968_v29 = vmul.u32 2146121005, %v840_v58  ;;  %v2371_v31 = vsub.f32 2.0, %v2115_v27  ;;  %v8534_v24 = vshrl.u32 %v453_v54, 16 }
 0x386   : > { %v2548_v20 = vmul.f32 0.6931472, %v10465_v11  ;;  %10470 = vlog2.f32 %v2367_v59  ;;  %v8791_v62 = vshrl.u32 %v1478_v46, 16  ;;  %v8795_v47 = vshrl.u32 %v1482_v37, 16 }
 0x387   : > { %v2752_v51 = vmul.f32 -0.1, %v2540_v34  ;;  %v972_v16 = vmul.u32 2146121005, %v844_v55  ;;  %v8665_v18 = vshrl.u32 %v968_v29, 15  ;;  %10472 = vlog2.f32 %v2371_v31  ;;  %v15246_v34 = vld [vmem:[#allocation48_spill] sm:$0xff] }
 0x388   : > { %v2756_v7 = vmul.f32 -0.1, %v2548_v20  ;;  %v12976_v4 = vxor.u32 %v8791_v62, %v1478_v46  ;;  %v12978_v15 = vxor.u32 %v8795_v47, %v1482_v37  ;;  %v2881_v2 = vand.u32 2147483648, %v12954_v41 }
 0x389   : > { %v3136_v39 = vor.u32 %v2880_v6, %v2752_v51  ;;  %v8669_v22 = vshrl.u32 %v972_v16, 15  ;;  %v1352_v8 = vxor.u32 %v8665_v18, %v968_v29  ;;  %v8538_v21 = vshrl.u32 %v457_v9, 16 }
 0x38a   : > { %v10467_v45 = vpop.eup %10466  ;;  %v3140_v26 = vor.u32 %v2884_v25, %v2756_v7  ;;  %v1990_v0 = vand.u32 8388607, %v12976_v4  ;;  %v1994_v14 = vand.u32 8388607, %v12978_v15  ;;  %v455_v30 = vxor.u32 %v11026_v60, %v15245_v57 }
 0x38b   : > { %v2534_v5 = vmul.f32 0.6931472, %v10467_v45  ;;  %v1356_v52 = vxor.u32 %v8669_v22, %v972_v16  ;;  %v1480_v13 = vmul.u32 2221713035, %v1352_v8  ;;  %v837_v36 = vxor.u32 %v8534_v24, %v453_v54 }
 0x38c   : > { %v10469_v17 = vpop.eup %10468  ;;  %v3436_v6 = vpack.c.bf16 %v3140_v26, %v3136_v39  ;;  %v2118_v44 = vor.u32 1065353216, %v1990_v0  ;;  %v2122_v25 = vor.u32 1065353216, %v1994_v14  ;;  %v841_v50 = vxor.u32 %v8538_v21, %v457_v9 }
 0x38d   : > { %v2542_v33 = vmul.f32 0.6931472, %v10469_v17  ;;  %v2749_v35 = vmul.f32 -0.1, %v2534_v5  ;;  %v1484_v1 = vmul.u32 2221713035, %v1356_v52  ;;  %v459_v37 = vxor.u32 %v11026_v60, %v15246_v34 }
 0x38e   : > { %7616 = vmatprep.mubr.bf16.mxu1 %v3436_v6  ;;  %v2374_v41 = vsub.f32 2.0, %v2118_v44  ;;  %v8793_v53 = vshrl.u32 %v1480_v13, 16  ;;  %v965_v12 = vmul.u32 2146121005, %v837_v36  ;;  %v2378_v49 = vsub.f32 2.0, %v2122_v25 }
 0x38f   : > { %v2753_v58 = vmul.f32 -0.1, %v2542_v33  ;;  %v3133_v55 = vor.u32 %v2877_v40, %v2749_v35  ;;  %v969_v27 = vmul.u32 2146121005, %v841_v50  ;;  %v8797_v59 = vshrl.u32 %v1484_v1, 16  ;;  %v15247_v35 = vld [vmem:[#allocation49_spill] sm:$0xff] }
 0x390   : > { %10474 = vlog2.f32 %v2374_v41  ;;  %v12985_v46 = vxor.u32 %v8793_v53, %v1480_v13  ;;  %v8662_v61 = vshrl.u32 %v965_v12, 15  ;;  %v2879_v29 = vand.u32 2147483648, %v12959_v63  ;;  %v15248_v50 = vld [vmem:[#allocation51_spill] sm:$0xff] }
 0x391   : > { %v3137_v11 = vor.u32 %v2881_v2, %v2753_v58  ;;  %10476 = vlog2.f32 %v2378_v49  ;;  %v8666_v54 = vshrl.u32 %v969_v27, 15  ;;  %v12990_v56 = vxor.u32 %v8797_v59, %v1484_v1 }
 0x392   : > { %v1992_v9 = vand.u32 8388607, %v12985_v46  ;;  %v1349_v40 = vxor.u32 %v8662_v61, %v965_v12  ;;  %v8536_v51 = vshrl.u32 %v455_v30, 16  ;;  %v8540_v47 = vshrl.u32 %v459_v37, 16 }
 0x393   : > { %v10471_v20 = vpop.eup %10470  ;;  %v3433_v31 = vpack.c.bf16 %v3137_v11, %v3133_v55  ;;  %v1353_v62 = vxor.u32 %v8666_v54, %v969_v27  ;;  %v2883_v18 = vand.u32 2147483648, %v12966_v23  ;;  %v1996_v7 = vand.u32 8388607, %v12990_v56 }
 0x394   : > { %v2538_v16 = vmul.f32 0.6931472, %v10471_v20  ;;  %v2120_v24 = vor.u32 1065353216, %v1992_v9  ;;  %v10473_v39 = vpop.eup %10472  ;;  %v1477_v22 = vmul.u32 2221713035, %v1349_v40  ;;  %v839_v8 = vxor.u32 %v8536_v51, %v455_v30 }
 0x395   : > { %7456 = vmatmul.mubr.bf16.gmra.mxu0 %v3433_v31  ;;  %v1481_v63 = vmul.u32 2221713035, %v1353_v62  ;;  %v843_v45 = vxor.u32 %v8540_v47, %v459_v37  ;;  %v2546_v26 = vmul.f32 0.6931472, %v10473_v39  ;;  %v2124_v0 = vor.u32 1065353216, %v1996_v7  ;;  %v15249_v37 = vld [vmem:[#allocation50_spill] sm:$0xff] }
 0x396   : > { %v2751_v2 = vmul.f32 -0.1, %v2538_v16  ;;  %v2376_v21 = vsub.f32 2.0, %v2120_v24  ;;  %v8790_v5 = vshrl.u32 %v1477_v22, 16  ;;  %v967_v52 = vmul.u32 2146121005, %v839_v8 }
 0x397   : > { %v8794_v14 = vshrl.u32 %v1481_v63, 16  ;;  %v971_v57 = vmul.u32 2146121005, %v843_v45  ;;  %v2755_v17 = vmul.f32 -0.1, %v2546_v26  ;;  %v2380_v23 = vsub.f32 2.0, %v2124_v0 }
 0x398   : > { %v3135_v6 = vor.u32 %v2879_v29, %v2751_v2  ;;  %10478 = vlog2.f32 %v2376_v21  ;;  %v12995_v44 = vxor.u32 %v8790_v5, %v1477_v22  ;;  %v8664_v36 = vshrl.u32 %v967_v52, 15 }
 0x399   : > { %v12997_v13 = vxor.u32 %v8794_v14, %v1481_v63  ;;  %v8668_v33 = vshrl.u32 %v971_v57, 15  ;;  %v3139_v30 = vor.u32 %v2883_v18, %v2755_v17  ;;  %10480 = vlog2.f32 %v2380_v23  ;;  %v15250_v63 = vld [vmem:[#allocation53_spill] sm:$0xff] }
 0x39a   : > { %v462_v25 = vxor.u32 %v11026_v60, %v15247_v35  ;;  %v466_v41 = vxor.u32 %v11026_v60, %v15248_v50  ;;  %v2886_v1 = vand.u32 2147483648, %v12976_v4  ;;  %v2890_v53 = vand.u32 2147483648, %v12978_v15 }
 0x39b   : > { %v1989_v12 = vand.u32 8388607, %v12995_v44  ;;  %v1993_v58 = vand.u32 8388607, %v12997_v13  ;;  %v3435_v55 = vpack.c.bf16 %v3139_v30, %v3135_v6  ;;  %v1351_v49 = vxor.u32 %v8664_v36, %v967_v52 }
 0x39c   : > { %v1355_v27 = vxor.u32 %v8668_v33, %v971_v57  ;;  %v8543_v59 = vshrl.u32 %v462_v25, 16  ;;  %v8547_v34 = vshrl.u32 %v466_v41, 16  ;;  %v464_v29 = vxor.u32 %v11026_v60, %v15249_v37 }
 0x39d   : > { %v10475_v61 = vpop.eup %10474  ;;  %v2117_v11 = vor.u32 1065353216, %v1989_v12  ;;  %v2121_v54 = vor.u32 1065353216, %v1993_v58  ;;  %7617 = vmatmul.mubr.bf16.gmra.mxu1 %v3435_v55  ;;  %v1479_v40 = vmul.u32 2221713035, %v1351_v49  ;;  %v468_v8 = vxor.u32 %v11026_v60, %v15250_v63  ;;  %v15251_v55 = vld [vmem:[#allocation52_spill] sm:$0xff] }
 0x39e   : > { %v10477_v9 = vpop.eup %10476  ;;  %v2552_v4 = vmul.f32 0.6931472, %v10475_v61  ;;  %v1483_v15 = vmul.u32 2221713035, %v1355_v27  ;;  %v846_v20 = vxor.u32 %v8543_v59, %v462_v25  ;;  %v850_v47 = vxor.u32 %v8547_v34, %v466_v41 }
 0x39f   : > { %v2560_v31 = vmul.f32 0.6931472, %v10477_v9  ;;  %v2373_v62 = vsub.f32 2.0, %v2117_v11  ;;  %v2377_v51 = vsub.f32 2.0, %v2121_v54  ;;  %v8792_v18 = vshrl.u32 %v1479_v40, 16 }
 0x3a0   : > { %v2758_v16 = vmul.f32 -0.1, %v2552_v4  ;;  %v8796_v7 = vshrl.u32 %v1483_v15, 16  ;;  %v974_v24 = vmul.u32 2146121005, %v846_v20  ;;  %v8545_v14 = vshrl.u32 %v464_v29, 16 }
 0x3a1   : > { %v2762_v39 = vmul.f32 -0.1, %v2560_v31  ;;  %10482 = vlog2.f32 %v2373_v62  ;;  %v978_v22 = vmul.u32 2146121005, %v850_v47  ;;  %v13011_v26 = vxor.u32 %v8792_v18, %v1479_v40 }
 0x3a2   : > { %v3142_v45 = vor.u32 %v2886_v1, %v2758_v16  ;;  %10484 = vlog2.f32 %v2377_v51  ;;  %v13013_v2 = vxor.u32 %v8796_v7, %v1483_v15  ;;  %v8671_v21 = vshrl.u32 %v974_v24, 15 }
 0x3a3   : > { %v3146_v0 = vor.u32 %v2890_v53, %v2762_v39  ;;  %v8675_v5 = vshrl.u32 %v978_v22, 15  ;;  %v2888_v52 = vand.u32 2147483648, %v12985_v46  ;;  %v2892_v57 = vand.u32 2147483648, %v12990_v56 }
 0x3a4   : > { %v1991_v17 = vand.u32 8388607, %v13011_v26  ;;  %v1995_v6 = vand.u32 8388607, %v13013_v2  ;;  %v1358_v33 = vxor.u32 %v8671_v21, %v974_v24  ;;  %v8549_v35 = vshrl.u32 %v468_v8, 16 }
 0x3a5   : > { %v10479_v23 = vpop.eup %10478  ;;  %v3438_v36 = vpack.c.bf16 %v3146_v0, %v3142_v45  ;;  %v1362_v30 = vxor.u32 %v8675_v5, %v978_v22  ;;  %v848_v1 = vxor.u32 %v8545_v14, %v464_v29  ;;  %v461_v56 = vxor.u32 %v11026_v60, %v15251_v55  ;;  %v15252_v29 = vld [vmem:[#allocation54_spill] sm:$0xff] }
 0x3a6   : > { %v2556_v25 = vmul.f32 0.6931472, %v10479_v23  ;;  %v2119_v50 = vor.u32 1065353216, %v1991_v17  ;;  %v2123_v41 = vor.u32 1065353216, %v1995_v6  ;;  %v10481_v53 = vpop.eup %10480  ;;  %v1486_v12 = vmul.u32 2221713035, %v1358_v33 }
 0x3a7   : > { %7463 = vmatprep.mubr.bf16.mxu0 %v3438_v36  ;;  %v1490_v58 = vmul.u32 2221713035, %v1362_v30  ;;  %v852_v46 = vxor.u32 %v8549_v35, %v468_v8  ;;  %v2564_v49 = vmul.f32 0.6931472, %v10481_v53  ;;  %v976_v34 = vmul.u32 2146121005, %v848_v1 }
 0x3a8   : > { %v2760_v27 = vmul.f32 -0.1, %v2556_v25  ;;  %v2375_v59 = vsub.f32 2.0, %v2119_v50  ;;  %v2379_v61 = vsub.f32 2.0, %v2123_v41  ;;  %v8799_v11 = vshrl.u32 %v1486_v12, 16  ;;  %v15253_v23 = vld [vmem:[#allocation55_spill] sm:$0xff] }
 0x3a9   : > { %v8803_v54 = vshrl.u32 %v1490_v58, 16  ;;  %v980_v37 = vmul.u32 2146121005, %v852_v46  ;;  %v2764_v9 = vmul.f32 -0.1, %v2564_v49  ;;  %v465_v40 = vxor.u32 %v11026_v60, %v15252_v29 }
 0x3aa   : > { %v3144_v4 = vor.u32 %v2888_v52, %v2760_v27  ;;  %10486 = vlog2.f32 %v2375_v59  ;;  %v13023_v15 = vxor.u32 %v8799_v11, %v1486_v12  ;;  %v8673_v31 = vshrl.u32 %v976_v34, 15 }
 0x3ab   : > { %10488 = vlog2.f32 %v2379_v61  ;;  %v13025_v20 = vxor.u32 %v8803_v54, %v1490_v58  ;;  %v3148_v62 = vor.u32 %v2892_v57, %v2764_v9  ;;  %v8677_v51 = vshrl.u32 %v980_v37, 15  ;;  %v15254_v58 = vld [vmem:[#allocation56_spill] sm:$0xff] }
 0x3ac   : > { %v8542_v47 = vshrl.u32 %v461_v56, 16  ;;  %v8546_v16 = vshrl.u32 %v465_v40, 16  ;;  %v2885_v18 = vand.u32 2147483648, %v12995_v44  ;;  %v2889_v7 = vand.u32 2147483648, %v12997_v13 }
 0x3ad   : > { %v1998_v24 = vand.u32 8388607, %v13023_v15  ;;  %v2002_v39 = vand.u32 8388607, %v13025_v20  ;;  %v3440_v63 = vpack.c.bf16 %v3148_v62, %v3144_v4  ;;  %v1360_v8 = vxor.u32 %v8673_v31, %v976_v34 }
 0x3ae   : > { %v10483_v22 = vpop.eup %10482  ;;  %v1364_v45 = vxor.u32 %v8677_v51, %v980_v37  ;;  %v845_v0 = vxor.u32 %v8542_v47, %v461_v56  ;;  %v849_v57 = vxor.u32 %v8546_v16, %v465_v40  ;;  %v463_v13 = vxor.u32 %v11026_v60, %v15253_v23 }
 0x3af   : > { %v10485_v21 = vpop.eup %10484  ;;  %v2550_v5 = vmul.f32 0.6931472, %v10483_v22  ;;  %v2126_v14 = vor.u32 1065353216, %v1998_v24  ;;  %v2130_v52 = vor.u32 1065353216, %v2002_v39  ;;  %7624 = vmatprep.mubr.bf16.mxu1 %v3440_v63  ;;  %v1488_v6 = vmul.u32 2221713035, %v1360_v8 }
 0x3b0   : > { %v2558_v17 = vmul.f32 0.6931472, %v10485_v21  ;;  %v1492_v44 = vmul.u32 2221713035, %v1364_v45  ;;  %v973_v35 = vmul.u32 2146121005, %v845_v0  ;;  %v467_v46 = vxor.u32 %v11026_v60, %v15254_v58 }
 0x3b1   : > { %v2757_v36 = vmul.f32 -0.1, %v2550_v5  ;;  %v2382_v33 = vsub.f32 2.0, %v2126_v14  ;;  %v2386_v30 = vsub.f32 2.0, %v2130_v52  ;;  %v8801_v50 = vshrl.u32 %v1488_v6, 16 }
 0x3b2   : > { %v2761_v25 = vmul.f32 -0.1, %v2558_v17  ;;  %v8805_v41 = vshrl.u32 %v1492_v44, 16  ;;  %v977_v1 = vmul.u32 2146121005, %v849_v57  ;;  %v8670_v12 = vshrl.u32 %v973_v35, 15 }
 0x3b3   : > { %v3141_v53 = vor.u32 %v2885_v18, %v2757_v36  ;;  %10490 = vlog2.f32 %v2382_v33  ;;  %v13035_v56 = vxor.u32 %v8801_v50, %v1488_v6  ;;  %v8544_v61 = vshrl.u32 %v463_v13, 16  ;;  %v15256_v6 = vld [vmem:[#allocation58_spill] sm:$0xff] }
 0x3b4   : > { %v3145_v55 = vor.u32 %v2889_v7, %v2761_v25  ;;  %10492 = vlog2.f32 %v2386_v30  ;;  %v13037_v49 = vxor.u32 %v8805_v41, %v1492_v44  ;;  %v8674_v27 = vshrl.u32 %v977_v1, 15 }
 0x3b5   : > { %v1357_v59 = vxor.u32 %v8670_v12, %v973_v35  ;;  %v8548_v11 = vshrl.u32 %v467_v46, 16  ;;  %v2887_v34 = vand.u32 2147483648, %v13011_v26  ;;  %v2000_v37 = vand.u32 8388607, %v13035_v56  ;;  %v15255_v26 = vld [vmem:[#allocation57_spill] sm:$0xff] }
 0x3b6   : > { %v3437_v54 = vpack.c.bf16 %v3145_v55, %v3141_v53  ;;  %v2004_v9 = vand.u32 8388607, %v13037_v49  ;;  %v2891_v29 = vand.u32 2147483648, %v13013_v2  ;;  %v1361_v40 = vxor.u32 %v8674_v27, %v977_v1 }
 0x3b7   : > { %v10487_v4 = vpop.eup %10486  ;;  %v1485_v31 = vmul.u32 2221713035, %v1357_v59  ;;  %v847_v62 = vxor.u32 %v8544_v61, %v463_v13  ;;  %v2128_v16 = vor.u32 1065353216, %v2000_v37  ;;  %v851_v7 = vxor.u32 %v8548_v11, %v467_v46 }
 0x3b8   : > { %v10489_v51 = vpop.eup %10488  ;;  %7464 = vmatmul.mubr.bf16.gmra.mxu0 %v3437_v54  ;;  %v2554_v47 = vmul.f32 0.6931472, %v10487_v4  ;;  %v2132_v18 = vor.u32 1065353216, %v2004_v9  ;;  %v1489_v39 = vmul.u32 2221713035, %v1361_v40  ;;  %v470_v63 = vxor.u32 %v11026_v60, %v15255_v26 }
 0x3b9   : > { %v2562_v24 = vmul.f32 0.6931472, %v10489_v51  ;;  %v8798_v22 = vshrl.u32 %v1485_v31, 16  ;;  %v2384_v45 = vsub.f32 2.0, %v2128_v16  ;;  %v975_v21 = vmul.u32 2146121005, %v847_v62 }
 0x3ba   : > { %v2759_v8 = vmul.f32 -0.1, %v2554_v47  ;;  %v2388_v0 = vsub.f32 2.0, %v2132_v18  ;;  %v8802_v5 = vshrl.u32 %v1489_v39, 16  ;;  %v979_v52 = vmul.u32 2146121005, %v851_v7 }
 0x3bb   : > { %v2763_v2 = vmul.f32 -0.1, %v2562_v24  ;;  %v13045_v14 = vxor.u32 %v8798_v22, %v1485_v31  ;;  %10494 = vlog2.f32 %v2384_v45  ;;  %v8672_v17 = vshrl.u32 %v975_v21, 15  ;;  %v15258_v24 = vld [vmem:[#allocation60_spill] sm:$0xff] }
 0x3bc   : > { %v3143_v57 = vor.u32 %v2887_v34, %v2759_v8  ;;  %v474_v44 = vxor.u32 %v11026_v60, %v15256_v6  ;;  %10496 = vlog2.f32 %v2388_v0  ;;  %v13049_v13 = vxor.u32 %v8802_v5, %v1489_v39 }
 0x3bd   : > { %v3147_v23 = vor.u32 %v2891_v29, %v2763_v2  ;;  %v1997_v36 = vand.u32 8388607, %v13045_v14  ;;  %v2894_v33 = vand.u32 2147483648, %v13023_v15  ;;  %v8676_v30 = vshrl.u32 %v979_v52, 15  ;;  %v15257_v15 = vld [vmem:[#allocation59_spill] sm:$0xff] }
 0x3be   : > { %v1359_v35 = vxor.u32 %v8672_v17, %v975_v21  ;;  %v8551_v25 = vshrl.u32 %v470_v63, 16  ;;  %v2898_v41 = vand.u32 2147483648, %v13025_v20  ;;  %v2001_v1 = vand.u32 8388607, %v13049_v13 }
 0x3bf   : > { %v3439_v50 = vpack.c.bf16 %v3147_v23, %v3143_v57  ;;  %v2125_v53 = vor.u32 1065353216, %v1997_v36  ;;  %v1363_v58 = vxor.u32 %v8676_v30, %v979_v52  ;;  %v8555_v55 = vshrl.u32 %v474_v44, 16 }
 0x3c0   : > { %v10491_v12 = vpop.eup %10490  ;;  %v1487_v46 = vmul.u32 2221713035, %v1359_v35  ;;  %v854_v27 = vxor.u32 %v8551_v25, %v470_v63  ;;  %v2129_v11 = vor.u32 1065353216, %v2001_v1  ;;  %v472_v34 = vxor.u32 %v11026_v60, %v15257_v15 }
 0x3c1   : > { %v10493_v59 = vpop.eup %10492  ;;  %7625 = vmatmul.mubr.bf16.gmra.mxu1 %v3439_v50  ;;  %v2568_v61 = vmul.f32 0.6931472, %v10491_v12  ;;  %v2381_v54 = vsub.f32 2.0, %v2125_v53  ;;  %v1491_v9 = vmul.u32 2221713035, %v1363_v58  ;;  %v858_v20 = vxor.u32 %v8555_v55, %v474_v44  ;;  %v15259_v50 = vld [vmem:[#allocation61_spill] sm:$0xff] }
 0x3c2   : > { %v2576_v37 = vmul.f32 0.6931472, %v10493_v59  ;;  %v8800_v4 = vshrl.u32 %v1487_v46, 16  ;;  %v2385_v40 = vsub.f32 2.0, %v2129_v11  ;;  %v982_v31 = vmul.u32 2146121005, %v854_v27 }
 0x3c3   : > { %v2766_v29 = vmul.f32 -0.1, %v2568_v61  ;;  %10498 = vlog2.f32 %v2381_v54  ;;  %v8804_v51 = vshrl.u32 %v1491_v9, 16  ;;  %v986_v16 = vmul.u32 2146121005, %v858_v20 }
 0x3c4   : > { %v2770_v62 = vmul.f32 -0.1, %v2576_v37  ;;  %v13057_v47 = vxor.u32 %v8800_v4, %v1487_v46  ;;  %10500 = vlog2.f32 %v2385_v40  ;;  %v8679_v7 = vshrl.u32 %v982_v31, 15 }
 0x3c5   : > { %v3150_v18 = vor.u32 %v2894_v33, %v2766_v29  ;;  %v476_v39 = vxor.u32 %v11026_v60, %v15258_v24  ;;  %v2896_v26 = vand.u32 2147483648, %v13035_v56  ;;  %v13062_v63 = vxor.u32 %v8804_v51, %v1491_v9 }
 0x3c6   : > { %v3154_v22 = vor.u32 %v2898_v41, %v2770_v62  ;;  %v1999_v8 = vand.u32 8388607, %v13057_v47  ;;  %v8683_v45 = vshrl.u32 %v986_v16, 15  ;;  %v1366_v0 = vxor.u32 %v8679_v7, %v982_v31 }
 0x3c7   : > { %v8553_v21 = vshrl.u32 %v472_v34, 16  ;;  %v8557_v2 = vshrl.u32 %v476_v39, 16  ;;  %v2900_v52 = vand.u32 2147483648, %v13037_v49  ;;  %v2003_v57 = vand.u32 8388607, %v13062_v63  ;;  %v15260_v49 = vld [vmem:[#allocation62_spill] sm:$0xff] }
 0x3c8   : > { %v3442_v5 = vpack.c.bf16 %v3154_v22, %v3150_v18  ;;  %v2127_v17 = vor.u32 1065353216, %v1999_v8  ;;  %v10495_v6 = vpop.eup %10494  ;;  %v1370_v44 = vxor.u32 %v8683_v45, %v986_v16  ;;  %v1494_v23 = vmul.u32 2221713035, %v1366_v0 }
 0x3c9   : > { %v856_v36 = vxor.u32 %v8553_v21, %v472_v34  ;;  %v860_v33 = vxor.u32 %v8557_v2, %v476_v39  ;;  %v10497_v56 = vpop.eup %10496  ;;  %v2572_v30 = vmul.f32 0.6931472, %v10495_v6  ;;  %v2131_v35 = vor.u32 1065353216, %v2003_v57  ;;  %v15261_v6 = vld [vmem:[#allocation63_spill] sm:$0xff] }
 0x3ca   : > { %7471 = vmatprep.mubr.bf16.mxu0 %v3442_v5  ;;  %v2383_v25 = vsub.f32 2.0, %v2127_v17  ;;  %v469_v41 = vxor.u32 %v11026_v60, %v15259_v50  ;;  %v2580_v1 = vmul.f32 0.6931472, %v10497_v56  ;;  %v1498_v53 = vmul.u32 2221713035, %v1370_v44  ;;  %v15262_v50 = vld [vmem:[#allocation64_spill] sm:$0xff] }
 0x3cb   : > { %v8807_v12 = vshrl.u32 %v1494_v23, 16  ;;  %v473_v58 = vxor.u32 %v11026_v60, %v15260_v49  ;;  %v2768_v46 = vmul.f32 -0.1, %v2572_v30  ;;  %v2387_v55 = vsub.f32 2.0, %v2131_v35 }
 0x3cc   : > { %10502 = vlog2.f32 %v2383_v25  ;;  %v984_v27 = vmul.u32 2146121005, %v856_v36  ;;  %v2772_v59 = vmul.f32 -0.1, %v2580_v1  ;;  %v8811_v61 = vshrl.u32 %v1498_v53, 16 }
 0x3cd   : > { %v13071_v11 = vxor.u32 %v8807_v12, %v1494_v23  ;;  %v988_v54 = vmul.u32 2146121005, %v860_v33  ;;  %v3152_v15 = vor.u32 %v2896_v26, %v2768_v46  ;;  %10504 = vlog2.f32 %v2387_v55 }
 0x3ce   : > { %v8681_v34 = vshrl.u32 %v984_v27, 15  ;;  %v8550_v37 = vshrl.u32 %v469_v41, 16  ;;  %v3156_v9 = vor.u32 %v2900_v52, %v2772_v59  ;;  %v2893_v4 = vand.u32 2147483648, %v13045_v14 }
 0x3cf   : > { %v13074_v20 = vxor.u32 %v8811_v61, %v1498_v53  ;;  %v2006_v29 = vand.u32 8388607, %v13071_v11  ;;  %v8685_v31 = vshrl.u32 %v988_v54, 15  ;;  %v8554_v51 = vshrl.u32 %v473_v58, 16 }
 0x3d0   : > { %v10499_v40 = vpop.eup %10498  ;;  %v1368_v62 = vxor.u32 %v8681_v34, %v984_v27  ;;  %v853_v16 = vxor.u32 %v8550_v37, %v469_v41  ;;  %v3444_v18 = vpack.c.bf16 %v3156_v9, %v3152_v15  ;;  %v2897_v26 = vand.u32 2147483648, %v13049_v13 }
 0x3d1   : > { %v2566_v7 = vmul.f32 0.6931472, %v10499_v40  ;;  %v2010_v24 = vand.u32 8388607, %v13074_v20  ;;  %v2134_v39 = vor.u32 1065353216, %v2006_v29  ;;  %v10501_v22 = vpop.eup %10500  ;;  %v1372_v8 = vxor.u32 %v8685_v31, %v988_v54 }
 0x3d2   : > { %v1496_v45 = vmul.u32 2221713035, %v1368_v62  ;;  %v857_v14 = vxor.u32 %v8554_v51, %v473_v58  ;;  %7632 = vmatprep.mubr.bf16.mxu1 %v3444_v18  ;;  %v2574_v0 = vmul.f32 0.6931472, %v10501_v22  ;;  %v981_v17 = vmul.u32 2146121005, %v853_v16 }
 0x3d3   : > { %v2765_v21 = vmul.f32 -0.1, %v2566_v7  ;;  %v2138_v2 = vor.u32 1065353216, %v2010_v24  ;;  %v2390_v5 = vsub.f32 2.0, %v2134_v39  ;;  %v1500_v52 = vmul.u32 2221713035, %v1372_v8 }
 0x3d4   : > { %v8809_v57 = vshrl.u32 %v1496_v45, 16  ;;  %v471_v44 = vxor.u32 %v11026_v60, %v15261_v6  ;;  %v2769_v23 = vmul.f32 -0.1, %v2574_v0  ;;  %v985_v30 = vmul.u32 2146121005, %v857_v14 }
 0x3d5   : > { %v3149_v36 = vor.u32 %v2893_v4, %v2765_v21  ;;  %v2394_v33 = vsub.f32 2.0, %v2138_v2  ;;  %10506 = vlog2.f32 %v2390_v5  ;;  %v8813_v56 = vshrl.u32 %v1500_v52, 16 }
 0x3d6   : > { %v13081_v13 = vxor.u32 %v8809_v57, %v1496_v45  ;;  %v8678_v35 = vshrl.u32 %v981_v17, 15  ;;  %v3153_v25 = vor.u32 %v2897_v26, %v2769_v23  ;;  %v475_v41 = vxor.u32 %v11026_v60, %v15262_v50  ;;  %v15263_v50 = vld [vmem:[#allocation65_spill] sm:$0xff] }
 0x3d7   : > { %10508 = vlog2.f32 %v2394_v33  ;;  %v8552_v1 = vshrl.u32 %v471_v44, 16  ;;  %v2895_v53 = vand.u32 2147483648, %v13057_v47  ;;  %v13086_v12 = vxor.u32 %v8813_v56, %v1500_v52 }
 0x3d8   : > { %v2008_v49 = vand.u32 8388607, %v13081_v13  ;;  %v8682_v58 = vshrl.u32 %v985_v30, 15  ;;  %v3441_v55 = vpack.c.bf16 %v3153_v25, %v3149_v36  ;;  %v1365_v27 = vxor.u32 %v8678_v35, %v981_v17 }
 0x3d9   : > { %v10503_v46 = vpop.eup %10502  ;;  %v8556_v59 = vshrl.u32 %v475_v41, 16  ;;  %v855_v61 = vxor.u32 %v8552_v1, %v471_v44  ;;  %v2899_v15 = vand.u32 2147483648, %v13062_v63  ;;  %v2012_v34 = vand.u32 8388607, %v13086_v12 }
 0x3da   : > { %v2570_v54 = vmul.f32 0.6931472, %v10503_v46  ;;  %v2136_v37 = vor.u32 1065353216, %v2008_v49  ;;  %v10505_v9 = vpop.eup %10504  ;;  %7472 = vmatmul.mubr.bf16.gmra.mxu0 %v3441_v55  ;;  %v1369_v4 = vxor.u32 %v8682_v58, %v985_v30  ;;  %v1493_v47 = vmul.u32 2221713035, %v1365_v27  ;;  %v15264_v27 = vld [vmem:[#allocation67_spill] sm:$0xff] }
 0x3db   : > { %v859_v29 = vxor.u32 %v8556_v59, %v475_v41  ;;  %v983_v40 = vmul.u32 2146121005, %v855_v61  ;;  %v2578_v31 = vmul.f32 0.6931472, %v10505_v9  ;;  %v2140_v51 = vor.u32 1065353216, %v2012_v34 }
 0x3dc   : > { %v2767_v62 = vmul.f32 -0.1, %v2570_v54  ;;  %v2392_v16 = vsub.f32 2.0, %v2136_v37  ;;  %v1497_v18 = vmul.u32 2221713035, %v1369_v4  ;;  %v8806_v7 = vshrl.u32 %v1493_v47, 16 }
 0x3dd   : > { %v987_v24 = vmul.u32 2146121005, %v859_v29  ;;  %v8680_v39 = vshrl.u32 %v983_v40, 15  ;;  %v2771_v22 = vmul.f32 -0.1, %v2578_v31  ;;  %v2396_v63 = vsub.f32 2.0, %v2140_v51 }
 0x3de   : > { %v3151_v26 = vor.u32 %v2895_v53, %v2767_v62  ;;  %10510 = vlog2.f32 %v2392_v16  ;;  %v8810_v8 = vshrl.u32 %v1497_v18, 16  ;;  %v13091_v45 = vxor.u32 %v8806_v7, %v1493_v47  ;;  %v15265_v47 = vld [vmem:[#allocation66_spill] sm:$0xff]  ;;  %v15266_v7 = vld [vmem:[#allocation68_spill] sm:$0xff] }
 0x3df   : > { %v8684_v14 = vshrl.u32 %v987_v24, 15  ;;  %v1367_v0 = vxor.u32 %v8680_v39, %v983_v40  ;;  %v3155_v21 = vor.u32 %v2899_v15, %v2771_v22  ;;  %10512 = vlog2.f32 %v2396_v63 }
 0x3e0   : > { %v13093_v2 = vxor.u32 %v8810_v8, %v1497_v18  ;;  %v2005_v5 = vand.u32 8388607, %v13091_v45  ;;  %v2902_v23 = vand.u32 2147483648, %v13071_v11  ;;  %v2906_v30 = vand.u32 2147483648, %v13074_v20 }
 0x3e1   : > { %v1371_v52 = vxor.u32 %v8684_v14, %v987_v24  ;;  %v3443_v17 = vpack.c.bf16 %v3155_v21, %v3151_v26  ;;  %v1495_v6 = vmul.u32 2221713035, %v1367_v0  ;;  %v478_v41 = vxor.u32 %v11026_v60, %v15263_v50 }
 0x3e2   : > { %v10507_v57 = vpop.eup %10506  ;;  %v2009_v36 = vand.u32 8388607, %v13093_v2  ;;  %v2133_v33 = vor.u32 1065353216, %v2005_v5  ;;  %v2904_v46 = vand.u32 2147483648, %v13081_v13  ;;  %v482_v59 = vxor.u32 %v11026_v60, %v15264_v27 }
 0x3e3   : > { %v2584_v44 = vmul.f32 0.6931472, %v10507_v57  ;;  %7633 = vmatmul.mubr.bf16.gmra.mxu1 %v3443_v17  ;;  %v1499_v35 = vmul.u32 2221713035, %v1371_v52  ;;  %v8808_v25 = vshrl.u32 %v1495_v6, 16  ;;  %v2908_v15 = vand.u32 2147483648, %v13086_v12 }
 0x3e4   : > { %v10509_v56 = vpop.eup %10508  ;;  %v2137_v49 = vor.u32 1065353216, %v2009_v36  ;;  %v2389_v58 = vsub.f32 2.0, %v2133_v33  ;;  %v8559_v9 = vshrl.u32 %v478_v41, 16  ;;  %v8563_v13 = vshrl.u32 %v482_v59, 16  ;;  %v15267_v52 = vld [vmem:[#allocation69_spill] sm:$0xff] }
 0x3e5   : > { %v2592_v1 = vmul.f32 0.6931472, %v10509_v56  ;;  %v2774_v53 = vmul.f32 -0.1, %v2584_v44  ;;  %v8812_v55 = vshrl.u32 %v1499_v35, 16  ;;  %v13102_v11 = vxor.u32 %v8808_v25, %v1495_v6  ;;  %v15268_v25 = vld [vmem:[#allocation70_spill] sm:$0xff] }
 0x3e6   : > { %v2393_v20 = vsub.f32 2.0, %v2137_v49  ;;  %10514 = vlog2.f32 %v2389_v58  ;;  %v480_v29 = vxor.u32 %v11026_v60, %v15265_v47  ;;  %v2901_v40 = vand.u32 2147483648, %v13091_v45 }
 0x3e7   : > { %v2778_v61 = vmul.f32 -0.1, %v2592_v1  ;;  %v3158_v54 = vor.u32 %v2902_v23, %v2774_v53  ;;  %v13107_v34 = vxor.u32 %v8812_v55, %v1499_v35  ;;  %v2007_v37 = vand.u32 8388607, %v13102_v11 }
 0x3e8   : > { %10516 = vlog2.f32 %v2393_v20  ;;  %v862_v51 = vxor.u32 %v8559_v9, %v478_v41  ;;  %v866_v12 = vxor.u32 %v8563_v13, %v482_v59  ;;  %v484_v24 = vxor.u32 %v11026_v60, %v15266_v7  ;;  %v15270_v7 = vld [vmem:[#allocation72_spill] sm:$0xff] }
 0x3e9   : > { %v3162_v4 = vor.u32 %v2906_v30, %v2778_v61  ;;  %v2011_v31 = vand.u32 8388607, %v13107_v34  ;;  %v2135_v62 = vor.u32 1065353216, %v2007_v37  ;;  %v8561_v39 = vshrl.u32 %v480_v29, 16 }
 0x3ea   : > { %v990_v8 = vmul.u32 2146121005, %v862_v51  ;;  %v994_v0 = vmul.u32 2146121005, %v866_v12  ;;  %v8565_v21 = vshrl.u32 %v484_v24, 16  ;;  %v477_v57 = vxor.u32 %v11026_v60, %v15267_v52 }
 0x3eb   : > { %v10511_v16 = vpop.eup %10510  ;;  %v3446_v18 = vpack.c.bf16 %v3162_v4, %v3158_v54  ;;  %v2139_v26 = vor.u32 1065353216, %v2011_v31  ;;  %v2391_v63 = vsub.f32 2.0, %v2135_v62  ;;  %v864_v5 = vxor.u32 %v8561_v39, %v480_v29 }
 0x3ec   : > { %v2588_v22 = vmul.f32 0.6931472, %v10511_v16  ;;  %v10513_v14 = vpop.eup %10512  ;;  %v8687_v23 = vshrl.u32 %v990_v8, 15  ;;  %v8691_v36 = vshrl.u32 %v994_v0, 15  ;;  %v868_v33 = vxor.u32 %v8565_v21, %v484_v24 }
 0x3ed   : > { %7479 = vmatprep.mubr.bf16.mxu0 %v3446_v18  ;;  %v2596_v17 = vmul.f32 0.6931472, %v10513_v14  ;;  %v2395_v44 = vsub.f32 2.0, %v2139_v26  ;;  %10518 = vlog2.f32 %v2391_v63  ;;  %v992_v56 = vmul.u32 2146121005, %v864_v5  ;;  %v15269_v18 = vld [vmem:[#allocation71_spill] sm:$0xff] }
 0x3ee   : > { %v2776_v6 = vmul.f32 -0.1, %v2588_v22  ;;  %v481_v50 = vxor.u32 %v11026_v60, %v15268_v25  ;;  %v1374_v41 = vxor.u32 %v8687_v23, %v990_v8  ;;  %v1378_v1 = vxor.u32 %v8691_v36, %v994_v0 }
 0x3ef   : > { %v2780_v30 = vmul.f32 -0.1, %v2596_v17  ;;  %10520 = vlog2.f32 %v2395_v44  ;;  %v996_v53 = vmul.u32 2146121005, %v868_v33  ;;  %v8689_v49 = vshrl.u32 %v992_v56, 15 }
 0x3f0   : > { %v3160_v35 = vor.u32 %v2904_v46, %v2776_v6  ;;  %v2905_v55 = vand.u32 2147483648, %v13093_v2  ;;  %v8558_v27 = vshrl.u32 %v477_v57, 16  ;;  %v8562_v59 = vshrl.u32 %v481_v50, 16 }
 0x3f1   : > { %v3164_v58 = vor.u32 %v2908_v15, %v2780_v30  ;;  %v1502_v61 = vmul.u32 2221713035, %v1374_v41  ;;  %v1506_v54 = vmul.u32 2221713035, %v1378_v1  ;;  %v8693_v20 = vshrl.u32 %v996_v53, 15 }
 0x3f2   : > { %v1376_v37 = vxor.u32 %v8689_v49, %v992_v56  ;;  %v2903_v46 = vand.u32 2147483648, %v13102_v11  ;;  %v861_v13 = vxor.u32 %v8558_v27, %v477_v57  ;;  %v865_v47 = vxor.u32 %v8562_v59, %v481_v50 }
 0x3f3   : > { %v10515_v9 = vpop.eup %10514  ;;  %v3448_v4 = vpack.c.bf16 %v3164_v58, %v3160_v35  ;;  %v8815_v31 = vshrl.u32 %v1502_v61, 16  ;;  %v8819_v62 = vshrl.u32 %v1506_v54, 16  ;;  %v1380_v51 = vxor.u32 %v8693_v20, %v996_v53 }
 0x3f4   : > { %v2582_v29 = vmul.f32 0.6931472, %v10515_v9  ;;  %v1504_v15 = vmul.u32 2221713035, %v1376_v37  ;;  %v989_v2 = vmul.u32 2146121005, %v861_v13  ;;  %v479_v12 = vxor.u32 %v11026_v60, %v15269_v18 }
 0x3f5   : > { %v10517_v16 = vpop.eup %10516  ;;  %7640 = vmatprep.mubr.bf16.mxu1 %v3448_v4  ;;  %v483_v24 = vxor.u32 %v11026_v60, %v15270_v7  ;;  %v13126_v26 = vxor.u32 %v8815_v31, %v1502_v61  ;;  %v13128_v11 = vxor.u32 %v8819_v62, %v1506_v54  ;;  %v1508_v63 = vmul.u32 2221713035, %v1380_v51 }
 0x3f6   : > { %v2590_v39 = vmul.f32 0.6931472, %v10517_v16  ;;  %v2773_v22 = vmul.f32 -0.1, %v2582_v29  ;;  %v8817_v8 = vshrl.u32 %v1504_v15, 16  ;;  %v8686_v0 = vshrl.u32 %v989_v2, 15 }
 0x3f7   : > { %v993_v14 = vmul.u32 2146121005, %v865_v47  ;;  %v2014_v52 = vand.u32 8388607, %v13126_v26  ;;  %v2018_v57 = vand.u32 8388607, %v13128_v11 }
 0x3f8   : > { %v2777_v21 = vmul.f32 -0.1, %v2590_v39  ;;  %v3157_v5 = vor.u32 %v2901_v40, %v2773_v22  ;;  %v2907_v17 = vand.u32 2147483648, %v13107_v34  ;;  %v8821_v6 = vshrl.u32 %v1508_v63, 16 }
 0x3f9   : > { %v13135_v44 = vxor.u32 %v8817_v8, %v1504_v15  ;;  %v8560_v23 = vshrl.u32 %v479_v12, 16  ;;  %v2142_v56 = vor.u32 1065353216, %v2014_v52  ;;  %v2146_v30 = vor.u32 1065353216, %v2018_v57  ;;  %v15272_v57 = vld [vmem:[#allocation75_spill] sm:$0xff] }
 0x3fa   : > { %v10519_v36 = vpop.eup %10518  ;;  %v3161_v33 = vor.u32 %v2905_v55, %v2777_v21  ;;  %v8690_v35 = vshrl.u32 %v993_v14, 15  ;;  %v13137_v50 = vxor.u32 %v8821_v6, %v1508_v63  ;;  %v8564_v40 = vshrl.u32 %v483_v24, 16 }
 0x3fb   : > { %v2586_v25 = vmul.f32 0.6931472, %v10519_v36  ;;  %v2016_v45 = vand.u32 8388607, %v13135_v44  ;;  %v2398_v53 = vsub.f32 2.0, %v2142_v56  ;;  %v2402_v49 = vsub.f32 2.0, %v2146_v30 }
 0x3fc   : > { %v10521_v41 = vpop.eup %10520  ;;  %v3445_v1 = vpack.c.bf16 %v3161_v33, %v3157_v5  ;;  %v1373_v34 = vxor.u32 %v8686_v0, %v989_v2  ;;  %v2020_v59 = vand.u32 8388607, %v13137_v50  ;;  %v1377_v61 = vxor.u32 %v8690_v35, %v993_v14  ;;  %v15271_v5 = vld [vmem:[#allocation73_spill] sm:$0xff]  ;;  %v15273_v33 = vld [vmem:[#allocation74_spill] sm:$0xff] }
 0x3fd   : > { %v2594_v58 = vmul.f32 0.6931472, %v10521_v41  ;;  %v2775_v27 = vmul.f32 -0.1, %v2586_v25  ;;  %10522 = vlog2.f32 %v2398_v53  ;;  %v2144_v55 = vor.u32 1065353216, %v2016_v45  ;;  %v15274_v25 = vld [vmem:[#allocation76_spill] sm:$0xff] }
 0x3fe   : > { %7480 = vmatmul.mubr.bf16.gmra.mxu0 %v3445_v1  ;;  %v1501_v54 = vmul.u32 2221713035, %v1373_v34  ;;  %10524 = vlog2.f32 %v2402_v49  ;;  %v2148_v9 = vor.u32 1065353216, %v2020_v59  ;;  %v1505_v13 = vmul.u32 2221713035, %v1377_v61 }
 0x3ff   : > { %v2779_v20 = vmul.f32 -0.1, %v2594_v58  ;;  %v3159_v37 = vor.u32 %v2903_v46, %v2775_v27  ;;  %v2400_v4 = vsub.f32 2.0, %v2144_v55  ;;  %v863_v29 = vxor.u32 %v8560_v23, %v479_v12 }
 0x400   : > { %v8814_v47 = vshrl.u32 %v1501_v54, 16  ;;  %v2404_v62 = vsub.f32 2.0, %v2148_v9  ;;  %v867_v51 = vxor.u32 %v8564_v40, %v483_v24  ;;  %v8818_v16 = vshrl.u32 %v1505_v13, 16 }
 0x401   : > { %v3163_v31 = vor.u32 %v2907_v17, %v2779_v20  ;;  %10526 = vlog2.f32 %v2400_v4  ;;  %v991_v2 = vmul.u32 2146121005, %v863_v29  ;;  %v2910_v12 = vand.u32 2147483648, %v13126_v26 }
 0x402   : > { %v13141_v15 = vxor.u32 %v8814_v47, %v1501_v54  ;;  %10528 = vlog2.f32 %v2404_v62  ;;  %v995_v7 = vmul.u32 2146121005, %v867_v51  ;;  %v13143_v39 = vxor.u32 %v8818_v16, %v1505_v13 }
 0x403   : > { %v3447_v18 = vpack.c.bf16 %v3163_v31, %v3159_v37  ;;  %v8688_v22 = vshrl.u32 %v991_v2, 15  ;;  %v2914_v0 = vand.u32 2147483648, %v13128_v11  ;;  %v486_v52 = vxor.u32 %v11026_v60, %v15271_v5 }
 0x404   : > { %v2013_v46 = vand.u32 8388607, %v13141_v15  ;;  %v8692_v63 = vshrl.u32 %v995_v7, 15  ;;  %v2017_v8 = vand.u32 8388607, %v13143_v39  ;;  %v490_v17 = vxor.u32 %v11026_v60, %v15272_v57 }
 0x405   : > { %7641 = vmatmul.mubr.bf16.gmra.mxu1 %v3447_v18  ;;  %v1375_v14 = vxor.u32 %v8688_v22, %v991_v2  ;;  %v488_v56 = vxor.u32 %v11026_v60, %v15273_v33  ;;  %v8567_v30 = vshrl.u32 %v486_v52, 16  ;;  %v492_v45 = vxor.u32 %v11026_v60, %v15274_v25  ;;  %v13165_v18 = vpop.f32.mrf.mxu0 }
 0x406   : > { %v2141_v24 = vor.u32 1065353216, %v2013_v46  ;;  %v1379_v21 = vxor.u32 %v8692_v63, %v995_v7  ;;  %v2145_v6 = vor.u32 1065353216, %v2017_v8  ;;  %v8571_v35 = vshrl.u32 %v490_v17, 16  ;;  %v13167_v7 = vpop.f32.mrf.mxu1 }
 0x407   : > { %v1503_v36 = vmul.u32 2221713035, %v1375_v14  ;;  %v8569_v41 = vshrl.u32 %v488_v56, 16  ;;  %v870_v49 = vxor.u32 %v8567_v30, %v486_v52  ;;  %v8573_v58 = vshrl.u32 %v492_v45, 16 }
 0x408   : > { %v2397_v23 = vsub.f32 2.0, %v2141_v24  ;;  %v1507_v26 = vmul.u32 2221713035, %v1379_v21  ;;  %v2401_v11 = vsub.f32 2.0, %v2145_v6  ;;  %v874_v34 = vxor.u32 %v8571_v35, %v490_v17 }
 0x409   : > { %v8816_v40 = vshrl.u32 %v1503_v36, 16  ;;  %v2912_v61 = vand.u32 2147483648, %v13135_v44  ;;  %v998_v37 = vmul.u32 2146121005, %v870_v49  ;;  %v2916_v13 = vand.u32 2147483648, %v13137_v50 }
 0x40a   : > { %10530 = vlog2.f32 %v2397_v23  ;;  %v10523_v1 = vpop.eup %10522  ;;  %v8820_v53 = vshrl.u32 %v1507_v26, 16  ;;  %v1002_v9 = vmul.u32 2146121005, %v874_v34  ;;  %v872_v29 = vxor.u32 %v8569_v41, %v488_v56  ;;  %v13169_v56 = vpop.f32.mrf.mxu0 }
 0x40b   : > { %v10525_v27 = vpop.eup %10524  ;;  %v2600_v59 = vmul.f32 0.6931472, %v10523_v1  ;;  %10532 = vlog2.f32 %v2401_v11  ;;  %v13158_v55 = vxor.u32 %v8816_v40, %v1503_v36  ;;  %v8695_v16 = vshrl.u32 %v998_v37, 15  ;;  %v15275_v1 = vld [vmem:[#allocation77_spill] sm:$0xff] }
 0x40c   : > { %v2608_v54 = vmul.f32 0.6931472, %v10525_v27  ;;  %v13160_v20 = vxor.u32 %v8820_v53, %v1507_v26  ;;  %v876_v44 = vxor.u32 %v8573_v58, %v492_v45  ;;  %v8699_v8 = vshrl.u32 %v1002_v9, 15  ;;  %v13171_v26 = vpop.f32.mrf.mxu1 }
 0x40d   : > { %v2782_v4 = vmul.f32 -0.1, %v2600_v59  ;;  %v2015_v47 = vand.u32 8388607, %v13158_v55  ;;  %v1382_v21 = vxor.u32 %v8695_v16, %v998_v37  ;;  %v1000_v17 = vmul.u32 2146121005, %v872_v29 }
 0x40e   : > { %v10527_v31 = vpop.eup %10526  ;;  %v2786_v62 = vmul.f32 -0.1, %v2608_v54  ;;  %v2019_v51 = vand.u32 8388607, %v13160_v20  ;;  %v1386_v57 = vxor.u32 %v8699_v8, %v1002_v9  ;;  %v1004_v35 = vmul.u32 2146121005, %v876_v44  ;;  %v13182_v54 = vpop.f32.mrf.mxu1 }
 0x40f   : > { %v10529_v2 = vpop.eup %10528  ;;  %v3166_v46 = vor.u32 %v2910_v12, %v2782_v4  ;;  %v2604_v22 = vmul.f32 0.6931472, %v10527_v31  ;;  %v2143_v63 = vor.u32 1065353216, %v2015_v47  ;;  %v1510_v33 = vmul.u32 2221713035, %v1382_v21 }
 0x410   : > { %v3170_v24 = vor.u32 %v2914_v0, %v2786_v62  ;;  %v2612_v50 = vmul.f32 0.6931472, %v10529_v2  ;;  %v2147_v14 = vor.u32 1065353216, %v2019_v51  ;;  %v1514_v30 = vmul.u32 2221713035, %v1386_v57 }
 0x411   : > { %v2784_v5 = vmul.f32 -0.1, %v2604_v22  ;;  %v2399_v52 = vsub.f32 2.0, %v2143_v63  ;;  %v8823_v25 = vshrl.u32 %v1510_v33, 16  ;;  %v8697_v45 = vshrl.u32 %v1000_v17, 15  ;;  %v15276_v63 = vld [vmem:[#allocation78_spill] sm:$0xff] }
 0x412   : > { %v3450_v6 = vpack.c.bf16 %v3170_v24, %v3166_v46  ;;  %v2788_v23 = vmul.f32 -0.1, %v2612_v50  ;;  %v2403_v36 = vsub.f32 2.0, %v2147_v14  ;;  %v8827_v11 = vshrl.u32 %v1514_v30, 16  ;;  %v13193_v50 = vpop.f32.mrf.mxu1 }
 0x413   : > { %v3168_v12 = vor.u32 %v2912_v61, %v2784_v5  ;;  %10534 = vlog2.f32 %v2399_v52  ;;  %v8701_v40 = vshrl.u32 %v1004_v35, 15  ;;  %v485_v41 = vxor.u32 %v11026_v60, %v12068_v19  ;;  %v13180_v61 = vpop.f32.mrf.mxu0 }
 0x414   : > { %7487 = vmatprep.mubr.bf16.mxu0 %v3450_v6  ;;  %v3172_v0 = vor.u32 %v2916_v13, %v2788_v23  ;;  %10536 = vlog2.f32 %v2403_v36  ;;  %v489_v53 = vxor.u32 %v11026_v60, %v15275_v1  ;;  %v2909_v58 = vand.u32 2147483648, %v13141_v15 }
 0x415   : > { %v13178_v27 = vxor.u32 %v8823_v25, %v1510_v33  ;;  %v1384_v59 = vxor.u32 %v8697_v45, %v1000_v17  ;;  %v13184_v9 = vxor.u32 %v8827_v11, %v1514_v30  ;;  %v1388_v4 = vxor.u32 %v8701_v40, %v1004_v35  ;;  %v13191_v24 = vpop.f32.mrf.mxu0  ;;  %v13205_v11 = vpop.f32.mrf.mxu1 }
 0x416   : > { %v3452_v34 = vpack.c.bf16 %v3172_v0, %v3168_v12  ;;  %v8566_v13 = vshrl.u32 %v485_v41, 16  ;;  %v2913_v47 = vand.u32 2147483648, %v13143_v39  ;;  %v8570_v15 = vshrl.u32 %v489_v53, 16  ;;  %v15277_v12 = vld [vmem:[#allocation79_spill] sm:$0xff] }
 0x417   : > { %v10531_v49 = vpop.eup %10530  ;;  %v2022_v29 = vand.u32 8388607, %v13178_v27  ;;  %v1512_v31 = vmul.u32 2221713035, %v1384_v59  ;;  %v2026_v16 = vand.u32 8388607, %v13184_v9  ;;  %v487_v8 = vxor.u32 %v11026_v60, %v15276_v63  ;;  %v13203_v45 = vpop.f32.mrf.mxu0 }
 0x418   : > { %v2598_v37 = vmul.f32 0.6931472, %v10531_v49  ;;  %v10533_v19 = vpop.eup %10532  ;;  %7648 = vmatprep.mubr.bf16.mxu1 %v3452_v34  ;;  %v869_v44 = vxor.u32 %v8566_v13, %v485_v41  ;;  %v1516_v46 = vmul.u32 2221713035, %v1388_v4  ;;  %v873_v5 = vxor.u32 %v8570_v15, %v489_v53 }
 0x419   : > { %v2606_v62 = vmul.f32 0.6931472, %v10533_v19  ;;  %v2150_v2 = vor.u32 1065353216, %v2022_v29  ;;  %v8825_v22 = vshrl.u32 %v1512_v31, 16  ;;  %v2154_v21 = vor.u32 1065353216, %v2026_v16  ;;  %v13211_v16 = vpop.f32.mrf.mxu1 }
 0x41a   : > { %v2781_v51 = vmul.f32 -0.1, %v2598_v37  ;;  %v8829_v57 = vshrl.u32 %v1516_v46, 16  ;;  %v997_v6 = vmul.u32 2146121005, %v869_v44  ;;  %v491_v30 = vxor.u32 %v11026_v60, %v15277_v12 }
 0x41b   : > { %v2785_v39 = vmul.f32 -0.1, %v2606_v62  ;;  %v2406_v52 = vsub.f32 2.0, %v2150_v2  ;;  %v13195_v17 = vxor.u32 %v8825_v22, %v1512_v31  ;;  %v2410_v36 = vsub.f32 2.0, %v2154_v21 }
 0x41c   : > { %v3165_v14 = vor.u32 %v2909_v58, %v2781_v51  ;;  %v1001_v33 = vmul.u32 2146121005, %v873_v5  ;;  %v2911_v35 = vand.u32 2147483648, %v13158_v55  ;;  %v13200_v0 = vxor.u32 %v8829_v57, %v1516_v46  ;;  %v13209_v51 = vpop.f32.mrf.mxu0 }
 0x41d   : > { %v3169_v23 = vor.u32 %v2913_v47, %v2785_v39  ;;  %10538 = vlog2.f32 %v2406_v52  ;;  %v2024_v25 = vand.u32 8388607, %v13195_v17  ;;  %v8694_v41 = vshrl.u32 %v997_v6, 15 }
 0x41e   : > { %10540 = vlog2.f32 %v2410_v36  ;;  %v8698_v1 = vshrl.u32 %v1001_v33, 15  ;;  %v2915_v49 = vand.u32 2147483648, %v13160_v20  ;;  %v2028_v34 = vand.u32 8388607, %v13200_v0 }
 0x41f   : > { %v3449_v40 = vpack.c.bf16 %v3169_v23, %v3165_v14  ;;  %v2152_v58 = vor.u32 1065353216, %v2024_v25  ;;  %v8568_v55 = vshrl.u32 %v487_v8, 16  ;;  %v1381_v4 = vxor.u32 %v8694_v41, %v997_v6  ;;  %v13215_v6 = vpop.f32.mrf.mxu1 }
 0x420   : > { %v10535_v53 = vpop.eup %10534  ;;  %v1385_v13 = vxor.u32 %v8698_v1, %v1001_v33  ;;  %v8572_v19 = vshrl.u32 %v491_v30, 16  ;;  %v2156_v29 = vor.u32 1065353216, %v2028_v34  ;;  %v2918_v25 = vand.u32 2147483648, %v13178_v27 }
 0x421   : > { %v10537_v59 = vpop.eup %10536  ;;  %7488 = vmatmul.mubr.bf16.gmra.mxu0 %v3449_v40  ;;  %v2602_v37 = vmul.f32 0.6931472, %v10535_v53  ;;  %v2408_v31 = vsub.f32 2.0, %v2152_v58  ;;  %v871_v15 = vxor.u32 %v8568_v55, %v487_v8  ;;  %v1509_v20 = vmul.u32 2221713035, %v1381_v4  ;;  %v13213_v8 = vpop.f32.mrf.mxu0  ;;  %v15279_v4 = vld [vmem:[#allocation81_spill] sm:$0xff] }
 0x422   : > { %v2610_v47 = vmul.f32 0.6931472, %v10537_v59  ;;  %v1513_v44 = vmul.u32 2221713035, %v1385_v13  ;;  %v875_v2 = vxor.u32 %v8572_v19, %v491_v30  ;;  %v2412_v22 = vsub.f32 2.0, %v2156_v29  ;;  %v13232_v59 = vpop.f32.mrf.mxu1 }
 0x423   : > { %v2783_v62 = vmul.f32 -0.1, %v2602_v37  ;;  %10542 = vlog2.f32 %v2408_v31  ;;  %v999_v63 = vmul.u32 2146121005, %v871_v15  ;;  %v8822_v14 = vshrl.u32 %v1509_v20, 16  ;;  %v13230_v55 = vpop.f32.mrf.mxu0  ;;  %v15278_v37 = vld [vmem:[#allocation80_spill] sm:$0xff] }
 0x424   : > { %v2787_v46 = vmul.f32 -0.1, %v2610_v47  ;;  %v8826_v21 = vshrl.u32 %v1513_v44, 16  ;;  %v1003_v5 = vmul.u32 2146121005, %v875_v2  ;;  %10544 = vlog2.f32 %v2412_v22 }
 0x425   : > { %v3167_v39 = vor.u32 %v2911_v35, %v2783_v62  ;;  %v8696_v57 = vshrl.u32 %v999_v63, 15  ;;  %v13217_v23 = vxor.u32 %v8822_v14, %v1509_v20  ;;  %v13223_v35 = vadd.f32 %v13169_v56, %v13165_v18  ;;  %v13243_v14 = vpop.f32.mrf.mxu1 }
 0x426   : > { %v3171_v52 = vor.u32 %v2915_v49, %v2787_v46  ;;  %v13219_v36 = vxor.u32 %v8826_v21, %v1513_v44  ;;  %v8700_v33 = vshrl.u32 %v1003_v5, 15  ;;  %v2922_v1 = vand.u32 2147483648, %v13184_v9 }
 0x427   : > { %v1383_v30 = vxor.u32 %v8696_v57, %v999_v63  ;;  %v2021_v40 = vand.u32 8388607, %v13217_v23  ;;  %v2920_v53 = vand.u32 2147483648, %v13195_v17  ;;  %v494_v27 = vxor.u32 %v11026_v60, %v15278_v37 }
 0x428   : > { %v3451_v12 = vpack.c.bf16 %v3171_v52, %v3167_v39  ;;  %v2025_v41 = vand.u32 8388607, %v13219_v36  ;;  %v1387_v49 = vxor.u32 %v8700_v33, %v1003_v5  ;;  %v498_v13 = vxor.u32 %v11026_v60, %v15279_v4  ;;  %v13241_v39 = vpop.f32.mrf.mxu0  ;;  %v15280_v5 = vld [vmem:[#allocation82_spill] sm:$0xff] }
 0x429   : > { %v1511_v34 = vmul.u32 2221713035, %v1383_v30  ;;  %v2149_v18 = vor.u32 1065353216, %v2021_v40  ;;  %v2924_v9 = vand.u32 2147483648, %v13200_v0  ;;  %v8575_v20 = vshrl.u32 %v494_v27, 16 }
 0x42a   : > { %7649 = vmatmul.mubr.bf16.gmra.mxu1 %v3451_v12  ;;  %v10539_v58 = vpop.eup %10538  ;;  %v2153_v56 = vor.u32 1065353216, %v2025_v41  ;;  %v1515_v17 = vmul.u32 2221713035, %v1387_v49  ;;  %v8579_v22 = vshrl.u32 %v498_v13, 16  ;;  %v496_v0 = vxor.u32 %v11026_v60, %v15280_v5  ;;  %v15281_v49 = vld [vmem:[#allocation83_spill] sm:$0xff]  ;;  %v13254_v4 = vpop.f32.mrf.mxu0 }
 0x42b   : > { %v10541_v19 = vpop.eup %10540  ;;  %v2616_v47 = vmul.f32 0.6931472, %v10539_v58  ;;  %v8824_v29 = vshrl.u32 %v1511_v34, 16  ;;  %v2405_v15 = vsub.f32 2.0, %v2149_v18  ;;  %v878_v21 = vxor.u32 %v8575_v20, %v494_v27 }
 0x42c   : > { %v2624_v31 = vmul.f32 0.6931472, %v10541_v19  ;;  %v2409_v62 = vsub.f32 2.0, %v2153_v56  ;;  %v8828_v2 = vshrl.u32 %v1515_v17, 16  ;;  %v882_v40 = vxor.u32 %v8579_v22, %v498_v13  ;;  %v13256_v19 = vpop.f32.mrf.mxu1  ;;  %v13258_v5 = vpop.f32.mrf.mxu0 }
 0x42d   : > { %v2790_v44 = vmul.f32 -0.1, %v2616_v47  ;;  %v13239_v46 = vxor.u32 %v8824_v29, %v1511_v34  ;;  %10546 = vlog2.f32 %v2405_v15  ;;  %v1006_v41 = vmul.u32 2146121005, %v878_v21 }
 0x42e   : > { %v2794_v63 = vmul.f32 -0.1, %v2624_v31  ;;  %10548 = vlog2.f32 %v2409_v62  ;;  %v13247_v57 = vxor.u32 %v8828_v2, %v1515_v17  ;;  %v500_v34 = vxor.u32 %v11026_v60, %v15281_v49 }
 0x42f   : > { %v3174_v52 = vor.u32 %v2918_v25, %v2790_v44  ;;  %v2023_v33 = vand.u32 8388607, %v13239_v46  ;;  %v1010_v47 = vmul.u32 2146121005, %v882_v40  ;;  %v8703_v17 = vshrl.u32 %v1006_v41, 15 }
 0x430   : > { %v10543_v12 = vpop.eup %10542  ;;  %v3178_v30 = vor.u32 %v2922_v1, %v2794_v63  ;;  %v2027_v56 = vand.u32 8388607, %v13247_v57  ;;  %v8577_v1 = vshrl.u32 %v496_v0, 16  ;;  %v8581_v44 = vshrl.u32 %v500_v34, 16 }
 0x431   : > { %v2620_v58 = vmul.f32 0.6931472, %v10543_v12  ;;  %v2151_v37 = vor.u32 1065353216, %v2023_v33  ;;  %v10545_v27 = vpop.eup %10544  ;;  %v8707_v62 = vshrl.u32 %v1010_v47, 15  ;;  %v1390_v20 = vxor.u32 %v8703_v17, %v1006_v41  ;;  %v15283_v41 = vld [vmem:[#allocation85_spill] sm:$0xff] }
 0x432   : > { %v3454_v25 = vpack.c.bf16 %v3178_v30, %v3174_v52  ;;  %v2628_v13 = vmul.f32 0.6931472, %v10545_v27  ;;  %v2155_v31 = vor.u32 1065353216, %v2027_v56  ;;  %v880_v2 = vxor.u32 %v8577_v1, %v496_v0  ;;  %v13260_v52 = vpop.f32.mrf.mxu1 }
 0x433   : > { %v2792_v29 = vmul.f32 -0.1, %v2620_v58  ;;  %v2407_v15 = vsub.f32 2.0, %v2151_v37  ;;  %v1394_v33 = vxor.u32 %v8707_v62, %v1010_v47  ;;  %v1518_v12 = vmul.u32 2221713035, %v1390_v20  ;;  %v15282_v58 = vld [vmem:[#allocation84_spill] sm:$0xff] }
 0x434   : > { %7495 = vmatprep.mubr.bf16.mxu0 %v3454_v25  ;;  %v2796_v22 = vmul.f32 -0.1, %v2628_v13  ;;  %v2411_v21 = vsub.f32 2.0, %v2155_v31  ;;  %v884_v30 = vxor.u32 %v8581_v44, %v500_v34  ;;  %v1008_v40 = vmul.u32 2146121005, %v880_v2  ;;  %v13268_v34 = vpop.f32.mrf.mxu0 }
 0x435   : > { %v3176_v63 = vor.u32 %v2920_v53, %v2792_v29  ;;  %10550 = vlog2.f32 %v2407_v15  ;;  %v493_v56 = vxor.u32 %v11026_v60, %v15282_v58  ;;  %v497_v0 = vxor.u32 %v11026_v60, %v15283_v41  ;;  %v15284_v29 = vld [vmem:[#allocation86_spill] sm:$0xff]  ;;  %v15285_v41 = vld [vmem:[#allocation87_spill] sm:$0xff] }
 0x436   : > { %v3180_v49 = vor.u32 %v2924_v9, %v2796_v22  ;;  %10552 = vlog2.f32 %v2411_v21  ;;  %v1522_v37 = vmul.u32 2221713035, %v1394_v33  ;;  %v8831_v53 = vshrl.u32 %v1518_v12, 16  ;;  %v13270_v9 = vpop.f32.mrf.mxu1 }
 0x437   : > { %v1012_v27 = vmul.u32 2146121005, %v884_v30  ;;  %v8705_v25 = vshrl.u32 %v1008_v40, 15  ;;  %v8574_v1 = vshrl.u32 %v493_v56, 16  ;;  %v8578_v13 = vshrl.u32 %v497_v0, 16 }
 0x438   : > { %v3456_v17 = vpack.c.bf16 %v3180_v49, %v3176_v63  ;;  %v495_v47 = vxor.u32 %v11026_v60, %v15284_v29  ;;  %v8835_v31 = vshrl.u32 %v1522_v37, 16  ;;  %v13272_v15 = vxor.u32 %v8831_v53, %v1518_v12 }
 0x439   : > { %v8709_v62 = vshrl.u32 %v1012_v27, 15  ;;  %v1392_v20 = vxor.u32 %v8705_v25, %v1008_v40  ;;  %v2921_v2 = vand.u32 2147483648, %v13219_v36  ;;  %v2919_v22 = vand.u32 2147483648, %v13239_v46  ;;  %v13282_v46 = vpop.f32.mrf.mxu0 }
 0x43a   : > { %v10547_v44 = vpop.eup %10546  ;;  %7656 = vmatprep.mubr.bf16.mxu1 %v3456_v17  ;;  %v877_v63 = vxor.u32 %v8574_v1, %v493_v56  ;;  %v881_v21 = vxor.u32 %v8578_v13, %v497_v0  ;;  %v13276_v49 = vxor.u32 %v8835_v31, %v1522_v37  ;;  %v2030_v58 = vand.u32 8388607, %v13272_v15  ;;  %v13284_v56 = vpop.f32.mrf.mxu1 }
 0x43b   : > { %v10549_v33 = vpop.eup %10548  ;;  %v2614_v30 = vmul.f32 0.6931472, %v10547_v44  ;;  %v499_v12 = vxor.u32 %v11026_v60, %v15285_v41  ;;  %v1396_v29 = vxor.u32 %v8709_v62, %v1012_v27  ;;  %v1520_v40 = vmul.u32 2221713035, %v1392_v20  ;;  %15286 = vst [vmem:[#allocation27_spill] sm:$0xff] %v13284_v56 }
 0x43c   : > { %v2622_v53 = vmul.f32 0.6931472, %v10549_v33  ;;  %v1005_v25 = vmul.u32 2146121005, %v877_v63  ;;  %v2034_v36 = vand.u32 8388607, %v13276_v49 }
 0x43d   : > { %v2789_v17 = vmul.f32 -0.1, %v2614_v30  ;;  %v2158_v18 = vor.u32 1065353216, %v2030_v58  ;;  %v8576_v0 = vshrl.u32 %v495_v47, 16  ;;  %v1524_v1 = vmul.u32 2221713035, %v1396_v29  ;;  %v13292_v29 = vpop.f32.mrf.mxu1 }
 0x43e   : > { %v2793_v37 = vmul.f32 -0.1, %v2622_v53  ;;  %v8833_v13 = vshrl.u32 %v1520_v40, 16  ;;  %v8702_v31 = vshrl.u32 %v1005_v25, 15  ;;  %v15287_v44 = vand.u32 2147483648, %v13217_v23  ;;  %v13290_v53 = vpop.f32.mrf.mxu0 }
 0x43f   : > { %v2162_v33 = vor.u32 1065353216, %v2034_v36  ;;  %v2414_v27 = vsub.f32 2.0, %v2158_v18  ;;  %v1009_v62 = vmul.u32 2146121005, %v881_v21  ;;  %v8837_v63 = vshrl.u32 %v1524_v1, 16 }
 0x440   : > { %v3173_v41 = vor.u32 %v15287_v44, %v2789_v17  ;;  %v3177_v20 = vor.u32 %v2921_v2, %v2793_v37  ;;  %v13288_v30 = vxor.u32 %v8833_v13, %v1520_v40  ;;  %v1389_v58 = vxor.u32 %v8702_v31, %v1005_v25 }
 0x441   : > { %v2418_v42 = vsub.f32 2.0, %v2162_v33  ;;  %10554 = vlog2.f32 %v2414_v27  ;;  %v8706_v3 = vshrl.u32 %v1009_v62, 15  ;;  %v8580_v38 = vshrl.u32 %v499_v12, 16  ;;  %v13301_v33 = vpop.f32.mrf.mxu0  ;;  %v13303_v27 = vpop.f32.mrf.mxu1 }
 0x442   : > { %v10551_v48 = vpop.eup %10550  ;;  %v3453_v56 = vpack.c.bf16 %v3177_v20, %v3173_v41  ;;  %v13294_v17 = vxor.u32 %v8837_v63, %v1524_v1  ;;  %v2032_v18 = vand.u32 8388607, %v13288_v30  ;;  %v2923_v21 = vand.u32 2147483648, %v13247_v57  ;;  %15288 = vst [vmem:[#allocation12_spill] sm:$0xff] %v13303_v27 }
 0x443   : > { %v2618_v23 = vmul.f32 0.6931472, %v10551_v48  ;;  %v10553_v2 = vpop.eup %10552  ;;  %10556 = vlog2.f32 %v2418_v42  ;;  %v1393_v40 = vxor.u32 %v8706_v3, %v1009_v62  ;;  %v1517_v25 = vmul.u32 2221713035, %v1389_v58 }
 0x444   : > { %7496 = vmatmul.mubr.bf16.gmra.mxu0 %v3453_v56  ;;  %v2626_v36 = vmul.f32 0.6931472, %v10553_v2  ;;  %v2036_v13 = vand.u32 8388607, %v13294_v17  ;;  %v879_v31 = vxor.u32 %v8576_v0, %v495_v47  ;;  %v9559_v44 = vadd.f32 %v13171_v26, %v13167_v7  ;;  %v13313_v2 = vpop.f32.mrf.mxu0 }
 0x445   : > { %v2791_v37 = vmul.f32 -0.1, %v2618_v23  ;;  %v2160_v48 = vor.u32 1065353216, %v2032_v18  ;;  %v1521_v1 = vmul.u32 2221713035, %v1393_v40  ;;  %v8830_v41 = vshrl.u32 %v1517_v25, 16 }
 0x446   : > { %v2795_v57 = vmul.f32 -0.1, %v2626_v36  ;;  %v2164_v3 = vor.u32 1065353216, %v2036_v13  ;;  %v883_v62 = vxor.u32 %v8580_v38, %v499_v12  ;;  %v1007_v58 = vmul.u32 2146121005, %v879_v31 }
 0x447   : > { %v3175_v42 = vor.u32 %v2919_v22, %v2791_v37  ;;  %v2416_v56 = vsub.f32 2.0, %v2160_v48  ;;  %v8834_v20 = vshrl.u32 %v1521_v1, 16  ;;  %v13305_v63 = vxor.u32 %v8830_v41, %v1517_v25  ;;  %v13315_v22 = vpop.f32.mrf.mxu1 }
 0x448   : > { %v3179_v47 = vor.u32 %v2923_v21, %v2795_v57  ;;  %v2420_v0 = vsub.f32 2.0, %v2164_v3  ;;  %v1011_v23 = vmul.u32 2146121005, %v883_v62  ;;  %v13308_v7 = vadd.f32 %v9559_v44, %v13223_v35  ;;  %15290 = vst [vmem:[#allocation14_spill] sm:$0xff] %v13315_v22  ;;  %v13331_v57 = vpop.f32.mrf.mxu0  ;;  %v15294_v62 = vld [vmem:[#allocation89_spill] sm:$0xff] }
 0x449   : > { %10558 = vlog2.f32 %v2416_v56  ;;  %v13310_v26 = vxor.u32 %v8834_v20, %v1521_v1  ;;  %v2029_v18 = vand.u32 8388607, %v13305_v63  ;;  %v8704_v12 = vshrl.u32 %v1007_v58, 15  ;;  %15292 = vst [vmem:[#allocation15_spill] sm:$0xff] %v13331_v57 }
 0x44a   : > { %15289 = vst [vmem:[#allocation13_spill] sm:$0xff] %v13308_v7  ;;  %v3455_v38 = vpack.c.bf16 %v3179_v47, %v3175_v42  ;;  %10560 = vlog2.f32 %v2420_v0  ;;  %v8708_v40 = vshrl.u32 %v1011_v23, 15  ;;  %v13319_v21 = vadd.f32 %v13191_v24, %v13180_v61  ;;  %v15291_v61 = vld [vmem:[#allocation88_spill] sm:$0xff] }
 0x44b   : > { %v13323_v35 = vadd.f32 %v13193_v50, %v13182_v54  ;;  %v2033_v25 = vand.u32 8388607, %v13310_v26  ;;  %v2157_v36 = vor.u32 1065353216, %v2029_v18  ;;  %v2926_v37 = vand.u32 2147483648, %v13272_v15  ;;  %v13333_v54 = vpop.f32.mrf.mxu1 }
 0x44c   : > { %7657 = vmatmul.mubr.bf16.gmra.mxu1 %v3455_v38  ;;  %v2930_v13 = vand.u32 2147483648, %v13276_v49  ;;  %v1391_v31 = vxor.u32 %v8704_v12, %v1007_v58  ;;  %v1395_v44 = vxor.u32 %v8708_v40, %v1011_v23  ;;  %v502_v24 = vxor.u32 %v11026_v60, %v15291_v61  ;;  %15293 = vst [vmem:[#allocation16_spill] sm:$0xff] %v13333_v54  ;;  %v15295_v38 = vld [vmem:[#allocation90_spill] sm:$0xff] }
 0x44d   : > { %v2161_v1 = vor.u32 1065353216, %v2033_v25  ;;  %v2413_v41 = vsub.f32 2.0, %v2157_v36  ;;  %v506_v49 = vxor.u32 %v11026_v60, %v15294_v62  ;;  %v504_v12 = vxor.u32 %v11026_v60, %v15295_v38 }
 0x44e   : > { %v10555_v50 = vpop.eup %10554  ;;  %v1519_v3 = vmul.u32 2221713035, %v1391_v31  ;;  %v1523_v15 = vmul.u32 2221713035, %v1395_v44  ;;  %v8583_v58 = vshrl.u32 %v502_v24, 16  ;;  %v13340_v31 = vpop.f32.mrf.mxu0 }
 0x44f   : > { %v2632_v56 = vmul.f32 0.6931472, %v10555_v50  ;;  %v2417_v20 = vsub.f32 2.0, %v2161_v1  ;;  %10562 = vlog2.f32 %v2413_v41  ;;  %v8587_v18 = vshrl.u32 %v506_v49, 16  ;;  %15296 = vst [vmem:[#allocation17_spill] sm:$0xff] %v13340_v31  ;;  %v13342_v44 = vpop.f32.mrf.mxu1  ;;  %v15298_v50 = vld [vmem:[#allocation91_spill] sm:$0xff] }
 0x450   : > { %v10557_v47 = vpop.eup %10556  ;;  %v8832_v0 = vshrl.u32 %v1519_v3, 16  ;;  %v8836_v23 = vshrl.u32 %v1523_v15, 16  ;;  %v886_v36 = vxor.u32 %v8583_v58, %v502_v24  ;;  %15297 = vst [vmem:[#allocation18_spill] sm:$0xff] %v13342_v44  ;;  %v508_v62 = vxor.u32 %v11026_v60, %v15298_v50 }
 0x451   : > { %v2640_v40 = vmul.f32 0.6931472, %v10557_v47  ;;  %v2798_v25 = vmul.f32 -0.1, %v2632_v56  ;;  %10564 = vlog2.f32 %v2417_v20  ;;  %v890_v41 = vxor.u32 %v8587_v18, %v506_v49  ;;  %v13354_v49 = vpop.f32.mrf.mxu0 }
 0x452   : > { %v13344_v61 = vxor.u32 %v8832_v0, %v1519_v3  ;;  %v13346_v1 = vxor.u32 %v8836_v23, %v1523_v15  ;;  %v1014_v7 = vmul.u32 2146121005, %v886_v36  ;;  %v8585_v38 = vshrl.u32 %v504_v12, 16  ;;  %15299 = vst [vmem:[#allocation19_spill] sm:$0xff] %v13354_v49  ;;  %v13356_v23 = vpop.f32.mrf.mxu1  ;;  %v15301_v36 = vld [vmem:[#allocation92_spill] sm:$0xff] }
 0x453   : > { %v2802_v42 = vmul.f32 -0.1, %v2640_v40  ;;  %v3182_v48 = vor.u32 %v2926_v37, %v2798_v25  ;;  %v1018_v47 = vmul.u32 2146121005, %v890_v41  ;;  %v8589_v0 = vshrl.u32 %v508_v62, 16  ;;  %15300 = vst [vmem:[#allocation20_spill] sm:$0xff] %v13356_v23 }
 0x454   : > { %v2031_v20 = vand.u32 8388607, %v13344_v61  ;;  %v2035_v58 = vand.u32 8388607, %v13346_v1  ;;  %v8711_v15 = vshrl.u32 %v1014_v7, 15  ;;  %v888_v25 = vxor.u32 %v8585_v38, %v504_v12  ;;  %v13362_v12 = vpop.f32.mrf.mxu1 }
 0x455   : > { %v3186_v3 = vor.u32 %v2930_v13, %v2802_v42  ;;  %v501_v50 = vxor.u32 %v11026_v60, %v15301_v36  ;;  %v8715_v54 = vshrl.u32 %v1018_v47, 15  ;;  %v892_v57 = vxor.u32 %v8589_v0, %v508_v62 }
 0x456   : > { %v10559_v18 = vpop.eup %10558  ;;  %v2159_v37 = vor.u32 1065353216, %v2031_v20  ;;  %v2163_v40 = vor.u32 1065353216, %v2035_v58  ;;  %v1398_v31 = vxor.u32 %v8711_v15, %v1014_v7  ;;  %v1016_v27 = vmul.u32 2146121005, %v888_v25  ;;  %v13360_v20 = vpop.f32.mrf.mxu0 }
 0x457   : > { %v10561_v24 = vpop.eup %10560  ;;  %v3458_v56 = vpack.c.bf16 %v3186_v3, %v3182_v48  ;;  %v2636_v44 = vmul.f32 0.6931472, %v10559_v18  ;;  %v1402_v22 = vxor.u32 %v8715_v54, %v1018_v47  ;;  %v1020_v58 = vmul.u32 2146121005, %v892_v57  ;;  %v15302_v48 = vld [vmem:[#allocation93_spill] sm:$0xff]  ;;  %v13374_v36 = vpop.f32.mrf.mxu1 }
 0x458   : > { %v2644_v13 = vmul.f32 0.6931472, %v10561_v24  ;;  %v2415_v42 = vsub.f32 2.0, %v2159_v37  ;;  %v2419_v41 = vsub.f32 2.0, %v2163_v40  ;;  %v1526_v23 = vmul.u32 2221713035, %v1398_v31  ;;  %v13372_v25 = vpop.f32.mrf.mxu0 }
 0x459   : > { %7503 = vmatprep.mubr.bf16.mxu0 %v3458_v56  ;;  %v2800_v49 = vmul.f32 -0.1, %v2636_v44  ;;  %v505_v3 = vxor.u32 %v11026_v60, %v15302_v48  ;;  %v15303_v7 = vand.u32 2147483648, %v13288_v30  ;;  %v1530_v62 = vmul.u32 2221713035, %v1402_v22 }
 0x45a   : > { %v2804_v38 = vmul.f32 -0.1, %v2644_v13  ;;  %10566 = vlog2.f32 %v2415_v42  ;;  %v8839_v56 = vshrl.u32 %v1526_v23, 16  ;;  %v15304_v54 = vand.u32 2147483648, %v13294_v17 }
 0x45b   : > { %v3184_v24 = vor.u32 %v15303_v7, %v2800_v49  ;;  %10568 = vlog2.f32 %v2419_v41  ;;  %v8713_v47 = vshrl.u32 %v1016_v27, 15  ;;  %v8717_v15 = vshrl.u32 %v1020_v58, 15 }
 0x45c   : > { %v10563_v44 = vpop.eup %10562  ;;  %v3188_v31 = vor.u32 %v15304_v54, %v2804_v38  ;;  %v8582_v0 = vshrl.u32 %v501_v50, 16  ;;  %v8843_v37 = vshrl.u32 %v1530_v62, 16  ;;  %v13370_v40 = vxor.u32 %v8839_v56, %v1526_v23 }
 0x45d   : > { %v2630_v18 = vmul.f32 0.6931472, %v10563_v44  ;;  %v8586_v57 = vshrl.u32 %v505_v3, 16  ;;  %v1400_v22 = vxor.u32 %v8713_v47, %v1016_v27  ;;  %v1404_v13 = vxor.u32 %v8717_v15, %v1020_v58 }
 0x45e   : > { %v10565_v30 = vpop.eup %10564  ;;  %v3460_v49 = vpack.c.bf16 %v3188_v31, %v3184_v24  ;;  %v885_v42 = vxor.u32 %v8582_v0, %v501_v50  ;;  %v13376_v38 = vxor.u32 %v8843_v37, %v1530_v62  ;;  %v2038_v48 = vand.u32 8388607, %v13370_v40  ;;  %v13386_v31 = vpop.f32.mrf.mxu0 }
 0x45f   : > { %v2638_v41 = vmul.f32 0.6931472, %v10565_v30  ;;  %v2797_v17 = vmul.f32 -0.1, %v2630_v18  ;;  %v13381_v23 = vadd.f32 %v13323_v35, %v13319_v21  ;;  %v1528_v7 = vmul.u32 2221713035, %v1400_v22  ;;  %v13388_v62 = vpop.f32.mrf.mxu1 }
 0x460   : > { %7664 = vmatprep.mubr.bf16.mxu1 %v3460_v49  ;;  %v1532_v56 = vmul.u32 2221713035, %v1404_v13  ;;  %v889_v44 = vxor.u32 %v8586_v57, %v505_v3  ;;  %v15306_v24 = vand.u32 2147483648, %v13305_v63  ;;  %v2042_v50 = vand.u32 8388607, %v13376_v38  ;;  %v15308_v22 = vld [vmem:[#allocation94_spill] sm:$0xff] }
 0x461   : > { %15305 = vst [vmem:[#allocation24_spill] sm:$0xff] %v13381_v23  ;;  %v2801_v54 = vmul.f32 -0.1, %v2638_v41  ;;  %v2166_v58 = vor.u32 1065353216, %v2038_v48  ;;  %v13392_v47 = vadd.f32 %v13209_v51, %v13203_v45  ;;  %v8841_v21 = vshrl.u32 %v1528_v7, 16 }
 0x462   : > { %v3181_v27 = vor.u32 %v15306_v24, %v2797_v17  ;;  %v8845_v35 = vshrl.u32 %v1532_v56, 16  ;;  %v1013_v15 = vmul.u32 2146121005, %v885_v42  ;;  %v15307_v3 = vand.u32 2147483648, %v13310_v26  ;;  %v13402_v17 = vpop.f32.mrf.mxu0  ;;  %v13404_v42 = vpop.f32.mrf.mxu1 }
 0x463   : > { %v2170_v18 = vor.u32 1065353216, %v2042_v50  ;;  %v2422_v63 = vsub.f32 2.0, %v2166_v58  ;;  %v1017_v37 = vmul.u32 2146121005, %v889_v44  ;;  %v13396_v57 = vxor.u32 %v8841_v21, %v1528_v7 }
 0x464   : > { %v3185_v0 = vor.u32 %v15307_v3, %v2801_v54  ;;  %v13398_v30 = vxor.u32 %v8845_v35, %v1532_v56  ;;  %v8710_v49 = vshrl.u32 %v1013_v15, 15  ;;  %v503_v13 = vxor.u32 %v11026_v60, %v15308_v22  ;;  %v13416_v22 = vpop.f32.mrf.mxu0 }
 0x465   : > { %v2426_v45 = vsub.f32 2.0, %v2170_v18  ;;  %10570 = vlog2.f32 %v2422_v63  ;;  %v8714_v51 = vshrl.u32 %v1017_v37, 15  ;;  %v2927_v26 = vand.u32 2147483648, %v13344_v61 }
 0x466   : > { %v3457_v41 = vpack.c.bf16 %v3185_v0, %v3181_v27  ;;  %v2931_v48 = vand.u32 2147483648, %v13346_v1  ;;  %v2040_v7 = vand.u32 8388607, %v13396_v57  ;;  %v2044_v56 = vand.u32 8388607, %v13398_v30  ;;  %v15309_v27 = vld [vmem:[#allocation95_spill] sm:$0xff] }
 0x467   : > { %v10567_v44 = vpop.eup %10566  ;;  %10572 = vlog2.f32 %v2426_v45  ;;  %v1397_v54 = vxor.u32 %v8710_v49, %v1013_v15  ;;  %v1401_v24 = vxor.u32 %v8714_v51, %v1017_v37  ;;  %v507_v50 = vxor.u32 %v11026_v60, %v15309_v27 }
 0x468   : > { %7504 = vmatmul.mubr.bf16.gmra.mxu0 %v3457_v41  ;;  %v10569_v58 = vpop.eup %10568  ;;  %v2634_v21 = vmul.f32 0.6931472, %v10567_v44  ;;  %v2168_v35 = vor.u32 1065353216, %v2040_v7  ;;  %v2172_v3 = vor.u32 1065353216, %v2044_v56  ;;  %v8584_v0 = vshrl.u32 %v503_v13, 16  ;;  %v13418_v41 = vpop.f32.mrf.mxu1 }
 0x469   : > { %v13414_v61 = vadd.f32 %v13211_v16, %v13205_v11  ;;  %v2642_v1 = vmul.f32 0.6931472, %v10569_v58  ;;  %v1525_v18 = vmul.u32 2221713035, %v1397_v54  ;;  %v1529_v63 = vmul.u32 2221713035, %v1401_v24 }
 0x46a   : > { %v2799_v15 = vmul.f32 -0.1, %v2634_v21  ;;  %v2424_v37 = vsub.f32 2.0, %v2168_v35  ;;  %v2428_v49 = vsub.f32 2.0, %v2172_v3  ;;  %v8588_v45 = vshrl.u32 %v507_v50, 16  ;;  %v13428_v21 = vpop.f32.mrf.mxu0  ;;  %v13430_v35 = vpop.f32.mrf.mxu1 }
 0x46b   : > { %v2803_v51 = vmul.f32 -0.1, %v2642_v1  ;;  %v8838_v44 = vshrl.u32 %v1525_v18, 16  ;;  %v8842_v7 = vshrl.u32 %v1529_v63, 16  ;;  %v887_v56 = vxor.u32 %v8584_v0, %v503_v13  ;;  %15310 = vst [vmem:[#allocation21_spill] sm:$0xff] %v13430_v35 }
 0x46c   : > { %v13422_v27 = vadd.f32 %v13230_v55, %v13213_v8  ;;  %v3183_v11 = vor.u32 %v2927_v26, %v2799_v15  ;;  %10574 = vlog2.f32 %v2424_v37  ;;  %v891_v16 = vxor.u32 %v8588_v45, %v507_v50  ;;  %v15312_v37 = vld [vmem:[#allocation98_spill] sm:$0xff] }
 0x46d   : > { %v3187_v54 = vor.u32 %v2931_v48, %v2803_v51  ;;  %10576 = vlog2.f32 %v2428_v49  ;;  %v13424_v24 = vxor.u32 %v8838_v44, %v1525_v18  ;;  %v13426_v58 = vxor.u32 %v8842_v7, %v1529_v63  ;;  %v15311_v63 = vld [vmem:[#allocation96_spill] sm:$0xff]  ;;  %v13454_v49 = vpop.f32.mrf.mxu1  ;;  %v15315_v44 = vld [vmem:[#allocation97_spill] sm:$0xff] }
 0x46e   : > { %v13434_v13 = vadd.f32 %v13232_v59, %v13215_v6  ;;  %v13438_v8 = vadd.f32 %v13254_v4, %v13241_v39  ;;  %v1015_v55 = vmul.u32 2146121005, %v887_v56  ;;  %v1019_v26 = vmul.u32 2146121005, %v891_v16  ;;  %15314 = vst [vmem:[#allocation22_spill] sm:$0xff] %v13454_v49 }
 0x46f   : > { %v13442_v48 = vadd.f32 %v13256_v19, %v13243_v14  ;;  %v3459_v50 = vpack.c.bf16 %v3187_v54, %v3183_v11  ;;  %v2037_v3 = vand.u32 8388607, %v13424_v24  ;;  %v2041_v0 = vand.u32 8388607, %v13426_v58  ;;  %v13452_v19 = vpop.f32.mrf.mxu0 }
 0x470   : > { %v2934_v1 = vand.u32 2147483648, %v13370_v40  ;;  %v2938_v6 = vand.u32 2147483648, %v13376_v38  ;;  %v8712_v59 = vshrl.u32 %v1015_v55, 15  ;;  %v8716_v18 = vshrl.u32 %v1019_v26, 15  ;;  %15313 = vst [vmem:[#allocation25_spill] sm:$0xff] %v13452_v19 }
 0x471   : > { %7665 = vmatmul.mubr.bf16.gmra.mxu1 %v3459_v50  ;;  %v2165_v39 = vor.u32 1065353216, %v2037_v3  ;;  %v2169_v4 = vor.u32 1065353216, %v2041_v0  ;;  %v510_v15 = vxor.u32 %v11026_v60, %v15311_v63  ;;  %v514_v14 = vxor.u32 %v11026_v60, %v15312_v37  ;;  %v15316_v37 = vld [vmem:[#allocation99_spill] sm:$0xff] }
 0x472   : > { %v10571_v45 = vpop.eup %10570  ;;  %v2936_v40 = vand.u32 2147483648, %v13396_v57  ;;  %v1399_v51 = vxor.u32 %v8712_v59, %v1015_v55  ;;  %v1403_v38 = vxor.u32 %v8716_v18, %v1019_v26  ;;  %v512_v7 = vxor.u32 %v11026_v60, %v15315_v44  ;;  %v13461_v55 = vpop.f32.mrf.mxu0 }
 0x473   : > { %v2648_v56 = vmul.f32 0.6931472, %v10571_v45  ;;  %v2421_v11 = vsub.f32 2.0, %v2165_v39  ;;  %v2425_v16 = vsub.f32 2.0, %v2169_v4  ;;  %v8591_v54 = vshrl.u32 %v510_v15, 16  ;;  %15317 = vst [vmem:[#allocation26_spill] sm:$0xff] %v13461_v55  ;;  %v13463_v26 = vpop.f32.mrf.mxu1 }
 0x474   : > { %v10573_v50 = vpop.eup %10572  ;;  %v1527_v3 = vmul.u32 2221713035, %v1399_v51  ;;  %v1531_v0 = vmul.u32 2221713035, %v1403_v38  ;;  %v8595_v63 = vshrl.u32 %v514_v14, 16  ;;  %v516_v23 = vxor.u32 %v11026_v60, %v15316_v37  ;;  %15318 = vst [vmem:[#allocation23_spill] sm:$0xff] %v13463_v26 }
 0x475   : > { %v2656_v49 = vmul.f32 0.6931472, %v10573_v50  ;;  %v2806_v35 = vmul.f32 -0.1, %v2648_v56  ;;  %10578 = vlog2.f32 %v2421_v11  ;;  %v894_v57 = vxor.u32 %v8591_v54, %v510_v15  ;;  %v13472_v55 = vpop.f32.mrf.mxu1 }
 0x476   : > { %10580 = vlog2.f32 %v2425_v16  ;;  %v8840_v59 = vshrl.u32 %v1527_v3, 16  ;;  %v8844_v18 = vshrl.u32 %v1531_v0, 16  ;;  %v898_v39 = vxor.u32 %v8595_v63, %v514_v14  ;;  %v13470_v16 = vpop.f32.mrf.mxu0  ;;  %15320 = vst [vmem:[#allocation29_spill] sm:$0xff] %v13472_v55 }
 0x477   : > { %v2810_v4 = vmul.f32 -0.1, %v2656_v49  ;;  %v3190_v45 = vor.u32 %v2934_v1, %v2806_v35  ;;  %v1022_v51 = vmul.u32 2146121005, %v894_v57  ;;  %v8593_v38 = vshrl.u32 %v512_v7, 16  ;;  %15319 = vst [vmem:[#allocation28_spill] sm:$0xff] %v13470_v16  ;;  %v13481_v16 = vpop.f32.mrf.mxu1 }
 0x478   : > { %v13465_v44 = vxor.u32 %v8840_v59, %v1527_v3  ;;  %v13467_v19 = vxor.u32 %v8844_v18, %v1531_v0  ;;  %v1026_v50 = vmul.u32 2146121005, %v898_v39  ;;  %v8597_v56 = vshrl.u32 %v516_v23, 16  ;;  %v13479_v55 = vpop.f32.mrf.mxu0 }
 0x479   : > { %v10575_v11 = vpop.eup %10574  ;;  %v3194_v15 = vor.u32 %v2938_v6, %v2810_v4  ;;  %v2940_v54 = vand.u32 2147483648, %v13398_v30  ;;  %v8719_v37 = vshrl.u32 %v1022_v51, 15  ;;  %v896_v26 = vxor.u32 %v8593_v38, %v512_v7 }
 0x47a   : > { %v10577_v14 = vpop.eup %10576  ;;  %v2652_v35 = vmul.f32 0.6931472, %v10575_v11  ;;  %v2039_v1 = vand.u32 8388607, %v13465_v44  ;;  %v2043_v49 = vand.u32 8388607, %v13467_v19  ;;  %v900_v3 = vxor.u32 %v8597_v56, %v516_v23 }
 0x47b   : > { %v3462_v0 = vpack.c.bf16 %v3194_v15, %v3190_v45  ;;  %v2660_v63 = vmul.f32 0.6931472, %v10577_v14  ;;  %v2933_v57 = vand.u32 2147483648, %v13424_v24  ;;  %v509_v30 = vxor.u32 %v11026_v60, %v12385_v28 }
 0x47c   : > { %v2808_v6 = vmul.f32 -0.1, %v2652_v35  ;;  %v2167_v7 = vor.u32 1065353216, %v2039_v1  ;;  %v2171_v59 = vor.u32 1065353216, %v2043_v49  ;;  %v8723_v18 = vshrl.u32 %v1026_v50, 15 }
 0x47d   : > { %7511 = vmatprep.mubr.bf16.mxu0 %v3462_v0  ;;  %v2812_v39 = vmul.f32 -0.1, %v2660_v63  ;;  %v1406_v4 = vxor.u32 %v8719_v37, %v1022_v51  ;;  %v1024_v38 = vmul.u32 2146121005, %v896_v26  ;;  %v1028_v11 = vmul.u32 2146121005, %v900_v3  ;;  %v13485_v0 = vpop.f32.mrf.mxu0 }
 0x47e   : > { %v3192_v23 = vor.u32 %v2936_v40, %v2808_v6  ;;  %v2423_v45 = vsub.f32 2.0, %v2167_v7  ;;  %v2427_v56 = vsub.f32 2.0, %v2171_v59  ;;  %v1410_v24 = vxor.u32 %v8723_v18, %v1026_v50  ;;  %v13487_v40 = vpop.f32.mrf.mxu1 }
 0x47f   : > { %v3196_v15 = vor.u32 %v2940_v54, %v2812_v39  ;;  %v1534_v14 = vmul.u32 2221713035, %v1406_v4  ;;  %v8721_v28 = vshrl.u32 %v1024_v38, 15  ;;  %v8725_v35 = vshrl.u32 %v1028_v11, 15 }
 0x480   : > { %10582 = vlog2.f32 %v2423_v45  ;;  %v1538_v1 = vmul.u32 2221713035, %v1410_v24  ;;  %v513_v49 = vxor.u32 %v11026_v60, %v12393_v32  ;;  %v8590_v51 = vshrl.u32 %v509_v30, 16 }
 0x481   : > { %v3464_v26 = vpack.c.bf16 %v3196_v15, %v3192_v23  ;;  %10584 = vlog2.f32 %v2427_v56  ;;  %v8847_v37 = vshrl.u32 %v1534_v14, 16  ;;  %v1408_v3 = vxor.u32 %v8721_v28, %v1024_v38  ;;  %v13492_v23 = vpop.f32.mrf.mxu0  ;;  %v13494_v38 = vpop.f32.mrf.mxu1 }
 0x482   : > { %v10579_v63 = vpop.eup %10578  ;;  %v2937_v50 = vand.u32 2147483648, %v13426_v58  ;;  %v8851_v54 = vshrl.u32 %v1538_v1, 16  ;;  %v1412_v6 = vxor.u32 %v8725_v35, %v1028_v11  ;;  %v8594_v7 = vshrl.u32 %v513_v49, 16  ;;  %15321 = vst [vmem:[#allocation30_spill] sm:$0xff] %v13494_v38 }
 0x483   : > { %v10581_v59 = vpop.eup %10580  ;;  %7672 = vmatprep.mubr.bf16.mxu1 %v3464_v26  ;;  %v2646_v18 = vmul.f32 0.6931472, %v10579_v63  ;;  %v13490_v39 = vxor.u32 %v8847_v37, %v1534_v14  ;;  %v1536_v32 = vmul.u32 2221713035, %v1408_v3  ;;  %v893_v4 = vxor.u32 %v8590_v51, %v509_v30  ;;  %v13503_v35 = vpop.f32.mrf.mxu0 }
 0x484   : > { %v2654_v45 = vmul.f32 0.6931472, %v10581_v59  ;;  %v13496_v56 = vxor.u32 %v8851_v54, %v1538_v1  ;;  %v1540_v24 = vmul.u32 2221713035, %v1412_v6  ;;  %v897_v15 = vxor.u32 %v8594_v7, %v513_v49  ;;  %v13505_v30 = vpop.f32.mrf.mxu1  ;;  %v15323_v1 = vld [vmem:[#allocation100_spill] sm:$0xff] }
 0x485   : > { %v13500_v58 = vadd.f32 %v13268_v34, %v13258_v5  ;;  %v2805_v11 = vmul.f32 -0.1, %v2646_v18  ;;  %v2046_v28 = vand.u32 8388607, %v13490_v39  ;;  %v8849_v14 = vshrl.u32 %v1536_v32, 16  ;;  %15322 = vst [vmem:[#allocation31_spill] sm:$0xff] %v13505_v30  ;;  %v13512_v34 = vpop.f32.mrf.mxu0 }
 0x486   : > { %v2809_v51 = vmul.f32 -0.1, %v2654_v45  ;;  %v2050_v26 = vand.u32 8388607, %v13496_v56  ;;  %v8853_v37 = vshrl.u32 %v1540_v24, 16  ;;  %v511_v3 = vxor.u32 %v11026_v60, %v15323_v1  ;;  %15324 = vst [vmem:[#allocation32_spill] sm:$0xff] %v13512_v34  ;;  %v13514_v6 = vpop.f32.mrf.mxu1 }
 0x487   : > { %v3189_v49 = vor.u32 %v2933_v57, %v2805_v11  ;;  %v2174_v63 = vor.u32 1065353216, %v2046_v28  ;;  %v13510_v54 = vxor.u32 %v8849_v14, %v1536_v32  ;;  %v1021_v5 = vmul.u32 2146121005, %v893_v4  ;;  %15325 = vst [vmem:[#allocation33_spill] sm:$0xff] %v13514_v6  ;;  %v13521_v11 = vpop.f32.mrf.mxu0 }
 0x488   : > { %v3193_v7 = vor.u32 %v2937_v50, %v2809_v51  ;;  %v2178_v59 = vor.u32 1065353216, %v2050_v26  ;;  %v13516_v18 = vxor.u32 %v8853_v37, %v1540_v24  ;;  %v1025_v45 = vmul.u32 2146121005, %v897_v15  ;;  %15326 = vst [vmem:[#allocation34_spill] sm:$0xff] %v13521_v11  ;;  %v13523_v32 = vpop.f32.mrf.mxu1  ;;  %v15330_v37 = vld [vmem:[#allocation101_spill] sm:$0xff] }
 0x489   : > { %v9574_v30 = vadd.f32 %v13270_v9, %v13260_v52  ;;  %v2430_v38 = vsub.f32 2.0, %v2174_v63  ;;  %v2048_v1 = vand.u32 8388607, %v13510_v54  ;;  %v8718_v57 = vshrl.u32 %v1021_v5, 15  ;;  %15327 = vst [vmem:[#allocation35_spill] sm:$0xff] %v13523_v32  ;;  %v13527_v26 = vpop.f32.mrf.mxu0 }
 0x48a   : > { %v3461_v4 = vpack.c.bf16 %v3193_v7, %v3189_v49  ;;  %v2935_v28 = vand.u32 2147483648, %v13465_v44  ;;  %v2434_v14 = vsub.f32 2.0, %v2178_v59  ;;  %v2052_v50 = vand.u32 8388607, %v13516_v18  ;;  %15328 = vst [vmem:[#allocation36_spill] sm:$0xff] %v13527_v26  ;;  %v13529_v52 = vpop.f32.mrf.mxu1 }
 0x48b   : > { %10586 = vlog2.f32 %v2430_v38  ;;  %v2176_v24 = vor.u32 1065353216, %v2048_v1  ;;  %v8722_v15 = vshrl.u32 %v1025_v45, 15  ;;  %v1405_v51 = vxor.u32 %v8718_v57, %v1021_v5  ;;  %15329 = vst [vmem:[#allocation37_spill] sm:$0xff] %v13529_v52  ;;  %v13534_v1 = vpop.f32.mrf.mxu0 }
 0x48c   : > { %7512 = vmatmul.mubr.bf16.gmra.mxu0 %v3461_v4  ;;  %10588 = vlog2.f32 %v2434_v14  ;;  %v2180_v9 = vor.u32 1065353216, %v2052_v50  ;;  %v515_v63 = vxor.u32 %v11026_v60, %v15330_v37  ;;  %v8592_v49 = vshrl.u32 %v511_v3, 16  ;;  %v13536_v5 = vpop.f32.mrf.mxu1 }
 0x48d   : > { %v10583_v7 = vpop.eup %10582  ;;  %v2939_v44 = vand.u32 2147483648, %v13467_v19  ;;  %v2432_v59 = vsub.f32 2.0, %v2176_v24  ;;  %v1409_v32 = vxor.u32 %v8722_v15, %v1025_v45  ;;  %v1533_v38 = vmul.u32 2221713035, %v1405_v51  ;;  %v13538_v11 = vpop.f32.mrf.mxu0 }
 0x48e   : > { %v10585_v57 = vpop.eup %10584  ;;  %v2650_v26 = vmul.f32 0.6931472, %v10583_v7  ;;  %v2436_v52 = vsub.f32 2.0, %v2180_v9  ;;  %v8596_v4 = vshrl.u32 %v515_v63, 16  ;;  %v895_v14 = vxor.u32 %v8592_v49, %v511_v3  ;;  %15331 = vst [vmem:[#allocation38_spill] sm:$0xff] %v13538_v11  ;;  %v13540_v34 = vpop.f32.mrf.mxu1 }
 0x48f   : > { %v2658_v50 = vmul.f32 0.6931472, %v10585_v57  ;;  %10590 = vlog2.f32 %v2432_v59  ;;  %v1537_v6 = vmul.u32 2221713035, %v1409_v32  ;;  %v8846_v37 = vshrl.u32 %v1533_v38, 16  ;;  %15332 = vst [vmem:[#allocation39_spill] sm:$0xff] %v13540_v34  ;;  %v13548_v3 = vpop.f32.mrf.mxu0 }
 0x490   : > { %v2807_v19 = vmul.f32 -0.1, %v2650_v26  ;;  %10592 = vlog2.f32 %v2436_v52  ;;  %v899_v45 = vxor.u32 %v8596_v4, %v515_v63  ;;  %v1023_v24 = vmul.u32 2146121005, %v895_v14  ;;  %15334 = vst [vmem:[#allocation41_spill] sm:$0xff] %v13548_v3  ;;  %v13550_v32 = vpop.f32.mrf.mxu1 }
 0x491   : > { %v13544_v15 = vadd.f32 %v13414_v61, %v13392_v47  ;;  %v2811_v51 = vmul.f32 -0.1, %v2658_v50  ;;  %v8850_v9 = vshrl.u32 %v1537_v6, 16  ;;  %v13546_v7 = vxor.u32 %v8846_v37, %v1533_v38  ;;  %15335 = vst [vmem:[#allocation42_spill] sm:$0xff] %v13550_v32  ;;  %v13563_v57 = vpop.f32.mrf.mxu0 }
 0x492   : > { %v13554_v49 = vadd.f32 %v13434_v13, %v13422_v27  ;;  %v3191_v26 = vor.u32 %v2935_v28, %v2807_v19  ;;  %v1027_v52 = vmul.u32 2146121005, %v899_v45  ;;  %v8720_v63 = vshrl.u32 %v1023_v24, 15  ;;  %15338 = vst [vmem:[#allocation45_spill] sm:$0xff] %v13563_v57  ;;  %v13565_v4 = vpop.f32.mrf.mxu1  ;;  %v15349_v57 = vld [vmem:[#allocation104_spill] sm:$0xff] }
 0x493   : > { %15333 = vst [vmem:[#allocation40_spill] sm:$0xff] %v13544_v15  ;;  %v13558_v59 = vadd.f32 %v13442_v48, %v13438_v8  ;;  %v3195_v47 = vor.u32 %v2939_v44, %v2811_v51  ;;  %v13560_v61 = vxor.u32 %v8850_v9, %v1537_v6  ;;  %v2045_v38 = vand.u32 8388607, %v13546_v7  ;;  %15339 = vst [vmem:[#allocation46_spill] sm:$0xff] %v13565_v4  ;;  %v13573_v44 = vpop.f32.mrf.mxu0 }
 0x494   : > { %15336 = vst [vmem:[#allocation43_spill] sm:$0xff] %v13554_v49  ;;  %v13568_v14 = vadd.f32 %v9574_v30, %v13500_v58  ;;  %v2942_v27 = vand.u32 2147483648, %v13490_v39  ;;  %v8724_v13 = vshrl.u32 %v1027_v52, 15  ;;  %v1407_v28 = vxor.u32 %v8720_v63, %v1023_v24  ;;  %15341 = vst [vmem:[#allocation48_spill] sm:$0xff] %v13573_v44  ;;  %v13575_v37 = vpop.f32.mrf.mxu1  ;;  %v15343_v58 = vld [vmem:[#allocation102_spill] sm:$0xff] }
 0x495   : > { %15337 = vst [vmem:[#allocation44_spill] sm:$0xff] %v13558_v59  ;;  %v3463_v50 = vpack.c.bf16 %v3195_v47, %v3191_v26  ;;  %v2946_v8 = vand.u32 2147483648, %v13496_v56  ;;  %v2049_v48 = vand.u32 8388607, %v13560_v61  ;;  %v2173_v6 = vor.u32 1065353216, %v2045_v38  ;;  %15342 = vst [vmem:[#allocation49_spill] sm:$0xff] %v13575_v37  ;;  %v13583_v63 = vpop.f32.mrf.mxu0 }
 0x496   : > { %15340 = vst [vmem:[#allocation47_spill] sm:$0xff] %v13568_v14  ;;  %v2944_v19 = vand.u32 2147483648, %v13510_v54  ;;  %v1411_v45 = vxor.u32 %v8724_v13, %v1027_v52  ;;  %v1535_v51 = vmul.u32 2221713035, %v1407_v28  ;;  %v518_v30 = vxor.u32 %v11026_v60, %v15343_v58  ;;  %v15344_v56 = vld [vmem:[#allocation103_spill] sm:$0xff]  ;;  %15345 = vst [vmem:[#allocation51_spill] sm:$0xff] %v13583_v63  ;;  %v13585_v47 = vpop.f32.mrf.mxu1 }
 0x497   : > { %7673 = vmatmul.mubr.bf16.gmra.mxu1 %v3463_v50  ;;  %v2948_v39 = vand.u32 2147483648, %v13516_v18  ;;  %v2177_v24 = vor.u32 1065353216, %v2049_v48  ;;  %v2429_v9 = vsub.f32 2.0, %v2173_v6  ;;  %v522_v26 = vxor.u32 %v11026_v60, %v15344_v56  ;;  %15346 = vst [vmem:[#allocation50_spill] sm:$0xff] %v13585_v47  ;;  %v13589_v48 = vpop.f32.mrf.mxu0 }
 0x498   : > { %v10587_v38 = vpop.eup %10586  ;;  %v1539_v37 = vmul.u32 2221713035, %v1411_v45  ;;  %v8848_v54 = vshrl.u32 %v1535_v51, 16  ;;  %v8599_v52 = vshrl.u32 %v518_v30, 16  ;;  %v520_v13 = vxor.u32 %v11026_v60, %v12459_v43  ;;  %15347 = vst [vmem:[#allocation53_spill] sm:$0xff] %v13589_v48  ;;  %v13591_v6 = vpop.f32.mrf.mxu1 }
 0x499   : > { %v10589_v28 = vpop.eup %10588  ;;  %v2664_v50 = vmul.f32 0.6931472, %v10587_v38  ;;  %v2433_v58 = vsub.f32 2.0, %v2177_v24  ;;  %10594 = vlog2.f32 %v2429_v9  ;;  %v8603_v18 = vshrl.u32 %v522_v26, 16  ;;  %15348 = vst [vmem:[#allocation52_spill] sm:$0xff] %v13591_v6  ;;  %v13597_v32 = vpop.f32.mrf.mxu0 }
 0x49a   : > { %v2672_v56 = vmul.f32 0.6931472, %v10589_v28  ;;  %v8852_v63 = vshrl.u32 %v1539_v37, 16  ;;  %v13593_v4 = vxor.u32 %v8848_v54, %v1535_v51  ;;  %v902_v47 = vxor.u32 %v8599_v52, %v518_v30  ;;  %15350 = vst [vmem:[#allocation54_spill] sm:$0xff] %v13597_v32  ;;  %v13599_v24 = vpop.f32.mrf.mxu1 }
 0x49b   : > { %v2814_v45 = vmul.f32 -0.1, %v2664_v50  ;;  %10596 = vlog2.f32 %v2433_v58  ;;  %v906_v44 = vxor.u32 %v8603_v18, %v522_v26  ;;  %v524_v43 = vxor.u32 %v11026_v60, %v15349_v57  ;;  %15351 = vst [vmem:[#allocation55_spill] sm:$0xff] %v13599_v24  ;;  %v13604_v26 = vpop.f32.mrf.mxu0 }
 0x49c   : > { %v10591_v9 = vpop.eup %10590  ;;  %v2818_v38 = vmul.f32 -0.1, %v2672_v56  ;;  %v13601_v48 = vxor.u32 %v8852_v63, %v1539_v37  ;;  %v2047_v28 = vand.u32 8388607, %v13593_v4  ;;  %v8601_v6 = vshrl.u32 %v520_v13, 16  ;;  %15352 = vst [vmem:[#allocation56_spill] sm:$0xff] %v13604_v26  ;;  %v13606_v58 = vpop.f32.mrf.mxu1 }
 0x49d   : > { %v10593_v51 = vpop.eup %10592  ;;  %v3198_v54 = vor.u32 %v2942_v27, %v2814_v45  ;;  %v2668_v30 = vmul.f32 0.6931472, %v10591_v9  ;;  %v1030_v52 = vmul.u32 2146121005, %v902_v47  ;;  %v1034_v50 = vmul.u32 2146121005, %v906_v44  ;;  %v13610_v3 = vpop.f32.mrf.mxu0 }
 0x49e   : > { %15353 = vst [vmem:[#allocation57_spill] sm:$0xff] %v13606_v58  ;;  %v3202_v57 = vor.u32 %v2946_v8, %v2818_v38  ;;  %v2676_v18 = vmul.f32 0.6931472, %v10593_v51  ;;  %v2051_v24 = vand.u32 8388607, %v13601_v48  ;;  %v2175_v32 = vor.u32 1065353216, %v2047_v28  ;;  %v13612_v27 = vpop.f32.mrf.mxu1 }
 0x49f   : > { %v2816_v56 = vmul.f32 -0.1, %v2668_v30  ;;  %v8727_v63 = vshrl.u32 %v1030_v52, 15  ;;  %v8731_v34 = vshrl.u32 %v1034_v50, 15  ;;  %15354 = vst [vmem:[#allocation58_spill] sm:$0xff] %v13610_v3  ;;  %15355 = vst [vmem:[#allocation59_spill] sm:$0xff] %v13612_v27  ;;  %v13614_v51 = vpop.f32.mrf.mxu0  ;;  %v904_v11 = vxor.u32 %v8601_v6, %v520_v13 }
 0x4a0   : > { %v3466_v47 = vpack.c.bf16 %v3202_v57, %v3198_v54  ;;  %v2820_v44 = vmul.f32 -0.1, %v2676_v18  ;;  %v2179_v45 = vor.u32 1065353216, %v2051_v24  ;;  %v2431_v9 = vsub.f32 2.0, %v2175_v32  ;;  %15356 = vst [vmem:[#allocation60_spill] sm:$0xff] %v13614_v51  ;;  %v13616_v28 = vpop.f32.mrf.mxu1  ;;  %v15358_v54 = vld [vmem:[#allocation105_spill] sm:$0xff] }
 0x4a1   : > { %v3200_v26 = vor.u32 %v2944_v19, %v2816_v56  ;;  %v1414_v58 = vxor.u32 %v8727_v63, %v1030_v52  ;;  %v1418_v8 = vxor.u32 %v8731_v34, %v1034_v50  ;;  %v8605_v38 = vshrl.u32 %v524_v43, 16  ;;  %15357 = vst [vmem:[#allocation61_spill] sm:$0xff] %v13616_v28  ;;  %v13620_v32 = vpop.f32.mrf.mxu0  ;;  %v15361_v50 = vld [vmem:[#allocation106_spill] sm:$0xff] }
 0x4a2   : > { %7519 = vmatprep.mubr.bf16.mxu0 %v3466_v47  ;;  %v3204_v30 = vor.u32 %v2948_v39, %v2820_v44  ;;  %v2435_v37 = vsub.f32 2.0, %v2179_v45  ;;  %10598 = vlog2.f32 %v2431_v9  ;;  %v517_v24 = vxor.u32 %v11026_v60, %v15358_v54  ;;  %15359 = vst [vmem:[#allocation62_spill] sm:$0xff] %v13620_v32  ;;  %v13622_v19 = vpop.f32.mrf.mxu1 }
 0x4a3   : > { %v1542_v3 = vmul.u32 2221713035, %v1414_v58  ;;  %v1546_v14 = vmul.u32 2221713035, %v1418_v8  ;;  %v908_v27 = vxor.u32 %v8605_v38, %v524_v43  ;;  %15360 = vst [vmem:[#allocation63_spill] sm:$0xff] %v13622_v19  ;;  %v521_v57 = vxor.u32 %v11026_v60, %v15361_v50  ;;  %v13626_v6 = vpop.f32.mrf.mxu0 }
 0x4a4   : > { %v3468_v34 = vpack.c.bf16 %v3204_v30, %v3200_v26  ;;  %10600 = vlog2.f32 %v2435_v37  ;;  %v1032_v52 = vmul.u32 2146121005, %v904_v11  ;;  %v8598_v13 = vshrl.u32 %v517_v24, 16  ;;  %15362 = vst [vmem:[#allocation64_spill] sm:$0xff] %v13626_v6  ;;  %v13628_v43 = vpop.f32.mrf.mxu1  ;;  %v15364_v26 = vld [vmem:[#allocation107_spill] sm:$0xff] }
 0x4a5   : > { %v8855_v39 = vshrl.u32 %v1542_v3, 16  ;;  %v8859_v18 = vshrl.u32 %v1546_v14, 16  ;;  %v1036_v56 = vmul.u32 2146121005, %v908_v27  ;;  %15363 = vst [vmem:[#allocation65_spill] sm:$0xff] %v13628_v43  ;;  %v2945_v63 = vand.u32 2147483648, %v13560_v61  ;;  %v13637_v8 = vpop.f32.mrf.mxu0 }
 0x4a6   : > { %v10595_v58 = vpop.eup %10594  ;;  %7680 = vmatprep.mubr.bf16.mxu1 %v3468_v34  ;;  %v8729_v47 = vshrl.u32 %v1032_v52, 15  ;;  %v8602_v44 = vshrl.u32 %v521_v57, 16  ;;  %v519_v11 = vxor.u32 %v11026_v60, %v15364_v26  ;;  %15365 = vst [vmem:[#allocation67_spill] sm:$0xff] %v13637_v8  ;;  %v13639_v38 = vpop.f32.mrf.mxu1  ;;  %v901_v34 = vxor.u32 %v8598_v13, %v517_v24 }
 0x4a7   : > { %v2662_v37 = vmul.f32 0.6931472, %v10595_v58  ;;  %v13633_v45 = vxor.u32 %v8855_v39, %v1542_v3  ;;  %v13635_v9 = vxor.u32 %v8859_v18, %v1546_v14  ;;  %v8733_v27 = vshrl.u32 %v1036_v56, 15  ;;  %15366 = vst [vmem:[#allocation66_spill] sm:$0xff] %v13639_v38  ;;  %v13644_v39 = vpop.f32.mrf.mxu0 }
 0x4a8   : > { %v10597_v30 = vpop.eup %10596  ;;  %v1416_v54 = vxor.u32 %v8729_v47, %v1032_v52  ;;  %v905_v50 = vxor.u32 %v8602_v44, %v521_v57  ;;  %v523_v61 = vxor.u32 %v11026_v60, %v12505_v10  ;;  %15367 = vst [vmem:[#allocation68_spill] sm:$0xff] %v13644_v39  ;;  %v13646_v14 = vpop.f32.mrf.mxu1  ;;  %v13650_v18 = vadd.f32 %v13290_v53, %v13282_v46 }
 0x4a9   : > { %v2670_v43 = vmul.f32 0.6931472, %v10597_v30  ;;  %v2813_v19 = vmul.f32 -0.1, %v2662_v37  ;;  %v2054_v58 = vand.u32 8388607, %v13633_v45  ;;  %v1420_v3 = vxor.u32 %v8733_v27, %v1036_v56  ;;  %v13655_v37 = vpop.f32.mrf.mxu0 }
 0x4aa   : > { %15368 = vst [vmem:[#allocation69_spill] sm:$0xff] %v13646_v14  ;;  %v2058_v52 = vand.u32 8388607, %v13635_v9  ;;  %v1544_v24 = vmul.u32 2221713035, %v1416_v54  ;;  %v8600_v57 = vshrl.u32 %v519_v11, 16  ;;  %v13657_v56 = vpop.f32.mrf.mxu1 }
 0x4ab   : > { %v2817_v13 = vmul.f32 -0.1, %v2670_v43  ;;  %v15369_v10 = vand.u32 2147483648, %v13546_v7  ;;  %v2182_v44 = vor.u32 1065353216, %v2054_v58  ;;  %v1548_v26 = vmul.u32 2221713035, %v1420_v3  ;;  %v13659_v54 = vpop.f32.mrf.mxu0 }
 0x4ac   : > { %v2186_v27 = vor.u32 1065353216, %v2058_v52  ;;  %v8857_v30 = vshrl.u32 %v1544_v24, 16  ;;  %v1029_v14 = vmul.u32 2146121005, %v901_v34  ;;  %v1033_v38 = vmul.u32 2146121005, %v905_v50  ;;  %v13661_v43 = vpop.f32.mrf.mxu1 }
 0x4ad   : > { %v3197_v47 = vor.u32 %v15369_v10, %v2813_v19  ;;  %v3201_v46 = vor.u32 %v2945_v63, %v2817_v13  ;;  %v2438_v53 = vsub.f32 2.0, %v2182_v44  ;;  %v8861_v39 = vshrl.u32 %v1548_v26, 16  ;;  %15370 = vst [vmem:[#allocation70_spill] sm:$0xff] %v13661_v43  ;;  %v13668_v63 = vpop.f32.mrf.mxu0 }
 0x4ae   : > { %v8604_v8 = vshrl.u32 %v523_v61, 16  ;;  %v2442_v7 = vsub.f32 2.0, %v2186_v27  ;;  %v13663_v19 = vxor.u32 %v8857_v30, %v1544_v24  ;;  %v8726_v58 = vshrl.u32 %v1029_v14, 15  ;;  %15371 = vst [vmem:[#allocation71_spill] sm:$0xff] %v13668_v63  ;;  %v13670_v50 = vpop.f32.mrf.mxu1 }
 0x4af   : > { %v8730_v3 = vshrl.u32 %v1033_v38, 15  ;;  %v10599_v10 = vpop.eup %10598  ;;  %v3465_v6 = vpack.c.bf16 %v3201_v46, %v3197_v47  ;;  %v2943_v52 = vand.u32 2147483648, %v13593_v4  ;;  %10602 = vlog2.f32 %v2438_v53  ;;  %15372 = vst [vmem:[#allocation72_spill] sm:$0xff] %v13670_v50  ;;  %v13675_v53 = vpop.f32.mrf.mxu0 }
 0x4b0   : > { %v13666_v34 = vxor.u32 %v8861_v39, %v1548_v26  ;;  %v2666_v13 = vmul.f32 0.6931472, %v10599_v10  ;;  %10604 = vlog2.f32 %v2442_v7  ;;  %v2056_v44 = vand.u32 8388607, %v13663_v19  ;;  %15373 = vst [vmem:[#allocation73_spill] sm:$0xff] %v13675_v53  ;;  %v13677_v39 = vpop.f32.mrf.mxu1  ;;  %v15375_v7 = vld [vmem:[#allocation27_spill] sm:$0xff] }
 0x4b1   : > { %v903_v27 = vxor.u32 %v8600_v57, %v519_v11  ;;  %v10601_v24 = vpop.eup %10600  ;;  %7520 = vmatmul.mubr.bf16.gmra.mxu0 %v3465_v6  ;;  %v2947_v30 = vand.u32 2147483648, %v13601_v48  ;;  %v1413_v46 = vxor.u32 %v8726_v58, %v1029_v14  ;;  %v1417_v4 = vxor.u32 %v8730_v3, %v1033_v38  ;;  %15374 = vst [vmem:[#allocation75_spill] sm:$0xff] %v13677_v39  ;;  %v13683_v48 = vpop.f32.mrf.mxu0 }
 0x4b2   : > { %v2060_v47 = vand.u32 8388607, %v13666_v34  ;;  %v2674_v26 = vmul.f32 0.6931472, %v10601_v24  ;;  %v2815_v32 = vmul.f32 -0.1, %v2666_v13  ;;  %v907_v10 = vxor.u32 %v8604_v8, %v523_v61  ;;  %v13685_v59 = vpop.f32.mrf.mxu1 }
 0x4b3   : > { %v2184_v28 = vor.u32 1065353216, %v2056_v44  ;;  %v13681_v51 = vadd.f32 %v13292_v29, %v15375_v7  ;;  %v1541_v6 = vmul.u32 2221713035, %v1413_v46  ;;  %v1545_v57 = vmul.u32 2221713035, %v1417_v4  ;;  %15376 = vst [vmem:[#allocation74_spill] sm:$0xff] %v13683_v48  ;;  %v13687_v8 = vpop.f32.mrf.mxu0 }
 0x4b4   : > { %v2188_v11 = vor.u32 1065353216, %v2060_v47  ;;  %15377 = vst [vmem:[#allocation76_spill] sm:$0xff] %v13685_v59  ;;  %v2819_v38 = vmul.f32 -0.1, %v2674_v26  ;;  %v3199_v14 = vor.u32 %v2943_v52, %v2815_v32  ;;  %v1031_v3 = vmul.u32 2146121005, %v903_v27  ;;  %v13689_v61 = vpop.f32.mrf.mxu1 }
 0x4b5   : > { %v2440_v58 = vsub.f32 2.0, %v2184_v28  ;;  %v8854_v24 = vshrl.u32 %v1541_v6, 16  ;;  %v8858_v13 = vshrl.u32 %v1545_v57, 16  ;;  %v1035_v44 = vmul.u32 2146121005, %v907_v10  ;;  %15378 = vst [vmem:[#allocation77_spill] sm:$0xff] %v13687_v8  ;;  %v13699_v52 = vpop.f32.mrf.mxu0 }
 0x4b6   : > { %v2444_v49 = vsub.f32 2.0, %v2188_v11  ;;  %15379 = vst [vmem:[#allocation78_spill] sm:$0xff] %v13689_v61  ;;  %v13693_v29 = vadd.f32 %v13313_v2, %v13301_v33  ;;  %v3203_v47 = vor.u32 %v2947_v30, %v2819_v38  ;;  %v8728_v46 = vshrl.u32 %v1031_v3, 15  ;;  %15380 = vst [vmem:[#allocation79_spill] sm:$0xff] %v13699_v52  ;;  %v13701_v27 = vpop.f32.mrf.mxu1  ;;  %v15382_v26 = vld [vmem:[#allocation12_spill] sm:$0xff]  ;;  %v15383_v10 = vld [vmem:[#allocation14_spill] sm:$0xff] }
 0x4b7   : > { %10606 = vlog2.f32 %v2440_v58  ;;  %v13695_v4 = vxor.u32 %v8854_v24, %v1541_v6  ;;  %v13697_v28 = vxor.u32 %v8858_v13, %v1545_v57  ;;  %v8732_v32 = vshrl.u32 %v1035_v44, 15  ;;  %15381 = vst [vmem:[#allocation80_spill] sm:$0xff] %v13701_v27  ;;  %v15384_v11 = vld [vmem:[#allocation15_spill] sm:$0xff]  ;;  %v15385_v33 = vld [vmem:[#allocation17_spill] sm:$0xff]  ;;  %v13715_v24 = vpop.f32.mrf.mxu0 }
 0x4b8   : > { %10608 = vlog2.f32 %v2444_v49  ;;  %v13705_v7 = vadd.f32 %v15383_v10, %v15382_v26  ;;  %v13709_v2 = vadd.f32 %v15385_v33, %v15384_v11  ;;  %v3467_v30 = vpack.c.bf16 %v3203_v47, %v3199_v14  ;;  %15386 = vst [vmem:[#allocation81_spill] sm:$0xff] %v13715_v24  ;;  %v13717_v13 = vpop.f32.mrf.mxu1  ;;  %v15388_v33 = vld [vmem:[#allocation108_spill] sm:$0xff]  ;;  %v15389_v47 = vld [vmem:[#allocation109_spill] sm:$0xff]  ;;  %v15395_v48 = vld [vmem:[#allocation111_spill] sm:$0xff] }
 0x4b9   : > { %v1415_v38 = vxor.u32 %v8728_v46, %v1031_v3  ;;  %v2950_v49 = vand.u32 2147483648, %v13633_v45  ;;  %v2954_v6 = vand.u32 2147483648, %v13635_v9  ;;  %v2053_v57 = vand.u32 8388607, %v13695_v4  ;;  %15387 = vst [vmem:[#allocation82_spill] sm:$0xff] %v13717_v13  ;;  %v13725_v15 = vpop.f32.mrf.mxu0 }
 0x4ba   : > { %v2057_v58 = vand.u32 8388607, %v13697_v28  ;;  %7681 = vmatmul.mubr.bf16.gmra.mxu1 %v3467_v30  ;;  %v1419_v10 = vxor.u32 %v8732_v32, %v1035_v44  ;;  %v526_v14 = vxor.u32 %v11026_v60, %v15388_v33  ;;  %v530_v46 = vxor.u32 %v11026_v60, %v15389_v47  ;;  %15390 = vst [vmem:[#allocation83_spill] sm:$0xff] %v13725_v15  ;;  %v13727_v27 = vpop.f32.mrf.mxu1  ;;  %v15392_v44 = vld [vmem:[#allocation110_spill] sm:$0xff] }
 0x4bb   : > { %v1543_v11 = vmul.u32 2221713035, %v1415_v38  ;;  %v2181_v3 = vor.u32 1065353216, %v2053_v57  ;;  %15391 = vst [vmem:[#allocation84_spill] sm:$0xff] %v13727_v27  ;;  %v528_v32 = vxor.u32 %v11026_v60, %v15392_v44  ;;  %v532_v44 = vxor.u32 %v11026_v60, %v15395_v48 }
 0x4bc   : > { %v2185_v9 = vor.u32 1065353216, %v2057_v58  ;;  %v10603_v13 = vpop.eup %10602  ;;  %v1547_v30 = vmul.u32 2221713035, %v1419_v10  ;;  %v8607_v26 = vshrl.u32 %v526_v14, 16  ;;  %v8611_v57 = vshrl.u32 %v530_v46, 16  ;;  %v13731_v58 = vpop.f32.mrf.mxu0 }
 0x4bd   : > { %v8856_v24 = vshrl.u32 %v1543_v11, 16  ;;  %v10605_v38 = vpop.eup %10604  ;;  %v2680_v33 = vmul.f32 0.6931472, %v10603_v13  ;;  %v2437_v52 = vsub.f32 2.0, %v2181_v3  ;;  %15393 = vst [vmem:[#allocation85_spill] sm:$0xff] %v13731_v58  ;;  %v13733_v61 = vpop.f32.mrf.mxu1 }
 0x4be   : > { %v2441_v45 = vsub.f32 2.0, %v2185_v9  ;;  %15394 = vst [vmem:[#allocation86_spill] sm:$0xff] %v13733_v61  ;;  %v2688_v47 = vmul.f32 0.6931472, %v10605_v38  ;;  %v8860_v15 = vshrl.u32 %v1547_v30, 16  ;;  %v910_v27 = vxor.u32 %v8607_v26, %v526_v14  ;;  %v13739_v39 = vpop.f32.mrf.mxu0 }
 0x4bf   : > { %v13735_v59 = vxor.u32 %v8856_v24, %v1543_v11  ;;  %v2822_v10 = vmul.f32 -0.1, %v2680_v33  ;;  %10610 = vlog2.f32 %v2437_v52  ;;  %v914_v8 = vxor.u32 %v8611_v57, %v530_v46  ;;  %15396 = vst [vmem:[#allocation87_spill] sm:$0xff] %v13739_v39  ;;  %v13741_v13 = vpop.f32.mrf.mxu1 }
 0x4c0   : > { %15397 = vst [vmem:[#allocation88_spill] sm:$0xff] %v13741_v13  ;;  %v2826_v3 = vmul.f32 -0.1, %v2688_v47  ;;  %10612 = vlog2.f32 %v2441_v45  ;;  %v13743_v9 = vxor.u32 %v8860_v15, %v1547_v30  ;;  %v1038_v26 = vmul.u32 2146121005, %v910_v27  ;;  %v13747_v52 = vpop.f32.mrf.mxu0 }
 0x4c1   : > { %v2055_v38 = vand.u32 8388607, %v13735_v59  ;;  %v3206_v61 = vor.u32 %v2950_v49, %v2822_v10  ;;  %v1042_v11 = vmul.u32 2146121005, %v914_v8  ;;  %15398 = vst [vmem:[#allocation89_spill] sm:$0xff] %v13747_v52  ;;  %v13749_v14 = vpop.f32.mrf.mxu1  ;;  %v8609_v47 = vshrl.u32 %v528_v32, 16 }
 0x4c2   : > { %15399 = vst [vmem:[#allocation90_spill] sm:$0xff] %v13749_v14  ;;  %v3210_v48 = vor.u32 %v2954_v6, %v2826_v3  ;;  %v2059_v33 = vand.u32 8388607, %v13743_v9  ;;  %v8735_v15 = vshrl.u32 %v1038_v26, 15  ;;  %v8613_v13 = vshrl.u32 %v532_v44, 16  ;;  %v13753_v49 = vpop.f32.mrf.mxu0 }
 0x4c3   : > { %v2183_v57 = vor.u32 1065353216, %v2055_v38  ;;  %v8739_v30 = vshrl.u32 %v1042_v11, 15  ;;  %15400 = vst [vmem:[#allocation91_spill] sm:$0xff] %v13753_v49  ;;  %v13755_v10 = vpop.f32.mrf.mxu1  ;;  %v912_v39 = vxor.u32 %v8609_v47, %v528_v32  ;;  %v15405_v32 = vand.u32 2147483648, %v13663_v19 }
 0x4c4   : > { %v10607_v45 = vpop.eup %10606  ;;  %15401 = vst [vmem:[#allocation92_spill] sm:$0xff] %v13755_v10  ;;  %v3470_v27 = vpack.c.bf16 %v3210_v48, %v3206_v61  ;;  %v2187_v52 = vor.u32 1065353216, %v2059_v33  ;;  %v1422_v3 = vxor.u32 %v8735_v15, %v1038_v26  ;;  %v13757_v58 = vpop.f32.mrf.mxu0  ;;  %v916_v49 = vxor.u32 %v8613_v13, %v532_v44  ;;  %v15402_v61 = vld [vmem:[#allocation112_spill] sm:$0xff] }
 0x4c5   : > { %v10609_v8 = vpop.eup %10608  ;;  %v2684_v24 = vmul.f32 0.6931472, %v10607_v45  ;;  %v2439_v14 = vsub.f32 2.0, %v2183_v57  ;;  %v1426_v46 = vxor.u32 %v8739_v30, %v1042_v11  ;;  %v13759_v38 = vpop.f32.mrf.mxu1  ;;  %v525_v48 = vxor.u32 %v11026_v60, %v15402_v61 }
 0x4c6   : > { %v2692_v6 = vmul.f32 0.6931472, %v10609_v8  ;;  %7527 = vmatprep.mubr.bf16.mxu0 %v3470_v27  ;;  %v2443_v53 = vsub.f32 2.0, %v2187_v52  ;;  %v1550_v10 = vmul.u32 2221713035, %v1422_v3  ;;  %v13763_v33 = vpop.f32.mrf.mxu0 }
 0x4c7   : > { %v2824_v50 = vmul.f32 -0.1, %v2684_v24  ;;  %10614 = vlog2.f32 %v2439_v14  ;;  %v1554_v43 = vmul.u32 2221713035, %v1426_v46  ;;  %15403 = vst [vmem:[#allocation93_spill] sm:$0xff] %v13763_v33  ;;  %v13765_v26 = vpop.f32.mrf.mxu1  ;;  %v15406_v24 = vand.u32 2147483648, %v13666_v34 }
 0x4c8   : > { %v2828_v63 = vmul.f32 -0.1, %v2692_v6  ;;  %15404 = vst [vmem:[#allocation94_spill] sm:$0xff] %v13765_v26  ;;  %10616 = vlog2.f32 %v2443_v53  ;;  %v1040_v57 = vmul.u32 2146121005, %v912_v39  ;;  %v8863_v44 = vshrl.u32 %v1550_v10, 16  ;;  %v13773_v15 = vpop.f32.mrf.mxu0 }
 0x4c9   : > { %v3208_v11 = vor.u32 %v15405_v32, %v2824_v50  ;;  %v1044_v45 = vmul.u32 2146121005, %v916_v49  ;;  %v8867_v13 = vshrl.u32 %v1554_v43, 16  ;;  %v15407_v14 = vld [vmem:[#allocation113_spill] sm:$0xff]  ;;  %15408 = vst [vmem:[#allocation95_spill] sm:$0xff] %v13773_v15  ;;  %v13775_v30 = vpop.f32.mrf.mxu1  ;;  %v8606_v50 = vshrl.u32 %v525_v48, 16 }
 0x4ca   : > { %v3212_v52 = vor.u32 %v15406_v24, %v2828_v63  ;;  %v529_v46 = vxor.u32 %v11026_v60, %v15407_v14  ;;  %15409 = vst [vmem:[#allocation96_spill] sm:$0xff] %v13775_v30  ;;  %v8737_v8 = vshrl.u32 %v1040_v57, 15  ;;  %v13778_v39 = vxor.u32 %v8863_v44, %v1550_v10  ;;  %v13782_v63 = vpop.f32.mrf.mxu0  ;;  %v15412_v24 = vld [vmem:[#allocation114_spill] sm:$0xff]  ;;  %v15413_v30 = vld [vmem:[#allocation16_spill] sm:$0xff] }
 0x4cb   : > { %v8741_v19 = vshrl.u32 %v1044_v45, 15  ;;  %v13780_v49 = vxor.u32 %v8867_v13, %v1554_v43  ;;  %15410 = vst [vmem:[#allocation98_spill] sm:$0xff] %v13782_v63  ;;  %v13784_v27 = vpop.f32.mrf.mxu1  ;;  %v909_v32 = vxor.u32 %v8606_v50, %v525_v48  ;;  %v527_v14 = vxor.u32 %v11026_v60, %v15412_v24  ;;  %v15414_v26 = vld [vmem:[#allocation18_spill] sm:$0xff] }
 0x4cc   : > { %v3472_v53 = vpack.c.bf16 %v3212_v52, %v3208_v11  ;;  %v8610_v34 = vshrl.u32 %v529_v46, 16  ;;  %15411 = vst [vmem:[#allocation97_spill] sm:$0xff] %v13784_v27  ;;  %v10611_v6 = vpop.eup %10610  ;;  %v1424_v3 = vxor.u32 %v8737_v8, %v1040_v57  ;;  %v13790_v11 = vadd.f32 %v15414_v26, %v15413_v30  ;;  %v13794_v44 = vpop.f32.mrf.mxu0  ;;  %v15417_v8 = vld [vmem:[#allocation115_spill] sm:$0xff] }
 0x4cd   : > { %v1428_v61 = vxor.u32 %v8741_v19, %v1044_v45  ;;  %v10613_v47 = vpop.eup %10612  ;;  %v2678_v43 = vmul.f32 0.6931472, %v10611_v6  ;;  %v2062_v10 = vand.u32 8388607, %v13778_v39  ;;  %v2066_v52 = vand.u32 8388607, %v13780_v49  ;;  %v13796_v13 = vpop.f32.mrf.mxu1 }
 0x4ce   : > { %7688 = vmatprep.mubr.bf16.mxu1 %v3472_v53  ;;  %15415 = vst [vmem:[#allocation99_spill] sm:$0xff] %v13794_v44  ;;  %15416 = vst [vmem:[#allocation100_spill] sm:$0xff] %v13796_v13  ;;  %v2686_v57 = vmul.f32 0.6931472, %v10613_v47  ;;  %v1552_v48 = vmul.u32 2221713035, %v1424_v3  ;;  %v913_v45 = vxor.u32 %v8610_v34, %v529_v46  ;;  %v531_v19 = vxor.u32 %v11026_v60, %v15417_v8  ;;  %v13800_v53 = vpop.f32.mrf.mxu0 }
 0x4cf   : > { %v2821_v50 = vmul.f32 -0.1, %v2678_v43  ;;  %v2190_v24 = vor.u32 1065353216, %v2062_v10  ;;  %v2194_v26 = vor.u32 1065353216, %v2066_v52  ;;  %v1556_v30 = vmul.u32 2221713035, %v1428_v61  ;;  %v13802_v6 = vpop.f32.mrf.mxu1 }
 0x4d0   : > { %15418 = vst [vmem:[#allocation101_spill] sm:$0xff] %v13800_v53  ;;  %15419 = vst [vmem:[#allocation102_spill] sm:$0xff] %v13802_v6  ;;  %v2825_v27 = vmul.f32 -0.1, %v2686_v57  ;;  %v8865_v63 = vshrl.u32 %v1552_v48, 16  ;;  %v8608_v44 = vshrl.u32 %v527_v14, 16  ;;  %v13806_v33 = vpop.f32.mrf.mxu0 }
 0x4d1   : > { %v1037_v15 = vmul.u32 2146121005, %v909_v32  ;;  %v15420_v13 = vand.u32 2147483648, %v13695_v4  ;;  %v2446_v3 = vsub.f32 2.0, %v2190_v24  ;;  %v2450_v46 = vsub.f32 2.0, %v2194_v26  ;;  %15421 = vst [vmem:[#allocation103_spill] sm:$0xff] %v13806_v33  ;;  %v13808_v60 = vpop.f32.mrf.mxu1 }
 0x4d2   : > { %v8869_v34 = vshrl.u32 %v1556_v30, 16  ;;  %15422 = vst [vmem:[#allocation104_spill] sm:$0xff] %v13808_v60  ;;  %v15423_v61 = vand.u32 2147483648, %v13697_v28  ;;  %v13812_v10 = vxor.u32 %v8865_v63, %v1552_v48  ;;  %v1041_v52 = vmul.u32 2146121005, %v913_v45  ;;  %v15426_v63 = vld [vmem:[#allocation19_spill] sm:$0xff] }
 0x4d3   : > { %v3205_v47 = vor.u32 %v15420_v13, %v2821_v50  ;;  %v8734_v57 = vshrl.u32 %v1037_v15, 15  ;;  %10618 = vlog2.f32 %v2446_v3  ;;  %v8612_v4 = vshrl.u32 %v531_v19, 16  ;;  %v13816_v50 = vpop.f32.mrf.mxu0  ;;  %v13818_v24 = vpop.f32.mrf.mxu1 }
 0x4d4   : > { %v3209_v43 = vor.u32 %v15423_v61, %v2825_v27  ;;  %v10615_v8 = vpop.eup %10614  ;;  %v13814_v32 = vxor.u32 %v8869_v34, %v1556_v30  ;;  %v911_v13 = vxor.u32 %v8608_v44, %v527_v14  ;;  %15424 = vst [vmem:[#allocation105_spill] sm:$0xff] %v13816_v50  ;;  %15425 = vst [vmem:[#allocation106_spill] sm:$0xff] %v13818_v24  ;;  %10620 = vlog2.f32 %v2450_v46 }
 0x4d5   : > { %v2682_v6 = vmul.f32 0.6931472, %v10615_v8  ;;  %v2064_v28 = vand.u32 8388607, %v13812_v10  ;;  %v10617_v27 = vpop.eup %10616  ;;  %v9474_v48 = vadd.f32 %v13360_v20, %v15426_v63  ;;  %v2955_v45 = vand.u32 2147483648, %v13743_v9  ;;  %v13825_v34 = vpop.f32.mrf.mxu0 }
 0x4d6   : > { %v3469_v26 = vpack.c.bf16 %v3209_v43, %v3205_v47  ;;  %v2068_v30 = vand.u32 8388607, %v13814_v32  ;;  %v8738_v3 = vshrl.u32 %v1041_v52, 15  ;;  %15427 = vst [vmem:[#allocation107_spill] sm:$0xff] %v13825_v34  ;;  %v13827_v14 = vpop.f32.mrf.mxu1  ;;  %v2690_v44 = vmul.f32 0.6931472, %v10617_v27 }
 0x4d7   : > { %15428 = vst [vmem:[#allocation27_spill] sm:$0xff] %v13827_v14  ;;  %v2823_v47 = vmul.f32 -0.1, %v2682_v6  ;;  %v2192_v61 = vor.u32 1065353216, %v2064_v28  ;;  %v1421_v46 = vxor.u32 %v8734_v57, %v1037_v15  ;;  %v915_v24 = vxor.u32 %v8612_v4, %v531_v19  ;;  %v13829_v60 = vpop.f32.mrf.mxu0  ;;  %v15430_v19 = vld [vmem:[#allocation20_spill] sm:$0xff] }
 0x4d8   : > { %7528 = vmatmul.mubr.bf16.gmra.mxu0 %v3469_v26  ;;  %v2196_v43 = vor.u32 1065353216, %v2068_v30  ;;  %v1425_v8 = vxor.u32 %v8738_v3, %v1041_v52  ;;  %v1039_v50 = vmul.u32 2146121005, %v911_v13  ;;  %v13831_v20 = vpop.f32.mrf.mxu1  ;;  %v2827_v9 = vmul.f32 -0.1, %v2690_v44 }
 0x4d9   : > { %v15429_v63 = vand.u32 2147483648, %v13735_v59  ;;  %v2448_v34 = vsub.f32 2.0, %v2192_v61  ;;  %v1549_v53 = vmul.u32 2221713035, %v1421_v46  ;;  %v1043_v27 = vmul.u32 2146121005, %v915_v24  ;;  %v13835_v28 = vpop.f32.mrf.mxu0 }
 0x4da   : > { %v2452_v14 = vsub.f32 2.0, %v2196_v43  ;;  %v1553_v26 = vmul.u32 2221713035, %v1425_v8  ;;  %v8736_v6 = vshrl.u32 %v1039_v50, 15  ;;  %v13837_v15 = vpop.f32.mrf.mxu1  ;;  %v9586_v52 = vadd.f32 %v13362_v12, %v15430_v19 }
 0x4db   : > { %v3207_v33 = vor.u32 %v15429_v63, %v2823_v47  ;;  %v3211_v57 = vor.u32 %v2955_v45, %v2827_v9  ;;  %10622 = vlog2.f32 %v2448_v34  ;;  %v8862_v4 = vshrl.u32 %v1549_v53, 16  ;;  %v13841_v3 = vpop.f32.mrf.mxu0 }
 0x4dc   : > { %10624 = vlog2.f32 %v2452_v14  ;;  %v8866_v13 = vshrl.u32 %v1553_v26, 16  ;;  %v8740_v59 = vshrl.u32 %v1043_v27, 15  ;;  %v1423_v30 = vxor.u32 %v8736_v6, %v1039_v50  ;;  %v13843_v44 = vpop.f32.mrf.mxu1 }
 0x4dd   : > { %v13847_v24 = vadd.f32 %v13681_v51, %v13650_v18  ;;  %v13851_v47 = vadd.f32 %v13705_v7, %v13693_v29  ;;  %v3471_v12 = vpack.c.bf16 %v3211_v57, %v3207_v33  ;;  %v13853_v45 = vxor.u32 %v8862_v4, %v1549_v53  ;;  %v13861_v46 = vpop.f32.mrf.mxu0  ;;  %v15435_v57 = vld [vmem:[#allocation21_spill] sm:$0xff]  ;;  %v15436_v4 = vld [vmem:[#allocation22_spill] sm:$0xff] }
 0x4de   : > { %v13857_v34 = vadd.f32 %v13790_v11, %v13709_v2  ;;  %v13859_v50 = vxor.u32 %v8866_v13, %v1553_v26  ;;  %v1427_v14 = vxor.u32 %v8740_v59, %v1043_v27  ;;  %v1551_v61 = vmul.u32 2221713035, %v1423_v30  ;;  %v13863_v43 = vpop.f32.mrf.mxu1 }
 0x4df   : > { %15431 = vst [vmem:[#allocation12_spill] sm:$0xff] %v13851_v47  ;;  %v13865_v51 = vadd.f32 %v9586_v52, %v9474_v48  ;;  %v13869_v18 = vadd.f32 %v13386_v31, %v13372_v25  ;;  %v13873_v29 = vadd.f32 %v13388_v62, %v13374_v36  ;;  %7689 = vmatmul.mubr.bf16.gmra.mxu1 %v3471_v12  ;;  %v2061_v7 = vand.u32 8388607, %v13853_v45  ;;  %v13879_v48 = vpop.f32.mrf.mxu0  ;;  %v15434_v36 = vld [vmem:[#allocation25_spill] sm:$0xff] }
 0x4e0   : > { %15432 = vst [vmem:[#allocation14_spill] sm:$0xff] %v13857_v34  ;;  %v9480_v2 = vadd.f32 %v13416_v22, %v13402_v17  ;;  %v2065_v33 = vand.u32 8388607, %v13859_v50  ;;  %v1555_v11 = vmul.u32 2221713035, %v1427_v14  ;;  %v8864_v53 = vshrl.u32 %v1551_v61, 16  ;;  %v13881_v8 = vpop.f32.mrf.mxu1  ;;  %v10619_v25 = vpop.eup %10618 }
 0x4e1   : > { %15433 = vst [vmem:[#allocation15_spill] sm:$0xff] %v13865_v51  ;;  %v9592_v31 = vadd.f32 %v13418_v41, %v13404_v42  ;;  %v9483_v62 = vadd.f32 %v15434_v36, %v13428_v21  ;;  %v2958_v9 = vand.u32 2147483648, %v13778_v39  ;;  %v2189_v63 = vor.u32 1065353216, %v2061_v7  ;;  %v10621_v26 = vpop.eup %10620  ;;  %v13890_v19 = vpop.f32.mrf.mxu0  ;;  %v15437_v7 = vld [vmem:[#allocation26_spill] sm:$0xff]  ;;  %v15440_v36 = vld [vmem:[#allocation29_spill] sm:$0xff] }
 0x4e2   : > { %v2696_v17 = vmul.f32 0.6931472, %v10619_v25  ;;  %v2193_v22 = vor.u32 1065353216, %v2065_v33  ;;  %v8868_v27 = vshrl.u32 %v1555_v11, 16  ;;  %v13888_v6 = vxor.u32 %v8864_v53, %v1551_v61  ;;  %v13892_v52 = vpop.f32.mrf.mxu1  ;;  %v15438_v33 = vld [vmem:[#allocation28_spill] sm:$0xff]  ;;  %v15439_v25 = vld [vmem:[#allocation23_spill] sm:$0xff] }
 0x4e3   : > { %v9595_v13 = vadd.f32 %v15436_v4, %v15435_v57  ;;  %v2704_v42 = vmul.f32 0.6931472, %v10621_v26  ;;  %v2962_v41 = vand.u32 2147483648, %v13780_v49  ;;  %v2445_v21 = vsub.f32 2.0, %v2189_v63  ;;  %v13900_v14 = vpop.f32.mrf.mxu0 }
 0x4e4   : > { %v2830_v59 = vmul.f32 -0.1, %v2696_v17  ;;  %v2449_v39 = vsub.f32 2.0, %v2193_v22  ;;  %v13897_v30 = vxor.u32 %v8868_v27, %v1555_v11  ;;  %v2063_v12 = vand.u32 8388607, %v13888_v6  ;;  %v13902_v61 = vpop.f32.mrf.mxu1 }
 0x4e5   : > { %v9486_v53 = vadd.f32 %v15438_v33, %v15437_v7  ;;  %v9598_v57 = vadd.f32 %v15440_v36, %v15439_v25  ;;  %v2834_v26 = vmul.f32 -0.1, %v2704_v42  ;;  %10626 = vlog2.f32 %v2445_v21  ;;  %v13909_v17 = vpop.f32.mrf.mxu0  ;;  %v15442_v36 = vld [vmem:[#allocation31_spill] sm:$0xff] }
 0x4e6   : > { %v3214_v49 = vor.u32 %v2958_v9, %v2830_v59  ;;  %10628 = vlog2.f32 %v2449_v39  ;;  %v2067_v63 = vand.u32 8388607, %v13897_v30  ;;  %v2191_v11 = vor.u32 1065353216, %v2063_v12  ;;  %v13911_v22 = vpop.f32.mrf.mxu1 }
 0x4e7   : > { %v3218_v27 = vor.u32 %v2962_v41, %v2834_v26  ;;  %v2960_v4 = vand.u32 2147483648, %v13812_v10  ;;  %v2964_v51 = vand.u32 2147483648, %v13814_v32  ;;  %v9489_v7 = vadd.f32 %v13485_v0, %v13479_v55  ;;  %v13921_v39 = vpop.f32.mrf.mxu0  ;;  %v15441_v32 = vld [vmem:[#allocation30_spill] sm:$0xff]  ;;  %v15443_v55 = vld [vmem:[#allocation32_spill] sm:$0xff] }
 0x4e8   : > { %v10623_v33 = vpop.eup %10622  ;;  %v2195_v42 = vor.u32 1065353216, %v2067_v63  ;;  %v2447_v21 = vsub.f32 2.0, %v2191_v11  ;;  %v9601_v9 = vadd.f32 %v13487_v40, %v13481_v16  ;;  %v9492_v59 = vadd.f32 %v13503_v35, %v13492_v23  ;;  %v13923_v12 = vpop.f32.mrf.mxu1  ;;  %v15444_v0 = vld [vmem:[#allocation34_spill] sm:$0xff]  ;;  %v15445_v16 = vld [vmem:[#allocation33_spill] sm:$0xff]  ;;  %v15446_v40 = vld [vmem:[#allocation35_spill] sm:$0xff] }
 0x4e9   : > { %v10625_v41 = vpop.eup %10624  ;;  %v3474_v10 = vpack.c.bf16 %v3218_v27, %v3214_v49  ;;  %v2700_v25 = vmul.f32 0.6931472, %v10623_v33  ;;  %v9604_v26 = vadd.f32 %v15442_v36, %v15441_v32  ;;  %v9495_v63 = vadd.f32 %v15444_v0, %v15443_v55  ;;  %v13931_v23 = vpop.f32.mrf.mxu0  ;;  %v15449_v36 = vld [vmem:[#allocation37_spill] sm:$0xff] }
 0x4ea   : > { %v2708_v11 = vmul.f32 0.6931472, %v10625_v41  ;;  %v2451_v34 = vsub.f32 2.0, %v2195_v42  ;;  %10630 = vlog2.f32 %v2447_v21  ;;  %v9607_v47 = vadd.f32 %v15446_v40, %v15445_v16  ;;  %v13933_v35 = vpop.f32.mrf.mxu1  ;;  %v15448_v42 = vld [vmem:[#allocation36_spill] sm:$0xff] }
 0x4eb   : > { %v13937_v49 = vadd.f32 %v13873_v29, %v13869_v18  ;;  %v13939_v27 = vadd.f32 %v9592_v31, %v9480_v2  ;;  %v13941_v33 = vadd.f32 %v9595_v13, %v9483_v62  ;;  %7535 = vmatprep.mubr.bf16.mxu0 %v3474_v10  ;;  %v2832_v32 = vmul.f32 -0.1, %v2700_v25  ;;  %v13947_v0 = vpop.f32.mrf.mxu0  ;;  %v15472_v25 = vld [vmem:[#allocation84_spill] sm:$0xff] }
 0x4ec   : > { %v2836_v41 = vmul.f32 -0.1, %v2708_v11  ;;  %10632 = vlog2.f32 %v2451_v34  ;;  %v9498_v21 = vadd.f32 %v13534_v1, %v15448_v42  ;;  %v9610_v55 = vadd.f32 %v13536_v5, %v15449_v36  ;;  %v13949_v16 = vpop.f32.mrf.mxu1  ;;  %v15461_v11 = vld [vmem:[#allocation77_spill] sm:$0xff]  ;;  %v15464_v42 = vld [vmem:[#allocation78_spill] sm:$0xff] }
 0x4ed   : > { %15447 = vst [vmem:[#allocation17_spill] sm:$0xff] %v13941_v33  ;;  %v13951_v18 = vadd.f32 %v9598_v57, %v9486_v53  ;;  %v3216_v29 = vor.u32 %v2960_v4, %v2832_v32  ;;  %v2957_v2 = vand.u32 2147483648, %v13853_v45  ;;  %v13954_v31 = vadd.f32 %v9601_v9, %v9489_v7  ;;  %v13961_v10 = vpop.f32.mrf.mxu0  ;;  %v15454_v45 = vld [vmem:[#allocation70_spill] sm:$0xff]  ;;  %v15455_v4 = vld [vmem:[#allocation71_spill] sm:$0xff] }
 0x4ee   : > { %v3220_v62 = vor.u32 %v2964_v51, %v2836_v41  ;;  %v2961_v34 = vand.u32 2147483648, %v13859_v50  ;;  %v13957_v13 = vadd.f32 %v9604_v26, %v9492_v59  ;;  %v13959_v1 = vadd.f32 %v9607_v47, %v9495_v63  ;;  %v13963_v5 = vpop.f32.mrf.mxu1  ;;  %v15456_v51 = vld [vmem:[#allocation73_spill] sm:$0xff]  ;;  %v15458_v47 = vld [vmem:[#allocation72_spill] sm:$0xff]  ;;  %v15459_v59 = vld [vmem:[#allocation75_spill] sm:$0xff] }
 0x4ef   : > { %15450 = vst [vmem:[#allocation108_spill] sm:$0xff] %v13951_v18  ;;  %15451 = vst [vmem:[#allocation109_spill] sm:$0xff] %v13954_v31  ;;  %v9522_v53 = vadd.f32 %v13659_v54, %v13655_v37  ;;  %v9634_v57 = vadd.f32 %v15454_v45, %v13657_v56  ;;  %v9525_v7 = vadd.f32 %v15456_v51, %v15455_v4  ;;  %v15460_v63 = vld [vmem:[#allocation74_spill] sm:$0xff]  ;;  %v13978_v32 = vpop.f32.mrf.mxu0  ;;  %v15463_v56 = vld [vmem:[#allocation76_spill] sm:$0xff] }
 0x4f0   : > { %15452 = vst [vmem:[#allocation110_spill] sm:$0xff] %v13957_v13  ;;  %15453 = vst [vmem:[#allocation111_spill] sm:$0xff] %v13959_v1  ;;  %v3476_v50 = vpack.c.bf16 %v3220_v62, %v3216_v29  ;;  %v13972_v9 = vadd.f32 %v9610_v55, %v9498_v21  ;;  %v9637_v26 = vadd.f32 %v15459_v59, %v15458_v47  ;;  %v13980_v41 = vpop.f32.mrf.mxu1  ;;  %v15465_v29 = vld [vmem:[#allocation79_spill] sm:$0xff]  ;;  %v15466_v21 = vld [vmem:[#allocation81_spill] sm:$0xff] }
 0x4f1   : > { %v9528_v40 = vadd.f32 %v15461_v11, %v15460_v63  ;;  %v13983_v54 = vadd.f32 %v9634_v57, %v9522_v53  ;;  %v9640_v36 = vadd.f32 %v15464_v42, %v15463_v56  ;;  %v9531_v55 = vadd.f32 %v15466_v21, %v15465_v29  ;;  %v15468_v4 = vld [vmem:[#allocation80_spill] sm:$0xff]  ;;  %v15469_v51 = vld [vmem:[#allocation82_spill] sm:$0xff]  ;;  %v15470_v59 = vld [vmem:[#allocation83_spill] sm:$0xff]  ;;  %v13997_v57 = vpop.f32.mrf.mxu0 }
 0x4f2   : > { %15457 = vst [vmem:[#allocation112_spill] sm:$0xff] %v13972_v9  ;;  %v10627_v62 = vpop.eup %10626  ;;  %7696 = vmatprep.mubr.bf16.mxu1 %v3476_v50  ;;  %v13989_v45 = vadd.f32 %v9637_v26, %v9525_v7  ;;  %v9643_v47 = vadd.f32 %v15469_v51, %v15468_v4  ;;  %v15471_v63 = vld [vmem:[#allocation85_spill] sm:$0xff]  ;;  %v15473_v37 = vld [vmem:[#allocation86_spill] sm:$0xff]  ;;  %v15475_v50 = vld [vmem:[#allocation87_spill] sm:$0xff] }
 0x4f3   : > { %15462 = vst [vmem:[#allocation113_spill] sm:$0xff] %v13983_v54  ;;  %v9534_v11 = vadd.f32 %v15471_v63, %v15470_v59  ;;  %v9646_v53 = vadd.f32 %v15473_v37, %v15472_v25  ;;  %v13999_v54 = vpop.f32.mrf.mxu1  ;;  %v10629_v56 = vpop.eup %10628  ;;  %v2694_v42 = vmul.f32 0.6931472, %v10627_v62  ;;  %v14001_v29 = vadd.f32 %v9640_v36, %v9528_v40  ;;  %v15476_v7 = vld [vmem:[#allocation89_spill] sm:$0xff]  ;;  %v15477_v21 = vld [vmem:[#allocation88_spill] sm:$0xff]  ;;  %v15481_v25 = vld [vmem:[#allocation91_spill] sm:$0xff] }
 0x4f4   : > { %15467 = vst [vmem:[#allocation114_spill] sm:$0xff] %v13989_v45  ;;  %v9537_v26 = vadd.f32 %v15476_v7, %v15475_v50  ;;  %v15478_v45 = vld [vmem:[#allocation90_spill] sm:$0xff]  ;;  %v2702_v51 = vmul.f32 0.6931472, %v10629_v56  ;;  %v14007_v9 = vadd.f32 %v9643_v47, %v9531_v55  ;;  %v9540_v37 = vadd.f32 %v13757_v58, %v15481_v25  ;;  %v14013_v63 = vpop.f32.mrf.mxu0  ;;  %v15483_v62 = vld [vmem:[#allocation92_spill] sm:$0xff]  ;;  %v15484_v7 = vld [vmem:[#allocation93_spill] sm:$0xff] }
 0x4f5   : > { %15474 = vst [vmem:[#allocation16_spill] sm:$0xff] %v14001_v29  ;;  %v9649_v4 = vadd.f32 %v15478_v45, %v15477_v21  ;;  %v14009_v59 = vadd.f32 %v9646_v53, %v9534_v11  ;;  %v14015_v1 = vpop.f32.mrf.mxu1  ;;  %v2829_v40 = vmul.f32 -0.1, %v2694_v42  ;;  %v9652_v50 = vadd.f32 %v13759_v38, %v15483_v62  ;;  %v15485_v45 = vld [vmem:[#allocation95_spill] sm:$0xff]  ;;  %v15486_v47 = vld [vmem:[#allocation94_spill] sm:$0xff]  ;;  %v15487_v11 = vld [vmem:[#allocation96_spill] sm:$0xff] }
 0x4f6   : > { %15479 = vst [vmem:[#allocation18_spill] sm:$0xff] %v14007_v9  ;;  %v9671_v56 = vadd.f32 %v15485_v45, %v15484_v7  ;;  %v2833_v55 = vmul.f32 -0.1, %v2702_v51  ;;  %v9783_v53 = vadd.f32 %v15487_v11, %v15486_v47  ;;  %v15488_v21 = vld [vmem:[#allocation98_spill] sm:$0xff]  ;;  %v15490_v25 = vld [vmem:[#allocation97_spill] sm:$0xff]  ;;  %v15491_v9 = vld [vmem:[#allocation100_spill] sm:$0xff]  ;;  %v14029_v13 = vpop.f32.mrf.mxu0 }
 0x4f7   : > { %15480 = vst [vmem:[#allocation115_spill] sm:$0xff] %v14009_v59  ;;  %v14017_v36 = vadd.f32 %v9649_v4, %v9537_v26  ;;  %v15489_v59 = vld [vmem:[#allocation99_spill] sm:$0xff]  ;;  %v9786_v29 = vadd.f32 %v15491_v9, %v15490_v25  ;;  %v14031_v42 = vpop.f32.mrf.mxu1  ;;  %v10631_v26 = vpop.eup %10630  ;;  %v3213_v4 = vor.u32 %v2957_v2, %v2829_v40  ;;  %v14033_v38 = vadd.f32 %v9652_v50, %v9540_v37  ;;  %v15493_v62 = vld [vmem:[#allocation13_spill] sm:$0xff]  ;;  %v15496_v31 = vld [vmem:[#allocation24_spill] sm:$0xff] }
 0x4f8   : > { %v9674_v58 = vadd.f32 %v15489_v59, %v15488_v21  ;;  %v7418_v7 = vadd.f32 %v9671_v56, %v15493_v62  ;;  %v15494_v51 = vld [vmem:[#allocation101_spill] sm:$0xff]  ;;  %v15495_v45 = vld [vmem:[#allocation103_spill] sm:$0xff]  ;;  %v3217_v47 = vor.u32 %v2961_v34, %v2833_v55  ;;  %v2698_v11 = vmul.f32 0.6931472, %v10631_v26  ;;  %v15497_v21 = vld [vmem:[#allocation102_spill] sm:$0xff]  ;;  %v14046_v2 = vpop.f32.mrf.mxu0 }
 0x4f9   : > { %15482 = vst [vmem:[#allocation19_spill] sm:$0xff] %v14017_v36  ;;  %15492 = vst [vmem:[#allocation20_spill] sm:$0xff] %v14033_v38  ;;  %v9677_v36 = vadd.f32 %v15495_v45, %v15494_v51  ;;  %v15498_v18 = vld [vmem:[#allocation104_spill] sm:$0xff]  ;;  %v14044_v25 = vld [vmem:[%s14922_s1] ss:$0 sm:$0xff]  ;;  %v14048_v37 = vpop.f32.mrf.mxu1  ;;  %v10633_v40 = vpop.eup %10632 }
 0x4fa   : > { %v7421_v59 = vadd.f32 %v9674_v58, %v15496_v31  ;;  %v9789_v9 = vadd.f32 %v15498_v18, %v15497_v21  ;;  %15499 = vst [vmem:[#allocation25_spill] sm:$0xff] %v14046_v2  ;;  %15500 = vst [vmem:[#allocation21_spill] sm:$0xff] %v14048_v37  ;;  %v7579_v50 = vadd.f32 %v9783_v53, %v7418_v7  ;;  %v15501_v56 = vld [vmem:[#allocation40_spill] sm:$0xff]  ;;  %v15502_v34 = vld [vmem:[#allocation105_spill] sm:$0xff]  ;;  %v2706_v26 = vmul.f32 0.6931472, %v10633_v40  ;;  %v14053_v45 = vpop.f32.mrf.mxu0 }
 0x4fb   : > { %v7426_v62 = vadd.f32 %v9677_v36, %v15501_v56  ;;  %v15503_v55 = vld [vmem:[#allocation107_spill] sm:$0xff]  ;;  %v3473_v58 = vpack.c.bf16 %v3217_v47, %v3213_v4  ;;  %v2831_v18 = vmul.f32 -0.1, %v2698_v11  ;;  %v14055_v21 = vpop.f32.mrf.mxu1  ;;  %v15506_v7 = vld [vmem:[#allocation106_spill] sm:$0xff]  ;;  %v15508_v4 = vand.u32 2147483648, %v13888_v6 }
 0x4fc   : > { %v9680_v31 = vadd.f32 %v15503_v55, %v15502_v34  ;;  %v7582_v51 = vadd.f32 %v9786_v29, %v7421_v59  ;;  %v14058_v33 = vadd.f32 %v14044_v25, %v7579_v50  ;;  %v15505_v37 = vld [vmem:[#allocation43_spill] sm:$0xff]  ;;  %v2835_v2 = vmul.f32 -0.1, %v2706_v26  ;;  %v14070_v59 = vpop.f32.mrf.mxu0 }
 0x4fd   : > { %v7587_v38 = vadd.f32 %v9789_v9, %v7426_v62  ;;  %v15507_v36 = vld [vmem:[#allocation27_spill] sm:$0xff]  ;;  %7536 = vmatmul.mubr.bf16.gmra.mxu0 %v3473_v58  ;;  %v3215_v47 = vor.u32 %v15508_v4, %v2831_v18  ;;  %v9683_v11 = vadd.f32 %v13835_v28, %v13829_v60  ;;  %v14072_v9 = vpop.f32.mrf.mxu1  ;;  %v9795_v50 = vadd.f32 %v13837_v15, %v13831_v20  ;;  %v15512_v28 = vld [vmem:[#allocation44_spill] sm:$0xff] }
 0x4fe   : > { %15504 = vst [vmem:[#allocation22_spill] sm:$0xff] %v14058_v33  ;;  %v7429_v53 = vadd.f32 %v9680_v31, %v15505_v37  ;;  %v9792_v56 = vadd.f32 %v15507_v36, %v15506_v7  ;;  %v14066_v29 = vadd.f32 %v14044_v25, %v7582_v51  ;;  %v7746_v37 = vsel %vm7745_vm1, %v14058_v33, -inf  ;;  %v14088_v58 = vpop.f32.mrf.mxu0 }
 0x4ff   : > { %v14079_v6 = vadd.f32 %v14044_v25, %v7587_v38  ;;  %v15511_v62 = vand.u32 2147483648, %v13897_v30  ;;  %7747 = vmax.xlane.f32.xlu0 %v7746_v37  ;;  %v7434_v55 = vadd.f32 %v9683_v11, %v15512_v28  ;;  %v9686_v31 = vadd.f32 %v13861_v46, %v13841_v3  ;;  %v14090_v26 = vpop.f32.mrf.mxu1  ;;  %v15513_v3 = vld [vmem:[#allocation47_spill] sm:$0xff]  ;;  %v15514_v11 = vld [vmem:[#allocation12_spill] sm:$0xff]  ;;  %v15515_v37 = vld [vmem:[#allocation14_spill] sm:$0xff] }
 0x500   : > { %15509 = vst [vmem:[#allocation26_spill] sm:$0xff] %v14066_v29  ;;  %v7590_v40 = vadd.f32 %v9792_v56, %v7429_v53  ;;  %v7749_v60 = vsel %vm7745_vm1, %v14066_v29, -inf  ;;  %v9798_v15 = vadd.f32 %v13863_v43, %v13843_v44  ;;  %v9689_v38 = vadd.f32 %v13890_v19, %v13879_v48  ;;  %v9711_v53 = vpop.f32.mrf.mxu0 }
 0x501   : > { %15510 = vst [vmem:[#allocation28_spill] sm:$0xff] %v14079_v6  ;;  %v3219_v34 = vor.u32 %v15511_v62, %v2835_v2  ;;  %v7752_v20 = vsel %vm7745_vm1, %v14079_v6, -inf  ;;  %v7595_v18 = vadd.f32 %v9795_v50, %v7434_v55  ;;  %v7437_v46 = vadd.f32 %v9686_v31, %v15513_v3  ;;  %v14104_v7 = vpop.f32.mrf.mxu1  ;;  %v15519_v3 = vld [vmem:[#allocation41_spill] sm:$0xff] }
 0x502   : > { %v14097_v30 = vadd.f32 %v14044_v25, %v7590_v40  ;;  %7753 = vmax.xlane.f32.xlu1 %v7752_v20  ;;  %v9801_v51 = vadd.f32 %v13892_v52, %v13881_v8  ;;  %v7442_v43 = vadd.f32 %v9689_v38, %v13847_v24  ;;  %v9692_v36 = vadd.f32 %v13909_v17, %v13900_v14  ;;  %v9712_v52 = vpop.f32.mrf.mxu0 }
 0x503   : > { %v3475_v2 = vpack.c.bf16 %v3219_v34, %v3215_v47  ;;  %v9804_v48 = vadd.f32 %v13911_v22, %v13902_v61  ;;  %7750 = vmax.xlane.f32.xlu0 %v7749_v60  ;;  %v7598_v19 = vadd.f32 %v9798_v15, %v7437_v46  ;;  %v14114_v56 = vadd.f32 %v14044_v25, %v7595_v18  ;;  %v9824_v4 = vpop.f32.mrf.mxu1  ;;  %v15518_v18 = vld [vmem:[#allocation38_spill] sm:$0xff] }
 0x504   : > { %v7755_v44 = vsel %vm7745_vm1, %v14097_v30, -inf  ;;  %v9695_v8 = vadd.f32 %v13931_v23, %v13921_v39  ;;  %v7603_v47 = vadd.f32 %v9801_v51, %v7442_v43  ;;  %v7445_v24 = vadd.f32 %v9692_v36, %v15514_v11  ;;  %v9714_v40 = vpop.f32.mrf.mxu0  ;;  %v15520_v43 = vld [vmem:[#allocation17_spill] sm:$0xff] }
 0x505   : > { %7697 = vmatmul.mubr.bf16.gmra.mxu1 %v3475_v2  ;;  %v9807_v14 = vadd.f32 %v13933_v35, %v13923_v12  ;;  %v9698_v61 = vadd.f32 %v13961_v10, %v13947_v0  ;;  %v7758_v17 = vsel %vm7745_vm1, %v14114_v56, -inf  ;;  %v14126_v22 = vadd.f32 %v14044_v25, %v7598_v19  ;;  %v9826_v50 = vpop.f32.mrf.mxu1  ;;  %v15516_v35 = vld [vmem:[#allocation15_spill] sm:$0xff] }
 0x506   : > { %7756 = vmax.xlane.f32.xlu1 %v7755_v44  ;;  %v7450_v39 = vadd.f32 %v9695_v8, %v15515_v37  ;;  %v9810_v23 = vadd.f32 %v13963_v5, %v13949_v16  ;;  %v7606_v62 = vadd.f32 %v9804_v48, %v7445_v24  ;;  %v14132_v12 = vadd.f32 %v14044_v25, %v7603_v47  ;;  %v9715_v5 = vpop.f32.mrf.mxu0  ;;  %v15522_v8 = vld [vmem:[#allocation39_spill] sm:$0xff]  ;;  %v15523_v47 = vld [vmem:[#allocation42_spill] sm:$0xff]  ;;  %v15524_v37 = vld [vmem:[#allocation108_spill] sm:$0xff] }
 0x507   : > { %v7453_v0 = vadd.f32 %v9698_v61, %v15516_v35  ;;  %v9701_v10 = vadd.f32 %v13997_v57, %v13978_v32  ;;  %7759 = vmax.xlane.f32.xlu0 %v7758_v17  ;;  %v7761_v34 = vsel %vm7745_vm1, %v14126_v22, -inf  ;;  %v9813_v28 = vadd.f32 %v13999_v54, %v13980_v41  ;;  %v9827_v55 = vpop.f32.mrf.mxu1  ;;  %v15517_v54 = vld [vmem:[#allocation25_spill] sm:$0xff] }
 0x508   : > { %v7611_v60 = vadd.f32 %v9807_v14, %v7450_v39  ;;  %v9704_v16 = vadd.f32 %v14029_v13, %v14013_v63  ;;  %v7764_v31 = vsel %vm7745_vm1, %v14132_v12, -inf  ;;  %v14146_v15 = vadd.f32 %v14044_v25, %v7606_v62  ;;  %v9717_v38 = vpop.f32.mrf.mxu0  ;;  %v15525_v35 = vld [vmem:[#allocation109_spill] sm:$0xff] }
 0x509   : > { %v7614_v20 = vadd.f32 %v9810_v23, %v7453_v0  ;;  %v7458_v32 = vadd.f32 %v9701_v10, %v13937_v49  ;;  %v9816_v13 = vadd.f32 %v14031_v42, %v14015_v1  ;;  %v9707_v63 = vadd.f32 %v14053_v45, %v15517_v54  ;;  %v9829_v2 = vpop.f32.mrf.mxu1  ;;  %v15521_v1 = vld [vmem:[#allocation21_spill] sm:$0xff] }
 0x50a   : > { %7762 = vmax.xlane.f32.xlu1 %v7761_v34  ;;  %v14150_v57 = vadd.f32 %v14044_v25, %v7611_v60  ;;  %v7461_v41 = vadd.f32 %v9704_v16, %v13939_v27  ;;  %v9501_v46 = vadd.f32 %v15519_v3, %v15518_v18  ;;  %v7767_v49 = vsel %vm7745_vm1, %v14146_v15, -inf  ;;  %v9718_v48 = vpop.f32.mrf.mxu0  ;;  %v15528_v18 = vld [vmem:[#allocation112_spill] sm:$0xff] }
 0x50b   : > { %v7619_v51 = vadd.f32 %v9813_v28, %v7458_v32  ;;  %v14162_v44 = vadd.f32 %v14044_v25, %v7614_v20  ;;  %7765 = vmax.xlane.f32.xlu0 %v7764_v31  ;;  %v7466_v36 = vadd.f32 %v9707_v63, %v15520_v43  ;;  %v9819_v42 = vadd.f32 %v14055_v21, %v15521_v1  ;;  %v9830_v19 = vpop.f32.mrf.mxu1  ;;  %v15526_v31 = vld [vmem:[#allocation110_spill] sm:$0xff]  ;;  %v15532_v43 = vld [vmem:[#allocation49_spill] sm:$0xff] }
 0x50c   : > { %v7622_v27 = vadd.f32 %v9816_v13, %v7461_v41  ;;  %v9710_v45 = vadd.f32 %v14088_v58, %v14070_v59  ;;  %v9613_v11 = vadd.f32 %v15523_v47, %v15522_v8  ;;  %v7770_v24 = vsel %vm7745_vm1, %v14150_v57, -inf  ;;  %v9720_v58 = vpop.f32.mrf.mxu0 }
 0x50d   : > { %v14174_v14 = vadd.f32 %v14044_v25, %v7619_v51  ;;  %v9713_v61 = vadd.f32 %v9712_v52, %v9711_v53  ;;  %v7773_v17 = vsel %vm7745_vm1, %v14162_v44, -inf  ;;  %v7627_v21 = vadd.f32 %v9819_v42, %v7466_v36  ;;  %v9832_v23 = vpop.f32.mrf.mxu1  ;;  %v15529_v51 = vld [vmem:[#allocation45_spill] sm:$0xff] }
 0x50e   : > { %7768 = vmax.xlane.f32.xlu1 %v7767_v49  ;;  %v7469_v39 = vadd.f32 %v9710_v45, %v15524_v37  ;;  %v9822_v59 = vadd.f32 %v14090_v26, %v14072_v9  ;;  %v14182_v62 = vadd.f32 %v14044_v25, %v7622_v27  ;;  %v9825_v10 = vadd.f32 %v9824_v4, %v14104_v7  ;;  %v9721_v9 = vpop.f32.mrf.mxu0  ;;  %v15527_v4 = vld [vmem:[#allocation111_spill] sm:$0xff]  ;;  %v15530_v27 = vld [vmem:[#allocation48_spill] sm:$0xff] }
 0x50f   : > { %v7474_v0 = vadd.f32 %v9713_v61, %v15525_v35  ;;  %v9716_v53 = vadd.f32 %v9715_v5, %v9714_v40  ;;  %7771 = vmax.xlane.f32.xlu0 %v7770_v24  ;;  %v7776_v52 = vsel %vm7745_vm1, %v14174_v14, -inf  ;;  %v14189_v60 = vadd.f32 %v14044_v25, %v7627_v21  ;;  %v9833_v26 = vpop.f32.mrf.mxu1  ;;  %v15535_v35 = vld [vmem:[#allocation50_spill] sm:$0xff] }
 0x510   : > { %v7630_v34 = vadd.f32 %v9822_v59, %v7469_v39  ;;  %v9719_v28 = vadd.f32 %v9718_v48, %v9717_v38  ;;  %v9828_v32 = vadd.f32 %v9827_v55, %v9826_v50  ;;  %v9722_v41 = vadd.f32 %v9721_v9, %v9720_v58  ;;  %v9723_v5 = vpop.f32.mrf.mxu0  ;;  %v15531_v55 = vld [vmem:[#allocation46_spill] sm:$0xff]  ;;  %v15533_v39 = vld [vmem:[#allocation51_spill] sm:$0xff]  ;;  %v15534_v59 = vld [vmem:[#allocation53_spill] sm:$0xff] }
 0x511   : > { %v7635_v16 = vadd.f32 %v9825_v10, %v7474_v0  ;;  %v7477_v20 = vadd.f32 %v9716_v53, %v15526_v31  ;;  %v9835_v13 = vpop.f32.mrf.mxu1  ;;  %v7779_v54 = vsel %vm7745_vm1, %v14182_v62, -inf  ;;  %v9831_v38 = vadd.f32 %v9830_v19, %v9829_v2  ;;  %v15536_v0 = vld [vmem:[#allocation52_spill] sm:$0xff] }
 0x512   : > { %7774 = vmax.xlane.f32.xlu1 %v7773_v17  ;;  %v14193_v7 = vadd.f32 %v14044_v25, %v7630_v34  ;;  %v7482_v40 = vadd.f32 %v9719_v28, %v15527_v4  ;;  %v7485_v3 = vadd.f32 %v9722_v41, %v15528_v18  ;;  %v7137_v49 = vadd.f32 %v9613_v11, %v9501_v46  ;;  %v9724_v42 = vpop.f32.mrf.mxu0 }
 0x513   : > { %v7638_v63 = vadd.f32 %v9828_v32, %v7477_v20  ;;  %v9504_v50 = vadd.f32 %v15530_v27, %v15529_v51  ;;  %v9616_v36 = vadd.f32 %v15532_v43, %v15531_v55  ;;  %7777 = vmax.xlane.f32.xlu0 %v7776_v52  ;;  %v7782_v1 = vsel %vm7745_vm1, %v14189_v60, -inf  ;;  %v9836_v45 = vpop.f32.mrf.mxu1 }
 0x514   : > { %v7643_v48 = vadd.f32 %v9831_v38, %v7482_v40  ;;  %v14206_v8 = vadd.f32 %v14044_v25, %v7635_v16  ;;  %v9834_v2 = vadd.f32 %v9833_v26, %v9832_v23  ;;  %v9725_v19 = vadd.f32 %v9724_v42, %v9723_v5  ;;  %v9726_v47 = vpop.f32.mrf.mxu0  ;;  %v15539_v40 = vld [vmem:[#allocation54_spill] sm:$0xff]  ;;  %v15540_v5 = vld [vmem:[#allocation56_spill] sm:$0xff] }
 0x515   : > { %v7785_v46 = vsel %vm7745_vm1, %v14193_v7, -inf  ;;  %v9838_v11 = vpop.f32.mrf.mxu1  ;;  %v14211_v61 = vadd.f32 %v14044_v25, %v7638_v63  ;;  %v9837_v21 = vadd.f32 %v9836_v45, %v9835_v13  ;;  %v7140_v37 = vadd.f32 %v9616_v36, %v9504_v50  ;;  %v15542_v63 = vld [vmem:[#allocation57_spill] sm:$0xff] }
 0x516   : > { %7780 = vmax.xlane.f32.xlu1 %v7779_v54  ;;  %v7646_v24 = vadd.f32 %v9834_v2, %v7485_v3  ;;  %v7490_v17 = vadd.f32 %v9725_v19, %v7137_v49  ;;  %v9507_v58 = vadd.f32 %v15534_v59, %v15533_v39  ;;  %v9619_v23 = vadd.f32 %v15536_v0, %v15535_v35  ;;  %v9727_v10 = vpop.f32.mrf.mxu0  ;;  %v15541_v54 = vld [vmem:[#allocation55_spill] sm:$0xff] }
 0x517   : > { %7783 = vmax.xlane.f32.xlu0 %v7782_v1  ;;  %v9839_v53 = vpop.f32.mrf.mxu1  ;;  %v7788_v52 = vsel %vm7745_vm1, %v14206_v8, -inf  ;;  %v14220_v28 = vadd.f32 %v14044_v25, %v7643_v48  ;;  %v9728_v9 = vadd.f32 %v9727_v10, %v9726_v47  ;;  %v7791_v31 = vsel %vm7745_vm1, %v14211_v61, -inf }
 0x518   : > { %v7651_v34 = vadd.f32 %v9837_v21, %v7490_v17  ;;  %v9729_v26 = vpop.f32.mrf.mxu0  ;;  %v9840_v32 = vadd.f32 %v9839_v53, %v9838_v11  ;;  %v14225_v41 = vadd.f32 %v14044_v25, %v7646_v24  ;;  %v7145_v4 = vadd.f32 %v9619_v23, %v9507_v58  ;;  %v15544_v53 = vld [vmem:[#allocation58_spill] sm:$0xff] }
 0x519   : > { %15537 = vst [vmem:[#allocation23_spill] sm:$0xff] %v14220_v28  ;;  %v9841_v16 = vpop.f32.mrf.mxu1  ;;  %v7493_v20 = vadd.f32 %v9728_v9, %v7140_v37  ;;  %v9510_v13 = vadd.f32 %v15540_v5, %v15539_v40  ;;  %v9622_v38 = vadd.f32 %v15542_v63, %v15541_v54  ;;  %v7794_v49 = vsel %vm7745_vm1, %v14220_v28, -inf  ;;  %v15546_v9 = vld [vmem:[#allocation59_spill] sm:$0xff]  ;;  %v15549_v40 = vld [vmem:[#allocation64_spill] sm:$0xff]  ;;  %v15551_v54 = vld [vmem:[#allocation65_spill] sm:$0xff] }
 0x51a   : > { %7786 = vmax.xlane.f32.xlu1 %v7785_v46  ;;  %15538 = vst [vmem:[#allocation29_spill] sm:$0xff] %v14225_v41  ;;  %v9730_v18 = vpop.f32.mrf.mxu0  ;;  %v14234_v50 = vadd.f32 %v14044_v25, %v7651_v34  ;;  %v7797_v36 = vsel %vm7745_vm1, %v14225_v41, -inf }
 0x51b   : > { %7789 = vmax.xlane.f32.xlu0 %v7788_v52  ;;  %v9842_v3 = vpop.f32.mrf.mxu1  ;;  %v7654_v51 = vadd.f32 %v9840_v32, %v7493_v20  ;;  %v9731_v27 = vadd.f32 %v9730_v18, %v9729_v26  ;;  %v7148_v19 = vadd.f32 %v9622_v38, %v9510_v13  ;;  %v15545_v52 = vld [vmem:[#allocation60_spill] sm:$0xff]  ;;  %v15547_v26 = vld [vmem:[#allocation61_spill] sm:$0xff]  ;;  %v15550_v13 = vld [vmem:[#allocation63_spill] sm:$0xff] }
 0x51c   : > { %15543 = vst [vmem:[#allocation30_spill] sm:$0xff] %v14234_v50  ;;  %v9732_v55 = vpop.f32.mrf.mxu0  ;;  %v9843_v42 = vadd.f32 %v9842_v3, %v9841_v16  ;;  %v7800_v47 = vsel %vm7745_vm1, %v14234_v50, -inf  ;;  %v9513_v34 = vadd.f32 %v15545_v52, %v15544_v53  ;;  %v9625_v16 = vadd.f32 %v15547_v26, %v15546_v9 }
 0x51d   : > { %v9844_v43 = vpop.f32.mrf.mxu1  ;;  %v7498_v1 = vadd.f32 %v9731_v27, %v7145_v4  ;;  %v14239_v45 = vadd.f32 %v14044_v25, %v7654_v51  ;;  %v15548_v4 = vld [vmem:[#allocation62_spill] sm:$0xff]  ;;  %v9628_v63 = vadd.f32 %v15551_v54, %v15550_v13 }
 0x51e   : > { %7792 = vmax.xlane.f32.xlu1 %v7791_v31  ;;  %v9733_v48 = vpop.f32.mrf.mxu0  ;;  %v7153_v32 = vadd.f32 %v9625_v16, %v9513_v34  ;;  %v9516_v5 = vadd.f32 %v15549_v40, %v15548_v4  ;;  %v15556_v4 = vld [vmem:[#allocation113_spill] sm:$0xff] }
 0x51f   : > { %7795 = vmax.xlane.f32.xlu0 %v7794_v49  ;;  %v9845_v2 = vpop.f32.mrf.mxu1  ;;  %v7659_v46 = vadd.f32 %v9843_v42, %v7498_v1  ;;  %v9734_v11 = vadd.f32 %v9733_v48, %v9732_v55  ;;  %v7803_v21 = vsel %vm7745_vm1, %v14239_v45, -inf }
 0x520   : > { %v9846_v17 = vadd.f32 %v9845_v2, %v9844_v43  ;;  %v7156_v51 = vadd.f32 %v9628_v63, %v9516_v5 }
 0x521   : > { %v7501_v24 = vadd.f32 %v9734_v11, %v7148_v19  ;;  %v14246_v37 = vadd.f32 %v14044_v25, %v7659_v46 }
 0x522   : > { %7798 = vmax.xlane.f32.xlu1 %v7797_v36 }
 0x523   : > { %7801 = vmax.xlane.f32.xlu0 %v7800_v47  ;;  %v7662_v39 = vadd.f32 %v9846_v17, %v7501_v24  ;;  %v7806_v59 = vsel %vm7745_vm1, %v14246_v37, -inf }
 0x525   : > { %v14251_v58 = vadd.f32 %v14044_v25, %v7662_v39  ;;  %v15553_v39 = vld [vmem:[#allocation68_spill] sm:$0xff] }
 0x526   : > { %7804 = vmax.xlane.f32.xlu1 %v7803_v21  ;;  %v15552_v21 = vld [vmem:[#allocation67_spill] sm:$0xff] }
 0x527   : > { %7807 = vmax.xlane.f32.xlu0 %v7806_v59  ;;  %v7809_v35 = vsel %vm7745_vm1, %v14251_v58, -inf  ;;  %v9519_v59 = vadd.f32 %v15553_v39, %v15552_v21 }
 0x528   : > { %v9735_v0 = vpop.f32.mrf.mxu0 }
 0x52a   : > { %7810 = vmax.xlane.f32.xlu1 %v7809_v35  ;;  %v9736_v23 = vpop.f32.mrf.mxu0  ;;  %v15554_v35 = vld [vmem:[#allocation66_spill] sm:$0xff] }
 0x52b   : > { %v9737_v31 = vadd.f32 %v9736_v23, %v9735_v0  ;;  %v15555_v0 = vld [vmem:[#allocation69_spill] sm:$0xff] }
 0x52c   : > { %v9738_v10 = vpop.f32.mrf.mxu0  ;;  %v9631_v23 = vadd.f32 %v15555_v0, %v15554_v35 }
 0x52d   : > { %v7506_v18 = vadd.f32 %v9737_v31, %v7153_v32 }
 0x52e   : > { %v9739_v20 = vpop.f32.mrf.mxu0  ;;  %v7161_v52 = vadd.f32 %v9631_v23, %v9519_v59 }
 0x52f   : > { %v9740_v3 = vadd.f32 %v9739_v20, %v9738_v10 }
 0x531   : > { %v9847_v38 = vpop.f32.mrf.mxu1  ;;  %v7509_v36 = vadd.f32 %v9740_v3, %v7156_v51 }
 0x533   : > { %v9848_v49 = vpop.f32.mrf.mxu1 }
 0x534   : > { %v9849_v27 = vadd.f32 %v9848_v49, %v9847_v38 }
 0x535   : > { %v9850_v55 = vpop.f32.mrf.mxu1 }
 0x536   : > { %v7667_v43 = vadd.f32 %v9849_v27, %v7506_v18 }
 0x537   : > { %v9851_v1 = vpop.f32.mrf.mxu1 }
 0x538   : > { %v9852_v42 = vadd.f32 %v9851_v1, %v9850_v55  ;;  %v14264_v48 = vadd.f32 %v14044_v25, %v7667_v43  ;;  %v15557_v1 = vld [vmem:[#allocation114_spill] sm:$0xff] }
 0x53a   : > { %v7670_v2 = vadd.f32 %v9852_v42, %v7509_v36  ;;  %v7812_v19 = vsel %vm7745_vm1, %v14264_v48, -inf }
 0x53b   : > { %7813 = vmax.xlane.f32.xlu0 %v7812_v19 }
 0x53c   : > { %v14269_v46 = vadd.f32 %v14044_v25, %v7670_v2 }
 0x53e   : > { %v7815_v47 = vsel %vm7745_vm1, %v14269_v46, -inf }
 0x53f   : > { %7816 = vmax.xlane.f32.xlu1 %v7815_v47 }
 0x54c   : > { %v9741_v11 = vpop.f32.mrf.mxu0 }
 0x54e   : > { %v9742_v24 = vpop.f32.mrf.mxu0 }
 0x54f   : > { %v9743_v10 = vadd.f32 %v9742_v24, %v9741_v11 }
 0x550   : > { %v9744_v17 = vpop.f32.mrf.mxu0 }
 0x551   : > { %v7514_v9 = vadd.f32 %v9743_v10, %v7161_v52 }
 0x552   : > { %v9745_v53 = vpop.f32.mrf.mxu0 }
 0x553   : > { %v9746_v26 = vadd.f32 %v9745_v53, %v9744_v17  ;;  %v15558_v17 = vld [vmem:[#allocation16_spill] sm:$0xff] }
 0x555   : > { %v7517_v40 = vadd.f32 %v9746_v26, %v15556_v4 }
 0x557   : > { %v9853_v34 = vpop.f32.mrf.mxu1 }
 0x559   : > { %v9854_v16 = vpop.f32.mrf.mxu1 }
 0x55a   : > { %v9855_v31 = vadd.f32 %v9854_v16, %v9853_v34 }
 0x55b   : > { %v9856_v20 = vpop.f32.mrf.mxu1 }
 0x55c   : > { %v7675_v32 = vadd.f32 %v9855_v31, %v7514_v9 }
 0x55d   : > { %v9857_v5 = vpop.f32.mrf.mxu1 }
 0x55e   : > { %v9858_v13 = vadd.f32 %v9857_v5, %v9856_v20  ;;  %v14279_v54 = vadd.f32 %v14044_v25, %v7675_v32  ;;  %v15559_v20 = vld [vmem:[#allocation18_spill] sm:$0xff] }
 0x560   : > { %v7678_v63 = vadd.f32 %v9858_v13, %v7517_v40  ;;  %v7818_v38 = vsel %vm7745_vm1, %v14279_v54, -inf }
 0x561   : > { %7819 = vmax.xlane.f32.xlu0 %v7818_v38  ;;  %v15560_v38 = vld [vmem:[#allocation115_spill] sm:$0xff] }
 0x562   : > { %v14284_v18 = vadd.f32 %v14044_v25, %v7678_v63 }
 0x564   : > { %v7821_v3 = vsel %vm7745_vm1, %v14284_v18, -inf }
 0x565   : > { %7822 = vmax.xlane.f32.xlu1 %v7821_v3 }
 0x571   : > { %v9747_v49 = vpop.f32.mrf.mxu0 }
 0x573   : > { %v9748_v51 = vpop.f32.mrf.mxu0 }
 0x574   : > { %v9749_v55 = vadd.f32 %v9748_v51, %v9747_v49 }
 0x575   : > { %v9750_v27 = vpop.f32.mrf.mxu0 }
 0x576   : > { %v7522_v42 = vadd.f32 %v9749_v55, %v15557_v1 }
 0x577   : > { %v9751_v43 = vpop.f32.mrf.mxu0 }
 0x578   : > { %v9752_v2 = vadd.f32 %v9751_v43, %v9750_v27 }
 0x57a   : > { %v9859_v36 = vpop.f32.mrf.mxu1  ;;  %v7525_v21 = vadd.f32 %v9752_v2, %v15558_v17 }
 0x57c   : > { %v9860_v19 = vpop.f32.mrf.mxu1 }
 0x57d   : > { %v9861_v47 = vadd.f32 %v9860_v19, %v9859_v36 }
 0x57e   : > { %v9862_v11 = vpop.f32.mrf.mxu1 }
 0x57f   : > { %v7683_v24 = vadd.f32 %v9861_v47, %v7522_v42 }
 0x580   : > { %v9863_v39 = vpop.f32.mrf.mxu1 }
 0x581   : > { %v9864_v59 = vadd.f32 %v9863_v39, %v9862_v11  ;;  %v14291_v35 = vadd.f32 %v14044_v25, %v7683_v24 }
 0x583   : > { %v7686_v0 = vadd.f32 %v9864_v59, %v7525_v21  ;;  %v7824_v23 = vsel %vm7745_vm1, %v14291_v35, -inf  ;;  %v15561_v21 = vld [vmem:[#allocation19_spill] sm:$0xff] }
 0x584   : > { %7825 = vmax.xlane.f32.xlu0 %v7824_v23 }
 0x585   : > { %v14296_v10 = vadd.f32 %v14044_v25, %v7686_v0 }
 0x587   : > { %v7827_v53 = vsel %vm7745_vm1, %v14296_v10, -inf }
 0x588   : > { %7828 = vmax.xlane.f32.xlu1 %v7827_v53  ;;  %v7748_v11 = vpop.xlane.xlu0 %7747 }
 0x589   : > { %vm7842_vm2 = vcmp.ge.f32.partialorder %v14058_v33, %v7748_v11 }
 0x598   : > { %v9753_v52 = vpop.f32.mrf.mxu0 }
 0x59a   : > { %v9754_v34 = vpop.f32.mrf.mxu0 }
 0x59b   : > { %v9755_v26 = vadd.f32 %v9754_v34, %v9753_v52  ;;  %v15562_v52 = vld [vmem:[#allocation10_spill] sm:$0xff] }
 0x59c   : > { %v9756_v9 = vpop.f32.mrf.mxu0  ;;  %v14314_v34 = vcvt.s32.f32 %v15562_v52 }
 0x59d   : > { %v7530_v32 = vadd.f32 %v9755_v26, %v15559_v20 }
 0x59e   : > { %v9757_v16 = vpop.f32.mrf.mxu0 }
 0x59f   : > { %v9865_v31 = vpop.f32.mrf.mxu1  ;;  %v9758_v4 = vadd.f32 %v9757_v16, %v9756_v9  ;;  %v7754_v9 = vpop.xlane.xlu1 %7753  ;;  %v15563_v16 = vld [vmem:[#allocation20_spill] sm:$0xff] }
 0x5a0   : > { %vm7844_vm4 = vcmp.ge.f32.partialorder %v14079_v6, %v7754_v9 }
 0x5a1   : > { %v9866_v40 = vpop.f32.mrf.mxu1  ;;  %v7533_v3 = vadd.f32 %v9758_v4, %v15560_v38 }
 0x5a2   : > { %v9867_v5 = vadd.f32 %v9866_v40, %v9865_v31 }
 0x5a3   : > { %v9868_v13 = vpop.f32.mrf.mxu1  ;;  %v7757_v38 = vpop.xlane.xlu1 %7756 }
 0x5a4   : > { %v7691_v63 = vadd.f32 %v9867_v5, %v7530_v32  ;;  %v7751_v32 = vpop.xlane.xlu0 %7750  ;;  %v7874_v5 = vsel %vm7842_vm2, %v14314_v34, 10.0  ;;  %vm7845_vm5 = vcmp.ge.f32.partialorder %v14097_v30, %v7757_v38 }
 0x5a5   : > { %v9869_v49 = vpop.f32.mrf.mxu1  ;;  %vm7843_vm3 = vcmp.ge.f32.partialorder %v14066_v29, %v7751_v32 }
 0x5a6   : > { %v9870_v51 = vadd.f32 %v9869_v49, %v9868_v13  ;;  %v14303_v27 = vadd.f32 %v14044_v25, %v7691_v63 }
 0x5a8   : > { %v7694_v55 = vadd.f32 %v9870_v51, %v7533_v3  ;;  %v7830_v43 = vsel %vm7745_vm1, %v14303_v27, -inf  ;;  %v7760_v3 = vpop.xlane.xlu0 %7759  ;;  %v7906_v51 = vsel %vm7745_vm1, %v7874_v5, inf }
 0x5a9   : > { %7831 = vmax.xlane.f32.xlu0 %v7830_v43  ;;  %v7876_v43 = vsel %vm7844_vm4, %v14314_v34, 10.0  ;;  %vm7846_vm6 = vcmp.ge.f32.partialorder %v14114_v56, %v7760_v3 }
 0x5aa   : > { %v14308_v36 = vadd.f32 %v14044_v25, %v7694_v55  ;;  %v7875_v55 = vsel %vm7843_vm3, %v14314_v34, 10.0  ;;  %v7878_v11 = vsel %vm7846_vm6, %v14314_v34, 10.0 }
 0x5ac   : > { %v7833_v1 = vsel %vm7745_vm1, %v14308_v36, -inf }
 0x5ad   : > { %7834 = vmax.xlane.f32.xlu1 %v7833_v1 }
 0x5bd   : > { %v9759_v42 = vpop.f32.mrf.mxu0 }
 0x5bf   : > { %v9760_v2 = vpop.f32.mrf.mxu0 }
 0x5c0   : > { %v9761_v19 = vadd.f32 %v9760_v2, %v9759_v42  ;;  %v7763_v42 = vpop.xlane.xlu1 %7762  ;;  %v7766_v2 = vpop.xlane.xlu0 %7765 }
 0x5c1   : > { %v9762_v47 = vpop.f32.mrf.mxu0  ;;  %vm7847_vm7 = vcmp.ge.f32.partialorder %v14126_v22, %v7763_v42  ;;  %vm7848_vm8 = vcmp.ge.f32.partialorder %v14132_v12, %v7766_v2 }
 0x5c2   : > { %v7538_v39 = vadd.f32 %v9761_v19, %v15561_v21  ;;  %v7912_v19 = vsel %vm7745_vm1, %v7876_v43, inf }
 0x5c3   : > { %v9763_v17 = vpop.f32.mrf.mxu0 }
 0x5c4   : > { %v9764_v59 = vadd.f32 %v9763_v17, %v9762_v47  ;;  %v7877_v47 = vsel %vm7845_vm5, %v14314_v34, 10.0  ;;  %v7772_v17 = vpop.xlane.xlu0 %7771 }
 0x5c5   : > { %v9871_v24 = vpop.f32.mrf.mxu1  ;;  %v7915_v21 = vsel %vm7745_vm1, %v7877_v47, inf  ;;  %vm7850_vm10 = vcmp.ge.f32.partialorder %v14150_v57, %v7772_v17 }
 0x5c6   : > { %v7541_v31 = vadd.f32 %v9764_v59, %v15563_v16  ;;  %v7879_v59 = vsel %vm7847_vm7, %v14314_v34, 10.0  ;;  %v7882_v16 = vsel %vm7850_vm10, %v14314_v34, 10.0 }
 0x5c7   : > { %v9872_v0 = vpop.f32.mrf.mxu1  ;;  %v7921_v52 = vsel %vm7745_vm1, %v7879_v59, inf }
 0x5c8   : > { %v9873_v23 = vadd.f32 %v9872_v0, %v9871_v24  ;;  %v7769_v24 = vpop.xlane.xlu1 %7768  ;;  %v7880_v0 = vsel %vm7848_vm8, %v14314_v34, 10.0 }
 0x5c9   : > { %v9874_v53 = vpop.f32.mrf.mxu1  ;;  %vm7849_vm9 = vcmp.ge.f32.partialorder %v14146_v15, %v7769_v24  ;;  %v7924_v9 = vsel %vm7745_vm1, %v7880_v0, inf }
 0x5ca   : > { %v7699_v26 = vadd.f32 %v9873_v23, %v7538_v39  ;;  %v7918_v39 = vsel %vm7745_vm1, %v7878_v11, inf }
 0x5cb   : > { %v9875_v20 = vpop.f32.mrf.mxu1 }
 0x5cc   : > { %v9876_v4 = vadd.f32 %v9875_v20, %v9874_v53  ;;  %v14319_v40 = vadd.f32 %v14044_v25, %v7699_v26  ;;  %v7775_v23 = vpop.xlane.xlu1 %7774  ;;  %v7778_v53 = vpop.xlane.xlu0 %7777  ;;  %v7881_v26 = vsel %vm7849_vm9, %v14314_v34, 10.0 }
 0x5cd   : > { %vm7851_vm11 = vcmp.ge.f32.partialorder %v14162_v44, %v7775_v23  ;;  %vm7852_vm12 = vcmp.ge.f32.partialorder %v14174_v14, %v7778_v53  ;;  %v7927_v32 = vsel %vm7745_vm1, %v7881_v26, inf }
 0x5ce   : > { %v7702_v13 = vadd.f32 %v9876_v4, %v7541_v31  ;;  %v7836_v63 = vsel %vm7745_vm1, %v14319_v40, -inf  ;;  %v7930_v4 = vsel %vm7745_vm1, %v7882_v16, inf  ;;  %v7883_v5 = vsel %vm7851_vm11, %v14314_v34, 10.0 }
 0x5cf   : > { %7837 = vmax.xlane.f32.xlu0 %v7836_v63  ;;  %v7933_v3 = vsel %vm7745_vm1, %v7883_v5, inf }
 0x5d0   : > { %v14327_v49 = vadd.f32 %v14044_v25, %v7702_v13  ;;  %v7909_v25 = vsel %vm7745_vm1, %v7875_v55, inf  ;;  %v7781_v31 = vpop.xlane.xlu1 %7780  ;;  %v7784_v20 = vpop.xlane.xlu0 %7783  ;;  %v7884_v13 = vsel %vm7852_vm12, %v14314_v34, 10.0 }
 0x5d1   : > { %vm7853_vm13 = vcmp.ge.f32.partialorder %v14182_v62, %v7781_v31  ;;  %vm7854_vm14 = vcmp.ge.f32.partialorder %v14189_v60, %v7784_v20 }
 0x5d2   : > { %v7839_v1 = vsel %vm7745_vm1, %v14327_v49, -inf  ;;  %v7885_v55 = vsel %vm7853_vm13, %v14314_v34, 10.0  ;;  %v7886_v43 = vsel %vm7854_vm14, %v14314_v34, 10.0 }
 0x5d3   : > { %7840 = vmax.xlane.f32.xlu1 %v7839_v1  ;;  %7907 = vmin.xlane.f32.xlu0 %v7906_v51  ;;  %v7936_v51 = vsel %vm7745_vm1, %v7884_v13, inf  ;;  %v7939_v2 = vsel %vm7745_vm1, %v7885_v55, inf }
 0x5d4   : > { %v7787_v63 = vpop.xlane.xlu1 %7786  ;;  %v7790_v38 = vpop.xlane.xlu0 %7789 }
 0x5d5   : > { %vm7855_vm15 = vcmp.ge.f32.partialorder %v14193_v7, %v7787_v63  ;;  %vm7856_vm0 = vcmp.ge.f32.partialorder %v14206_v8, %v7790_v38 }
 0x5d6   : > { %v7888_v47 = vsel %vm7856_vm0, %v14314_v34, 10.0 }
 0x5d7   : > { %7910 = vmin.xlane.f32.xlu1 %v7909_v25  ;;  %7913 = vmin.xlane.f32.xlu0 %v7912_v19  ;;  %v7942_v25 = vsel %vm7745_vm1, %v7886_v43, inf  ;;  %v7887_v19 = vsel %vm7855_vm15, %v14314_v34, 10.0 }
 0x5d8   : > { %v7793_v1 = vpop.xlane.xlu1 %7792  ;;  %v7796_v42 = vpop.xlane.xlu0 %7795  ;;  %v7945_v17 = vsel %vm7745_vm1, %v7887_v19, inf }
 0x5d9   : > { %vm7857_vm2 = vcmp.ge.f32.partialorder %v14211_v61, %v7793_v1  ;;  %vm7858_vm3 = vcmp.ge.f32.partialorder %v14220_v28, %v7796_v42 }
 0x5da   : > { %v7890_v59 = vsel %vm7858_vm3, %v14314_v34, 10.0 }
 0x5db   : > { %7916 = vmin.xlane.f32.xlu1 %v7915_v21  ;;  %7919 = vmin.xlane.f32.xlu0 %v7918_v39  ;;  %v7948_v21 = vsel %vm7745_vm1, %v7888_v47, inf  ;;  %v7889_v39 = vsel %vm7857_vm2, %v14314_v34, 10.0 }
 0x5dc   : > { %v7799_v11 = vpop.xlane.xlu1 %7798  ;;  %v7802_v24 = vpop.xlane.xlu0 %7801  ;;  %v7951_v53 = vsel %vm7745_vm1, %v7889_v39, inf }
 0x5dd   : > { %vm7859_vm4 = vcmp.ge.f32.partialorder %v14225_v41, %v7799_v11  ;;  %vm7860_vm5 = vcmp.ge.f32.partialorder %v14234_v50, %v7802_v24 }
 0x5de   : > { %v7892_v26 = vsel %vm7860_vm5, %v14314_v34, 10.0 }
 0x5df   : > { %7922 = vmin.xlane.f32.xlu1 %v7921_v52  ;;  %7925 = vmin.xlane.f32.xlu0 %v7924_v9  ;;  %v7954_v52 = vsel %vm7745_vm1, %v7890_v59, inf  ;;  %v7891_v9 = vsel %vm7859_vm4, %v14314_v34, 10.0 }
 0x5e0   : > { %v7805_v0 = vpop.xlane.xlu1 %7804  ;;  %v7808_v23 = vpop.xlane.xlu0 %7807  ;;  %v7957_v20 = vsel %vm7745_vm1, %v7891_v9, inf }
 0x5e1   : > { %vm7861_vm6 = vcmp.ge.f32.partialorder %v14239_v45, %v7805_v0  ;;  %vm7862_vm7 = vcmp.ge.f32.partialorder %v14246_v37, %v7808_v23 }
 0x5e2   : > { %v7894_v5 = vsel %vm7862_vm7, %v14314_v34, 10.0 }
 0x5e3   : > { %7928 = vmin.xlane.f32.xlu1 %v7927_v32  ;;  %7931 = vmin.xlane.f32.xlu0 %v7930_v4  ;;  %v7960_v32 = vsel %vm7745_vm1, %v7892_v26, inf  ;;  %v7893_v4 = vsel %vm7861_vm6, %v14314_v34, 10.0 }
 0x5e4   : > { %v7811_v16 = vpop.xlane.xlu1 %7810  ;;  %v7814_v31 = vpop.xlane.xlu0 %7813  ;;  %v7963_v38 = vsel %vm7745_vm1, %v7893_v4, inf }
 0x5e5   : > { %vm7863_vm8 = vcmp.ge.f32.partialorder %v14251_v58, %v7811_v16  ;;  %vm7864_vm9 = vcmp.ge.f32.partialorder %v14264_v48, %v7814_v31 }
 0x5e6   : > { %v7896_v55 = vsel %vm7864_vm9, %v14314_v34, 10.0 }
 0x5e7   : > { %7934 = vmin.xlane.f32.xlu1 %v7933_v3  ;;  %7937 = vmin.xlane.f32.xlu0 %v7936_v51  ;;  %v7966_v3 = vsel %vm7745_vm1, %v7894_v5, inf  ;;  %v7895_v51 = vsel %vm7863_vm8, %v14314_v34, 10.0  ;;  %v7972_v42 = vsel %vm7745_vm1, %v7896_v55, inf }
 0x5e8   : > { %v7817_v13 = vpop.xlane.xlu1 %7816  ;;  %v7969_v1 = vsel %vm7745_vm1, %v7895_v51, inf }
 0x5e9   : > { %vm7865_vm10 = vcmp.ge.f32.partialorder %v14269_v46, %v7817_v13 }
 0x5ea   : > { %v7820_v63 = vpop.xlane.xlu0 %7819 }
 0x5eb   : > { %7940 = vmin.xlane.f32.xlu1 %v7939_v2  ;;  %7943 = vmin.xlane.f32.xlu0 %v7942_v25  ;;  %vm7866_vm11 = vcmp.ge.f32.partialorder %v14279_v54, %v7820_v63  ;;  %v7897_v2 = vsel %vm7865_vm10, %v14314_v34, 10.0 }
 0x5ec   : > { %v7898_v25 = vsel %vm7866_vm11, %v14314_v34, 10.0  ;;  %v7975_v19 = vsel %vm7745_vm1, %v7897_v2, inf }
 0x5ed   : > { %v7978_v47 = vsel %vm7745_vm1, %v7898_v25, inf }
 0x5ee   : > { %v7823_v43 = vpop.xlane.xlu1 %7822 }
 0x5ef   : > { %7946 = vmin.xlane.f32.xlu1 %v7945_v17  ;;  %7949 = vmin.xlane.f32.xlu0 %v7948_v21  ;;  %vm7867_vm12 = vcmp.ge.f32.partialorder %v14284_v18, %v7823_v43 }
 0x5f0   : > { %v7899_v11 = vsel %vm7867_vm12, %v14314_v34, 10.0 }
 0x5f1   : > { %v7981_v24 = vsel %vm7745_vm1, %v7899_v11, inf }
 0x5f3   : > { %7952 = vmin.xlane.f32.xlu1 %v7951_v53  ;;  %7955 = vmin.xlane.f32.xlu0 %v7954_v52 }
 0x5f7   : > { %7958 = vmin.xlane.f32.xlu1 %v7957_v20  ;;  %7961 = vmin.xlane.f32.xlu0 %v7960_v32 }
 0x5fb   : > { %7964 = vmin.xlane.f32.xlu1 %v7963_v38  ;;  %7967 = vmin.xlane.f32.xlu0 %v7966_v3 }
 0x5ff   : > { %7970 = vmin.xlane.f32.xlu1 %v7969_v1  ;;  %7973 = vmin.xlane.f32.xlu0 %v7972_v42 }
 0x603   : > { %7976 = vmin.xlane.f32.xlu1 %v7975_v19  ;;  %7979 = vmin.xlane.f32.xlu0 %v7978_v47 }
 0x607   : > { %7982 = vmin.xlane.f32.xlu1 %v7981_v24 }
 0x60d   : > { %v7826_v17 = vpop.xlane.xlu0 %7825 }
 0x60e   : > { %vm7868_vm13 = vcmp.ge.f32.partialorder %v14291_v35, %v7826_v17 }
 0x60f   : > { %v7900_v21 = vsel %vm7868_vm13, %v14314_v34, 10.0 }
 0x610   : > { %v7984_v39 = vsel %vm7745_vm1, %v7900_v21, inf }
 0x611   : > { %v7829_v59 = vpop.xlane.xlu1 %7828  ;;  %7985 = vmin.xlane.f32.xlu0 %v7984_v39 }
 0x612   : > { %vm7869_vm14 = vcmp.ge.f32.partialorder %v14296_v10, %v7829_v59 }
 0x613   : > { %v7901_v0 = vsel %vm7869_vm14, %v14314_v34, 10.0 }
 0x614   : > { %v7987_v23 = vsel %vm7745_vm1, %v7901_v0, inf }
 0x615   : > { %7988 = vmin.xlane.f32.xlu1 %v7987_v23 }
 0x632   : > { %v7832_v53 = vpop.xlane.xlu0 %7831 }
 0x633   : > { %vm7870_vm15 = vcmp.ge.f32.partialorder %v14303_v27, %v7832_v53 }
 0x634   : > { %v7902_v52 = vsel %vm7870_vm15, %v14314_v34, 10.0 }
 0x635   : > { %v7990_v9 = vsel %vm7745_vm1, %v7902_v52, inf }
 0x636   : > { %v7835_v26 = vpop.xlane.xlu1 %7834  ;;  %7991 = vmin.xlane.f32.xlu0 %v7990_v9 }
 0x637   : > { %vm7871_vm0 = vcmp.ge.f32.partialorder %v14308_v36, %v7835_v26 }
 0x638   : > { %v7903_v16 = vsel %vm7871_vm0, %v14314_v34, 10.0 }
 0x639   : > { %v7993_v31 = vsel %vm7745_vm1, %v7903_v16, inf }
 0x63a   : > { %7994 = vmin.xlane.f32.xlu1 %v7993_v31 }
 0x658   : > { %v7838_v20 = vpop.xlane.xlu0 %7837 }
 0x659   : > { %vm7872_vm2 = vcmp.ge.f32.partialorder %v14319_v40, %v7838_v20 }
 0x65a   : > { %v7904_v32 = vsel %vm7872_vm2, %v14314_v34, 10.0 }
 0x65b   : > { %v7996_v4 = vsel %vm7745_vm1, %v7904_v32, inf }
 0x65c   : > { %v7841_v5 = vpop.xlane.xlu1 %7840  ;;  %7997 = vmin.xlane.f32.xlu0 %v7996_v4  ;;  %v14420_v13 = vpop.xlane.xlu0 %7907 }
 0x65d   : > { %15564 = vst [vmem:[#allocation31_spill] sm:$0xff] %v14420_v13  ;;  %vm7873_vm3 = vcmp.ge.f32.partialorder %v14327_v49, %v7841_v5 }
 0x65e   : > { %v7905_v63 = vsel %vm7873_vm3, %v14314_v34, 10.0 }
 0x65f   : > { %v7999_v38 = vsel %vm7745_vm1, %v7905_v63, inf }
 0x660   : > { %8000 = vmin.xlane.f32.xlu1 %v7999_v38  ;;  %v14427_v3 = vpop.xlane.xlu1 %7910  ;;  %v14429_v51 = vpop.xlane.xlu0 %7913 }
 0x661   : > { %15565 = vst [vmem:[#allocation32_spill] sm:$0xff] %v14427_v3  ;;  %15566 = vst [vmem:[#allocation34_spill] sm:$0xff] %v14429_v51 }
 0x664   : > { %v14435_v55 = vpop.xlane.xlu1 %7916  ;;  %v14437_v43 = vpop.xlane.xlu0 %7919 }
 0x665   : > { %15567 = vst [vmem:[#allocation33_spill] sm:$0xff] %v14435_v55 }
 0x668   : > { %v14443_v1 = vpop.xlane.xlu1 %7922  ;;  %v14445_v42 = vpop.xlane.xlu0 %7925 }
 0x66c   : > { %v14451_v2 = vpop.xlane.xlu1 %7928  ;;  %v14453_v25 = vpop.xlane.xlu0 %7931 }
 0x66d   : > { %vm15036_vm11 = vcmp.eq.f32.partialorder %v14314_v34, %v14453_v25 }
 0x670   : > { %v14459_v19 = vpop.xlane.xlu1 %7934  ;;  %v14461_v47 = vpop.xlane.xlu0 %7937 }
 0x671   : > { %vm15034_vm12 = vcmp.eq.f32.partialorder %v14314_v34, %v14459_v19  ;;  %vm8012_vm13 = vcmp.eq.f32.partialorder %v14314_v34, %v14461_v47 }
 0x674   : > { %v14467_v11 = vpop.xlane.xlu1 %7940  ;;  %v14469_v24 = vpop.xlane.xlu0 %7943 }
 0x675   : > { %vm8013_vm14 = vcmp.eq.f32.partialorder %v14314_v34, %v14467_v11  ;;  %vm8014_vm15 = vcmp.eq.f32.partialorder %v14314_v34, %v14469_v24 }
 0x678   : > { %v14475_v17 = vpop.xlane.xlu1 %7946  ;;  %v14477_v21 = vpop.xlane.xlu0 %7949 }
 0x679   : > { %vm8015_vm0 = vcmp.eq.f32.partialorder %v14314_v34, %v14475_v17  ;;  %vm8016_vm2 = vcmp.eq.f32.partialorder %v14314_v34, %v14477_v21 }
 0x67c   : > { %v14483_v39 = vpop.xlane.xlu1 %7952  ;;  %v14485_v59 = vpop.xlane.xlu0 %7955 }
 0x67d   : > { %15568 = vst [vmem:[#allocation35_spill] sm:$0xff] %v14485_v59  ;;  %vm8017_vm3 = vcmp.eq.f32.partialorder %v14314_v34, %v14483_v39 }
 0x680   : > { %v14491_v0 = vpop.xlane.xlu1 %7958  ;;  %v14493_v23 = vpop.xlane.xlu0 %7961 }
 0x681   : > { %15569 = vst [vmem:[#allocation36_spill] sm:$0xff] %v14491_v0  ;;  %15570 = vst [vmem:[#allocation37_spill] sm:$0xff] %v14493_v23 }
 0x684   : > { %v14499_v53 = vpop.xlane.xlu1 %7964  ;;  %v14501_v52 = vpop.xlane.xlu0 %7967 }
 0x688   : > { %v14507_v9 = vpop.xlane.xlu1 %7970  ;;  %v14509_v26 = vpop.xlane.xlu0 %7973 }
 0x68c   : > { %v14515_v16 = vpop.xlane.xlu1 %7976  ;;  %v14517_v31 = vpop.xlane.xlu0 %7979 }
 0x68d   : > { %vm15035_vm1 = vcmp.eq.f32.partialorder %v14314_v34, %v14517_v31 }
 0x690   : > { %v14523_v20 = vpop.xlane.xlu1 %7982 }
 0x691   : > { %vm8027_vm4 = vcmp.eq.f32.partialorder %v14314_v34, %v14523_v20 }
 0x69a   : > { %v14527_v32 = vpop.xlane.xlu0 %7985 }
 0x69b   : > { %vm8028_vm8 = vcmp.eq.f32.partialorder %v14314_v34, %v14527_v32 }
 0x69e   : > { %v14531_v4 = vpop.xlane.xlu1 %7988 }
 0x69f   : > { %vm8029_vm5 = vcmp.eq.f32.partialorder %v14314_v34, %v14531_v4 }
 0x6bf   : > { %v14535_v5 = vpop.xlane.xlu0 %7991 }
 0x6c0   : > { %vm8030_vm9 = vcmp.eq.f32.partialorder %v14314_v34, %v14535_v5 }
 0x6c3   : > { %v14539_v63 = vpop.xlane.xlu1 %7994 }
 0x6c4   : > { %vm8031_vm6 = vcmp.eq.f32.partialorder %v14314_v34, %v14539_v63 }
 0x6e5   : > { %v14543_v38 = vpop.xlane.xlu0 %7997 }
 0x6e6   : > { %vm8032_vm10 = vcmp.eq.f32.partialorder %v14314_v34, %v14543_v38  ;;  %8102 = sbr.rel (%p9351_p5) target bundleno = 2005 (0x7d5), region = 36 }
 0x6e9   : > { %v14547_v13 = vpop.xlane.xlu1 %8000 }
 0x6ea   : > { %vm8033_vm7 = vcmp.eq.f32.partialorder %v14314_v34, %v14547_v13 }
 0x6eb   : > { %9877 = vmatprep.subr.mxu0 %v14327_v49  ;;  %v10715_v59 = vmov 1.0  }
 0x6ec   : > { %9878 = vmatpush3.msra.mxu0 %v14211_v61  ;;  %9912 = vmatprep.subr.msk.mxu1 %vm8033_vm7, %v10715_v59 }
 0x6ed   : > { %9879 = vmatprep.subr.mxu0 %v14319_v40  ;;  %9913 = vmatpush3.msk.msra.mxu1 %vm8017_vm3, %v10715_v59 }
 0x6ee   : > { %9880 = vmatpush3.msra.mxu0 %v14206_v8  ;;  %9914 = vmatprep.subr.msk.mxu1 %vm8032_vm10, %v10715_v59 }
 0x6ef   : > { %9881 = vmatprep.subr.mxu0 %v14308_v36  ;;  %9915 = vmatpush3.msk.msra.mxu1 %vm8016_vm2, %v10715_v59 }
 0x6f0   : > { %9882 = vmatpush3.msra.mxu0 %v14193_v7  ;;  %9916 = vmatprep.subr.msk.mxu1 %vm8031_vm6, %v10715_v59 }
 0x6f1   : > { %9883 = vmatprep.subr.mxu0 %v14303_v27  ;;  %9917 = vmatpush3.msk.msra.mxu1 %vm8015_vm0, %v10715_v59 }
 0x6f2   : > { %9884 = vmatpush3.msra.mxu0 %v14189_v60  ;;  %9918 = vmatprep.subr.msk.mxu1 %vm8030_vm9, %v10715_v59 }
 0x6f3   : > { %9885 = vmatprep.subr.mxu0 %v14296_v10  ;;  %9919 = vmatpush3.msk.msra.mxu1 %vm8014_vm15, %v10715_v59 }
 0x6f4   : > { %9886 = vmatpush3.msra.mxu0 %v14182_v62  ;;  %9920 = vmatprep.subr.msk.mxu1 %vm8029_vm5, %v10715_v59 }
 0x6f5   : > { %9887 = vmatprep.subr.mxu0 %v14291_v35  ;;  %9921 = vmatpush3.msk.msra.mxu1 %vm8013_vm14, %v10715_v59 }
 0x6f6   : > { %9888 = vmatpush3.msra.mxu0 %v14174_v14  ;;  %9922 = vmatprep.subr.msk.mxu1 %vm8028_vm8, %v10715_v59 }
 0x6f7   : > { %9889 = vmatprep.subr.mxu0 %v14284_v18  ;;  %9923 = vmatpush3.msk.msra.mxu1 %vm8012_vm13, %v10715_v59 }
 0x6f8   : > { %9890 = vmatpush3.msra.mxu0 %v14162_v44  ;;  %9924 = vmatprep.subr.msk.mxu1 %vm8027_vm4, %v10715_v59 }
 0x6f9   : > { %9891 = vmatprep.subr.mxu0 %v14279_v54  ;;  %9925 = vmatpush3.msk.msra.mxu1 %vm15034_vm12, %v10715_v59  ;;  %vm15571_vm12 = vcmp.eq.f32.partialorder %v14314_v34, %v14515_v16 }
 0x6fa   : > { %9892 = vmatpush3.msra.mxu0 %v14150_v57  ;;  %9926 = vmatprep.subr.msk.mxu1 %vm15035_vm1, %v10715_v59  ;;  %vm15572_vm1 = vcmp.eq.f32.partialorder %v14314_v34, %v14451_v2 }
 0x6fb   : > { %9893 = vmatprep.subr.mxu0 %v14269_v46  ;;  %9927 = vmatpush3.msk.msra.mxu1 %vm15036_vm11, %v10715_v59  ;;  %vm15573_vm11 = vcmp.eq.f32.partialorder %v14314_v34, %v14509_v26 }
 0x6fc   : > { %9894 = vmatpush3.msra.mxu0 %v14146_v15  ;;  %9928 = vmatprep.subr.msk.mxu1 %vm15571_vm12, %v10715_v59  ;;  %vm15574_vm12 = vcmp.eq.f32.partialorder %v14314_v34, %v14445_v42 }
 0x6fd   : > { %9895 = vmatprep.subr.mxu0 %v14264_v48  ;;  %9929 = vmatpush3.msk.msra.mxu1 %vm15572_vm1, %v10715_v59  ;;  %vm15575_vm1 = vcmp.eq.f32.partialorder %v14314_v34, %v14507_v9 }
 0x6fe   : > { %9896 = vmatpush3.msra.mxu0 %v14132_v12  ;;  %9930 = vmatprep.subr.msk.mxu1 %vm15573_vm11, %v10715_v59  ;;  %vm15576_vm11 = vcmp.eq.f32.partialorder %v14314_v34, %v14443_v1 }
 0x6ff   : > { %9897 = vmatprep.subr.mxu0 %v14251_v58  ;;  %9931 = vmatpush3.msk.msra.mxu1 %vm15574_vm12, %v10715_v59  ;;  %vm15577_vm12 = vcmp.eq.f32.partialorder %v14314_v34, %v14501_v52 }
 0x700   : > { %9898 = vmatpush3.msra.mxu0 %v14126_v22  ;;  %9932 = vmatprep.subr.msk.mxu1 %vm15575_vm1, %v10715_v59  ;;  %vm15578_vm1 = vcmp.eq.f32.partialorder %v14314_v34, %v14437_v43 }
 0x701   : > { %9899 = vmatprep.subr.mxu0 %v14246_v37  ;;  %9933 = vmatpush3.msk.msra.mxu1 %vm15576_vm11, %v10715_v59  ;;  %vm15579_vm11 = vcmp.eq.f32.partialorder %v14314_v34, %v14499_v53 }
 0x702   : > { %9900 = vmatpush3.msra.mxu0 %v14114_v56  ;;  %9934 = vmatprep.subr.msk.mxu1 %vm15577_vm12, %v10715_v59  ;;  %vm15580_vm12 = vcmp.eq.f32.partialorder %v14314_v34, %v14435_v55 }
 0x703   : > { %9901 = vmatprep.subr.mxu0 %v14239_v45  ;;  %9935 = vmatpush3.msk.msra.mxu1 %vm15578_vm1, %v10715_v59  ;;  %vm15581_vm1 = vcmp.eq.f32.partialorder %v14314_v34, %v14493_v23  ;;  %v8177_v23 = vld [vmem:[#allocation6] sm:$0x1] }
 0x704   : > { %9902 = vmatpush3.msra.mxu0 %v14097_v30  ;;  %9936 = vmatprep.subr.msk.mxu1 %vm15579_vm11, %v10715_v59  ;;  %vm15582_vm11 = vcmp.eq.f32.partialorder %v14314_v34, %v14429_v51  ;;  %v15585_v51 = vld [vmem:[#allocation35_spill] sm:$0xff] }
 0x705   : > { %9903 = vmatprep.subr.mxu0 %v14234_v50  ;;  %9937 = vmatpush3.msk.msra.mxu1 %vm15580_vm12, %v10715_v59  ;;  %vm15583_vm12 = vcmp.eq.f32.partialorder %v14314_v34, %v14491_v0  ;;  %v15587_v0 = vld [vmem:[#allocation31_spill] sm:$0xff] }
 0x706   : > { %9904 = vmatpush3.msra.mxu0 %v14079_v6  ;;  %9938 = vmatprep.subr.msk.mxu1 %vm15581_vm1, %v10715_v59  ;;  %vm15584_vm1 = vcmp.eq.f32.partialorder %v14314_v34, %v14427_v3 }
 0x707   : > { %9905 = vmatprep.subr.mxu0 %v14225_v41  ;;  %9939 = vmatpush3.msk.msra.mxu1 %vm15582_vm11, %v10715_v59  ;;  %vm15586_vm11 = vcmp.eq.f32.partialorder %v14314_v34, %v15585_v51 }
 0x708   : > { %9906 = vmatpush3.msra.mxu0 %v14066_v29  ;;  %9940 = vmatprep.subr.msk.mxu1 %vm15583_vm12, %v10715_v59  ;;  %vm15588_vm12 = vcmp.eq.f32.partialorder %v14314_v34, %v15587_v0 }
 0x709   : > { %9907 = vmatprep.subr.mxu0 %v14220_v28  ;;  %9941 = vmatpush3.msk.msra.mxu1 %vm15584_vm1, %v10715_v59  ;;  %v8103_v28 = vld [vmem:[#allocation4] sm:$0x1]  ;;  %vm8175_vm1 = vcmask 73728  }
 0x70a   : > { %9908 = vmatpush3.msra.mxu0 %v14058_v33  ;;  %8168 = vmatprep.mubr.f32.mxu0 %v10715_v59 }
 0x70b   : > { %9942 = vmatprep.subr.msk.mxu1 %vm15586_vm11, %v10715_v59  ;;  %8169 = vmatmul.mubr.f32.vlgmr.msra.gmra.mxu0 %v10715_v59 }
 0x70c   : > { %9943 = vmatpush3.msk.msra.mxu1 %vm15588_vm12, %v10715_v59  ;;  %8242 = vmatprep.mubr.f32.mxu1 %v10715_v59 }
 0x70d   : > { %8243 = vmatmul.mubr.f32.vlgmr.msra.gmra.mxu1 %v10715_v59 }
 0x7cb   : > { %v9909_v3 = vpop.f32.mrf.mxu0 }
 0x7cd   : > { %v9944_v33 = vpop.f32.mrf.mxu1  ;;  %v9910_v29 = vpop.f32.mrf.mxu0 }
 0x7ce   : > { %v9911_v41 = vadd.f32 %v9910_v29, %v9909_v3 }
 0x7cf   : > { %v9945_v51 = vpop.f32.mrf.mxu1 }
 0x7d0   : > { %v8174_v6 = vadd.f32 %v9911_v41, %v8103_v28  ;;  %v9946_v55 = vadd.f32 %v9945_v51, %v9944_v33 }
 0x7d2   : > { %8176 = vst.msk [vmem:[#allocation4] sm:$0x1] %vm8175_vm1, %v8174_v6  ;;  %v8248_v50 = vadd.f32 %v9946_v55, %v8177_v23 }
 0x7d4   : > { %8249 = vst.msk [vmem:[#allocation6] sm:$0x1] %vm8175_vm1, %v8248_v50 }
 0x7d5 PF: > { %p9384_p6 = scmp.ge.s32.totalorder %s10774_s26, 256 }
 0x7d7   : > { %8253 = sbr.rel (%p9384_p6) target bundleno = 2246 (0x8c6), region = 40 }
 0x7dc   : > { %9947 = vmatprep.subr.mxu0 %v14327_v49  ;;  %v10716_v59 = vmov 1.0   ;;  %v8254_v33 = vstv %s10774_s26  ;;  %v15601_v29 = vld [vmem:[#allocation30_spill] sm:$0xff]  ;;  %v15602_v6 = vld [vmem:[#allocation33_spill] sm:$0xff] }
 0x7dd   : > { %9948 = vmatpush3.msra.mxu0 %v14211_v61  ;;  %9982 = vmatprep.subr.msk.mxu1 %vm8033_vm7, %v10716_v59  ;;  %vm15592_vm7 = vcmp.eq.f32.partialorder %v14314_v34, %v14515_v16  ;;  %v15621_v61 = vld [vmem:[#allocation31_spill] sm:$0xff]  ;;  %v8261_v50 = vld [vmem:[#allocation4] sm:$0x1] }
 0x7de   : > { %9949 = vmatprep.subr.mxu0 %v14319_v40  ;;  %9983 = vmatpush3.msk.msra.mxu1 %vm8017_vm3, %v10716_v59  ;;  %vm15603_vm3 = vcmp.eq.f32.partialorder %v14314_v34, %v15602_v6 }
 0x7df   : > { %9950 = vmatpush3.msra.mxu0 %v14206_v8  ;;  %9984 = vmatprep.subr.msk.mxu1 %vm8032_vm10, %v10716_v59  ;;  %vm15595_vm10 = vcmp.eq.f32.partialorder %v14314_v34, %v14445_v42  ;;  %v15619_v8 = vld [vmem:[#allocation35_spill] sm:$0xff] }
 0x7e0   : > { %9951 = vmatprep.subr.mxu0 %v14308_v36  ;;  %9985 = vmatpush3.msk.msra.mxu1 %vm8016_vm2, %v10716_v59  ;;  %vm15600_vm2 = vcmp.eq.f32.partialorder %v14314_v34, %v14499_v53 }
 0x7e1   : > { %9952 = vmatpush3.msra.mxu0 %v14193_v7  ;;  %9986 = vmatprep.subr.msk.mxu1 %vm8031_vm6, %v10716_v59  ;;  %vm15590_vm6 = vcmp.eq.f32.partialorder %v14314_v34, %v14517_v31  ;;  %v15618_v7 = vld [vmem:[#allocation22_spill] sm:$0xff] }
 0x7e2   : > { %9953 = vmatprep.subr.mxu0 %v14303_v27  ;;  %9987 = vmatpush3.msk.msra.mxu1 %vm8015_vm0, %v10716_v59  ;;  %vm15599_vm0 = vcmp.eq.f32.partialorder %v14314_v34, %v14437_v43 }
 0x7e3   : > { %9954 = vmatpush3.msra.mxu0 %v14189_v60  ;;  %9988 = vmatprep.subr.msk.mxu1 %vm8030_vm9, %v10716_v59  ;;  %vm15594_vm9 = vcmp.eq.f32.partialorder %v14314_v34, %v14509_v26  ;;  %v15616_v60 = vld [vmem:[#allocation32_spill] sm:$0xff] }
 0x7e4   : > { %9955 = vmatprep.subr.mxu0 %v14296_v10  ;;  %9989 = vmatpush3.msk.msra.mxu1 %vm8014_vm15, %v10716_v59  ;;  %vm15598_vm15 = vcmp.eq.f32.partialorder %v14314_v34, %v14501_v52 }
 0x7e5   : > { %9956 = vmatpush3.msra.mxu0 %v14182_v62  ;;  %9990 = vmatprep.subr.msk.mxu1 %vm8029_vm5, %v10716_v59  ;;  %vm15589_vm5 = vcmp.eq.f32.partialorder %v14314_v34, %v14459_v19  ;;  %v15615_v62 = vld [vmem:[#allocation23_spill] sm:$0xff] }
 0x7e6   : > { %9957 = vmatprep.subr.mxu0 %v14291_v35  ;;  %9991 = vmatpush3.msk.msra.mxu1 %vm8013_vm14, %v10716_v59  ;;  %vm15597_vm14 = vcmp.eq.f32.partialorder %v14314_v34, %v14443_v1 }
 0x7e7   : > { %9958 = vmatpush3.msra.mxu0 %v14174_v14  ;;  %9992 = vmatprep.subr.msk.mxu1 %vm8028_vm8, %v10716_v59  ;;  %vm15593_vm8 = vcmp.eq.f32.partialorder %v14314_v34, %v14451_v2  ;;  %v15614_v14 = vld [vmem:[#allocation10_spill] sm:$0xff] }
 0x7e8   : > { %9959 = vmatprep.subr.mxu0 %v14284_v18  ;;  %9993 = vmatpush3.msk.msra.mxu1 %vm8012_vm13, %v10716_v59  ;;  %vm15596_vm13 = vcmp.eq.f32.partialorder %v14314_v34, %v14507_v9 }
 0x7e9   : > { %9960 = vmatpush3.msra.mxu0 %v14162_v44  ;;  %9994 = vmatprep.subr.msk.mxu1 %vm8027_vm4, %v10716_v59  ;;  %vm15591_vm4 = vcmp.eq.f32.partialorder %v14314_v34, %v14453_v25  ;;  %v15612_v44 = vld [vmem:[#allocation36_spill] sm:$0xff] }
 0x7ea   : > { %9961 = vmatprep.subr.mxu0 %v14279_v54  ;;  %9995 = vmatpush3.msk.msra.mxu1 %vm15589_vm5, %v10716_v59  ;;  %vm15613_vm5 = vcmp.eq.f32.partialorder %v14314_v34, %v15612_v44 }
 0x7eb   : > { %9962 = vmatpush3.msra.mxu0 %v14150_v57  ;;  %9996 = vmatprep.subr.msk.mxu1 %vm15590_vm6, %v10716_v59  ;;  %v15611_v57 = vld [vmem:[#allocation26_spill] sm:$0xff]  ;;  %vm8255_vm6 = vcmp.lt.s32.totalorder %v15614_v14, %v8254_v33 }
 0x7ec   : > { %9963 = vmatprep.subr.mxu0 %v14269_v46  ;;  %9997 = vmatpush3.msk.msra.mxu1 %vm15591_vm4, %v10716_v59  ;;  %vm15617_vm4 = vcmp.eq.f32.partialorder %v14314_v34, %v15616_v60 }
 0x7ed   : > { %9964 = vmatpush3.msra.mxu0 %v14146_v15  ;;  %9998 = vmatprep.subr.msk.mxu1 %vm15592_vm7, %v10716_v59  ;;  %v15610_v15 = vld [vmem:[#allocation11_spill] sm:$0xff]  ;;  %vm15620_vm7 = vcmp.eq.f32.partialorder %v14314_v34, %v15619_v8 }
 0x7ee   : > { %9965 = vmatprep.subr.mxu0 %v14264_v48  ;;  %9999 = vmatpush3.msk.msra.mxu1 %vm15593_vm8, %v10716_v59  ;;  %vm8256_vm1 = vcmp.lt.s32.totalorder %v15610_v15, %v8254_v33  ;;  %vm15622_vm8 = vcmp.eq.f32.partialorder %v14314_v34, %v15621_v61 }
 0x7ef   : > { %9966 = vmatpush3.msra.mxu0 %v14132_v12  ;;  %10000 = vmatprep.subr.msk.mxu1 %vm15594_vm9, %v10716_v59  ;;  %v15608_v12 = vld [vmem:[#allocation34_spill] sm:$0xff]  ;;  %vm8333_vm9 = vcmask 73728  }
 0x7f0   : > { %9967 = vmatprep.subr.mxu0 %v14251_v58  ;;  %10001 = vmatpush3.msk.msra.mxu1 %vm15595_vm10, %v10716_v59  ;;  %vm15609_vm12 = vcmp.eq.f32.partialorder %v14314_v34, %v15608_v12  ;;  %v8335_v58 = vld [vmem:[#allocation6] sm:$0x1] }
 0x7f1   : > { %9968 = vmatpush3.msra.mxu0 %v14126_v22  ;;  %10002 = vmatprep.subr.msk.mxu1 %vm15596_vm13, %v10716_v59  ;;  %v15605_v22 = vld [vmem:[#allocation37_spill] sm:$0xff] }
 0x7f2   : > { %9969 = vmatprep.subr.mxu0 %v14246_v37  ;;  %10003 = vmatpush3.msk.msra.mxu1 %vm15597_vm14, %v10716_v59  ;;  %vm15606_vm11 = vcmp.eq.f32.partialorder %v14314_v34, %v15605_v22 }
 0x7f3   : > { %9970 = vmatpush3.msra.mxu0 %v14114_v56  ;;  %10004 = vmatprep.subr.msk.mxu1 %vm15598_vm15, %v10716_v59  ;;  %v15604_v56 = vld [vmem:[#allocation28_spill] sm:$0xff] }
 0x7f4   : > { %9971 = vmatprep.subr.mxu0 %v14239_v45  ;;  %10005 = vmatpush3.msk.msra.mxu1 %vm15599_vm0, %v10716_v59 }
 0x7f5   : > { %9972 = vmatpush3.msra.mxu0 %v14097_v30  ;;  %10006 = vmatprep.subr.msk.mxu1 %vm15600_vm2, %v10716_v59  ;;  %v15607_v30 = vld [vmem:[#allocation29_spill] sm:$0xff] }
 0x7f6   : > { %9973 = vmatprep.subr.mxu0 %v15601_v29  ;;  %10007 = vmatpush3.msk.msra.mxu1 %vm15603_vm3, %v10716_v59 }
 0x7f7   : > { %9974 = vmatpush3.msra.mxu0 %v15604_v56  ;;  %10008 = vmatprep.subr.msk.mxu1 %vm15606_vm11, %v10716_v59 }
 0x7f8   : > { %9975 = vmatprep.subr.mxu0 %v15607_v30  ;;  %10009 = vmatpush3.msk.msra.mxu1 %vm15609_vm12, %v10716_v59 }
 0x7f9   : > { %9976 = vmatpush3.msra.mxu0 %v15611_v57  ;;  %10010 = vmatprep.subr.msk.mxu1 %vm15613_vm5, %v10716_v59 }
 0x7fa   : > { %9977 = vmatprep.subr.mxu0 %v15615_v62  ;;  %10011 = vmatpush3.msk.msra.mxu1 %vm15617_vm4, %v10716_v59 }
 0x7fb   : > { %9978 = vmatpush3.msra.mxu0 %v15618_v7  ;;  %9387 = vmatprep.mubr.msk.f32.mxu0 %vm8256_vm1, %v10716_v59 }
 0x7fc   : > { %10012 = vmatprep.subr.msk.mxu1 %vm15620_vm7, %v10716_v59  ;;  %9388 = vmatmul.mubr.msk.f32.vlgmr.msra.gmra.mxu0 %vm8255_vm6, %v10716_v59 }
 0x7fd   : > { %10013 = vmatpush3.msk.msra.mxu1 %vm15622_vm8, %v10716_v59  ;;  %9421 = vmatprep.mubr.msk.f32.mxu1 %vm8256_vm1, %v10716_v59 }
 0x7fe   : > { %9422 = vmatmul.mubr.msk.f32.vlgmr.msra.gmra.mxu1 %vm8255_vm6, %v10716_v59 }
 0x8bc   : > { %v9979_v28 = vpop.f32.mrf.mxu0 }
 0x8be   : > { %v10014_v41 = vpop.f32.mrf.mxu1  ;;  %v9980_v45 = vpop.f32.mrf.mxu0 }
 0x8bf   : > { %v9981_v37 = vadd.f32 %v9980_v45, %v9979_v28 }
 0x8c0   : > { %v10015_v48 = vpop.f32.mrf.mxu1 }
 0x8c1   : > { %v8332_v46 = vadd.f32 %v9981_v37, %v8261_v50  ;;  %v10016_v54 = vadd.f32 %v10015_v48, %v10014_v41 }
 0x8c3   : > { %8334 = vst.msk [vmem:[#allocation4] sm:$0x1] %vm8333_vm9, %v8332_v46  ;;  %v8406_v18 = vadd.f32 %v10016_v54, %v8335_v58 }
 0x8c5   : > { %8407 = vst.msk [vmem:[#allocation6] sm:$0x1] %vm8333_vm9, %v8406_v18 }
 0x8c6 PF: > { %p14886_p7 = scmp.eq.s32.totalorder %s8481_s0, 1  ;;  %s10717_s22 = smov [#allocation4]  }
 0x8c7   : > { %s8417_s23 = sshll.u32 %s10717_s22, 4  ;;  %s10718_s24 = smov [#allocation6]   ;;  %s8418_s23 = int_to_ptr.vmem [resolvable:$true] %s8417_s23 }
 0x8c8   : > { %s8430_s25 = sshll.u32 %s10718_s24, 4  ;;  %s10634_s27 = scalar_lea.vmem %s8418_s23, 16  ;;  %s8431_s25 = int_to_ptr.vmem [resolvable:$true] %s8430_s25 }
 0x8c9   : > { %p10635_p8 = scmp.ne.s32.totalorder %s8418_s23, %s10634_s27  ;;  %s10640_s28 = scalar_lea.vmem %s8418_s23, 32 }
 0x8ca   : > { %p10641_p11 = scmp.lt.s32.totalorder %s8418_s23, %s8418_s23  ;;  %p10642_p12 = scmp.lt.s32.totalorder %s10640_s28, %s10634_s27 }
 0x8cb   : > { %p10636_p9 = pnand %p10635_p8, %p14886_p7 }
 0x8cc   : > { %p10643_p13 = por %p10642_p12, %p10641_p11 }
 0x8cd   : > { %p10637_p10 = pneg %p10636_p9 }
 0x8cf   : > { %p10644_p0 = pnand %p10643_p13, %p10637_p10 }
 0x8d1   : > { %10647 = shalt.err (!%p10644_p0)
}
 0x8d2   : > { %10018 = dma.vmem_to_hbm [thread:$0]  (%p14886_p7), %s8418_s23, 16, %s14924_s3, [#allocation5]  }
 0x8d3   : > { %s10658_s30 = scalar_lea.vmem %s8431_s25, 16  ;;  %s10664_s5 = scalar_lea.vmem %s8431_s25, 32 }
 0x8d4   : > { %p10659_p1 = scmp.ne.s32.totalorder %s8431_s25, %s10658_s30  ;;  %p10665_p4 = scmp.lt.s32.totalorder %s8431_s25, %s8431_s25 }
 0x8d5   : > { %p10666_p5 = scmp.lt.s32.totalorder %s10664_s5, %s10658_s30 }
 0x8d6   : > { %p10660_p2 = pnand %p10659_p1, %p14886_p7 }
 0x8d7   : > { %p10667_p6 = por %p10666_p5, %p10665_p4 }
 0x8d8   : > { %p10661_p3 = pneg %p10660_p2 }
 0x8da   : > { %p10668_p8 = pnand %p10667_p6, %p10661_p3 }
 0x8dc   : > { %10671 = shalt.err (!%p10668_p8)
}
 0x8dd   : > { %10020 = dma.vmem_to_hbm [thread:$0]  (%p14886_p7), %s8431_s25, 16, %s14925_s4, [#allocation7]  }
 0x8de   : > { %10695 = dma.done.wait (%p14886_p7), [#allocation5], 16  }
 0x8df   : > { %10697 = vsyncadd (%p14886_p7), [#allocation5], 4294967280 }
 0x8e0   : > { %10699 = dma.done.wait (%p14886_p7), [#allocation7], 16  }
 0x8e1   : > { %10701 = vsyncadd (%p14886_p7), [#allocation7], 4294967280 }
 0x8e2 PF: > { %s18_s19 = sadd.s32 1, %s10712_s19   ;;  %s15624_s17 = smov %s10708_s18 }
 0x8e3   : > { %p15_p9 = scmp.ge.s32.totalorder %s18_s19, 4   ;;  %s15625_s18 = smov %s15627_s20 }
 0x8e5   :  { %17 = sbr.rel (!%p15_p9) target bundleno = 5 (0x5), region = 74 }
 0x8ea   :  { %8447 = vsyncpa [#allocation5], 1 }
 0x8eb   :  { %8449 = vsyncpa [#allocation5 + $0x1], 1 }
 0x8ec   :  { %8450 = vsyncpa [#allocation7], 1 }

</bundles_post_ra>
